<compile_context>
chip_gen: v6e
topology: v6e:2x2x1
jax: 0.10.0
libtpu: 0.0.40
codegen_flags: <defaults>
</compile_context>

<pallas_src>
import functools
import math

import jax
import jax.numpy as jnp
from jax.experimental import pallas as pl
from jax.experimental.pallas import tpu as pltpu

F32 = jnp.float32
BF16 = jnp.bfloat16

_VMEM_LIMIT = 48 * 1024 * 1024  # within every generation's physical VMEM
_COMPILER_PARAMS = pltpu.CompilerParams(
    dimension_semantics=("parallel",), vmem_limit_bytes=_VMEM_LIMIT)


# ---------------------------------------------------------------------------
# In-kernel math helpers
# ---------------------------------------------------------------------------
def _gelu(x):
    # TODO(synk): PyTorch F.gelu defaults to the exact erf form; the tanh
    # approximation (routed through the EUP) differs by <1e-3.
    c = 0.7978845608028654  # sqrt(2/pi)
    return 0.5 * x * (1.0 + jnp.tanh(c * (x + 0.044715 * x * x * x)))


def _layernorm(x, g, b, eps=1e-5):
    mu = jnp.mean(x, axis=-1, keepdims=True)
    xc = x - mu
    var = jnp.mean(xc * xc, axis=-1, keepdims=True)
    return xc * jax.lax.rsqrt(var + eps) * g + b


def _attention(xq, xkv, wq, wk, wv, bq, bk, bv, wo, bo, n_heads):
    # xq: [Lq, D] f32, xkv: [Lk, D] f32
    # wq/wk/wv: [H, D, dh] bf16 refs; bq/bk/bv: [H, 1, dh] f32 refs
    # wo: [D, D] bf16 ref; bo: [1, D] f32 ref
    dh = wq.shape[-1]
    scale = 1.0 / math.sqrt(dh)
    xq_b = xq.astype(BF16)
    xkv_b = xq_b if xkv is xq else xkv.astype(BF16)

    def project(xb, w_ref, b_ref):
        # Per-head [L, D] @ [D, dh] matmuls (full-width contraction, no
        # lane-offset slicing) stacked into a head-major [H, L, dh] tensor.
        # TODO(synk): at production dh=64 heads could be grouped in pairs to
        # fill the 128/256-wide MXU N dimension.
        hs = [jnp.dot(xb, w_ref[h], preferred_element_type=F32)
              for h in range(n_heads)]
        return jnp.stack(hs, axis=0) + b_ref[...]

    qh = project(xq_b, wq, bq)                               # [H, Lq, dh]
    kh = project(xkv_b, wk, bk)                              # [H, Lk, dh]
    vh = project(xkv_b, wv, bv)

    # Head-batched score / PV matmuls (single dot_generals with a head batch
    # dim); softmax math stays f32 with exact normalization.
    s = jnp.einsum("hqd,hkd->hqk", qh.astype(BF16), kh.astype(BF16),
                   preferred_element_type=F32) * scale
    s = s - jnp.max(s, axis=-1, keepdims=True)
    p = jnp.exp(s)
    p = p / jnp.sum(p, axis=-1, keepdims=True)
    o = jnp.einsum("hqk,hkd->hqd", p.astype(BF16), vh.astype(BF16),
                   preferred_element_type=F32)               # [H, Lq, dh]

    # Output projection groups all heads: one full-width [Lq, D] @ [D, D].
    o_flat = jnp.concatenate([o[h] for h in range(n_heads)], axis=-1)
    return jnp.dot(o_flat.astype(BF16), wo[...],
                   preferred_element_type=F32) + bo[...]


def _ffn(x, w1, b1, w2, b2):
    # conv1(k=1) -> gelu -> conv2(k=1); kernel-size-1 Conv1d == pointwise linear
    h = _gelu(jnp.dot(x.astype(BF16), w1[...],
                      preferred_element_type=F32) + b1[...])
    return jnp.dot(h.astype(BF16), w2[...],
                   preferred_element_type=F32) + b2[...]


def _distil_conv_pool(x, cw, cb, pool_ref, l_out):
    # ConvLayer: circular Conv1d(k=3, pad=1) with BatchNorm1d(eval) folded
    # into the weights, done as three [L,C]@[C,C] tap matmuls on circularly
    # shifted inputs (no 3C-wide lane concat); ELU; MaxPool1d(k=3, s=2, p=1).
    L, C = x.shape
    x_prev = jnp.concatenate([x[L - 1:], x[:L - 1]], axis=0)  # x[(l-1) mod L]
    x_next = jnp.concatenate([x[1:], x[:1]], axis=0)          # x[(l+1) mod L]
    y = (jnp.dot(x_prev.astype(BF16), cw[0], preferred_element_type=F32)
         + jnp.dot(x.astype(BF16), cw[1], preferred_element_type=F32)
         + jnp.dot(x_next.astype(BF16), cw[2], preferred_element_type=F32)
         + cb[...])
    y = jnp.where(y > 0, y, jnp.exp(jnp.minimum(y, 0.0)) - 1.0)  # ELU(alpha=1)
    # rolling window-3 max with -inf edge padding (MaxPool1d padding semantics)
    neg = jnp.full((1, C), -1e30, dtype=y.dtype)
    y_up = jnp.concatenate([neg, y[:L - 1]], axis=0)          # y[j-1]
    y_dn = jnp.concatenate([y[1:], neg], axis=0)              # y[j+1]
    pool_ref[...] = jnp.maximum(jnp.maximum(y_up, y), y_dn)   # [L, C]
    # stride-2 subsample via sublane-strided read (rows 0, 2, 4, ...)
    return pool_ref[pl.ds(0, l_out, stride=2), :]


# ---------------------------------------------------------------------------
# Fused per-layer kernels (grid=(B,), "parallel")
# ---------------------------------------------------------------------------
def _enc_layer_kernel(*refs, n_heads, with_embed, with_conv, with_final_norm,
                      l_out):
    it = iter(refs)
    x_ref = next(it)
    if with_embed:
        ew, eb, pe = next(it), next(it), next(it)
    wq, wk, wv = next(it), next(it), next(it)
    bq, bk, bv = next(it), next(it), next(it)
    wo, bo = next(it), next(it)
    ln1g, ln1b = next(it), next(it)
    w1, b1, w2, b2 = next(it), next(it), next(it), next(it)
    ln2g, ln2b = next(it), next(it)
    if with_final_norm:
        fng, fnb = next(it), next(it)
    if with_conv:
        cw, cb = next(it), next(it)
    o_ref = next(it)
    pool_ref = next(it) if with_conv else None

    if with_embed:
        # TODO(synk): TotalEmbedding source not provided in the reference
        # module; emulated as Linear(input_features -> d_model) + sinusoidal
        # positional encoding (dropout = 0.0 -> identity).
        x = (jnp.dot(x_ref[0], ew[...], preferred_element_type=F32)
             + eb[...] + pe[...])
    else:
        x = x_ref[0]                                           # [L, D]

    att = _attention(x, x, wq, wk, wv, bq, bk, bv, wo, bo, n_heads)
    x = _layernorm(x + att, ln1g[...], ln1b[...])
    y = _ffn(x, w1, b1, w2, b2)
    x = _layernorm(x + y, ln2g[...], ln2b[...])
    if with_final_norm:
        x = _layernorm(x, fng[...], fnb[...])                  # Encoder.norm
    if with_conv:
        x = _distil_conv_pool(x, cw, cb, pool_ref, l_out)
    o_ref[0] = x


def _dec_layer_kernel(*refs, n_heads, with_embed, with_final_norm):
    it = iter(refs)
    x_ref = next(it)
    cr_ref = next(it)
    if with_embed:
        ew, eb, pe = next(it), next(it), next(it)
    s_wq, s_wk, s_wv, s_bq, s_bk, s_bv, s_wo, s_bo = [next(it) for _ in range(8)]
    ln1g, ln1b = next(it), next(it)
    c_wq, c_wk, c_wv, c_bq, c_bk, c_bv, c_wo, c_bo = [next(it) for _ in range(8)]
    ln2g, ln2b = next(it), next(it)
    w1, b1, w2, b2 = next(it), next(it), next(it), next(it)
    ln3g, ln3b = next(it), next(it)
    if with_final_norm:
        fng, fnb = next(it), next(it)
    o_ref = next(it)

    if with_embed:
        x = (jnp.dot(x_ref[0], ew[...], preferred_element_type=F32)
             + eb[...] + pe[...])
    else:
        x = x_ref[0]                                           # [Ld, D]
    cross = cr_ref[0]                                          # [Lc, D]

    # self-attention (reference forward passes tgt_mask=None -> no causal mask)
    att = _attention(x, x, s_wq, s_wk, s_wv, s_bq, s_bk, s_bv,
                     s_wo, s_bo, n_heads)
    x = _layernorm(x + att, ln1g[...], ln1b[...])
    # cross-attention
    att = _attention(x, cross, c_wq, c_wk, c_wv, c_bq, c_bk, c_bv,
                     c_wo, c_bo, n_heads)
    x = _layernorm(x + att, ln2g[...], ln2b[...])
    # FFN
    y = _ffn(x, w1, b1, w2, b2)
    x = _layernorm(x + y, ln3g[...], ln3b[...])
    if with_final_norm:
        x = _layernorm(x, fng[...], fnb[...])                  # Decoder.norm
    o_ref[0] = x


# ---------------------------------------------------------------------------
# Wrappers (one pallas_call per layer)
# ---------------------------------------------------------------------------
def _rep_spec(arr):
    n = arr.ndim
    return pl.BlockSpec(tuple(arr.shape), lambda b, _n=n: (0,) * _n)


def _fold_bn(conv, eps=1e-5):
    # Fold BatchNorm1d (eval-mode running stats) into the conv tap matrices.
    scale = conv["bn_gamma"] * jax.lax.rsqrt(conv["bn_var"] + eps)     # [C]
    w = (conv["w"] * scale[None, None, :]).astype(BF16)                # [3,C,C]
    b = conv["b"] * scale + conv["bn_beta"] - conv["bn_mean"] * scale
    return w, b.reshape(1, -1).astype(F32)


def encoder_layer(x, p, n_heads, *, embed=None, conv=None, final_norm=None):
    B, L = x.shape[0], x.shape[1]
    a = p["attn"]
    D = a["wo"].shape[0]
    Fd = p["w1"].shape[1]

    inputs = [x]
    if embed is not None:
        inputs += [embed["w"], embed["b"].reshape(1, D), embed["pe"][:L]]
    inputs += [a["wq"], a["wk"], a["wv"], a["bq"], a["bk"], a["bv"],
               a["wo"], a["bo"].reshape(1, D),
               p["ln1_g"].reshape(1, D), p["ln1_b"].reshape(1, D),
               p["w1"], p["b1"].reshape(1, Fd), p["w2"], p["b2"].reshape(1, D),
               p["ln2_g"].reshape(1, D), p["ln2_b"].reshape(1, D)]
    if final_norm is not None:
        fg, fb = final_norm
        inputs += [fg.reshape(1, D), fb.reshape(1, D)]
    if conv is not None:
        cw, cb = _fold_bn(conv)
        inputs += [cw, cb]
        l_out = (L - 1) // 2 + 1          # MaxPool1d(k=3, stride=2, pad=1)
    else:
        l_out = L

    in_specs = [pl.BlockSpec((1, L, x.shape[2]), lambda b: (b, 0, 0))]
    in_specs += [_rep_spec(arr) for arr in inputs[1:]]
    scratch = [pltpu.VMEM((L, D), F32)] if conv is not None else []

    return pl.pallas_call(
        functools.partial(_enc_layer_kernel, n_heads=n_heads,
                          with_embed=embed is not None,
                          with_conv=conv is not None,
                          with_final_norm=final_norm is not None,
                          l_out=l_out),
        grid=(B,),
        in_specs=in_specs,
        out_specs=pl.BlockSpec((1, l_out, D), lambda b: (b, 0, 0)),
        out_shape=jax.ShapeDtypeStruct((B, l_out, D), F32),
        scratch_shapes=scratch,
        compiler_params=_COMPILER_PARAMS,
    )(*inputs)


def decoder_layer(x, cross, p, n_heads, *, embed=None, final_norm=None):
    B, Ld = x.shape[0], x.shape[1]
    Lc = cross.shape[1]
    sa, ca = p["self_attn"], p["cross_attn"]
    D = sa["wo"].shape[0]
    Fd = p["w1"].shape[1]

    inputs = [x, cross]
    if embed is not None:
        inputs += [embed["w"], embed["b"].reshape(1, D), embed["pe"][:Ld]]
    inputs += [sa["wq"], sa["wk"], sa["wv"], sa["bq"], sa["bk"], sa["bv"],
               sa["wo"], sa["bo"].reshape(1, D),
               p["ln1_g"].reshape(1, D), p["ln1_b"].reshape(1, D),
               ca["wq"], ca["wk"], ca["wv"], ca["bq"], ca["bk"], ca["bv"],
               ca["wo"], ca["bo"].reshape(1, D),
               p["ln2_g"].reshape(1, D), p["ln2_b"].reshape(1, D),
               p["w1"], p["b1"].reshape(1, Fd), p["w2"], p["b2"].reshape(1, D),
               p["ln3_g"].reshape(1, D), p["ln3_b"].reshape(1, D)]
    if final_norm is not None:
        fg, fb = final_norm
        inputs += [fg.reshape(1, D), fb.reshape(1, D)]

    in_specs = [pl.BlockSpec((1, Ld, x.shape[2]), lambda b: (b, 0, 0)),
                pl.BlockSpec((1, Lc, D), lambda b: (b, 0, 0))]
    in_specs += [_rep_spec(arr) for arr in inputs[2:]]

    return pl.pallas_call(
        functools.partial(_dec_layer_kernel, n_heads=n_heads,
                          with_embed=embed is not None,
                          with_final_norm=final_norm is not None),
        grid=(B,),
        in_specs=in_specs,
        out_specs=pl.BlockSpec((1, Ld, D), lambda b: (b, 0, 0)),
        out_shape=jax.ShapeDtypeStruct((B, Ld, D), F32),
        compiler_params=_COMPILER_PARAMS,
    )(*inputs)


# ---------------------------------------------------------------------------
# Model assembly
# ---------------------------------------------------------------------------
def informer_forward(params, enc_in, dec_in, n_heads):
    e_layers = len(params["enc_layers"])
    n_convs = len(params["enc_convs"])
    enc = enc_in
    for i, lp in enumerate(params["enc_layers"]):
        enc = encoder_layer(
            enc, lp, n_heads,
            embed=params["enc_emb"] if i == 0 else None,
            conv=params["enc_convs"][i] if i < n_convs else None,
            final_norm=((params["enc_norm_g"], params["enc_norm_b"])
                        if i == e_layers - 1 else None))

    d_layers = len(params["dec_layers"])
    dec = dec_in
    for i, lp in enumerate(params["dec_layers"]):
        dec = decoder_layer(
            dec, enc, lp, n_heads,
            embed=params["dec_emb"] if i == 0 else None,
            final_norm=((params["dec_norm_g"], params["dec_norm_b"])
                        if i == d_layers - 1 else None))

    # Final Linear(D -> 1) projection in plain XLA (keeps the kernel output
    # lane-dense instead of a width-1 masked store), then dec_out[:, :, 0].
    out = jnp.einsum("bld,do->blo", dec, params["proj_w"]) + params["proj_b"]
    return out[:, :, 0]


# ---------------------------------------------------------------------------
# Deterministic parameter init (kernel-friendly layouts)
# ---------------------------------------------------------------------------
def init_params(key, Fin, D, Fd, n_heads, e_layers, d_layers, max_len=64):
    keys = iter(jax.random.split(key, 512))
    dh = D // n_heads

    def lin(fan_in, fan_out):
        w = jax.random.normal(next(keys), (fan_in, fan_out), F32) / math.sqrt(fan_in)
        b = jax.random.normal(next(keys), (fan_out,), F32) * 0.01
        return w, b

    def split_w(w):   # [D, D] -> per-head lane-aligned [H, D, dh], bf16
        return w.reshape(D, n_heads, dh).transpose(1, 0, 2).astype(BF16)

    def split_b(b):   # [D] -> [H, 1, dh]
        return b.reshape(n_heads, 1, dh)

    def attn_params():
        # PyTorch MultiheadAttention in_proj (q|k|v) + out_proj, pre-split per
        # head; matmul weights stored bf16, biases/LN stay f32.
        wq, bq = lin(D, D)
        wk, bk = lin(D, D)
        wv, bv = lin(D, D)
        wo, bo = lin(D, D)
        return dict(wq=split_w(wq), wk=split_w(wk), wv=split_w(wv),
                    bq=split_b(bq), bk=split_b(bk), bv=split_b(bv),
                    wo=wo.astype(BF16), bo=bo)

    pos = jnp.arange(max_len, dtype=F32)[:, None]
    div = jnp.exp(jnp.arange(0, D, 2, dtype=F32) * (-math.log(10000.0) / D))
    pe = jnp.zeros((max_len, D), F32)
    pe = pe.at[:, 0::2].set(jnp.sin(pos * div))
    pe = pe.at[:, 1::2].set(jnp.cos(pos * div))

    def embedding_params():
        w, b = lin(Fin, D)
        return dict(w=w, b=b, pe=pe)

    def enc_layer_params():
        w1, b1 = lin(D, Fd)
        w2, b2 = lin(Fd, D)
        return dict(attn=attn_params(),
                    w1=w1.astype(BF16), b1=b1, w2=w2.astype(BF16), b2=b2,
                    ln1_g=jnp.ones((D,), F32), ln1_b=jnp.zeros((D,), F32),
                    ln2_g=jnp.ones((D,), F32), ln2_b=jnp.zeros((D,), F32))

    def dec_layer_params():
        w1, b1 = lin(D, Fd)
        w2, b2 = lin(Fd, D)
        return dict(self_attn=attn_params(), cross_attn=attn_params(),
                    w1=w1.astype(BF16), b1=b1, w2=w2.astype(BF16), b2=b2,
                    ln1_g=jnp.ones((D,), F32), ln1_b=jnp.zeros((D,), F32),
                    ln2_g=jnp.ones((D,), F32), ln2_b=jnp.zeros((D,), F32),
                    ln3_g=jnp.ones((D,), F32), ln3_b=jnp.zeros((D,), F32))

    def conv_layer_params():
        # w[t] is the [C_in, C_out] tap-t matrix of a circular Conv1d(k=3)
        # (tap 0 -> left neighbor, tap 1 -> center, tap 2 -> right neighbor)
        w = jax.random.normal(next(keys), (3, D, D), F32) / math.sqrt(3 * D)
        b = jax.random.normal(next(keys), (D,), F32) * 0.01
        return dict(w=w, b=b,
                    bn_gamma=jnp.ones((D,), F32), bn_beta=jnp.zeros((D,), F32),
                    bn_mean=jnp.zeros((D,), F32), bn_var=jnp.ones((D,), F32))

    pw, pb = lin(D, 1)
    return dict(
        enc_emb=embedding_params(),
        dec_emb=embedding_params(),
        enc_layers=[enc_layer_params() for _ in range(e_layers)],
        enc_convs=[conv_layer_params() for _ in range(e_layers - 1)],
        enc_norm_g=jnp.ones((D,), F32), enc_norm_b=jnp.zeros((D,), F32),
        dec_layers=[dec_layer_params() for _ in range(d_layers)],
        dec_norm_g=jnp.ones((D,), F32), dec_norm_b=jnp.zeros((D,), F32),
        proj_w=pw, proj_b=pb,
    )


if __name__ == "__main__":
    key = jax.random.PRNGKey(0)
    B, Fin = 2, 4                 # batch, input_features_count
    D, n_heads, Fd = 32, 4, 32    # d_model, n_heads, d_ff
    e_layers, d_layers = 2, 2
    L_enc, L_dec = 16, 8

    k_params, k_enc, k_dec = jax.random.split(key, 3)
    params = init_params(k_params, Fin, D, Fd, n_heads, e_layers, d_layers)
    enc_in = jax.random.normal(k_enc, (B, L_enc, Fin), F32)
    dec_in = jax.random.normal(k_dec, (B, L_dec, Fin), F32)

    fwd = jax.jit(informer_forward, static_argnames=("n_heads",))
    out = fwd(params, enc_in, dec_in, n_heads=n_heads)
    out = jax.block_until_ready(out)
    assert out.shape == (B, L_dec), out.shape
    assert bool(jnp.all(jnp.isfinite(out)))
    print("KERNEL_OK")
</pallas_src>

<mosaic_0001>
module attributes {stable_mosaic.version = 11 : i64} {
  func.func @_enc_layer_kernel(%arg0: i32, %arg1: memref<1x8x32xf32, #tpu.memory_space<vmem>>, %arg2: memref<4x32x8xbf16, #tpu.memory_space<vmem>>, %arg3: memref<4x32x8xbf16, #tpu.memory_space<vmem>>, %arg4: memref<4x32x8xbf16, #tpu.memory_space<vmem>>, %arg5: memref<4x1x8xf32, #tpu.memory_space<vmem>>, %arg6: memref<4x1x8xf32, #tpu.memory_space<vmem>>, %arg7: memref<4x1x8xf32, #tpu.memory_space<vmem>>, %arg8: memref<32x32xbf16, #tpu.memory_space<vmem>>, %arg9: memref<1x32xf32, #tpu.memory_space<vmem>>, %arg10: memref<1x32xf32, #tpu.memory_space<vmem>>, %arg11: memref<1x32xf32, #tpu.memory_space<vmem>>, %arg12: memref<32x32xbf16, #tpu.memory_space<vmem>>, %arg13: memref<1x32xf32, #tpu.memory_space<vmem>>, %arg14: memref<32x32xbf16, #tpu.memory_space<vmem>>, %arg15: memref<1x32xf32, #tpu.memory_space<vmem>>, %arg16: memref<1x32xf32, #tpu.memory_space<vmem>>, %arg17: memref<1x32xf32, #tpu.memory_space<vmem>>, %arg18: memref<1x32xf32, #tpu.memory_space<vmem>>, %arg19: memref<1x32xf32, #tpu.memory_space<vmem>>, %arg20: memref<1x8x32xf32, #tpu.memory_space<vmem>>) attributes {dimension_semantics = [#tpu.dimension_semantics<parallel>], iteration_bounds = array<i64: 2>, scalar_prefetch = 0 : i64, scratch_operands = 0 : i64, tpu.core_type = #tpu.core_type<tc>, window_params = [{transform_indices = @transform_0, window_bounds = array<i64: 1, 8, 32>}, {pipeline_mode = #tpu.pipeline_mode<synchronous>, transform_indices = @transform_1, window_bounds = array<i64: 4, 32, 8>}, {pipeline_mode = #tpu.pipeline_mode<synchronous>, transform_indices = @transform_2, window_bounds = array<i64: 4, 32, 8>}, {pipeline_mode = #tpu.pipeline_mode<synchronous>, transform_indices = @transform_3, window_bounds = array<i64: 4, 32, 8>}, {pipeline_mode = #tpu.pipeline_mode<synchronous>, transform_indices = @transform_4, window_bounds = array<i64: 4, 1, 8>}, {pipeline_mode = #tpu.pipeline_mode<synchronous>, transform_indices = @transform_5, window_bounds = array<i64: 4, 1, 8>}, {pipeline_mode = #tpu.pipeline_mode<synchronous>, transform_indices = @transform_6, window_bounds = array<i64: 4, 1, 8>}, {pipeline_mode = #tpu.pipeline_mode<synchronous>, transform_indices = @transform_7, window_bounds = array<i64: 32, 32>}, {pipeline_mode = #tpu.pipeline_mode<synchronous>, transform_indices = @transform_8, window_bounds = array<i64: 1, 32>}, {pipeline_mode = #tpu.pipeline_mode<synchronous>, transform_indices = @transform_9, window_bounds = array<i64: 1, 32>}, {pipeline_mode = #tpu.pipeline_mode<synchronous>, transform_indices = @transform_10, window_bounds = array<i64: 1, 32>}, {pipeline_mode = #tpu.pipeline_mode<synchronous>, transform_indices = @transform_11, window_bounds = array<i64: 32, 32>}, {pipeline_mode = #tpu.pipeline_mode<synchronous>, transform_indices = @transform_12, window_bounds = array<i64: 1, 32>}, {pipeline_mode = #tpu.pipeline_mode<synchronous>, transform_indices = @transform_13, window_bounds = array<i64: 32, 32>}, {pipeline_mode = #tpu.pipeline_mode<synchronous>, transform_indices = @transform_14, window_bounds = array<i64: 1, 32>}, {pipeline_mode = #tpu.pipeline_mode<synchronous>, transform_indices = @transform_15, window_bounds = array<i64: 1, 32>}, {pipeline_mode = #tpu.pipeline_mode<synchronous>, transform_indices = @transform_16, window_bounds = array<i64: 1, 32>}, {pipeline_mode = #tpu.pipeline_mode<synchronous>, transform_indices = @transform_17, window_bounds = array<i64: 1, 32>}, {pipeline_mode = #tpu.pipeline_mode<synchronous>, transform_indices = @transform_18, window_bounds = array<i64: 1, 32>}, {transform_indices = @transform_19, window_bounds = array<i64: 1, 8, 32>}]} {
    %c0 = arith.constant 0 : index
    %c0_0 = arith.constant 0 : index
    %c0_1 = arith.constant 0 : index
    %0 = vector.load %arg1[%c0, %c0_0, %c0_1] : memref<1x8x32xf32, #tpu.memory_space<vmem>>, vector<1x8x32xf32>
    %1 = vector.shape_cast %0 : vector<1x8x32xf32> to vector<8x32xf32>
    %2 = arith.truncf %1 : vector<8x32xf32> to vector<8x32xbf16>
    %c0_2 = arith.constant 0 : index
    %c0_3 = arith.constant 0 : index
    %c0_4 = arith.constant 0 : index
    %3 = vector.load %arg2[%c0_2, %c0_3, %c0_4] : memref<4x32x8xbf16, #tpu.memory_space<vmem>>, vector<1x32x8xbf16>
    %4 = vector.shape_cast %3 : vector<1x32x8xbf16> to vector<32x8xbf16>
    %cst = arith.constant dense<0.000000e+00> : vector<8x8xf32>
    %5 = tpu.matmul %2, %4, %cst {dimension_numbers = #tpu.dot_dimension_numbers<[1], [0], [0], [1], [0, 0, 1, 1], [], []>} : vector<8x32xbf16>, vector<32x8xbf16>, vector<8x8xf32> -> vector<8x8xf32>
    %c1 = arith.constant 1 : index
    %c0_5 = arith.constant 0 : index
    %c0_6 = arith.constant 0 : index
    %6 = vector.load %arg2[%c1, %c0_5, %c0_6] : memref<4x32x8xbf16, #tpu.memory_space<vmem>>, vector<1x32x8xbf16>
    %7 = vector.shape_cast %6 : vector<1x32x8xbf16> to vector<32x8xbf16>
    %cst_7 = arith.constant dense<0.000000e+00> : vector<8x8xf32>
    %8 = tpu.matmul %2, %7, %cst_7 {dimension_numbers = #tpu.dot_dimension_numbers<[1], [0], [0], [1], [0, 0, 1, 1], [], []>} : vector<8x32xbf16>, vector<32x8xbf16>, vector<8x8xf32> -> vector<8x8xf32>
    %c2 = arith.constant 2 : index
    %c0_8 = arith.constant 0 : index
    %c0_9 = arith.constant 0 : index
    %9 = vector.load %arg2[%c2, %c0_8, %c0_9] : memref<4x32x8xbf16, #tpu.memory_space<vmem>>, vector<1x32x8xbf16>
    %10 = vector.shape_cast %9 : vector<1x32x8xbf16> to vector<32x8xbf16>
    %cst_10 = arith.constant dense<0.000000e+00> : vector<8x8xf32>
    %11 = tpu.matmul %2, %10, %cst_10 {dimension_numbers = #tpu.dot_dimension_numbers<[1], [0], [0], [1], [0, 0, 1, 1], [], []>} : vector<8x32xbf16>, vector<32x8xbf16>, vector<8x8xf32> -> vector<8x8xf32>
    %c3 = arith.constant 3 : index
    %c0_11 = arith.constant 0 : index
    %c0_12 = arith.constant 0 : index
    %12 = vector.load %arg2[%c3, %c0_11, %c0_12] : memref<4x32x8xbf16, #tpu.memory_space<vmem>>, vector<1x32x8xbf16>
    %13 = vector.shape_cast %12 : vector<1x32x8xbf16> to vector<32x8xbf16>
    %cst_13 = arith.constant dense<0.000000e+00> : vector<8x8xf32>
    %14 = tpu.matmul %2, %13, %cst_13 {dimension_numbers = #tpu.dot_dimension_numbers<[1], [0], [0], [1], [0, 0, 1, 1], [], []>} : vector<8x32xbf16>, vector<32x8xbf16>, vector<8x8xf32> -> vector<8x8xf32>
    %15 = vector.shape_cast %5 : vector<8x8xf32> to vector<1x8x8xf32>
    %16 = vector.shape_cast %8 : vector<8x8xf32> to vector<1x8x8xf32>
    %17 = vector.shape_cast %11 : vector<8x8xf32> to vector<1x8x8xf32>
    %18 = vector.shape_cast %14 : vector<8x8xf32> to vector<1x8x8xf32>
    %19 = tpu.concatenate %15, %16, %17, %18 in 0 : vector<1x8x8xf32>, vector<1x8x8xf32>, vector<1x8x8xf32>, vector<1x8x8xf32> -> vector<4x8x8xf32>
    %c0_14 = arith.constant 0 : index
    %c0_15 = arith.constant 0 : index
    %c0_16 = arith.constant 0 : index
    %20 = vector.load %arg5[%c0_14, %c0_15, %c0_16] : memref<4x1x8xf32, #tpu.memory_space<vmem>>, vector<4x1x8xf32>
    %21 = vector.broadcast %20 : vector<4x1x8xf32> to vector<4x8x8xf32>
    %22 = arith.addf %19, %21 : vector<4x8x8xf32>
    %c0_17 = arith.constant 0 : index
    %c0_18 = arith.constant 0 : index
    %c0_19 = arith.constant 0 : index
    %23 = vector.load %arg3[%c0_17, %c0_18, %c0_19] : memref<4x32x8xbf16, #tpu.memory_space<vmem>>, vector<1x32x8xbf16>
    %24 = vector.shape_cast %23 : vector<1x32x8xbf16> to vector<32x8xbf16>
    %cst_20 = arith.constant dense<0.000000e+00> : vector<8x8xf32>
    %25 = tpu.matmul %2, %24, %cst_20 {dimension_numbers = #tpu.dot_dimension_numbers<[1], [0], [0], [1], [0, 0, 1, 1], [], []>} : vector<8x32xbf16>, vector<32x8xbf16>, vector<8x8xf32> -> vector<8x8xf32>
    %c1_21 = arith.constant 1 : index
    %c0_22 = arith.constant 0 : index
    %c0_23 = arith.constant 0 : index
    %26 = vector.load %arg3[%c1_21, %c0_22, %c0_23] : memref<4x32x8xbf16, #tpu.memory_space<vmem>>, vector<1x32x8xbf16>
    %27 = vector.shape_cast %26 : vector<1x32x8xbf16> to vector<32x8xbf16>
    %cst_24 = arith.constant dense<0.000000e+00> : vector<8x8xf32>
    %28 = tpu.matmul %2, %27, %cst_24 {dimension_numbers = #tpu.dot_dimension_numbers<[1], [0], [0], [1], [0, 0, 1, 1], [], []>} : vector<8x32xbf16>, vector<32x8xbf16>, vector<8x8xf32> -> vector<8x8xf32>
    %c2_25 = arith.constant 2 : index
    %c0_26 = arith.constant 0 : index
    %c0_27 = arith.constant 0 : index
    %29 = vector.load %arg3[%c2_25, %c0_26, %c0_27] : memref<4x32x8xbf16, #tpu.memory_space<vmem>>, vector<1x32x8xbf16>
    %30 = vector.shape_cast %29 : vector<1x32x8xbf16> to vector<32x8xbf16>
    %cst_28 = arith.constant dense<0.000000e+00> : vector<8x8xf32>
    %31 = tpu.matmul %2, %30, %cst_28 {dimension_numbers = #tpu.dot_dimension_numbers<[1], [0], [0], [1], [0, 0, 1, 1], [], []>} : vector<8x32xbf16>, vector<32x8xbf16>, vector<8x8xf32> -> vector<8x8xf32>
    %c3_29 = arith.constant 3 : index
    %c0_30 = arith.constant 0 : index
    %c0_31 = arith.constant 0 : index
    %32 = vector.load %arg3[%c3_29, %c0_30, %c0_31] : memref<4x32x8xbf16, #tpu.memory_space<vmem>>, vector<1x32x8xbf16>
    %33 = vector.shape_cast %32 : vector<1x32x8xbf16> to vector<32x8xbf16>
    %cst_32 = arith.constant dense<0.000000e+00> : vector<8x8xf32>
    %34 = tpu.matmul %2, %33, %cst_32 {dimension_numbers = #tpu.dot_dimension_numbers<[1], [0], [0], [1], [0, 0, 1, 1], [], []>} : vector<8x32xbf16>, vector<32x8xbf16>, vector<8x8xf32> -> vector<8x8xf32>
    %35 = vector.shape_cast %25 : vector<8x8xf32> to vector<1x8x8xf32>
    %36 = vector.shape_cast %28 : vector<8x8xf32> to vector<1x8x8xf32>
    %37 = vector.shape_cast %31 : vector<8x8xf32> to vector<1x8x8xf32>
    %38 = vector.shape_cast %34 : vector<8x8xf32> to vector<1x8x8xf32>
    %39 = tpu.concatenate %35, %36, %37, %38 in 0 : vector<1x8x8xf32>, vector<1x8x8xf32>, vector<1x8x8xf32>, vector<1x8x8xf32> -> vector<4x8x8xf32>
    %c0_33 = arith.constant 0 : index
    %c0_34 = arith.constant 0 : index
    %c0_35 = arith.constant 0 : index
    %40 = vector.load %arg6[%c0_33, %c0_34, %c0_35] : memref<4x1x8xf32, #tpu.memory_space<vmem>>, vector<4x1x8xf32>
    %41 = vector.broadcast %40 : vector<4x1x8xf32> to vector<4x8x8xf32>
    %42 = arith.addf %39, %41 : vector<4x8x8xf32>
    %c0_36 = arith.constant 0 : index
    %c0_37 = arith.constant 0 : index
    %c0_38 = arith.constant 0 : index
    %43 = vector.load %arg4[%c0_36, %c0_37, %c0_38] : memref<4x32x8xbf16, #tpu.memory_space<vmem>>, vector<1x32x8xbf16>
    %44 = vector.shape_cast %43 : vector<1x32x8xbf16> to vector<32x8xbf16>
    %cst_39 = arith.constant dense<0.000000e+00> : vector<8x8xf32>
    %45 = tpu.matmul %2, %44, %cst_39 {dimension_numbers = #tpu.dot_dimension_numbers<[1], [0], [0], [1], [0, 0, 1, 1], [], []>} : vector<8x32xbf16>, vector<32x8xbf16>, vector<8x8xf32> -> vector<8x8xf32>
    %c1_40 = arith.constant 1 : index
    %c0_41 = arith.constant 0 : index
    %c0_42 = arith.constant 0 : index
    %46 = vector.load %arg4[%c1_40, %c0_41, %c0_42] : memref<4x32x8xbf16, #tpu.memory_space<vmem>>, vector<1x32x8xbf16>
    %47 = vector.shape_cast %46 : vector<1x32x8xbf16> to vector<32x8xbf16>
    %cst_43 = arith.constant dense<0.000000e+00> : vector<8x8xf32>
    %48 = tpu.matmul %2, %47, %cst_43 {dimension_numbers = #tpu.dot_dimension_numbers<[1], [0], [0], [1], [0, 0, 1, 1], [], []>} : vector<8x32xbf16>, vector<32x8xbf16>, vector<8x8xf32> -> vector<8x8xf32>
    %c2_44 = arith.constant 2 : index
    %c0_45 = arith.constant 0 : index
    %c0_46 = arith.constant 0 : index
    %49 = vector.load %arg4[%c2_44, %c0_45, %c0_46] : memref<4x32x8xbf16, #tpu.memory_space<vmem>>, vector<1x32x8xbf16>
    %50 = vector.shape_cast %49 : vector<1x32x8xbf16> to vector<32x8xbf16>
    %cst_47 = arith.constant dense<0.000000e+00> : vector<8x8xf32>
    %51 = tpu.matmul %2, %50, %cst_47 {dimension_numbers = #tpu.dot_dimension_numbers<[1], [0], [0], [1], [0, 0, 1, 1], [], []>} : vector<8x32xbf16>, vector<32x8xbf16>, vector<8x8xf32> -> vector<8x8xf32>
    %c3_48 = arith.constant 3 : index
    %c0_49 = arith.constant 0 : index
    %c0_50 = arith.constant 0 : index
    %52 = vector.load %arg4[%c3_48, %c0_49, %c0_50] : memref<4x32x8xbf16, #tpu.memory_space<vmem>>, vector<1x32x8xbf16>
    %53 = vector.shape_cast %52 : vector<1x32x8xbf16> to vector<32x8xbf16>
    %cst_51 = arith.constant dense<0.000000e+00> : vector<8x8xf32>
    %54 = tpu.matmul %2, %53, %cst_51 {dimension_numbers = #tpu.dot_dimension_numbers<[1], [0], [0], [1], [0, 0, 1, 1], [], []>} : vector<8x32xbf16>, vector<32x8xbf16>, vector<8x8xf32> -> vector<8x8xf32>
    %55 = vector.shape_cast %45 : vector<8x8xf32> to vector<1x8x8xf32>
    %56 = vector.shape_cast %48 : vector<8x8xf32> to vector<1x8x8xf32>
    %57 = vector.shape_cast %51 : vector<8x8xf32> to vector<1x8x8xf32>
    %58 = vector.shape_cast %54 : vector<8x8xf32> to vector<1x8x8xf32>
    %59 = tpu.concatenate %55, %56, %57, %58 in 0 : vector<1x8x8xf32>, vector<1x8x8xf32>, vector<1x8x8xf32>, vector<1x8x8xf32> -> vector<4x8x8xf32>
    %c0_52 = arith.constant 0 : index
    %c0_53 = arith.constant 0 : index
    %c0_54 = arith.constant 0 : index
    %60 = vector.load %arg7[%c0_52, %c0_53, %c0_54] : memref<4x1x8xf32, #tpu.memory_space<vmem>>, vector<4x1x8xf32>
    %61 = vector.broadcast %60 : vector<4x1x8xf32> to vector<4x8x8xf32>
    %62 = arith.addf %59, %61 : vector<4x8x8xf32>
    %63 = arith.truncf %22 : vector<4x8x8xf32> to vector<4x8x8xbf16>
    %64 = arith.truncf %42 : vector<4x8x8xf32> to vector<4x8x8xbf16>
    "tpu.trace_start"() <{level = 10 : i32, message = "hqd,hkd->hqk"}> : () -> ()
    %cst_55 = arith.constant dense<0.000000e+00> : vector<4x8x8xf32>
    %65 = tpu.matmul %63, %64, %cst_55 {dimension_numbers = #tpu.dot_dimension_numbers<[2], [2], [1], [1], [0, 0, 0, 1, 1, 1], [0], [0]>} : vector<4x8x8xbf16>, vector<4x8x8xbf16>, vector<4x8x8xf32> -> vector<4x8x8xf32>
    "tpu.trace_stop"() : () -> ()
    %cst_56 = arith.constant 0.353553385 : f32
    %66 = vector.broadcast %cst_56 : f32 to vector<4x8x8xf32>
    %67 = arith.mulf %65, %66 : vector<4x8x8xf32>
    %cst_57 = arith.constant dense<0xFF800000> : vector<4x8xf32>
    %68 = vector.multi_reduction <maximumf>, %67, %cst_57 [2] : vector<4x8x8xf32> to vector<4x8xf32>
    %69 = vector.shape_cast %68 : vector<4x8xf32> to vector<4x8x1xf32>
    %70 = vector.broadcast %69 : vector<4x8x1xf32> to vector<4x8x8xf32>
    %71 = arith.subf %67, %70 : vector<4x8x8xf32>
    %72 = math.exp %71 : vector<4x8x8xf32>
    %cst_58 = arith.constant dense<0.000000e+00> : vector<4x8xf32>
    %73 = vector.multi_reduction <add>, %72, %cst_58 [2] : vector<4x8x8xf32> to vector<4x8xf32>
    %74 = vector.shape_cast %73 : vector<4x8xf32> to vector<4x8x1xf32>
    %75 = vector.broadcast %74 : vector<4x8x1xf32> to vector<4x8x8xf32>
    %76 = arith.divf %72, %75 : vector<4x8x8xf32>
    %77 = arith.truncf %76 : vector<4x8x8xf32> to vector<4x8x8xbf16>
    %78 = arith.truncf %62 : vector<4x8x8xf32> to vector<4x8x8xbf16>
    "tpu.trace_start"() <{level = 10 : i32, message = "hqk,hkd->hqd"}> : () -> ()
    %cst_59 = arith.constant dense<0.000000e+00> : vector<4x8x8xf32>
    %79 = tpu.matmul %77, %78, %cst_59 {dimension_numbers = #tpu.dot_dimension_numbers<[2], [1], [1], [2], [0, 0, 0, 1, 1, 2], [0], [0]>} : vector<4x8x8xbf16>, vector<4x8x8xbf16>, vector<4x8x8xf32> -> vector<4x8x8xf32>
    "tpu.trace_stop"() : () -> ()
    %80 = vector.extract_strided_slice %79 {offsets = [0, 0, 0], sizes = [1, 8, 8], strides = [1, 1, 1]} : vector<4x8x8xf32> to vector<1x8x8xf32>
    %81 = vector.shape_cast %80 : vector<1x8x8xf32> to vector<8x8xf32>
    %82 = vector.extract_strided_slice %79 {offsets = [1, 0, 0], sizes = [1, 8, 8], strides = [1, 1, 1]} : vector<4x8x8xf32> to vector<1x8x8xf32>
    %83 = vector.shape_cast %82 : vector<1x8x8xf32> to vector<8x8xf32>
    %84 = vector.extract_strided_slice %79 {offsets = [2, 0, 0], sizes = [1, 8, 8], strides = [1, 1, 1]} : vector<4x8x8xf32> to vector<1x8x8xf32>
    %85 = vector.shape_cast %84 : vector<1x8x8xf32> to vector<8x8xf32>
    %86 = vector.extract_strided_slice %79 {offsets = [3, 0, 0], sizes = [1, 8, 8], strides = [1, 1, 1]} : vector<4x8x8xf32> to vector<1x8x8xf32>
    %87 = vector.shape_cast %86 : vector<1x8x8xf32> to vector<8x8xf32>
    %88 = tpu.concatenate %81, %83, %85, %87 in 1 : vector<8x8xf32>, vector<8x8xf32>, vector<8x8xf32>, vector<8x8xf32> -> vector<8x32xf32>
    %89 = arith.truncf %88 : vector<8x32xf32> to vector<8x32xbf16>
    %c0_60 = arith.constant 0 : index
    %c0_61 = arith.constant 0 : index
    %90 = vector.load %arg8[%c0_60, %c0_61] : memref<32x32xbf16, #tpu.memory_space<vmem>>, vector<32x32xbf16>
    %cst_62 = arith.constant dense<0.000000e+00> : vector<8x32xf32>
    %91 = tpu.matmul %89, %90, %cst_62 {dimension_numbers = #tpu.dot_dimension_numbers<[1], [0], [0], [1], [0, 0, 1, 1], [], []>} : vector<8x32xbf16>, vector<32x32xbf16>, vector<8x32xf32> -> vector<8x32xf32>
    %c0_63 = arith.constant 0 : index
    %c0_64 = arith.constant 0 : index
    %92 = vector.load %arg9[%c0_63, %c0_64] : memref<1x32xf32, #tpu.memory_space<vmem>>, vector<1x32xf32>
    %93 = vector.broadcast %92 : vector<1x32xf32> to vector<8x32xf32>
    %94 = arith.addf %91, %93 : vector<8x32xf32>
    %95 = arith.addf %1, %94 : vector<8x32xf32>
    %c0_65 = arith.constant 0 : index
    %c0_66 = arith.constant 0 : index
    %96 = vector.load %arg10[%c0_65, %c0_66] : memref<1x32xf32, #tpu.memory_space<vmem>>, vector<1x32xf32>
    %c0_67 = arith.constant 0 : index
    %c0_68 = arith.constant 0 : index
    %97 = vector.load %arg11[%c0_67, %c0_68] : memref<1x32xf32, #tpu.memory_space<vmem>>, vector<1x32xf32>
    %cst_69 = arith.constant dense<0.000000e+00> : vector<8xf32>
    %98 = vector.multi_reduction <add>, %95, %cst_69 [1] : vector<8x32xf32> to vector<8xf32>
    %99 = vector.shape_cast %98 : vector<8xf32> to vector<8x1xf32>
    %cst_70 = arith.constant 3.200000e+01 : f32
    %100 = vector.broadcast %cst_70 : f32 to vector<8x1xf32>
    %101 = arith.divf %99, %100 : vector<8x1xf32>
    %102 = vector.broadcast %101 : vector<8x1xf32> to vector<8x32xf32>
    %103 = arith.subf %95, %102 : vector<8x32xf32>
    %104 = arith.mulf %103, %103 : vector<8x32xf32>
    %cst_71 = arith.constant dense<0.000000e+00> : vector<8xf32>
    %105 = vector.multi_reduction <add>, %104, %cst_71 [1] : vector<8x32xf32> to vector<8xf32>
    %106 = vector.shape_cast %105 : vector<8xf32> to vector<8x1xf32>
    %cst_72 = arith.constant 3.200000e+01 : f32
    %107 = vector.broadcast %cst_72 : f32 to vector<8x1xf32>
    %108 = arith.divf %106, %107 : vector<8x1xf32>
    %cst_73 = arith.constant 9.99999974E-6 : f32
    %109 = vector.broadcast %cst_73 : f32 to vector<8x1xf32>
    %110 = arith.addf %108, %109 : vector<8x1xf32>
    %111 = math.rsqrt %110 : vector<8x1xf32>
    %112 = vector.broadcast %111 : vector<8x1xf32> to vector<8x32xf32>
    %113 = arith.mulf %103, %112 : vector<8x32xf32>
    %114 = vector.broadcast %96 : vector<1x32xf32> to vector<8x32xf32>
    %115 = arith.mulf %113, %114 : vector<8x32xf32>
    %116 = vector.broadcast %97 : vector<1x32xf32> to vector<8x32xf32>
    %117 = arith.addf %115, %116 : vector<8x32xf32>
    %118 = arith.truncf %117 : vector<8x32xf32> to vector<8x32xbf16>
    %c0_74 = arith.constant 0 : index
    %c0_75 = arith.constant 0 : index
    %119 = vector.load %arg12[%c0_74, %c0_75] : memref<32x32xbf16, #tpu.memory_space<vmem>>, vector<32x32xbf16>
    %cst_76 = arith.constant dense<0.000000e+00> : vector<8x32xf32>
    %120 = tpu.matmul %118, %119, %cst_76 {dimension_numbers = #tpu.dot_dimension_numbers<[1], [0], [0], [1], [0, 0, 1, 1], [], []>} : vector<8x32xbf16>, vector<32x32xbf16>, vector<8x32xf32> -> vector<8x32xf32>
    %c0_77 = arith.constant 0 : index
    %c0_78 = arith.constant 0 : index
    %121 = vector.load %arg13[%c0_77, %c0_78] : memref<1x32xf32, #tpu.memory_space<vmem>>, vector<1x32xf32>
    %122 = vector.broadcast %121 : vector<1x32xf32> to vector<8x32xf32>
    %123 = arith.addf %120, %122 : vector<8x32xf32>
    %cst_79 = arith.constant 5.000000e-01 : f32
    %124 = vector.broadcast %cst_79 : f32 to vector<8x32xf32>
    %125 = arith.mulf %124, %123 : vector<8x32xf32>
    %cst_80 = arith.constant 4.471500e-02 : f32
    %126 = vector.broadcast %cst_80 : f32 to vector<8x32xf32>
    %127 = arith.mulf %126, %123 : vector<8x32xf32>
    %128 = arith.mulf %127, %123 : vector<8x32xf32>
    %129 = arith.mulf %128, %123 : vector<8x32xf32>
    %130 = arith.addf %123, %129 : vector<8x32xf32>
    %cst_81 = arith.constant 0.797884583 : f32
    %131 = vector.broadcast %cst_81 : f32 to vector<8x32xf32>
    %132 = arith.mulf %131, %130 : vector<8x32xf32>
    %133 = math.tanh %132 : vector<8x32xf32>
    %cst_82 = arith.constant 1.000000e+00 : f32
    %134 = vector.broadcast %cst_82 : f32 to vector<8x32xf32>
    %135 = arith.addf %134, %133 : vector<8x32xf32>
    %136 = arith.mulf %125, %135 : vector<8x32xf32>
    %137 = arith.truncf %136 : vector<8x32xf32> to vector<8x32xbf16>
    %c0_83 = arith.constant 0 : index
    %c0_84 = arith.constant 0 : index
    %138 = vector.load %arg14[%c0_83, %c0_84] : memref<32x32xbf16, #tpu.memory_space<vmem>>, vector<32x32xbf16>
    %cst_85 = arith.constant dense<0.000000e+00> : vector<8x32xf32>
    %139 = tpu.matmul %137, %138, %cst_85 {dimension_numbers = #tpu.dot_dimension_numbers<[1], [0], [0], [1], [0, 0, 1, 1], [], []>} : vector<8x32xbf16>, vector<32x32xbf16>, vector<8x32xf32> -> vector<8x32xf32>
    %c0_86 = arith.constant 0 : index
    %c0_87 = arith.constant 0 : index
    %140 = vector.load %arg15[%c0_86, %c0_87] : memref<1x32xf32, #tpu.memory_space<vmem>>, vector<1x32xf32>
    %141 = vector.broadcast %140 : vector<1x32xf32> to vector<8x32xf32>
    %142 = arith.addf %139, %141 : vector<8x32xf32>
    %143 = arith.addf %117, %142 : vector<8x32xf32>
    %c0_88 = arith.constant 0 : index
    %c0_89 = arith.constant 0 : index
    %144 = vector.load %arg16[%c0_88, %c0_89] : memref<1x32xf32, #tpu.memory_space<vmem>>, vector<1x32xf32>
    %c0_90 = arith.constant 0 : index
    %c0_91 = arith.constant 0 : index
    %145 = vector.load %arg17[%c0_90, %c0_91] : memref<1x32xf32, #tpu.memory_space<vmem>>, vector<1x32xf32>
    %cst_92 = arith.constant dense<0.000000e+00> : vector<8xf32>
    %146 = vector.multi_reduction <add>, %143, %cst_92 [1] : vector<8x32xf32> to vector<8xf32>
    %147 = vector.shape_cast %146 : vector<8xf32> to vector<8x1xf32>
    %cst_93 = arith.constant 3.200000e+01 : f32
    %148 = vector.broadcast %cst_93 : f32 to vector<8x1xf32>
    %149 = arith.divf %147, %148 : vector<8x1xf32>
    %150 = vector.broadcast %149 : vector<8x1xf32> to vector<8x32xf32>
    %151 = arith.subf %143, %150 : vector<8x32xf32>
    %152 = arith.mulf %151, %151 : vector<8x32xf32>
    %cst_94 = arith.constant dense<0.000000e+00> : vector<8xf32>
    %153 = vector.multi_reduction <add>, %152, %cst_94 [1] : vector<8x32xf32> to vector<8xf32>
    %154 = vector.shape_cast %153 : vector<8xf32> to vector<8x1xf32>
    %cst_95 = arith.constant 3.200000e+01 : f32
    %155 = vector.broadcast %cst_95 : f32 to vector<8x1xf32>
    %156 = arith.divf %154, %155 : vector<8x1xf32>
    %cst_96 = arith.constant 9.99999974E-6 : f32
    %157 = vector.broadcast %cst_96 : f32 to vector<8x1xf32>
    %158 = arith.addf %156, %157 : vector<8x1xf32>
    %159 = math.rsqrt %158 : vector<8x1xf32>
    %160 = vector.broadcast %159 : vector<8x1xf32> to vector<8x32xf32>
    %161 = arith.mulf %151, %160 : vector<8x32xf32>
    %162 = vector.broadcast %144 : vector<1x32xf32> to vector<8x32xf32>
    %163 = arith.mulf %161, %162 : vector<8x32xf32>
    %164 = vector.broadcast %145 : vector<1x32xf32> to vector<8x32xf32>
    %165 = arith.addf %163, %164 : vector<8x32xf32>
    %c0_97 = arith.constant 0 : index
    %c0_98 = arith.constant 0 : index
    %166 = vector.load %arg18[%c0_97, %c0_98] : memref<1x32xf32, #tpu.memory_space<vmem>>, vector<1x32xf32>
    %c0_99 = arith.constant 0 : index
    %c0_100 = arith.constant 0 : index
    %167 = vector.load %arg19[%c0_99, %c0_100] : memref<1x32xf32, #tpu.memory_space<vmem>>, vector<1x32xf32>
    %cst_101 = arith.constant dense<0.000000e+00> : vector<8xf32>
    %168 = vector.multi_reduction <add>, %165, %cst_101 [1] : vector<8x32xf32> to vector<8xf32>
    %169 = vector.shape_cast %168 : vector<8xf32> to vector<8x1xf32>
    %cst_102 = arith.constant 3.200000e+01 : f32
    %170 = vector.broadcast %cst_102 : f32 to vector<8x1xf32>
    %171 = arith.divf %169, %170 : vector<8x1xf32>
    %172 = vector.broadcast %171 : vector<8x1xf32> to vector<8x32xf32>
    %173 = arith.subf %165, %172 : vector<8x32xf32>
    %174 = arith.mulf %173, %173 : vector<8x32xf32>
    %cst_103 = arith.constant dense<0.000000e+00> : vector<8xf32>
    %175 = vector.multi_reduction <add>, %174, %cst_103 [1] : vector<8x32xf32> to vector<8xf32>
    %176 = vector.shape_cast %175 : vector<8xf32> to vector<8x1xf32>
    %cst_104 = arith.constant 3.200000e+01 : f32
    %177 = vector.broadcast %cst_104 : f32 to vector<8x1xf32>
    %178 = arith.divf %176, %177 : vector<8x1xf32>
    %cst_105 = arith.constant 9.99999974E-6 : f32
    %179 = vector.broadcast %cst_105 : f32 to vector<8x1xf32>
    %180 = arith.addf %178, %179 : vector<8x1xf32>
    %181 = math.rsqrt %180 : vector<8x1xf32>
    %182 = vector.broadcast %181 : vector<8x1xf32> to vector<8x32xf32>
    %183 = arith.mulf %173, %182 : vector<8x32xf32>
    %184 = vector.broadcast %166 : vector<1x32xf32> to vector<8x32xf32>
    %185 = arith.mulf %183, %184 : vector<8x32xf32>
    %186 = vector.broadcast %167 : vector<1x32xf32> to vector<8x32xf32>
    %187 = arith.addf %185, %186 : vector<8x32xf32>
    %c0_106 = arith.constant 0 : index
    %c0_107 = arith.constant 0 : index
    %c0_108 = arith.constant 0 : index
    %188 = vector.load %arg20[%c0_106, %c0_107, %c0_108] : memref<1x8x32xf32, #tpu.memory_space<vmem>>, vector<1x8x32xf32>
    %189 = vector.shape_cast %188 : vector<1x8x32xf32> to vector<8x32xf32>
    %190 = vector.shape_cast %187 : vector<8x32xf32> to vector<1x8x32xf32>
    tpu.vector_store %arg20[%c0_106, %c0_107, %c0_108], %190 {strides = array<i32>} : memref<1x8x32xf32, #tpu.memory_space<vmem>>, vector<1x8x32xf32>,
    return
  }
  func.func @transform_0(%arg0: i32) -> (i32, i32, i32) {
    %c0_i32 = arith.constant 0 : i32
    %c0_i32_0 = arith.constant 0 : i32
    %c0_i32_1 = arith.constant 0 : i32
    return %arg0, %c0_i32, %c0_i32_0 : i32, i32, i32
  }
  func.func @transform_1(%arg0: i32) -> (i32, i32, i32) {
    %c0_i32 = arith.constant 0 : i32
    %c0_i32_0 = arith.constant 0 : i32
    %c0_i32_1 = arith.constant 0 : i32
    %c0_i32_2 = arith.constant 0 : i32
    return %c0_i32, %c0_i32_0, %c0_i32_1 : i32, i32, i32
  }
  func.func @transform_2(%arg0: i32) -> (i32, i32, i32) {
    %c0_i32 = arith.constant 0 : i32
    %c0_i32_0 = arith.constant 0 : i32
    %c0_i32_1 = arith.constant 0 : i32
    %c0_i32_2 = arith.constant 0 : i32
    return %c0_i32, %c0_i32_0, %c0_i32_1 : i32, i32, i32
  }
  func.func @transform_3(%arg0: i32) -> (i32, i32, i32) {
    %c0_i32 = arith.constant 0 : i32
    %c0_i32_0 = arith.constant 0 : i32
    %c0_i32_1 = arith.constant 0 : i32
    %c0_i32_2 = arith.constant 0 : i32
    return %c0_i32, %c0_i32_0, %c0_i32_1 : i32, i32, i32
  }
  func.func @transform_4(%arg0: i32) -> (i32, i32, i32) {
    %c0_i32 = arith.constant 0 : i32
    %c0_i32_0 = arith.constant 0 : i32
    %c0_i32_1 = arith.constant 0 : i32
    %c0_i32_2 = arith.constant 0 : i32
    return %c0_i32, %c0_i32_0, %c0_i32_1 : i32, i32, i32
  }
  func.func @transform_5(%arg0: i32) -> (i32, i32, i32) {
    %c0_i32 = arith.constant 0 : i32
    %c0_i32_0 = arith.constant 0 : i32
    %c0_i32_1 = arith.constant 0 : i32
    %c0_i32_2 = arith.constant 0 : i32
    return %c0_i32, %c0_i32_0, %c0_i32_1 : i32, i32, i32
  }
  func.func @transform_6(%arg0: i32) -> (i32, i32, i32) {
    %c0_i32 = arith.constant 0 : i32
    %c0_i32_0 = arith.constant 0 : i32
    %c0_i32_1 = arith.constant 0 : i32
    %c0_i32_2 = arith.constant 0 : i32
    return %c0_i32, %c0_i32_0, %c0_i32_1 : i32, i32, i32
  }
  func.func @transform_7(%arg0: i32) -> (i32, i32) {
    %c0_i32 = arith.constant 0 : i32
    %c0_i32_0 = arith.constant 0 : i32
    %c0_i32_1 = arith.constant 0 : i32
    return %c0_i32, %c0_i32_0 : i32, i32
  }
  func.func @transform_8(%arg0: i32) -> (i32, i32) {
    %c0_i32 = arith.constant 0 : i32
    %c0_i32_0 = arith.constant 0 : i32
    %c0_i32_1 = arith.constant 0 : i32
    return %c0_i32, %c0_i32_0 : i32, i32
  }
  func.func @transform_9(%arg0: i32) -> (i32, i32) {
    %c0_i32 = arith.constant 0 : i32
    %c0_i32_0 = arith.constant 0 : i32
    %c0_i32_1 = arith.constant 0 : i32
    return %c0_i32, %c0_i32_0 : i32, i32
  }
  func.func @transform_10(%arg0: i32) -> (i32, i32) {
    %c0_i32 = arith.constant 0 : i32
    %c0_i32_0 = arith.constant 0 : i32
    %c0_i32_1 = arith.constant 0 : i32
    return %c0_i32, %c0_i32_0 : i32, i32
  }
  func.func @transform_11(%arg0: i32) -> (i32, i32) {
    %c0_i32 = arith.constant 0 : i32
    %c0_i32_0 = arith.constant 0 : i32
    %c0_i32_1 = arith.constant 0 : i32
    return %c0_i32, %c0_i32_0 : i32, i32
  }
  func.func @transform_12(%arg0: i32) -> (i32, i32) {
    %c0_i32 = arith.constant 0 : i32
    %c0_i32_0 = arith.constant 0 : i32
    %c0_i32_1 = arith.constant 0 : i32
    return %c0_i32, %c0_i32_0 : i32, i32
  }
  func.func @transform_13(%arg0: i32) -> (i32, i32) {
    %c0_i32 = arith.constant 0 : i32
    %c0_i32_0 = arith.constant 0 : i32
    %c0_i32_1 = arith.constant 0 : i32
    return %c0_i32, %c0_i32_0 : i32, i32
  }
  func.func @transform_14(%arg0: i32) -> (i32, i32) {
    %c0_i32 = arith.constant 0 : i32
    %c0_i32_0 = arith.constant 0 : i32
    %c0_i32_1 = arith.constant 0 : i32
    return %c0_i32, %c0_i32_0 : i32, i32
  }
  func.func @transform_15(%arg0: i32) -> (i32, i32) {
    %c0_i32 = arith.constant 0 : i32
    %c0_i32_0 = arith.constant 0 : i32
    %c0_i32_1 = arith.constant 0 : i32
    return %c0_i32, %c0_i32_0 : i32, i32
  }
  func.func @transform_16(%arg0: i32) -> (i32, i32) {
    %c0_i32 = arith.constant 0 : i32
    %c0_i32_0 = arith.constant 0 : i32
    %c0_i32_1 = arith.constant 0 : i32
    return %c0_i32, %c0_i32_0 : i32, i32
  }
  func.func @transform_17(%arg0: i32) -> (i32, i32) {
    %c0_i32 = arith.constant 0 : i32
    %c0_i32_0 = arith.constant 0 : i32
    %c0_i32_1 = arith.constant 0 : i32
    return %c0_i32, %c0_i32_0 : i32, i32
  }
  func.func @transform_18(%arg0: i32) -> (i32, i32) {
    %c0_i32 = arith.constant 0 : i32
    %c0_i32_0 = arith.constant 0 : i32
    %c0_i32_1 = arith.constant 0 : i32
    return %c0_i32, %c0_i32_0 : i32, i32
  }
  func.func @transform_19(%arg0: i32) -> (i32, i32, i32) {
    %c0_i32 = arith.constant 0 : i32
    %c0_i32_0 = arith.constant 0 : i32
    %c0_i32_1 = arith.constant 0 : i32
    return %arg0, %c0_i32, %c0_i32_0 : i32, i32, i32
  }
}

module attributes {stable_mosaic.version = 11 : i64} {
  func.func @_enc_layer_kernel(%arg0: i32, %arg1: memref<1x16x4xf32, #tpu.memory_space<vmem>>, %arg2: memref<4x32xf32, #tpu.memory_space<vmem>>, %arg3: memref<1x32xf32, #tpu.memory_space<vmem>>, %arg4: memref<16x32xf32, #tpu.memory_space<vmem>>, %arg5: memref<4x32x8xbf16, #tpu.memory_space<vmem>>, %arg6: memref<4x32x8xbf16, #tpu.memory_space<vmem>>, %arg7: memref<4x32x8xbf16, #tpu.memory_space<vmem>>, %arg8: memref<4x1x8xf32, #tpu.memory_space<vmem>>, %arg9: memref<4x1x8xf32, #tpu.memory_space<vmem>>, %arg10: memref<4x1x8xf32, #tpu.memory_space<vmem>>, %arg11: memref<32x32xbf16, #tpu.memory_space<vmem>>, %arg12: memref<1x32xf32, #tpu.memory_space<vmem>>, %arg13: memref<1x32xf32, #tpu.memory_space<vmem>>, %arg14: memref<1x32xf32, #tpu.memory_space<vmem>>, %arg15: memref<32x32xbf16, #tpu.memory_space<vmem>>, %arg16: memref<1x32xf32, #tpu.memory_space<vmem>>, %arg17: memref<32x32xbf16, #tpu.memory_space<vmem>>, %arg18: memref<1x32xf32, #tpu.memory_space<vmem>>, %arg19: memref<1x32xf32, #tpu.memory_space<vmem>>, %arg20: memref<1x32xf32, #tpu.memory_space<vmem>>, %arg21: memref<3x32x32xbf16, #tpu.memory_space<vmem>>, %arg22: memref<1x32xf32, #tpu.memory_space<vmem>>, %arg23: memref<1x8x32xf32, #tpu.memory_space<vmem>>, %arg24: memref<16x32xf32, #tpu.memory_space<vmem>>) attributes {dimension_semantics = [#tpu.dimension_semantics<parallel>], iteration_bounds = array<i64: 2>, scalar_prefetch = 0 : i64, scratch_operands = 1 : i64, tpu.core_type = #tpu.core_type<tc>, window_params = [{transform_indices = @transform_0, window_bounds = array<i64: 1, 16, 4>}, {pipeline_mode = #tpu.pipeline_mode<synchronous>, transform_indices = @transform_1, window_bounds = array<i64: 4, 32>}, {pipeline_mode = #tpu.pipeline_mode<synchronous>, transform_indices = @transform_2, window_bounds = array<i64: 1, 32>}, {pipeline_mode = #tpu.pipeline_mode<synchronous>, transform_indices = @transform_3, window_bounds = array<i64: 16, 32>}, {pipeline_mode = #tpu.pipeline_mode<synchronous>, transform_indices = @transform_4, window_bounds = array<i64: 4, 32, 8>}, {pipeline_mode = #tpu.pipeline_mode<synchronous>, transform_indices = @transform_5, window_bounds = array<i64: 4, 32, 8>}, {pipeline_mode = #tpu.pipeline_mode<synchronous>, transform_indices = @transform_6, window_bounds = array<i64: 4, 32, 8>}, {pipeline_mode = #tpu.pipeline_mode<synchronous>, transform_indices = @transform_7, window_bounds = array<i64: 4, 1, 8>}, {pipeline_mode = #tpu.pipeline_mode<synchronous>, transform_indices = @transform_8, window_bounds = array<i64: 4, 1, 8>}, {pipeline_mode = #tpu.pipeline_mode<synchronous>, transform_indices = @transform_9, window_bounds = array<i64: 4, 1, 8>}, {pipeline_mode = #tpu.pipeline_mode<synchronous>, transform_indices = @transform_10, window_bounds = array<i64: 32, 32>}, {pipeline_mode = #tpu.pipeline_mode<synchronous>, transform_indices = @transform_11, window_bounds = array<i64: 1, 32>}, {pipeline_mode = #tpu.pipeline_mode<synchronous>, transform_indices = @transform_12, window_bounds = array<i64: 1, 32>}, {pipeline_mode = #tpu.pipeline_mode<synchronous>, transform_indices = @transform_13, window_bounds = array<i64: 1, 32>}, {pipeline_mode = #tpu.pipeline_mode<synchronous>, transform_indices = @transform_14, window_bounds = array<i64: 32, 32>}, {pipeline_mode = #tpu.pipeline_mode<synchronous>, transform_indices = @transform_15, window_bounds = array<i64: 1, 32>}, {pipeline_mode = #tpu.pipeline_mode<synchronous>, transform_indices = @transform_16, window_bounds = array<i64: 32, 32>}, {pipeline_mode = #tpu.pipeline_mode<synchronous>, transform_indices = @transform_17, window_bounds = array<i64: 1, 32>}, {pipeline_mode = #tpu.pipeline_mode<synchronous>, transform_indices = @transform_18, window_bounds = array<i64: 1, 32>}, {pipeline_mode = #tpu.pipeline_mode<synchronous>, transform_indices = @transform_19, window_bounds = array<i64: 1, 32>}, {pipeline_mode = #tpu.pipeline_mode<synchronous>, transform_indices = @transform_20, window_bounds = array<i64: 3, 32, 32>}, {pipeline_mode = #tpu.pipeline_mode<synchronous>, transform_indices = @transform_21, window_bounds = array<i64: 1, 32>}, {transform_indices = @transform_22, window_bounds = array<i64: 1, 8, 32>}]} {
    %c0 = arith.constant 0 : index
    %c0_0 = arith.constant 0 : index
    %c0_1 = arith.constant 0 : index
    %0 = vector.load %arg1[%c0, %c0_0, %c0_1] : memref<1x16x4xf32, #tpu.memory_space<vmem>>, vector<1x16x4xf32>
    %1 = vector.shape_cast %0 : vector<1x16x4xf32> to vector<16x4xf32>
    %c0_2 = arith.constant 0 : index
    %c0_3 = arith.constant 0 : index
    %2 = vector.load %arg2[%c0_2, %c0_3] : memref<4x32xf32, #tpu.memory_space<vmem>>, vector<4x32xf32>
    %cst = arith.constant dense<0.000000e+00> : vector<16x32xf32>
    %3 = tpu.matmul %1, %2, %cst {dimension_numbers = #tpu.dot_dimension_numbers<[1], [0], [0], [1], [0, 0, 1, 1], [], []>} : vector<16x4xf32>, vector<4x32xf32>, vector<16x32xf32> -> vector<16x32xf32>
    %c0_4 = arith.constant 0 : index
    %c0_5 = arith.constant 0 : index
    %4 = vector.load %arg3[%c0_4, %c0_5] : memref<1x32xf32, #tpu.memory_space<vmem>>, vector<1x32xf32>
    %5 = vector.broadcast %4 : vector<1x32xf32> to vector<16x32xf32>
    %6 = arith.addf %3, %5 : vector<16x32xf32>
    %c0_6 = arith.constant 0 : index
    %c0_7 = arith.constant 0 : index
    %7 = vector.load %arg4[%c0_6, %c0_7] : memref<16x32xf32, #tpu.memory_space<vmem>>, vector<16x32xf32>
    %8 = arith.addf %6, %7 : vector<16x32xf32>
    %9 = arith.truncf %8 : vector<16x32xf32> to vector<16x32xbf16>
    %c0_8 = arith.constant 0 : index
    %c0_9 = arith.constant 0 : index
    %c0_10 = arith.constant 0 : index
    %10 = vector.load %arg5[%c0_8, %c0_9, %c0_10] : memref<4x32x8xbf16, #tpu.memory_space<vmem>>, vector<1x32x8xbf16>
    %11 = vector.shape_cast %10 : vector<1x32x8xbf16> to vector<32x8xbf16>
    %cst_11 = arith.constant dense<0.000000e+00> : vector<16x8xf32>
    %12 = tpu.matmul %9, %11, %cst_11 {dimension_numbers = #tpu.dot_dimension_numbers<[1], [0], [0], [1], [0, 0, 1, 1], [], []>} : vector<16x32xbf16>, vector<32x8xbf16>, vector<16x8xf32> -> vector<16x8xf32>
    %c1 = arith.constant 1 : index
    %c0_12 = arith.constant 0 : index
    %c0_13 = arith.constant 0 : index
    %13 = vector.load %arg5[%c1, %c0_12, %c0_13] : memref<4x32x8xbf16, #tpu.memory_space<vmem>>, vector<1x32x8xbf16>
    %14 = vector.shape_cast %13 : vector<1x32x8xbf16> to vector<32x8xbf16>
    %cst_14 = arith.constant dense<0.000000e+00> : vector<16x8xf32>
    %15 = tpu.matmul %9, %14, %cst_14 {dimension_numbers = #tpu.dot_dimension_numbers<[1], [0], [0], [1], [0, 0, 1, 1], [], []>} : vector<16x32xbf16>, vector<32x8xbf16>, vector<16x8xf32> -> vector<16x8xf32>
    %c2 = arith.constant 2 : index
    %c0_15 = arith.constant 0 : index
    %c0_16 = arith.constant 0 : index
    %16 = vector.load %arg5[%c2, %c0_15, %c0_16] : memref<4x32x8xbf16, #tpu.memory_space<vmem>>, vector<1x32x8xbf16>
    %17 = vector.shape_cast %16 : vector<1x32x8xbf16> to vector<32x8xbf16>
    %cst_17 = arith.constant dense<0.000000e+00> : vector<16x8xf32>
    %18 = tpu.matmul %9, %17, %cst_17 {dimension_numbers = #tpu.dot_dimension_numbers<[1], [0], [0], [1], [0, 0, 1, 1], [], []>} : vector<16x32xbf16>, vector<32x8xbf16>, vector<16x8xf32> -> vector<16x8xf32>
    %c3 = arith.constant 3 : index
    %c0_18 = arith.constant 0 : index
    %c0_19 = arith.constant 0 : index
    %19 = vector.load %arg5[%c3, %c0_18, %c0_19] : memref<4x32x8xbf16, #tpu.memory_space<vmem>>, vector<1x32x8xbf16>
    %20 = vector.shape_cast %19 : vector<1x32x8xbf16> to vector<32x8xbf16>
    %cst_20 = arith.constant dense<0.000000e+00> : vector<16x8xf32>
    %21 = tpu.matmul %9, %20, %cst_20 {dimension_numbers = #tpu.dot_dimension_numbers<[1], [0], [0], [1], [0, 0, 1, 1], [], []>} : vector<16x32xbf16>, vector<32x8xbf16>, vector<16x8xf32> -> vector<16x8xf32>
    %22 = vector.shape_cast %12 : vector<16x8xf32> to vector<1x16x8xf32>
    %23 = vector.shape_cast %15 : vector<16x8xf32> to vector<1x16x8xf32>
    %24 = vector.shape_cast %18 : vector<16x8xf32> to vector<1x16x8xf32>
    %25 = vector.shape_cast %21 : vector<16x8xf32> to vector<1x16x8xf32>
    %26 = tpu.concatenate %22, %23, %24, %25 in 0 : vector<1x16x8xf32>, vector<1x16x8xf32>, vector<1x16x8xf32>, vector<1x16x8xf32> -> vector<4x16x8xf32>
    %c0_21 = arith.constant 0 : index
    %c0_22 = arith.constant 0 : index
    %c0_23 = arith.constant 0 : index
    %27 = vector.load %arg8[%c0_21, %c0_22, %c0_23] : memref<4x1x8xf32, #tpu.memory_space<vmem>>, vector<4x1x8xf32>
    %28 = vector.broadcast %27 : vector<4x1x8xf32> to vector<4x16x8xf32>
    %29 = arith.addf %26, %28 : vector<4x16x8xf32>
    %c0_24 = arith.constant 0 : index
    %c0_25 = arith.constant 0 : index
    %c0_26 = arith.constant 0 : index
    %30 = vector.load %arg6[%c0_24, %c0_25, %c0_26] : memref<4x32x8xbf16, #tpu.memory_space<vmem>>, vector<1x32x8xbf16>
    %31 = vector.shape_cast %30 : vector<1x32x8xbf16> to vector<32x8xbf16>
    %cst_27 = arith.constant dense<0.000000e+00> : vector<16x8xf32>
    %32 = tpu.matmul %9, %31, %cst_27 {dimension_numbers = #tpu.dot_dimension_numbers<[1], [0], [0], [1], [0, 0, 1, 1], [], []>} : vector<16x32xbf16>, vector<32x8xbf16>, vector<16x8xf32> -> vector<16x8xf32>
    %c1_28 = arith.constant 1 : index
    %c0_29 = arith.constant 0 : index
    %c0_30 = arith.constant 0 : index
    %33 = vector.load %arg6[%c1_28, %c0_29, %c0_30] : memref<4x32x8xbf16, #tpu.memory_space<vmem>>, vector<1x32x8xbf16>
    %34 = vector.shape_cast %33 : vector<1x32x8xbf16> to vector<32x8xbf16>
    %cst_31 = arith.constant dense<0.000000e+00> : vector<16x8xf32>
    %35 = tpu.matmul %9, %34, %cst_31 {dimension_numbers = #tpu.dot_dimension_numbers<[1], [0], [0], [1], [0, 0, 1, 1], [], []>} : vector<16x32xbf16>, vector<32x8xbf16>, vector<16x8xf32> -> vector<16x8xf32>
    %c2_32 = arith.constant 2 : index
    %c0_33 = arith.constant 0 : index
    %c0_34 = arith.constant 0 : index
    %36 = vector.load %arg6[%c2_32, %c0_33, %c0_34] : memref<4x32x8xbf16, #tpu.memory_space<vmem>>, vector<1x32x8xbf16>
    %37 = vector.shape_cast %36 : vector<1x32x8xbf16> to vector<32x8xbf16>
    %cst_35 = arith.constant dense<0.000000e+00> : vector<16x8xf32>
    %38 = tpu.matmul %9, %37, %cst_35 {dimension_numbers = #tpu.dot_dimension_numbers<[1], [0], [0], [1], [0, 0, 1, 1], [], []>} : vector<16x32xbf16>, vector<32x8xbf16>, vector<16x8xf32> -> vector<16x8xf32>
    %c3_36 = arith.constant 3 : index
    %c0_37 = arith.constant 0 : index
    %c0_38 = arith.constant 0 : index
    %39 = vector.load %arg6[%c3_36, %c0_37, %c0_38] : memref<4x32x8xbf16, #tpu.memory_space<vmem>>, vector<1x32x8xbf16>
    %40 = vector.shape_cast %39 : vector<1x32x8xbf16> to vector<32x8xbf16>
    %cst_39 = arith.constant dense<0.000000e+00> : vector<16x8xf32>
    %41 = tpu.matmul %9, %40, %cst_39 {dimension_numbers = #tpu.dot_dimension_numbers<[1], [0], [0], [1], [0, 0, 1, 1], [], []>} : vector<16x32xbf16>, vector<32x8xbf16>, vector<16x8xf32> -> vector<16x8xf32>
    %42 = vector.shape_cast %32 : vector<16x8xf32> to vector<1x16x8xf32>
    %43 = vector.shape_cast %35 : vector<16x8xf32> to vector<1x16x8xf32>
    %44 = vector.shape_cast %38 : vector<16x8xf32> to vector<1x16x8xf32>
    %45 = vector.shape_cast %41 : vector<16x8xf32> to vector<1x16x8xf32>
    %46 = tpu.concatenate %42, %43, %44, %45 in 0 : vector<1x16x8xf32>, vector<1x16x8xf32>, vector<1x16x8xf32>, vector<1x16x8xf32> -> vector<4x16x8xf32>
    %c0_40 = arith.constant 0 : index
    %c0_41 = arith.constant 0 : index
    %c0_42 = arith.constant 0 : index
    %47 = vector.load %arg9[%c0_40, %c0_41, %c0_42] : memref<4x1x8xf32, #tpu.memory_space<vmem>>, vector<4x1x8xf32>
    %48 = vector.broadcast %47 : vector<4x1x8xf32> to vector<4x16x8xf32>
    %49 = arith.addf %46, %48 : vector<4x16x8xf32>
    %c0_43 = arith.constant 0 : index
    %c0_44 = arith.constant 0 : index
    %c0_45 = arith.constant 0 : index
    %50 = vector.load %arg7[%c0_43, %c0_44, %c0_45] : memref<4x32x8xbf16, #tpu.memory_space<vmem>>, vector<1x32x8xbf16>
    %51 = vector.shape_cast %50 : vector<1x32x8xbf16> to vector<32x8xbf16>
    %cst_46 = arith.constant dense<0.000000e+00> : vector<16x8xf32>
    %52 = tpu.matmul %9, %51, %cst_46 {dimension_numbers = #tpu.dot_dimension_numbers<[1], [0], [0], [1], [0, 0, 1, 1], [], []>} : vector<16x32xbf16>, vector<32x8xbf16>, vector<16x8xf32> -> vector<16x8xf32>
    %c1_47 = arith.constant 1 : index
    %c0_48 = arith.constant 0 : index
    %c0_49 = arith.constant 0 : index
    %53 = vector.load %arg7[%c1_47, %c0_48, %c0_49] : memref<4x32x8xbf16, #tpu.memory_space<vmem>>, vector<1x32x8xbf16>
    %54 = vector.shape_cast %53 : vector<1x32x8xbf16> to vector<32x8xbf16>
    %cst_50 = arith.constant dense<0.000000e+00> : vector<16x8xf32>
    %55 = tpu.matmul %9, %54, %cst_50 {dimension_numbers = #tpu.dot_dimension_numbers<[1], [0], [0], [1], [0, 0, 1, 1], [], []>} : vector<16x32xbf16>, vector<32x8xbf16>, vector<16x8xf32> -> vector<16x8xf32>
    %c2_51 = arith.constant 2 : index
    %c0_52 = arith.constant 0 : index
    %c0_53 = arith.constant 0 : index
    %56 = vector.load %arg7[%c2_51, %c0_52, %c0_53] : memref<4x32x8xbf16, #tpu.memory_space<vmem>>, vector<1x32x8xbf16>
    %57 = vector.shape_cast %56 : vector<1x32x8xbf16> to vector<32x8xbf16>
    %cst_54 = arith.constant dense<0.000000e+00> : vector<16x8xf32>
    %58 = tpu.matmul %9, %57, %cst_54 {dimension_numbers = #tpu.dot_dimension_numbers<[1], [0], [0], [1], [0, 0, 1, 1], [], []>} : vector<16x32xbf16>, vector<32x8xbf16>, vector<16x8xf32> -> vector<16x8xf32>
    %c3_55 = arith.constant 3 : index
    %c0_56 = arith.constant 0 : index
    %c0_57 = arith.constant 0 : index
    %59 = vector.load %arg7[%c3_55, %c0_56, %c0_57] : memref<4x32x8xbf16, #tpu.memory_space<vmem>>, vector<1x32x8xbf16>
    %60 = vector.shape_cast %59 : vector<1x32x8xbf16> to vector<32x8xbf16>
    %cst_58 = arith.constant dense<0.000000e+00> : vector<16x8xf32>
    %61 = tpu.matmul %9, %60, %cst_58 {dimension_numbers = #tpu.dot_dimension_numbers<[1], [0], [0], [1], [0, 0, 1, 1], [], []>} : vector<16x32xbf16>, vector<32x8xbf16>, vector<16x8xf32> -> vector<16x8xf32>
    %62 = vector.shape_cast %52 : vector<16x8xf32> to vector<1x16x8xf32>
    %63 = vector.shape_cast %55 : vector<16x8xf32> to vector<1x16x8xf32>
    %64 = vector.shape_cast %58 : vector<16x8xf32> to vector<1x16x8xf32>
    %65 = vector.shape_cast %61 : vector<16x8xf32> to vector<1x16x8xf32>
    %66 = tpu.concatenate %62, %63, %64, %65 in 0 : vector<1x16x8xf32>, vector<1x16x8xf32>, vector<1x16x8xf32>, vector<1x16x8xf32> -> vector<4x16x8xf32>
    %c0_59 = arith.constant 0 : index
    %c0_60 = arith.constant 0 : index
    %c0_61 = arith.constant 0 : index
    %67 = vector.load %arg10[%c0_59, %c0_60, %c0_61] : memref<4x1x8xf32, #tpu.memory_space<vmem>>, vector<4x1x8xf32>
    %68 = vector.broadcast %67 : vector<4x1x8xf32> to vector<4x16x8xf32>
    %69 = arith.addf %66, %68 : vector<4x16x8xf32>
    %70 = arith.truncf %29 : vector<4x16x8xf32> to vector<4x16x8xbf16>
    %71 = arith.truncf %49 : vector<4x16x8xf32> to vector<4x16x8xbf16>
    "tpu.trace_start"() <{level = 10 : i32, message = "hqd,hkd->hqk"}> : () -> ()
    %cst_62 = arith.constant dense<0.000000e+00> : vector<4x16x16xf32>
    %72 = tpu.matmul %70, %71, %cst_62 {dimension_numbers = #tpu.dot_dimension_numbers<[2], [2], [1], [1], [0, 0, 0, 1, 1, 1], [0], [0]>} : vector<4x16x8xbf16>, vector<4x16x8xbf16>, vector<4x16x16xf32> -> vector<4x16x16xf32>
    "tpu.trace_stop"() : () -> ()
    %cst_63 = arith.constant 0.353553385 : f32
    %73 = vector.broadcast %cst_63 : f32 to vector<4x16x16xf32>
    %74 = arith.mulf %72, %73 : vector<4x16x16xf32>
    %cst_64 = arith.constant dense<0xFF800000> : vector<4x16xf32>
    %75 = vector.multi_reduction <maximumf>, %74, %cst_64 [2] : vector<4x16x16xf32> to vector<4x16xf32>
    %76 = vector.shape_cast %75 : vector<4x16xf32> to vector<4x16x1xf32>
    %77 = vector.broadcast %76 : vector<4x16x1xf32> to vector<4x16x16xf32>
    %78 = arith.subf %74, %77 : vector<4x16x16xf32>
    %79 = math.exp %78 : vector<4x16x16xf32>
    %cst_65 = arith.constant dense<0.000000e+00> : vector<4x16xf32>
    %80 = vector.multi_reduction <add>, %79, %cst_65 [2] : vector<4x16x16xf32> to vector<4x16xf32>
    %81 = vector.shape_cast %80 : vector<4x16xf32> to vector<4x16x1xf32>
    %82 = vector.broadcast %81 : vector<4x16x1xf32> to vector<4x16x16xf32>
    %83 = arith.divf %79, %82 : vector<4x16x16xf32>
    %84 = arith.truncf %83 : vector<4x16x16xf32> to vector<4x16x16xbf16>
    %85 = arith.truncf %69 : vector<4x16x8xf32> to vector<4x16x8xbf16>
    "tpu.trace_start"() <{level = 10 : i32, message = "hqk,hkd->hqd"}> : () -> ()
    %cst_66 = arith.constant dense<0.000000e+00> : vector<4x16x8xf32>
    %86 = tpu.matmul %84, %85, %cst_66 {dimension_numbers = #tpu.dot_dimension_numbers<[2], [1], [1], [2], [0, 0, 0, 1, 1, 2], [0], [0]>} : vector<4x16x16xbf16>, vector<4x16x8xbf16>, vector<4x16x8xf32> -> vector<4x16x8xf32>
    "tpu.trace_stop"() : () -> ()
    %87 = vector.extract_strided_slice %86 {offsets = [0, 0, 0], sizes = [1, 16, 8], strides = [1, 1, 1]} : vector<4x16x8xf32> to vector<1x16x8xf32>
    %88 = vector.shape_cast %87 : vector<1x16x8xf32> to vector<16x8xf32>
    %89 = vector.extract_strided_slice %86 {offsets = [1, 0, 0], sizes = [1, 16, 8], strides = [1, 1, 1]} : vector<4x16x8xf32> to vector<1x16x8xf32>
    %90 = vector.shape_cast %89 : vector<1x16x8xf32> to vector<16x8xf32>
    %91 = vector.extract_strided_slice %86 {offsets = [2, 0, 0], sizes = [1, 16, 8], strides = [1, 1, 1]} : vector<4x16x8xf32> to vector<1x16x8xf32>
    %92 = vector.shape_cast %91 : vector<1x16x8xf32> to vector<16x8xf32>
    %93 = vector.extract_strided_slice %86 {offsets = [3, 0, 0], sizes = [1, 16, 8], strides = [1, 1, 1]} : vector<4x16x8xf32> to vector<1x16x8xf32>
    %94 = vector.shape_cast %93 : vector<1x16x8xf32> to vector<16x8xf32>
    %95 = tpu.concatenate %88, %90, %92, %94 in 1 : vector<16x8xf32>, vector<16x8xf32>, vector<16x8xf32>, vector<16x8xf32> -> vector<16x32xf32>
    %96 = arith.truncf %95 : vector<16x32xf32> to vector<16x32xbf16>
    %c0_67 = arith.constant 0 : index
    %c0_68 = arith.constant 0 : index
    %97 = vector.load %arg11[%c0_67, %c0_68] : memref<32x32xbf16, #tpu.memory_space<vmem>>, vector<32x32xbf16>
    %cst_69 = arith.constant dense<0.000000e+00> : vector<16x32xf32>
    %98 = tpu.matmul %96, %97, %cst_69 {dimension_numbers = #tpu.dot_dimension_numbers<[1], [0], [0], [1], [0, 0, 1, 1], [], []>} : vector<16x32xbf16>, vector<32x32xbf16>, vector<16x32xf32> -> vector<16x32xf32>
    %c0_70 = arith.constant 0 : index
    %c0_71 = arith.constant 0 : index
    %99 = vector.load %arg12[%c0_70, %c0_71] : memref<1x32xf32, #tpu.memory_space<vmem>>, vector<1x32xf32>
    %100 = vector.broadcast %99 : vector<1x32xf32> to vector<16x32xf32>
    %101 = arith.addf %98, %100 : vector<16x32xf32>
    %102 = arith.addf %8, %101 : vector<16x32xf32>
    %c0_72 = arith.constant 0 : index
    %c0_73 = arith.constant 0 : index
    %103 = vector.load %arg13[%c0_72, %c0_73] : memref<1x32xf32, #tpu.memory_space<vmem>>, vector<1x32xf32>
    %c0_74 = arith.constant 0 : index
    %c0_75 = arith.constant 0 : index
    %104 = vector.load %arg14[%c0_74, %c0_75] : memref<1x32xf32, #tpu.memory_space<vmem>>, vector<1x32xf32>
    %cst_76 = arith.constant dense<0.000000e+00> : vector<16xf32>
    %105 = vector.multi_reduction <add>, %102, %cst_76 [1] : vector<16x32xf32> to vector<16xf32>
    %106 = vector.shape_cast %105 : vector<16xf32> to vector<16x1xf32>
    %cst_77 = arith.constant 3.200000e+01 : f32
    %107 = vector.broadcast %cst_77 : f32 to vector<16x1xf32>
    %108 = arith.divf %106, %107 : vector<16x1xf32>
    %109 = vector.broadcast %108 : vector<16x1xf32> to vector<16x32xf32>
    %110 = arith.subf %102, %109 : vector<16x32xf32>
    %111 = arith.mulf %110, %110 : vector<16x32xf32>
    %cst_78 = arith.constant dense<0.000000e+00> : vector<16xf32>
    %112 = vector.multi_reduction <add>, %111, %cst_78 [1] : vector<16x32xf32> to vector<16xf32>
    %113 = vector.shape_cast %112 : vector<16xf32> to vector<16x1xf32>
    %cst_79 = arith.constant 3.200000e+01 : f32
    %114 = vector.broadcast %cst_79 : f32 to vector<16x1xf32>
    %115 = arith.divf %113, %114 : vector<16x1xf32>
    %cst_80 = arith.constant 9.99999974E-6 : f32
    %116 = vector.broadcast %cst_80 : f32 to vector<16x1xf32>
    %117 = arith.addf %115, %116 : vector<16x1xf32>
    %118 = math.rsqrt %117 : vector<16x1xf32>
    %119 = vector.broadcast %118 : vector<16x1xf32> to vector<16x32xf32>
    %120 = arith.mulf %110, %119 : vector<16x32xf32>
    %121 = vector.broadcast %103 : vector<1x32xf32> to vector<16x32xf32>
    %122 = arith.mulf %120, %121 : vector<16x32xf32>
    %123 = vector.broadcast %104 : vector<1x32xf32> to vector<16x32xf32>
    %124 = arith.addf %122, %123 : vector<16x32xf32>
    %125 = arith.truncf %124 : vector<16x32xf32> to vector<16x32xbf16>
    %c0_81 = arith.constant 0 : index
    %c0_82 = arith.constant 0 : index
    %126 = vector.load %arg15[%c0_81, %c0_82] : memref<32x32xbf16, #tpu.memory_space<vmem>>, vector<32x32xbf16>
    %cst_83 = arith.constant dense<0.000000e+00> : vector<16x32xf32>
    %127 = tpu.matmul %125, %126, %cst_83 {dimension_numbers = #tpu.dot_dimension_numbers<[1], [0], [0], [1], [0, 0, 1, 1], [], []>} : vector<16x32xbf16>, vector<32x32xbf16>, vector<16x32xf32> -> vector<16x32xf32>
    %c0_84 = arith.constant 0 : index
    %c0_85 = arith.constant 0 : index
    %128 = vector.load %arg16[%c0_84, %c0_85] : memref<1x32xf32, #tpu.memory_space<vmem>>, vector<1x32xf32>
    %129 = vector.broadcast %128 : vector<1x32xf32> to vector<16x32xf32>
    %130 = arith.addf %127, %129 : vector<16x32xf32>
    %cst_86 = arith.constant 5.000000e-01 : f32
    %131 = vector.broadcast %cst_86 : f32 to vector<16x32xf32>
    %132 = arith.mulf %131, %130 : vector<16x32xf32>
    %cst_87 = arith.constant 4.471500e-02 : f32
    %133 = vector.broadcast %cst_87 : f32 to vector<16x32xf32>
    %134 = arith.mulf %133, %130 : vector<16x32xf32>
    %135 = arith.mulf %134, %130 : vector<16x32xf32>
    %136 = arith.mulf %135, %130 : vector<16x32xf32>
    %137 = arith.addf %130, %136 : vector<16x32xf32>
    %cst_88 = arith.constant 0.797884583 : f32
    %138 = vector.broadcast %cst_88 : f32 to vector<16x32xf32>
    %139 = arith.mulf %138, %137 : vector<16x32xf32>
    %140 = math.tanh %139 : vector<16x32xf32>
    %cst_89 = arith.constant 1.000000e+00 : f32
    %141 = vector.broadcast %cst_89 : f32 to vector<16x32xf32>
    %142 = arith.addf %141, %140 : vector<16x32xf32>
    %143 = arith.mulf %132, %142 : vector<16x32xf32>
    %144 = arith.truncf %143 : vector<16x32xf32> to vector<16x32xbf16>
    %c0_90 = arith.constant 0 : index
    %c0_91 = arith.constant 0 : index
    %145 = vector.load %arg17[%c0_90, %c0_91] : memref<32x32xbf16, #tpu.memory_space<vmem>>, vector<32x32xbf16>
    %cst_92 = arith.constant dense<0.000000e+00> : vector<16x32xf32>
    %146 = tpu.matmul %144, %145, %cst_92 {dimension_numbers = #tpu.dot_dimension_numbers<[1], [0], [0], [1], [0, 0, 1, 1], [], []>} : vector<16x32xbf16>, vector<32x32xbf16>, vector<16x32xf32> -> vector<16x32xf32>
    %c0_93 = arith.constant 0 : index
    %c0_94 = arith.constant 0 : index
    %147 = vector.load %arg18[%c0_93, %c0_94] : memref<1x32xf32, #tpu.memory_space<vmem>>, vector<1x32xf32>
    %148 = vector.broadcast %147 : vector<1x32xf32> to vector<16x32xf32>
    %149 = arith.addf %146, %148 : vector<16x32xf32>
    %150 = arith.addf %124, %149 : vector<16x32xf32>
    %c0_95 = arith.constant 0 : index
    %c0_96 = arith.constant 0 : index
    %151 = vector.load %arg19[%c0_95, %c0_96] : memref<1x32xf32, #tpu.memory_space<vmem>>, vector<1x32xf32>
    %c0_97 = arith.constant 0 : index
    %c0_98 = arith.constant 0 : index
    %152 = vector.load %arg20[%c0_97, %c0_98] : memref<1x32xf32, #tpu.memory_space<vmem>>, vector<1x32xf32>
    %cst_99 = arith.constant dense<0.000000e+00> : vector<16xf32>
    %153 = vector.multi_reduction <add>, %150, %cst_99 [1] : vector<16x32xf32> to vector<16xf32>
    %154 = vector.shape_cast %153 : vector<16xf32> to vector<16x1xf32>
    %cst_100 = arith.constant 3.200000e+01 : f32
    %155 = vector.broadcast %cst_100 : f32 to vector<16x1xf32>
    %156 = arith.divf %154, %155 : vector<16x1xf32>
    %157 = vector.broadcast %156 : vector<16x1xf32> to vector<16x32xf32>
    %158 = arith.subf %150, %157 : vector<16x32xf32>
    %159 = arith.mulf %158, %158 : vector<16x32xf32>
    %cst_101 = arith.constant dense<0.000000e+00> : vector<16xf32>
    %160 = vector.multi_reduction <add>, %159, %cst_101 [1] : vector<16x32xf32> to vector<16xf32>
    %161 = vector.shape_cast %160 : vector<16xf32> to vector<16x1xf32>
    %cst_102 = arith.constant 3.200000e+01 : f32
    %162 = vector.broadcast %cst_102 : f32 to vector<16x1xf32>
    %163 = arith.divf %161, %162 : vector<16x1xf32>
    %cst_103 = arith.constant 9.99999974E-6 : f32
    %164 = vector.broadcast %cst_103 : f32 to vector<16x1xf32>
    %165 = arith.addf %163, %164 : vector<16x1xf32>
    %166 = math.rsqrt %165 : vector<16x1xf32>
    %167 = vector.broadcast %166 : vector<16x1xf32> to vector<16x32xf32>
    %168 = arith.mulf %158, %167 : vector<16x32xf32>
    %169 = vector.broadcast %151 : vector<1x32xf32> to vector<16x32xf32>
    %170 = arith.mulf %168, %169 : vector<16x32xf32>
    %171 = vector.broadcast %152 : vector<1x32xf32> to vector<16x32xf32>
    %172 = arith.addf %170, %171 : vector<16x32xf32>
    %173 = vector.extract_strided_slice %172 {offsets = [15, 0], sizes = [1, 32], strides = [1, 1]} : vector<16x32xf32> to vector<1x32xf32>
    %174 = vector.extract_strided_slice %172 {offsets = [0, 0], sizes = [15, 32], strides = [1, 1]} : vector<16x32xf32> to vector<15x32xf32>
    %175 = tpu.concatenate %173, %174 in 0 : vector<1x32xf32>, vector<15x32xf32> -> vector<16x32xf32>
    %176 = vector.extract_strided_slice %172 {offsets = [1, 0], sizes = [15, 32], strides = [1, 1]} : vector<16x32xf32> to vector<15x32xf32>
    %177 = vector.extract_strided_slice %172 {offsets = [0, 0], sizes = [1, 32], strides = [1, 1]} : vector<16x32xf32> to vector<1x32xf32>
    %178 = tpu.concatenate %176, %177 in 0 : vector<15x32xf32>, vector<1x32xf32> -> vector<16x32xf32>
    %179 = arith.truncf %175 : vector<16x32xf32> to vector<16x32xbf16>
    %c0_104 = arith.constant 0 : index
    %c0_105 = arith.constant 0 : index
    %c0_106 = arith.constant 0 : index
    %180 = vector.load %arg21[%c0_104, %c0_105, %c0_106] : memref<3x32x32xbf16, #tpu.memory_space<vmem>>, vector<1x32x32xbf16>
    %181 = vector.shape_cast %180 : vector<1x32x32xbf16> to vector<32x32xbf16>
    %cst_107 = arith.constant dense<0.000000e+00> : vector<16x32xf32>
    %182 = tpu.matmul %179, %181, %cst_107 {dimension_numbers = #tpu.dot_dimension_numbers<[1], [0], [0], [1], [0, 0, 1, 1], [], []>} : vector<16x32xbf16>, vector<32x32xbf16>, vector<16x32xf32> -> vector<16x32xf32>
    %183 = arith.truncf %172 : vector<16x32xf32> to vector<16x32xbf16>
    %c1_108 = arith.constant 1 : index
    %c0_109 = arith.constant 0 : index
    %c0_110 = arith.constant 0 : index
    %184 = vector.load %arg21[%c1_108, %c0_109, %c0_110] : memref<3x32x32xbf16, #tpu.memory_space<vmem>>, vector<1x32x32xbf16>
    %185 = vector.shape_cast %184 : vector<1x32x32xbf16> to vector<32x32xbf16>
    %cst_111 = arith.constant dense<0.000000e+00> : vector<16x32xf32>
    %186 = tpu.matmul %183, %185, %cst_111 {dimension_numbers = #tpu.dot_dimension_numbers<[1], [0], [0], [1], [0, 0, 1, 1], [], []>} : vector<16x32xbf16>, vector<32x32xbf16>, vector<16x32xf32> -> vector<16x32xf32>
    %187 = arith.addf %182, %186 : vector<16x32xf32>
    %188 = arith.truncf %178 : vector<16x32xf32> to vector<16x32xbf16>
    %c2_112 = arith.constant 2 : index
    %c0_113 = arith.constant 0 : index
    %c0_114 = arith.constant 0 : index
    %189 = vector.load %arg21[%c2_112, %c0_113, %c0_114] : memref<3x32x32xbf16, #tpu.memory_space<vmem>>, vector<1x32x32xbf16>
    %190 = vector.shape_cast %189 : vector<1x32x32xbf16> to vector<32x32xbf16>
    %cst_115 = arith.constant dense<0.000000e+00> : vector<16x32xf32>
    %191 = tpu.matmul %188, %190, %cst_115 {dimension_numbers = #tpu.dot_dimension_numbers<[1], [0], [0], [1], [0, 0, 1, 1], [], []>} : vector<16x32xbf16>, vector<32x32xbf16>, vector<16x32xf32> -> vector<16x32xf32>
    %192 = arith.addf %187, %191 : vector<16x32xf32>
    %c0_116 = arith.constant 0 : index
    %c0_117 = arith.constant 0 : index
    %193 = vector.load %arg22[%c0_116, %c0_117] : memref<1x32xf32, #tpu.memory_space<vmem>>, vector<1x32xf32>
    %194 = vector.broadcast %193 : vector<1x32xf32> to vector<16x32xf32>
    %195 = arith.addf %192, %194 : vector<16x32xf32>
    %cst_118 = arith.constant 0.000000e+00 : f32
    %196 = vector.broadcast %cst_118 : f32 to vector<16x32xf32>
    %197 = arith.cmpf ogt, %195, %196 : vector<16x32xf32>
    %cst_119 = arith.constant 0.000000e+00 : f32
    %198 = vector.broadcast %cst_119 : f32 to vector<16x32xf32>
    %199 = arith.minimumf %195, %198 : vector<16x32xf32>
    %200 = math.exp %199 : vector<16x32xf32>
    %cst_120 = arith.constant 1.000000e+00 : f32
    %201 = vector.broadcast %cst_120 : f32 to vector<16x32xf32>
    %202 = arith.subf %200, %201 : vector<16x32xf32>
    %203 = arith.select %197, %195, %202 : vector<16x32xi1>, vector<16x32xf32>
    %cst_121 = arith.constant -1.000000e+30 : f32
    %204 = vector.broadcast %cst_121 : f32 to vector<1x32xf32>
    %205 = vector.extract_strided_slice %203 {offsets = [0, 0], sizes = [15, 32], strides = [1, 1]} : vector<16x32xf32> to vector<15x32xf32>
    %206 = tpu.concatenate %204, %205 in 0 : vector<1x32xf32>, vector<15x32xf32> -> vector<16x32xf32>
    %207 = vector.extract_strided_slice %203 {offsets = [1, 0], sizes = [15, 32], strides = [1, 1]} : vector<16x32xf32> to vector<15x32xf32>
    %208 = tpu.concatenate %207, %204 in 0 : vector<15x32xf32>, vector<1x32xf32> -> vector<16x32xf32>
    %209 = arith.maximumf %206, %203 : vector<16x32xf32>
    %210 = arith.maximumf %209, %208 : vector<16x32xf32>
    %c0_122 = arith.constant 0 : index
    %c0_123 = arith.constant 0 : index
    %211 = vector.load %arg24[%c0_122, %c0_123] : memref<16x32xf32, #tpu.memory_space<vmem>>, vector<16x32xf32>
    tpu.vector_store %arg24[%c0_122, %c0_123], %210 {strides = array<i32>} : memref<16x32xf32, #tpu.memory_space<vmem>>, vector<16x32xf32>,
    %c0_124 = arith.constant 0 : index
    %c0_125 = arith.constant 0 : index
    %212 = tpu.strided_load %arg24[%c0_124, %c0_125] {strides = array<i32: 2, 1>} : memref<16x32xf32, #tpu.memory_space<vmem>>, vector<8x32xf32>
    %c0_126 = arith.constant 0 : index
    %c0_127 = arith.constant 0 : index
    %c0_128 = arith.constant 0 : index
    %213 = vector.load %arg23[%c0_126, %c0_127, %c0_128] : memref<1x8x32xf32, #tpu.memory_space<vmem>>, vector<1x8x32xf32>
    %214 = vector.shape_cast %213 : vector<1x8x32xf32> to vector<8x32xf32>
    %215 = vector.shape_cast %212 : vector<8x32xf32> to vector<1x8x32xf32>
    tpu.vector_store %arg23[%c0_126, %c0_127, %c0_128], %215 {strides = array<i32>} : memref<1x8x32xf32, #tpu.memory_space<vmem>>, vector<1x8x32xf32>,
    return
  }
  func.func @transform_0(%arg0: i32) -> (i32, i32, i32) {
    %c0_i32 = arith.constant 0 : i32
    %c0_i32_0 = arith.constant 0 : i32
    %c0_i32_1 = arith.constant 0 : i32
    return %arg0, %c0_i32, %c0_i32_0 : i32, i32, i32
  }
  func.func @transform_1(%arg0: i32) -> (i32, i32) {
    %c0_i32 = arith.constant 0 : i32
    %c0_i32_0 = arith.constant 0 : i32
    %c0_i32_1 = arith.constant 0 : i32
    return %c0_i32, %c0_i32_0 : i32, i32
  }
  func.func @transform_2(%arg0: i32) -> (i32, i32) {
    %c0_i32 = arith.constant 0 : i32
    %c0_i32_0 = arith.constant 0 : i32
    %c0_i32_1 = arith.constant 0 : i32
    return %c0_i32, %c0_i32_0 : i32, i32
  }
  func.func @transform_3(%arg0: i32) -> (i32, i32) {
    %c0_i32 = arith.constant 0 : i32
    %c0_i32_0 = arith.constant 0 : i32
    %c0_i32_1 = arith.constant 0 : i32
    return %c0_i32, %c0_i32_0 : i32, i32
  }
  func.func @transform_4(%arg0: i32) -> (i32, i32, i32) {
    %c0_i32 = arith.constant 0 : i32
    %c0_i32_0 = arith.constant 0 : i32
    %c0_i32_1 = arith.constant 0 : i32
    %c0_i32_2 = arith.constant 0 : i32
    return %c0_i32, %c0_i32_0, %c0_i32_1 : i32, i32, i32
  }
  func.func @transform_5(%arg0: i32) -> (i32, i32, i32) {
    %c0_i32 = arith.constant 0 : i32
    %c0_i32_0 = arith.constant 0 : i32
    %c0_i32_1 = arith.constant 0 : i32
    %c0_i32_2 = arith.constant 0 : i32
    return %c0_i32, %c0_i32_0, %c0_i32_1 : i32, i32, i32
  }
  func.func @transform_6(%arg0: i32) -> (i32, i32, i32) {
    %c0_i32 = arith.constant 0 : i32
    %c0_i32_0 = arith.constant 0 : i32
    %c0_i32_1 = arith.constant 0 : i32
    %c0_i32_2 = arith.constant 0 : i32
    return %c0_i32, %c0_i32_0, %c0_i32_1 : i32, i32, i32
  }
  func.func @transform_7(%arg0: i32) -> (i32, i32, i32) {
    %c0_i32 = arith.constant 0 : i32
    %c0_i32_0 = arith.constant 0 : i32
    %c0_i32_1 = arith.constant 0 : i32
    %c0_i32_2 = arith.constant 0 : i32
    return %c0_i32, %c0_i32_0, %c0_i32_1 : i32, i32, i32
  }
  func.func @transform_8(%arg0: i32) -> (i32, i32, i32) {
    %c0_i32 = arith.constant 0 : i32
    %c0_i32_0 = arith.constant 0 : i32
    %c0_i32_1 = arith.constant 0 : i32
    %c0_i32_2 = arith.constant 0 : i32
    return %c0_i32, %c0_i32_0, %c0_i32_1 : i32, i32, i32
  }
  func.func @transform_9(%arg0: i32) -> (i32, i32, i32) {
    %c0_i32 = arith.constant 0 : i32
    %c0_i32_0 = arith.constant 0 : i32
    %c0_i32_1 = arith.constant 0 : i32
    %c0_i32_2 = arith.constant 0 : i32
    return %c0_i32, %c0_i32_0, %c0_i32_1 : i32, i32, i32
  }
  func.func @transform_10(%arg0: i32) -> (i32, i32) {
    %c0_i32 = arith.constant 0 : i32
    %c0_i32_0 = arith.constant 0 : i32
    %c0_i32_1 = arith.constant 0 : i32
    return %c0_i32, %c0_i32_0 : i32, i32
  }
  func.func @transform_11(%arg0: i32) -> (i32, i32) {
    %c0_i32 = arith.constant 0 : i32
    %c0_i32_0 = arith.constant 0 : i32
    %c0_i32_1 = arith.constant 0 : i32
    return %c0_i32, %c0_i32_0 : i32, i32
  }
  func.func @transform_12(%arg0: i32) -> (i32, i32) {
    %c0_i32 = arith.constant 0 : i32
    %c0_i32_0 = arith.constant 0 : i32
    %c0_i32_1 = arith.constant 0 : i32
    return %c0_i32, %c0_i32_0 : i32, i32
  }
  func.func @transform_13(%arg0: i32) -> (i32, i32) {
    %c0_i32 = arith.constant 0 : i32
    %c0_i32_0 = arith.constant 0 : i32
    %c0_i32_1 = arith.constant 0 : i32
    return %c0_i32, %c0_i32_0 : i32, i32
  }
  func.func @transform_14(%arg0: i32) -> (i32, i32) {
    %c0_i32 = arith.constant 0 : i32
    %c0_i32_0 = arith.constant 0 : i32
    %c0_i32_1 = arith.constant 0 : i32
    return %c0_i32, %c0_i32_0 : i32, i32
  }
  func.func @transform_15(%arg0: i32) -> (i32, i32) {
    %c0_i32 = arith.constant 0 : i32
    %c0_i32_0 = arith.constant 0 : i32
    %c0_i32_1 = arith.constant 0 : i32
    return %c0_i32, %c0_i32_0 : i32, i32
  }
  func.func @transform_16(%arg0: i32) -> (i32, i32) {
    %c0_i32 = arith.constant 0 : i32
    %c0_i32_0 = arith.constant 0 : i32
    %c0_i32_1 = arith.constant 0 : i32
    return %c0_i32, %c0_i32_0 : i32, i32
  }
  func.func @transform_17(%arg0: i32) -> (i32, i32) {
    %c0_i32 = arith.constant 0 : i32
    %c0_i32_0 = arith.constant 0 : i32
    %c0_i32_1 = arith.constant 0 : i32
    return %c0_i32, %c0_i32_0 : i32, i32
  }
  func.func @transform_18(%arg0: i32) -> (i32, i32) {
    %c0_i32 = arith.constant 0 : i32
    %c0_i32_0 = arith.constant 0 : i32
    %c0_i32_1 = arith.constant 0 : i32
    return %c0_i32, %c0_i32_0 : i32, i32
  }
  func.func @transform_19(%arg0: i32) -> (i32, i32) {
    %c0_i32 = arith.constant 0 : i32
    %c0_i32_0 = arith.constant 0 : i32
    %c0_i32_1 = arith.constant 0 : i32
    return %c0_i32, %c0_i32_0 : i32, i32
  }
  func.func @transform_20(%arg0: i32) -> (i32, i32, i32) {
    %c0_i32 = arith.constant 0 : i32
    %c0_i32_0 = arith.constant 0 : i32
    %c0_i32_1 = arith.constant 0 : i32
    %c0_i32_2 = arith.constant 0 : i32
    return %c0_i32, %c0_i32_0, %c0_i32_1 : i32, i32, i32
  }
  func.func @transform_21(%arg0: i32) -> (i32, i32) {
    %c0_i32 = arith.constant 0 : i32
    %c0_i32_0 = arith.constant 0 : i32
    %c0_i32_1 = arith.constant 0 : i32
    return %c0_i32, %c0_i32_0 : i32, i32
  }
  func.func @transform_22(%arg0: i32) -> (i32, i32, i32) {
    %c0_i32 = arith.constant 0 : i32
    %c0_i32_0 = arith.constant 0 : i32
    %c0_i32_1 = arith.constant 0 : i32
    return %arg0, %c0_i32, %c0_i32_0 : i32, i32, i32
  }
}

module attributes {stable_mosaic.version = 11 : i64} {
  func.func @_dec_layer_kernel(%arg0: i32, %arg1: memref<1x8x4xf32, #tpu.memory_space<vmem>>, %arg2: memref<1x8x32xf32, #tpu.memory_space<vmem>>, %arg3: memref<4x32xf32, #tpu.memory_space<vmem>>, %arg4: memref<1x32xf32, #tpu.memory_space<vmem>>, %arg5: memref<8x32xf32, #tpu.memory_space<vmem>>, %arg6: memref<4x32x8xbf16, #tpu.memory_space<vmem>>, %arg7: memref<4x32x8xbf16, #tpu.memory_space<vmem>>, %arg8: memref<4x32x8xbf16, #tpu.memory_space<vmem>>, %arg9: memref<4x1x8xf32, #tpu.memory_space<vmem>>, %arg10: memref<4x1x8xf32, #tpu.memory_space<vmem>>, %arg11: memref<4x1x8xf32, #tpu.memory_space<vmem>>, %arg12: memref<32x32xbf16, #tpu.memory_space<vmem>>, %arg13: memref<1x32xf32, #tpu.memory_space<vmem>>, %arg14: memref<1x32xf32, #tpu.memory_space<vmem>>, %arg15: memref<1x32xf32, #tpu.memory_space<vmem>>, %arg16: memref<4x32x8xbf16, #tpu.memory_space<vmem>>, %arg17: memref<4x32x8xbf16, #tpu.memory_space<vmem>>, %arg18: memref<4x32x8xbf16, #tpu.memory_space<vmem>>, %arg19: memref<4x1x8xf32, #tpu.memory_space<vmem>>, %arg20: memref<4x1x8xf32, #tpu.memory_space<vmem>>, %arg21: memref<4x1x8xf32, #tpu.memory_space<vmem>>, %arg22: memref<32x32xbf16, #tpu.memory_space<vmem>>, %arg23: memref<1x32xf32, #tpu.memory_space<vmem>>, %arg24: memref<1x32xf32, #tpu.memory_space<vmem>>, %arg25: memref<1x32xf32, #tpu.memory_space<vmem>>, %arg26: memref<32x32xbf16, #tpu.memory_space<vmem>>, %arg27: memref<1x32xf32, #tpu.memory_space<vmem>>, %arg28: memref<32x32xbf16, #tpu.memory_space<vmem>>, %arg29: memref<1x32xf32, #tpu.memory_space<vmem>>, %arg30: memref<1x32xf32, #tpu.memory_space<vmem>>, %arg31: memref<1x32xf32, #tpu.memory_space<vmem>>, %arg32: memref<1x8x32xf32, #tpu.memory_space<vmem>>) attributes {dimension_semantics = [#tpu.dimension_semantics<parallel>], iteration_bounds = array<i64: 2>, scalar_prefetch = 0 : i64, scratch_operands = 0 : i64, tpu.core_type = #tpu.core_type<tc>, window_params = [{transform_indices = @transform_0, window_bounds = array<i64: 1, 8, 4>}, {transform_indices = @transform_1, window_bounds = array<i64: 1, 8, 32>}, {pipeline_mode = #tpu.pipeline_mode<synchronous>, transform_indices = @transform_2, window_bounds = array<i64: 4, 32>}, {pipeline_mode = #tpu.pipeline_mode<synchronous>, transform_indices = @transform_3, window_bounds = array<i64: 1, 32>}, {pipeline_mode = #tpu.pipeline_mode<synchronous>, transform_indices = @transform_4, window_bounds = array<i64: 8, 32>}, {pipeline_mode = #tpu.pipeline_mode<synchronous>, transform_indices = @transform_5, window_bounds = array<i64: 4, 32, 8>}, {pipeline_mode = #tpu.pipeline_mode<synchronous>, transform_indices = @transform_6, window_bounds = array<i64: 4, 32, 8>}, {pipeline_mode = #tpu.pipeline_mode<synchronous>, transform_indices = @transform_7, window_bounds = array<i64: 4, 32, 8>}, {pipeline_mode = #tpu.pipeline_mode<synchronous>, transform_indices = @transform_8, window_bounds = array<i64: 4, 1, 8>}, {pipeline_mode = #tpu.pipeline_mode<synchronous>, transform_indices = @transform_9, window_bounds = array<i64: 4, 1, 8>}, {pipeline_mode = #tpu.pipeline_mode<synchronous>, transform_indices = @transform_10, window_bounds = array<i64: 4, 1, 8>}, {pipeline_mode = #tpu.pipeline_mode<synchronous>, transform_indices = @transform_11, window_bounds = array<i64: 32, 32>}, {pipeline_mode = #tpu.pipeline_mode<synchronous>, transform_indices = @transform_12, window_bounds = array<i64: 1, 32>}, {pipeline_mode = #tpu.pipeline_mode<synchronous>, transform_indices = @transform_13, window_bounds = array<i64: 1, 32>}, {pipeline_mode = #tpu.pipeline_mode<synchronous>, transform_indices = @transform_14, window_bounds = array<i64: 1, 32>}, {pipeline_mode = #tpu.pipeline_mode<synchronous>, transform_indices = @transform_15, window_bounds = array<i64: 4, 32, 8>}, {pipeline_mode = #tpu.pipeline_mode<synchronous>, transform_indices = @transform_16, window_bounds = array<i64: 4, 32, 8>}, {pipeline_mode = #tpu.pipeline_mode<synchronous>, transform_indices = @transform_17, window_bounds = array<i64: 4, 32, 8>}, {pipeline_mode = #tpu.pipeline_mode<synchronous>, transform_indices = @transform_18, window_bounds = array<i64: 4, 1, 8>}, {pipeline_mode = #tpu.pipeline_mode<synchronous>, transform_indices = @transform_19, window_bounds = array<i64: 4, 1, 8>}, {pipeline_mode = #tpu.pipeline_mode<synchronous>, transform_indices = @transform_20, window_bounds = array<i64: 4, 1, 8>}, {pipeline_mode = #tpu.pipeline_mode<synchronous>, transform_indices = @transform_21, window_bounds = array<i64: 32, 32>}, {pipeline_mode = #tpu.pipeline_mode<synchronous>, transform_indices = @transform_22, window_bounds = array<i64: 1, 32>}, {pipeline_mode = #tpu.pipeline_mode<synchronous>, transform_indices = @transform_23, window_bounds = array<i64: 1, 32>}, {pipeline_mode = #tpu.pipeline_mode<synchronous>, transform_indices = @transform_24, window_bounds = array<i64: 1, 32>}, {pipeline_mode = #tpu.pipeline_mode<synchronous>, transform_indices = @transform_25, window_bounds = array<i64: 32, 32>}, {pipeline_mode = #tpu.pipeline_mode<synchronous>, transform_indices = @transform_26, window_bounds = array<i64: 1, 32>}, {pipeline_mode = #tpu.pipeline_mode<synchronous>, transform_indices = @transform_27, window_bounds = array<i64: 32, 32>}, {pipeline_mode = #tpu.pipeline_mode<synchronous>, transform_indices = @transform_28, window_bounds = array<i64: 1, 32>}, {pipeline_mode = #tpu.pipeline_mode<synchronous>, transform_indices = @transform_29, window_bounds = array<i64: 1, 32>}, {pipeline_mode = #tpu.pipeline_mode<synchronous>, transform_indices = @transform_30, window_bounds = array<i64: 1, 32>}, {transform_indices = @transform_31, window_bounds = array<i64: 1, 8, 32>}]} {
    %c0 = arith.constant 0 : index
    %c0_0 = arith.constant 0 : index
    %c0_1 = arith.constant 0 : index
    %0 = vector.load %arg1[%c0, %c0_0, %c0_1] : memref<1x8x4xf32, #tpu.memory_space<vmem>>, vector<1x8x4xf32>
    %1 = vector.shape_cast %0 : vector<1x8x4xf32> to vector<8x4xf32>
    %c0_2 = arith.constant 0 : index
    %c0_3 = arith.constant 0 : index
    %2 = vector.load %arg3[%c0_2, %c0_3] : memref<4x32xf32, #tpu.memory_space<vmem>>, vector<4x32xf32>
    %cst = arith.constant dense<0.000000e+00> : vector<8x32xf32>
    %3 = tpu.matmul %1, %2, %cst {dimension_numbers = #tpu.dot_dimension_numbers<[1], [0], [0], [1], [0, 0, 1, 1], [], []>} : vector<8x4xf32>, vector<4x32xf32>, vector<8x32xf32> -> vector<8x32xf32>
    %c0_4 = arith.constant 0 : index
    %c0_5 = arith.constant 0 : index
    %4 = vector.load %arg4[%c0_4, %c0_5] : memref<1x32xf32, #tpu.memory_space<vmem>>, vector<1x32xf32>
    %5 = vector.broadcast %4 : vector<1x32xf32> to vector<8x32xf32>
    %6 = arith.addf %3, %5 : vector<8x32xf32>
    %c0_6 = arith.constant 0 : index
    %c0_7 = arith.constant 0 : index
    %7 = vector.load %arg5[%c0_6, %c0_7] : memref<8x32xf32, #tpu.memory_space<vmem>>, vector<8x32xf32>
    %8 = arith.addf %6, %7 : vector<8x32xf32>
    %c0_8 = arith.constant 0 : index
    %c0_9 = arith.constant 0 : index
    %c0_10 = arith.constant 0 : index
    %9 = vector.load %arg2[%c0_8, %c0_9, %c0_10] : memref<1x8x32xf32, #tpu.memory_space<vmem>>, vector<1x8x32xf32>
    %10 = vector.shape_cast %9 : vector<1x8x32xf32> to vector<8x32xf32>
    %11 = arith.truncf %8 : vector<8x32xf32> to vector<8x32xbf16>
    %c0_11 = arith.constant 0 : index
    %c0_12 = arith.constant 0 : index
    %c0_13 = arith.constant 0 : index
    %12 = vector.load %arg6[%c0_11, %c0_12, %c0_13] : memref<4x32x8xbf16, #tpu.memory_space<vmem>>, vector<1x32x8xbf16>
    %13 = vector.shape_cast %12 : vector<1x32x8xbf16> to vector<32x8xbf16>
    %cst_14 = arith.constant dense<0.000000e+00> : vector<8x8xf32>
    %14 = tpu.matmul %11, %13, %cst_14 {dimension_numbers = #tpu.dot_dimension_numbers<[1], [0], [0], [1], [0, 0, 1, 1], [], []>} : vector<8x32xbf16>, vector<32x8xbf16>, vector<8x8xf32> -> vector<8x8xf32>
    %c1 = arith.constant 1 : index
    %c0_15 = arith.constant 0 : index
    %c0_16 = arith.constant 0 : index
    %15 = vector.load %arg6[%c1, %c0_15, %c0_16] : memref<4x32x8xbf16, #tpu.memory_space<vmem>>, vector<1x32x8xbf16>
    %16 = vector.shape_cast %15 : vector<1x32x8xbf16> to vector<32x8xbf16>
    %cst_17 = arith.constant dense<0.000000e+00> : vector<8x8xf32>
    %17 = tpu.matmul %11, %16, %cst_17 {dimension_numbers = #tpu.dot_dimension_numbers<[1], [0], [0], [1], [0, 0, 1, 1], [], []>} : vector<8x32xbf16>, vector<32x8xbf16>, vector<8x8xf32> -> vector<8x8xf32>
    %c2 = arith.constant 2 : index
    %c0_18 = arith.constant 0 : index
    %c0_19 = arith.constant 0 : index
    %18 = vector.load %arg6[%c2, %c0_18, %c0_19] : memref<4x32x8xbf16, #tpu.memory_space<vmem>>, vector<1x32x8xbf16>
    %19 = vector.shape_cast %18 : vector<1x32x8xbf16> to vector<32x8xbf16>
    %cst_20 = arith.constant dense<0.000000e+00> : vector<8x8xf32>
    %20 = tpu.matmul %11, %19, %cst_20 {dimension_numbers = #tpu.dot_dimension_numbers<[1], [0], [0], [1], [0, 0, 1, 1], [], []>} : vector<8x32xbf16>, vector<32x8xbf16>, vector<8x8xf32> -> vector<8x8xf32>
    %c3 = arith.constant 3 : index
    %c0_21 = arith.constant 0 : index
    %c0_22 = arith.constant 0 : index
    %21 = vector.load %arg6[%c3, %c0_21, %c0_22] : memref<4x32x8xbf16, #tpu.memory_space<vmem>>, vector<1x32x8xbf16>
    %22 = vector.shape_cast %21 : vector<1x32x8xbf16> to vector<32x8xbf16>
    %cst_23 = arith.constant dense<0.000000e+00> : vector<8x8xf32>
    %23 = tpu.matmul %11, %22, %cst_23 {dimension_numbers = #tpu.dot_dimension_numbers<[1], [0], [0], [1], [0, 0, 1, 1], [], []>} : vector<8x32xbf16>, vector<32x8xbf16>, vector<8x8xf32> -> vector<8x8xf32>
    %24 = vector.shape_cast %14 : vector<8x8xf32> to vector<1x8x8xf32>
    %25 = vector.shape_cast %17 : vector<8x8xf32> to vector<1x8x8xf32>
    %26 = vector.shape_cast %20 : vector<8x8xf32> to vector<1x8x8xf32>
    %27 = vector.shape_cast %23 : vector<8x8xf32> to vector<1x8x8xf32>
    %28 = tpu.concatenate %24, %25, %26, %27 in 0 : vector<1x8x8xf32>, vector<1x8x8xf32>, vector<1x8x8xf32>, vector<1x8x8xf32> -> vector<4x8x8xf32>
    %c0_24 = arith.constant 0 : index
    %c0_25 = arith.constant 0 : index
    %c0_26 = arith.constant 0 : index
    %29 = vector.load %arg9[%c0_24, %c0_25, %c0_26] : memref<4x1x8xf32, #tpu.memory_space<vmem>>, vector<4x1x8xf32>
    %30 = vector.broadcast %29 : vector<4x1x8xf32> to vector<4x8x8xf32>
    %31 = arith.addf %28, %30 : vector<4x8x8xf32>
    %c0_27 = arith.constant 0 : index
    %c0_28 = arith.constant 0 : index
    %c0_29 = arith.constant 0 : index
    %32 = vector.load %arg7[%c0_27, %c0_28, %c0_29] : memref<4x32x8xbf16, #tpu.memory_space<vmem>>, vector<1x32x8xbf16>
    %33 = vector.shape_cast %32 : vector<1x32x8xbf16> to vector<32x8xbf16>
    %cst_30 = arith.constant dense<0.000000e+00> : vector<8x8xf32>
    %34 = tpu.matmul %11, %33, %cst_30 {dimension_numbers = #tpu.dot_dimension_numbers<[1], [0], [0], [1], [0, 0, 1, 1], [], []>} : vector<8x32xbf16>, vector<32x8xbf16>, vector<8x8xf32> -> vector<8x8xf32>
    %c1_31 = arith.constant 1 : index
    %c0_32 = arith.constant 0 : index
    %c0_33 = arith.constant 0 : index
    %35 = vector.load %arg7[%c1_31, %c0_32, %c0_33] : memref<4x32x8xbf16, #tpu.memory_space<vmem>>, vector<1x32x8xbf16>
    %36 = vector.shape_cast %35 : vector<1x32x8xbf16> to vector<32x8xbf16>
    %cst_34 = arith.constant dense<0.000000e+00> : vector<8x8xf32>
    %37 = tpu.matmul %11, %36, %cst_34 {dimension_numbers = #tpu.dot_dimension_numbers<[1], [0], [0], [1], [0, 0, 1, 1], [], []>} : vector<8x32xbf16>, vector<32x8xbf16>, vector<8x8xf32> -> vector<8x8xf32>
    %c2_35 = arith.constant 2 : index
    %c0_36 = arith.constant 0 : index
    %c0_37 = arith.constant 0 : index
    %38 = vector.load %arg7[%c2_35, %c0_36, %c0_37] : memref<4x32x8xbf16, #tpu.memory_space<vmem>>, vector<1x32x8xbf16>
    %39 = vector.shape_cast %38 : vector<1x32x8xbf16> to vector<32x8xbf16>
    %cst_38 = arith.constant dense<0.000000e+00> : vector<8x8xf32>
    %40 = tpu.matmul %11, %39, %cst_38 {dimension_numbers = #tpu.dot_dimension_numbers<[1], [0], [0], [1], [0, 0, 1, 1], [], []>} : vector<8x32xbf16>, vector<32x8xbf16>, vector<8x8xf32> -> vector<8x8xf32>
    %c3_39 = arith.constant 3 : index
    %c0_40 = arith.constant 0 : index
    %c0_41 = arith.constant 0 : index
    %41 = vector.load %arg7[%c3_39, %c0_40, %c0_41] : memref<4x32x8xbf16, #tpu.memory_space<vmem>>, vector<1x32x8xbf16>
    %42 = vector.shape_cast %41 : vector<1x32x8xbf16> to vector<32x8xbf16>
    %cst_42 = arith.constant dense<0.000000e+00> : vector<8x8xf32>
    %43 = tpu.matmul %11, %42, %cst_42 {dimension_numbers = #tpu.dot_dimension_numbers<[1], [0], [0], [1], [0, 0, 1, 1], [], []>} : vector<8x32xbf16>, vector<32x8xbf16>, vector<8x8xf32> -> vector<8x8xf32>
    %44 = vector.shape_cast %34 : vector<8x8xf32> to vector<1x8x8xf32>
    %45 = vector.shape_cast %37 : vector<8x8xf32> to vector<1x8x8xf32>
    %46 = vector.shape_cast %40 : vector<8x8xf32> to vector<1x8x8xf32>
    %47 = vector.shape_cast %43 : vector<8x8xf32> to vector<1x8x8xf32>
    %48 = tpu.concatenate %44, %45, %46, %47 in 0 : vector<1x8x8xf32>, vector<1x8x8xf32>, vector<1x8x8xf32>, vector<1x8x8xf32> -> vector<4x8x8xf32>
    %c0_43 = arith.constant 0 : index
    %c0_44 = arith.constant 0 : index
    %c0_45 = arith.constant 0 : index
    %49 = vector.load %arg10[%c0_43, %c0_44, %c0_45] : memref<4x1x8xf32, #tpu.memory_space<vmem>>, vector<4x1x8xf32>
    %50 = vector.broadcast %49 : vector<4x1x8xf32> to vector<4x8x8xf32>
    %51 = arith.addf %48, %50 : vector<4x8x8xf32>
    %c0_46 = arith.constant 0 : index
    %c0_47 = arith.constant 0 : index
    %c0_48 = arith.constant 0 : index
    %52 = vector.load %arg8[%c0_46, %c0_47, %c0_48] : memref<4x32x8xbf16, #tpu.memory_space<vmem>>, vector<1x32x8xbf16>
    %53 = vector.shape_cast %52 : vector<1x32x8xbf16> to vector<32x8xbf16>
    %cst_49 = arith.constant dense<0.000000e+00> : vector<8x8xf32>
    %54 = tpu.matmul %11, %53, %cst_49 {dimension_numbers = #tpu.dot_dimension_numbers<[1], [0], [0], [1], [0, 0, 1, 1], [], []>} : vector<8x32xbf16>, vector<32x8xbf16>, vector<8x8xf32> -> vector<8x8xf32>
    %c1_50 = arith.constant 1 : index
    %c0_51 = arith.constant 0 : index
    %c0_52 = arith.constant 0 : index
    %55 = vector.load %arg8[%c1_50, %c0_51, %c0_52] : memref<4x32x8xbf16, #tpu.memory_space<vmem>>, vector<1x32x8xbf16>
    %56 = vector.shape_cast %55 : vector<1x32x8xbf16> to vector<32x8xbf16>
    %cst_53 = arith.constant dense<0.000000e+00> : vector<8x8xf32>
    %57 = tpu.matmul %11, %56, %cst_53 {dimension_numbers = #tpu.dot_dimension_numbers<[1], [0], [0], [1], [0, 0, 1, 1], [], []>} : vector<8x32xbf16>, vector<32x8xbf16>, vector<8x8xf32> -> vector<8x8xf32>
    %c2_54 = arith.constant 2 : index
    %c0_55 = arith.constant 0 : index
    %c0_56 = arith.constant 0 : index
    %58 = vector.load %arg8[%c2_54, %c0_55, %c0_56] : memref<4x32x8xbf16, #tpu.memory_space<vmem>>, vector<1x32x8xbf16>
    %59 = vector.shape_cast %58 : vector<1x32x8xbf16> to vector<32x8xbf16>
    %cst_57 = arith.constant dense<0.000000e+00> : vector<8x8xf32>
    %60 = tpu.matmul %11, %59, %cst_57 {dimension_numbers = #tpu.dot_dimension_numbers<[1], [0], [0], [1], [0, 0, 1, 1], [], []>} : vector<8x32xbf16>, vector<32x8xbf16>, vector<8x8xf32> -> vector<8x8xf32>
    %c3_58 = arith.constant 3 : index
    %c0_59 = arith.constant 0 : index
    %c0_60 = arith.constant 0 : index
    %61 = vector.load %arg8[%c3_58, %c0_59, %c0_60] : memref<4x32x8xbf16, #tpu.memory_space<vmem>>, vector<1x32x8xbf16>
    %62 = vector.shape_cast %61 : vector<1x32x8xbf16> to vector<32x8xbf16>
    %cst_61 = arith.constant dense<0.000000e+00> : vector<8x8xf32>
    %63 = tpu.matmul %11, %62, %cst_61 {dimension_numbers = #tpu.dot_dimension_numbers<[1], [0], [0], [1], [0, 0, 1, 1], [], []>} : vector<8x32xbf16>, vector<32x8xbf16>, vector<8x8xf32> -> vector<8x8xf32>
    %64 = vector.shape_cast %54 : vector<8x8xf32> to vector<1x8x8xf32>
    %65 = vector.shape_cast %57 : vector<8x8xf32> to vector<1x8x8xf32>
    %66 = vector.shape_cast %60 : vector<8x8xf32> to vector<1x8x8xf32>
    %67 = vector.shape_cast %63 : vector<8x8xf32> to vector<1x8x8xf32>
    %68 = tpu.concatenate %64, %65, %66, %67 in 0 : vector<1x8x8xf32>, vector<1x8x8xf32>, vector<1x8x8xf32>, vector<1x8x8xf32> -> vector<4x8x8xf32>
    %c0_62 = arith.constant 0 : index
    %c0_63 = arith.constant 0 : index
    %c0_64 = arith.constant 0 : index
    %69 = vector.load %arg11[%c0_62, %c0_63, %c0_64] : memref<4x1x8xf32, #tpu.memory_space<vmem>>, vector<4x1x8xf32>
    %70 = vector.broadcast %69 : vector<4x1x8xf32> to vector<4x8x8xf32>
    %71 = arith.addf %68, %70 : vector<4x8x8xf32>
    %72 = arith.truncf %31 : vector<4x8x8xf32> to vector<4x8x8xbf16>
    %73 = arith.truncf %51 : vector<4x8x8xf32> to vector<4x8x8xbf16>
    "tpu.trace_start"() <{level = 10 : i32, message = "hqd,hkd->hqk"}> : () -> ()
    %cst_65 = arith.constant dense<0.000000e+00> : vector<4x8x8xf32>
    %74 = tpu.matmul %72, %73, %cst_65 {dimension_numbers = #tpu.dot_dimension_numbers<[2], [2], [1], [1], [0, 0, 0, 1, 1, 1], [0], [0]>} : vector<4x8x8xbf16>, vector<4x8x8xbf16>, vector<4x8x8xf32> -> vector<4x8x8xf32>
    "tpu.trace_stop"() : () -> ()
    %cst_66 = arith.constant 0.353553385 : f32
    %75 = vector.broadcast %cst_66 : f32 to vector<4x8x8xf32>
    %76 = arith.mulf %74, %75 : vector<4x8x8xf32>
    %cst_67 = arith.constant dense<0xFF800000> : vector<4x8xf32>
    %77 = vector.multi_reduction <maximumf>, %76, %cst_67 [2] : vector<4x8x8xf32> to vector<4x8xf32>
    %78 = vector.shape_cast %77 : vector<4x8xf32> to vector<4x8x1xf32>
    %79 = vector.broadcast %78 : vector<4x8x1xf32> to vector<4x8x8xf32>
    %80 = arith.subf %76, %79 : vector<4x8x8xf32>
    %81 = math.exp %80 : vector<4x8x8xf32>
    %cst_68 = arith.constant dense<0.000000e+00> : vector<4x8xf32>
    %82 = vector.multi_reduction <add>, %81, %cst_68 [2] : vector<4x8x8xf32> to vector<4x8xf32>
    %83 = vector.shape_cast %82 : vector<4x8xf32> to vector<4x8x1xf32>
    %84 = vector.broadcast %83 : vector<4x8x1xf32> to vector<4x8x8xf32>
    %85 = arith.divf %81, %84 : vector<4x8x8xf32>
    %86 = arith.truncf %85 : vector<4x8x8xf32> to vector<4x8x8xbf16>
    %87 = arith.truncf %71 : vector<4x8x8xf32> to vector<4x8x8xbf16>
    "tpu.trace_start"() <{level = 10 : i32, message = "hqk,hkd->hqd"}> : () -> ()
    %cst_69 = arith.constant dense<0.000000e+00> : vector<4x8x8xf32>
    %88 = tpu.matmul %86, %87, %cst_69 {dimension_numbers = #tpu.dot_dimension_numbers<[2], [1], [1], [2], [0, 0, 0, 1, 1, 2], [0], [0]>} : vector<4x8x8xbf16>, vector<4x8x8xbf16>, vector<4x8x8xf32> -> vector<4x8x8xf32>
    "tpu.trace_stop"() : () -> ()
    %89 = vector.extract_strided_slice %88 {offsets = [0, 0, 0], sizes = [1, 8, 8], strides = [1, 1, 1]} : vector<4x8x8xf32> to vector<1x8x8xf32>
    %90 = vector.shape_cast %89 : vector<1x8x8xf32> to vector<8x8xf32>
    %91 = vector.extract_strided_slice %88 {offsets = [1, 0, 0], sizes = [1, 8, 8], strides = [1, 1, 1]} : vector<4x8x8xf32> to vector<1x8x8xf32>
    %92 = vector.shape_cast %91 : vector<1x8x8xf32> to vector<8x8xf32>
    %93 = vector.extract_strided_slice %88 {offsets = [2, 0, 0], sizes = [1, 8, 8], strides = [1, 1, 1]} : vector<4x8x8xf32> to vector<1x8x8xf32>
    %94 = vector.shape_cast %93 : vector<1x8x8xf32> to vector<8x8xf32>
    %95 = vector.extract_strided_slice %88 {offsets = [3, 0, 0], sizes = [1, 8, 8], strides = [1, 1, 1]} : vector<4x8x8xf32> to vector<1x8x8xf32>
    %96 = vector.shape_cast %95 : vector<1x8x8xf32> to vector<8x8xf32>
    %97 = tpu.concatenate %90, %92, %94, %96 in 1 : vector<8x8xf32>, vector<8x8xf32>, vector<8x8xf32>, vector<8x8xf32> -> vector<8x32xf32>
    %98 = arith.truncf %97 : vector<8x32xf32> to vector<8x32xbf16>
    %c0_70 = arith.constant 0 : index
    %c0_71 = arith.constant 0 : index
    %99 = vector.load %arg12[%c0_70, %c0_71] : memref<32x32xbf16, #tpu.memory_space<vmem>>, vector<32x32xbf16>
    %cst_72 = arith.constant dense<0.000000e+00> : vector<8x32xf32>
    %100 = tpu.matmul %98, %99, %cst_72 {dimension_numbers = #tpu.dot_dimension_numbers<[1], [0], [0], [1], [0, 0, 1, 1], [], []>} : vector<8x32xbf16>, vector<32x32xbf16>, vector<8x32xf32> -> vector<8x32xf32>
    %c0_73 = arith.constant 0 : index
    %c0_74 = arith.constant 0 : index
    %101 = vector.load %arg13[%c0_73, %c0_74] : memref<1x32xf32, #tpu.memory_space<vmem>>, vector<1x32xf32>
    %102 = vector.broadcast %101 : vector<1x32xf32> to vector<8x32xf32>
    %103 = arith.addf %100, %102 : vector<8x32xf32>
    %104 = arith.addf %8, %103 : vector<8x32xf32>
    %c0_75 = arith.constant 0 : index
    %c0_76 = arith.constant 0 : index
    %105 = vector.load %arg14[%c0_75, %c0_76] : memref<1x32xf32, #tpu.memory_space<vmem>>, vector<1x32xf32>
    %c0_77 = arith.constant 0 : index
    %c0_78 = arith.constant 0 : index
    %106 = vector.load %arg15[%c0_77, %c0_78] : memref<1x32xf32, #tpu.memory_space<vmem>>, vector<1x32xf32>
    %cst_79 = arith.constant dense<0.000000e+00> : vector<8xf32>
    %107 = vector.multi_reduction <add>, %104, %cst_79 [1] : vector<8x32xf32> to vector<8xf32>
    %108 = vector.shape_cast %107 : vector<8xf32> to vector<8x1xf32>
    %cst_80 = arith.constant 3.200000e+01 : f32
    %109 = vector.broadcast %cst_80 : f32 to vector<8x1xf32>
    %110 = arith.divf %108, %109 : vector<8x1xf32>
    %111 = vector.broadcast %110 : vector<8x1xf32> to vector<8x32xf32>
    %112 = arith.subf %104, %111 : vector<8x32xf32>
    %113 = arith.mulf %112, %112 : vector<8x32xf32>
    %cst_81 = arith.constant dense<0.000000e+00> : vector<8xf32>
    %114 = vector.multi_reduction <add>, %113, %cst_81 [1] : vector<8x32xf32> to vector<8xf32>
    %115 = vector.shape_cast %114 : vector<8xf32> to vector<8x1xf32>
    %cst_82 = arith.constant 3.200000e+01 : f32
    %116 = vector.broadcast %cst_82 : f32 to vector<8x1xf32>
    %117 = arith.divf %115, %116 : vector<8x1xf32>
    %cst_83 = arith.constant 9.99999974E-6 : f32
    %118 = vector.broadcast %cst_83 : f32 to vector<8x1xf32>
    %119 = arith.addf %117, %118 : vector<8x1xf32>
    %120 = math.rsqrt %119 : vector<8x1xf32>
    %121 = vector.broadcast %120 : vector<8x1xf32> to vector<8x32xf32>
    %122 = arith.mulf %112, %121 : vector<8x32xf32>
    %123 = vector.broadcast %105 : vector<1x32xf32> to vector<8x32xf32>
    %124 = arith.mulf %122, %123 : vector<8x32xf32>
    %125 = vector.broadcast %106 : vector<1x32xf32> to vector<8x32xf32>
    %126 = arith.addf %124, %125 : vector<8x32xf32>
    %127 = arith.truncf %126 : vector<8x32xf32> to vector<8x32xbf16>
    %128 = arith.truncf %10 : vector<8x32xf32> to vector<8x32xbf16>
    %c0_84 = arith.constant 0 : index
    %c0_85 = arith.constant 0 : index
    %c0_86 = arith.constant 0 : index
    %129 = vector.load %arg16[%c0_84, %c0_85, %c0_86] : memref<4x32x8xbf16, #tpu.memory_space<vmem>>, vector<1x32x8xbf16>
    %130 = vector.shape_cast %129 : vector<1x32x8xbf16> to vector<32x8xbf16>
    %cst_87 = arith.constant dense<0.000000e+00> : vector<8x8xf32>
    %131 = tpu.matmul %127, %130, %cst_87 {dimension_numbers = #tpu.dot_dimension_numbers<[1], [0], [0], [1], [0, 0, 1, 1], [], []>} : vector<8x32xbf16>, vector<32x8xbf16>, vector<8x8xf32> -> vector<8x8xf32>
    %c1_88 = arith.constant 1 : index
    %c0_89 = arith.constant 0 : index
    %c0_90 = arith.constant 0 : index
    %132 = vector.load %arg16[%c1_88, %c0_89, %c0_90] : memref<4x32x8xbf16, #tpu.memory_space<vmem>>, vector<1x32x8xbf16>
    %133 = vector.shape_cast %132 : vector<1x32x8xbf16> to vector<32x8xbf16>
    %cst_91 = arith.constant dense<0.000000e+00> : vector<8x8xf32>
    %134 = tpu.matmul %127, %133, %cst_91 {dimension_numbers = #tpu.dot_dimension_numbers<[1], [0], [0], [1], [0, 0, 1, 1], [], []>} : vector<8x32xbf16>, vector<32x8xbf16>, vector<8x8xf32> -> vector<8x8xf32>
    %c2_92 = arith.constant 2 : index
    %c0_93 = arith.constant 0 : index
    %c0_94 = arith.constant 0 : index
    %135 = vector.load %arg16[%c2_92, %c0_93, %c0_94] : memref<4x32x8xbf16, #tpu.memory_space<vmem>>, vector<1x32x8xbf16>
    %136 = vector.shape_cast %135 : vector<1x32x8xbf16> to vector<32x8xbf16>
    %cst_95 = arith.constant dense<0.000000e+00> : vector<8x8xf32>
    %137 = tpu.matmul %127, %136, %cst_95 {dimension_numbers = #tpu.dot_dimension_numbers<[1], [0], [0], [1], [0, 0, 1, 1], [], []>} : vector<8x32xbf16>, vector<32x8xbf16>, vector<8x8xf32> -> vector<8x8xf32>
    %c3_96 = arith.constant 3 : index
    %c0_97 = arith.constant 0 : index
    %c0_98 = arith.constant 0 : index
    %138 = vector.load %arg16[%c3_96, %c0_97, %c0_98] : memref<4x32x8xbf16, #tpu.memory_space<vmem>>, vector<1x32x8xbf16>
    %139 = vector.shape_cast %138 : vector<1x32x8xbf16> to vector<32x8xbf16>
    %cst_99 = arith.constant dense<0.000000e+00> : vector<8x8xf32>
    %140 = tpu.matmul %127, %139, %cst_99 {dimension_numbers = #tpu.dot_dimension_numbers<[1], [0], [0], [1], [0, 0, 1, 1], [], []>} : vector<8x32xbf16>, vector<32x8xbf16>, vector<8x8xf32> -> vector<8x8xf32>
    %141 = vector.shape_cast %131 : vector<8x8xf32> to vector<1x8x8xf32>
    %142 = vector.shape_cast %134 : vector<8x8xf32> to vector<1x8x8xf32>
    %143 = vector.shape_cast %137 : vector<8x8xf32> to vector<1x8x8xf32>
    %144 = vector.shape_cast %140 : vector<8x8xf32> to vector<1x8x8xf32>
    %145 = tpu.concatenate %141, %142, %143, %144 in 0 : vector<1x8x8xf32>, vector<1x8x8xf32>, vector<1x8x8xf32>, vector<1x8x8xf32> -> vector<4x8x8xf32>
    %c0_100 = arith.constant 0 : index
    %c0_101 = arith.constant 0 : index
    %c0_102 = arith.constant 0 : index
    %146 = vector.load %arg19[%c0_100, %c0_101, %c0_102] : memref<4x1x8xf32, #tpu.memory_space<vmem>>, vector<4x1x8xf32>
    %147 = vector.broadcast %146 : vector<4x1x8xf32> to vector<4x8x8xf32>
    %148 = arith.addf %145, %147 : vector<4x8x8xf32>
    %c0_103 = arith.constant 0 : index
    %c0_104 = arith.constant 0 : index
    %c0_105 = arith.constant 0 : index
    %149 = vector.load %arg17[%c0_103, %c0_104, %c0_105] : memref<4x32x8xbf16, #tpu.memory_space<vmem>>, vector<1x32x8xbf16>
    %150 = vector.shape_cast %149 : vector<1x32x8xbf16> to vector<32x8xbf16>
    %cst_106 = arith.constant dense<0.000000e+00> : vector<8x8xf32>
    %151 = tpu.matmul %128, %150, %cst_106 {dimension_numbers = #tpu.dot_dimension_numbers<[1], [0], [0], [1], [0, 0, 1, 1], [], []>} : vector<8x32xbf16>, vector<32x8xbf16>, vector<8x8xf32> -> vector<8x8xf32>
    %c1_107 = arith.constant 1 : index
    %c0_108 = arith.constant 0 : index
    %c0_109 = arith.constant 0 : index
    %152 = vector.load %arg17[%c1_107, %c0_108, %c0_109] : memref<4x32x8xbf16, #tpu.memory_space<vmem>>, vector<1x32x8xbf16>
    %153 = vector.shape_cast %152 : vector<1x32x8xbf16> to vector<32x8xbf16>
    %cst_110 = arith.constant dense<0.000000e+00> : vector<8x8xf32>
    %154 = tpu.matmul %128, %153, %cst_110 {dimension_numbers = #tpu.dot_dimension_numbers<[1], [0], [0], [1], [0, 0, 1, 1], [], []>} : vector<8x32xbf16>, vector<32x8xbf16>, vector<8x8xf32> -> vector<8x8xf32>
    %c2_111 = arith.constant 2 : index
    %c0_112 = arith.constant 0 : index
    %c0_113 = arith.constant 0 : index
    %155 = vector.load %arg17[%c2_111, %c0_112, %c0_113] : memref<4x32x8xbf16, #tpu.memory_space<vmem>>, vector<1x32x8xbf16>
    %156 = vector.shape_cast %155 : vector<1x32x8xbf16> to vector<32x8xbf16>
    %cst_114 = arith.constant dense<0.000000e+00> : vector<8x8xf32>
    %157 = tpu.matmul %128, %156, %cst_114 {dimension_numbers = #tpu.dot_dimension_numbers<[1], [0], [0], [1], [0, 0, 1, 1], [], []>} : vector<8x32xbf16>, vector<32x8xbf16>, vector<8x8xf32> -> vector<8x8xf32>
    %c3_115 = arith.constant 3 : index
    %c0_116 = arith.constant 0 : index
    %c0_117 = arith.constant 0 : index
    %158 = vector.load %arg17[%c3_115, %c0_116, %c0_117] : memref<4x32x8xbf16, #tpu.memory_space<vmem>>, vector<1x32x8xbf16>
    %159 = vector.shape_cast %158 : vector<1x32x8xbf16> to vector<32x8xbf16>
    %cst_118 = arith.constant dense<0.000000e+00> : vector<8x8xf32>
    %160 = tpu.matmul %128, %159, %cst_118 {dimension_numbers = #tpu.dot_dimension_numbers<[1], [0], [0], [1], [0, 0, 1, 1], [], []>} : vector<8x32xbf16>, vector<32x8xbf16>, vector<8x8xf32> -> vector<8x8xf32>
    %161 = vector.shape_cast %151 : vector<8x8xf32> to vector<1x8x8xf32>
    %162 = vector.shape_cast %154 : vector<8x8xf32> to vector<1x8x8xf32>
    %163 = vector.shape_cast %157 : vector<8x8xf32> to vector<1x8x8xf32>
    %164 = vector.shape_cast %160 : vector<8x8xf32> to vector<1x8x8xf32>
    %165 = tpu.concatenate %161, %162, %163, %164 in 0 : vector<1x8x8xf32>, vector<1x8x8xf32>, vector<1x8x8xf32>, vector<1x8x8xf32> -> vector<4x8x8xf32>
    %c0_119 = arith.constant 0 : index
    %c0_120 = arith.constant 0 : index
    %c0_121 = arith.constant 0 : index
    %166 = vector.load %arg20[%c0_119, %c0_120, %c0_121] : memref<4x1x8xf32, #tpu.memory_space<vmem>>, vector<4x1x8xf32>
    %167 = vector.broadcast %166 : vector<4x1x8xf32> to vector<4x8x8xf32>
    %168 = arith.addf %165, %167 : vector<4x8x8xf32>
    %c0_122 = arith.constant 0 : index
    %c0_123 = arith.constant 0 : index
    %c0_124 = arith.constant 0 : index
    %169 = vector.load %arg18[%c0_122, %c0_123, %c0_124] : memref<4x32x8xbf16, #tpu.memory_space<vmem>>, vector<1x32x8xbf16>
    %170 = vector.shape_cast %169 : vector<1x32x8xbf16> to vector<32x8xbf16>
    %cst_125 = arith.constant dense<0.000000e+00> : vector<8x8xf32>
    %171 = tpu.matmul %128, %170, %cst_125 {dimension_numbers = #tpu.dot_dimension_numbers<[1], [0], [0], [1], [0, 0, 1, 1], [], []>} : vector<8x32xbf16>, vector<32x8xbf16>, vector<8x8xf32> -> vector<8x8xf32>
    %c1_126 = arith.constant 1 : index
    %c0_127 = arith.constant 0 : index
    %c0_128 = arith.constant 0 : index
    %172 = vector.load %arg18[%c1_126, %c0_127, %c0_128] : memref<4x32x8xbf16, #tpu.memory_space<vmem>>, vector<1x32x8xbf16>
    %173 = vector.shape_cast %172 : vector<1x32x8xbf16> to vector<32x8xbf16>
    %cst_129 = arith.constant dense<0.000000e+00> : vector<8x8xf32>
    %174 = tpu.matmul %128, %173, %cst_129 {dimension_numbers = #tpu.dot_dimension_numbers<[1], [0], [0], [1], [0, 0, 1, 1], [], []>} : vector<8x32xbf16>, vector<32x8xbf16>, vector<8x8xf32> -> vector<8x8xf32>
    %c2_130 = arith.constant 2 : index
    %c0_131 = arith.constant 0 : index
    %c0_132 = arith.constant 0 : index
    %175 = vector.load %arg18[%c2_130, %c0_131, %c0_132] : memref<4x32x8xbf16, #tpu.memory_space<vmem>>, vector<1x32x8xbf16>
    %176 = vector.shape_cast %175 : vector<1x32x8xbf16> to vector<32x8xbf16>
    %cst_133 = arith.constant dense<0.000000e+00> : vector<8x8xf32>
    %177 = tpu.matmul %128, %176, %cst_133 {dimension_numbers = #tpu.dot_dimension_numbers<[1], [0], [0], [1], [0, 0, 1, 1], [], []>} : vector<8x32xbf16>, vector<32x8xbf16>, vector<8x8xf32> -> vector<8x8xf32>
    %c3_134 = arith.constant 3 : index
    %c0_135 = arith.constant 0 : index
    %c0_136 = arith.constant 0 : index
    %178 = vector.load %arg18[%c3_134, %c0_135, %c0_136] : memref<4x32x8xbf16, #tpu.memory_space<vmem>>, vector<1x32x8xbf16>
    %179 = vector.shape_cast %178 : vector<1x32x8xbf16> to vector<32x8xbf16>
    %cst_137 = arith.constant dense<0.000000e+00> : vector<8x8xf32>
    %180 = tpu.matmul %128, %179, %cst_137 {dimension_numbers = #tpu.dot_dimension_numbers<[1], [0], [0], [1], [0, 0, 1, 1], [], []>} : vector<8x32xbf16>, vector<32x8xbf16>, vector<8x8xf32> -> vector<8x8xf32>
    %181 = vector.shape_cast %171 : vector<8x8xf32> to vector<1x8x8xf32>
    %182 = vector.shape_cast %174 : vector<8x8xf32> to vector<1x8x8xf32>
    %183 = vector.shape_cast %177 : vector<8x8xf32> to vector<1x8x8xf32>
    %184 = vector.shape_cast %180 : vector<8x8xf32> to vector<1x8x8xf32>
    %185 = tpu.concatenate %181, %182, %183, %184 in 0 : vector<1x8x8xf32>, vector<1x8x8xf32>, vector<1x8x8xf32>, vector<1x8x8xf32> -> vector<4x8x8xf32>
    %c0_138 = arith.constant 0 : index
    %c0_139 = arith.constant 0 : index
    %c0_140 = arith.constant 0 : index
    %186 = vector.load %arg21[%c0_138, %c0_139, %c0_140] : memref<4x1x8xf32, #tpu.memory_space<vmem>>, vector<4x1x8xf32>
    %187 = vector.broadcast %186 : vector<4x1x8xf32> to vector<4x8x8xf32>
    %188 = arith.addf %185, %187 : vector<4x8x8xf32>
    %189 = arith.truncf %148 : vector<4x8x8xf32> to vector<4x8x8xbf16>
    %190 = arith.truncf %168 : vector<4x8x8xf32> to vector<4x8x8xbf16>
    "tpu.trace_start"() <{level = 10 : i32, message = "hqd,hkd->hqk"}> : () -> ()
    %cst_141 = arith.constant dense<0.000000e+00> : vector<4x8x8xf32>
    %191 = tpu.matmul %189, %190, %cst_141 {dimension_numbers = #tpu.dot_dimension_numbers<[2], [2], [1], [1], [0, 0, 0, 1, 1, 1], [0], [0]>} : vector<4x8x8xbf16>, vector<4x8x8xbf16>, vector<4x8x8xf32> -> vector<4x8x8xf32>
    "tpu.trace_stop"() : () -> ()
    %cst_142 = arith.constant 0.353553385 : f32
    %192 = vector.broadcast %cst_142 : f32 to vector<4x8x8xf32>
    %193 = arith.mulf %191, %192 : vector<4x8x8xf32>
    %cst_143 = arith.constant dense<0xFF800000> : vector<4x8xf32>
    %194 = vector.multi_reduction <maximumf>, %193, %cst_143 [2] : vector<4x8x8xf32> to vector<4x8xf32>
    %195 = vector.shape_cast %194 : vector<4x8xf32> to vector<4x8x1xf32>
    %196 = vector.broadcast %195 : vector<4x8x1xf32> to vector<4x8x8xf32>
    %197 = arith.subf %193, %196 : vector<4x8x8xf32>
    %198 = math.exp %197 : vector<4x8x8xf32>
    %cst_144 = arith.constant dense<0.000000e+00> : vector<4x8xf32>
    %199 = vector.multi_reduction <add>, %198, %cst_144 [2] : vector<4x8x8xf32> to vector<4x8xf32>
    %200 = vector.shape_cast %199 : vector<4x8xf32> to vector<4x8x1xf32>
    %201 = vector.broadcast %200 : vector<4x8x1xf32> to vector<4x8x8xf32>
    %202 = arith.divf %198, %201 : vector<4x8x8xf32>
    %203 = arith.truncf %202 : vector<4x8x8xf32> to vector<4x8x8xbf16>
    %204 = arith.truncf %188 : vector<4x8x8xf32> to vector<4x8x8xbf16>
    "tpu.trace_start"() <{level = 10 : i32, message = "hqk,hkd->hqd"}> : () -> ()
    %cst_145 = arith.constant dense<0.000000e+00> : vector<4x8x8xf32>
    %205 = tpu.matmul %203, %204, %cst_145 {dimension_numbers = #tpu.dot_dimension_numbers<[2], [1], [1], [2], [0, 0, 0, 1, 1, 2], [0], [0]>} : vector<4x8x8xbf16>, vector<4x8x8xbf16>, vector<4x8x8xf32> -> vector<4x8x8xf32>
    "tpu.trace_stop"() : () -> ()
    %206 = vector.extract_strided_slice %205 {offsets = [0, 0, 0], sizes = [1, 8, 8], strides = [1, 1, 1]} : vector<4x8x8xf32> to vector<1x8x8xf32>
    %207 = vector.shape_cast %206 : vector<1x8x8xf32> to vector<8x8xf32>
    %208 = vector.extract_strided_slice %205 {offsets = [1, 0, 0], sizes = [1, 8, 8], strides = [1, 1, 1]} : vector<4x8x8xf32> to vector<1x8x8xf32>
    %209 = vector.shape_cast %208 : vector<1x8x8xf32> to vector<8x8xf32>
    %210 = vector.extract_strided_slice %205 {offsets = [2, 0, 0], sizes = [1, 8, 8], strides = [1, 1, 1]} : vector<4x8x8xf32> to vector<1x8x8xf32>
    %211 = vector.shape_cast %210 : vector<1x8x8xf32> to vector<8x8xf32>
    %212 = vector.extract_strided_slice %205 {offsets = [3, 0, 0], sizes = [1, 8, 8], strides = [1, 1, 1]} : vector<4x8x8xf32> to vector<1x8x8xf32>
    %213 = vector.shape_cast %212 : vector<1x8x8xf32> to vector<8x8xf32>
    %214 = tpu.concatenate %207, %209, %211, %213 in 1 : vector<8x8xf32>, vector<8x8xf32>, vector<8x8xf32>, vector<8x8xf32> -> vector<8x32xf32>
    %215 = arith.truncf %214 : vector<8x32xf32> to vector<8x32xbf16>
    %c0_146 = arith.constant 0 : index
    %c0_147 = arith.constant 0 : index
    %216 = vector.load %arg22[%c0_146, %c0_147] : memref<32x32xbf16, #tpu.memory_space<vmem>>, vector<32x32xbf16>
    %cst_148 = arith.constant dense<0.000000e+00> : vector<8x32xf32>
    %217 = tpu.matmul %215, %216, %cst_148 {dimension_numbers = #tpu.dot_dimension_numbers<[1], [0], [0], [1], [0, 0, 1, 1], [], []>} : vector<8x32xbf16>, vector<32x32xbf16>, vector<8x32xf32> -> vector<8x32xf32>
    %c0_149 = arith.constant 0 : index
    %c0_150 = arith.constant 0 : index
    %218 = vector.load %arg23[%c0_149, %c0_150] : memref<1x32xf32, #tpu.memory_space<vmem>>, vector<1x32xf32>
    %219 = vector.broadcast %218 : vector<1x32xf32> to vector<8x32xf32>
    %220 = arith.addf %217, %219 : vector<8x32xf32>
    %221 = arith.addf %126, %220 : vector<8x32xf32>
    %c0_151 = arith.constant 0 : index
    %c0_152 = arith.constant 0 : index
    %222 = vector.load %arg24[%c0_151, %c0_152] : memref<1x32xf32, #tpu.memory_space<vmem>>, vector<1x32xf32>
    %c0_153 = arith.constant 0 : index
    %c0_154 = arith.constant 0 : index
    %223 = vector.load %arg25[%c0_153, %c0_154] : memref<1x32xf32, #tpu.memory_space<vmem>>, vector<1x32xf32>
    %cst_155 = arith.constant dense<0.000000e+00> : vector<8xf32>
    %224 = vector.multi_reduction <add>, %221, %cst_155 [1] : vector<8x32xf32> to vector<8xf32>
    %225 = vector.shape_cast %224 : vector<8xf32> to vector<8x1xf32>
    %cst_156 = arith.constant 3.200000e+01 : f32
    %226 = vector.broadcast %cst_156 : f32 to vector<8x1xf32>
    %227 = arith.divf %225, %226 : vector<8x1xf32>
    %228 = vector.broadcast %227 : vector<8x1xf32> to vector<8x32xf32>
    %229 = arith.subf %221, %228 : vector<8x32xf32>
    %230 = arith.mulf %229, %229 : vector<8x32xf32>
    %cst_157 = arith.constant dense<0.000000e+00> : vector<8xf32>
    %231 = vector.multi_reduction <add>, %230, %cst_157 [1] : vector<8x32xf32> to vector<8xf32>
    %232 = vector.shape_cast %231 : vector<8xf32> to vector<8x1xf32>
    %cst_158 = arith.constant 3.200000e+01 : f32
    %233 = vector.broadcast %cst_158 : f32 to vector<8x1xf32>
    %234 = arith.divf %232, %233 : vector<8x1xf32>
    %cst_159 = arith.constant 9.99999974E-6 : f32
    %235 = vector.broadcast %cst_159 : f32 to vector<8x1xf32>
    %236 = arith.addf %234, %235 : vector<8x1xf32>
    %237 = math.rsqrt %236 : vector<8x1xf32>
    %238 = vector.broadcast %237 : vector<8x1xf32> to vector<8x32xf32>
    %239 = arith.mulf %229, %238 : vector<8x32xf32>
    %240 = vector.broadcast %222 : vector<1x32xf32> to vector<8x32xf32>
    %241 = arith.mulf %239, %240 : vector<8x32xf32>
    %242 = vector.broadcast %223 : vector<1x32xf32> to vector<8x32xf32>
    %243 = arith.addf %241, %242 : vector<8x32xf32>
    %244 = arith.truncf %243 : vector<8x32xf32> to vector<8x32xbf16>
    %c0_160 = arith.constant 0 : index
    %c0_161 = arith.constant 0 : index
    %245 = vector.load %arg26[%c0_160, %c0_161] : memref<32x32xbf16, #tpu.memory_space<vmem>>, vector<32x32xbf16>
    %cst_162 = arith.constant dense<0.000000e+00> : vector<8x32xf32>
    %246 = tpu.matmul %244, %245, %cst_162 {dimension_numbers = #tpu.dot_dimension_numbers<[1], [0], [0], [1], [0, 0, 1, 1], [], []>} : vector<8x32xbf16>, vector<32x32xbf16>, vector<8x32xf32> -> vector<8x32xf32>
    %c0_163 = arith.constant 0 : index
    %c0_164 = arith.constant 0 : index
    %247 = vector.load %arg27[%c0_163, %c0_164] : memref<1x32xf32, #tpu.memory_space<vmem>>, vector<1x32xf32>
    %248 = vector.broadcast %247 : vector<1x32xf32> to vector<8x32xf32>
    %249 = arith.addf %246, %248 : vector<8x32xf32>
    %cst_165 = arith.constant 5.000000e-01 : f32
    %250 = vector.broadcast %cst_165 : f32 to vector<8x32xf32>
    %251 = arith.mulf %250, %249 : vector<8x32xf32>
    %cst_166 = arith.constant 4.471500e-02 : f32
    %252 = vector.broadcast %cst_166 : f32 to vector<8x32xf32>
    %253 = arith.mulf %252, %249 : vector<8x32xf32>
    %254 = arith.mulf %253, %249 : vector<8x32xf32>
    %255 = arith.mulf %254, %249 : vector<8x32xf32>
    %256 = arith.addf %249, %255 : vector<8x32xf32>
    %cst_167 = arith.constant 0.797884583 : f32
    %257 = vector.broadcast %cst_167 : f32 to vector<8x32xf32>
    %258 = arith.mulf %257, %256 : vector<8x32xf32>
    %259 = math.tanh %258 : vector<8x32xf32>
    %cst_168 = arith.constant 1.000000e+00 : f32
    %260 = vector.broadcast %cst_168 : f32 to vector<8x32xf32>
    %261 = arith.addf %260, %259 : vector<8x32xf32>
    %262 = arith.mulf %251, %261 : vector<8x32xf32>
    %263 = arith.truncf %262 : vector<8x32xf32> to vector<8x32xbf16>
    %c0_169 = arith.constant 0 : index
    %c0_170 = arith.constant 0 : index
    %264 = vector.load %arg28[%c0_169, %c0_170] : memref<32x32xbf16, #tpu.memory_space<vmem>>, vector<32x32xbf16>
    %cst_171 = arith.constant dense<0.000000e+00> : vector<8x32xf32>
    %265 = tpu.matmul %263, %264, %cst_171 {dimension_numbers = #tpu.dot_dimension_numbers<[1], [0], [0], [1], [0, 0, 1, 1], [], []>} : vector<8x32xbf16>, vector<32x32xbf16>, vector<8x32xf32> -> vector<8x32xf32>
    %c0_172 = arith.constant 0 : index
    %c0_173 = arith.constant 0 : index
    %266 = vector.load %arg29[%c0_172, %c0_173] : memref<1x32xf32, #tpu.memory_space<vmem>>, vector<1x32xf32>
    %267 = vector.broadcast %266 : vector<1x32xf32> to vector<8x32xf32>
    %268 = arith.addf %265, %267 : vector<8x32xf32>
    %269 = arith.addf %243, %268 : vector<8x32xf32>
    %c0_174 = arith.constant 0 : index
    %c0_175 = arith.constant 0 : index
    %270 = vector.load %arg30[%c0_174, %c0_175] : memref<1x32xf32, #tpu.memory_space<vmem>>, vector<1x32xf32>
    %c0_176 = arith.constant 0 : index
    %c0_177 = arith.constant 0 : index
    %271 = vector.load %arg31[%c0_176, %c0_177] : memref<1x32xf32, #tpu.memory_space<vmem>>, vector<1x32xf32>
    %cst_178 = arith.constant dense<0.000000e+00> : vector<8xf32>
    %272 = vector.multi_reduction <add>, %269, %cst_178 [1] : vector<8x32xf32> to vector<8xf32>
    %273 = vector.shape_cast %272 : vector<8xf32> to vector<8x1xf32>
    %cst_179 = arith.constant 3.200000e+01 : f32
    %274 = vector.broadcast %cst_179 : f32 to vector<8x1xf32>
    %275 = arith.divf %273, %274 : vector<8x1xf32>
    %276 = vector.broadcast %275 : vector<8x1xf32> to vector<8x32xf32>
    %277 = arith.subf %269, %276 : vector<8x32xf32>
    %278 = arith.mulf %277, %277 : vector<8x32xf32>
    %cst_180 = arith.constant dense<0.000000e+00> : vector<8xf32>
    %279 = vector.multi_reduction <add>, %278, %cst_180 [1] : vector<8x32xf32> to vector<8xf32>
    %280 = vector.shape_cast %279 : vector<8xf32> to vector<8x1xf32>
    %cst_181 = arith.constant 3.200000e+01 : f32
    %281 = vector.broadcast %cst_181 : f32 to vector<8x1xf32>
    %282 = arith.divf %280, %281 : vector<8x1xf32>
    %cst_182 = arith.constant 9.99999974E-6 : f32
    %283 = vector.broadcast %cst_182 : f32 to vector<8x1xf32>
    %284 = arith.addf %282, %283 : vector<8x1xf32>
    %285 = math.rsqrt %284 : vector<8x1xf32>
    %286 = vector.broadcast %285 : vector<8x1xf32> to vector<8x32xf32>
    %287 = arith.mulf %277, %286 : vector<8x32xf32>
    %288 = vector.broadcast %270 : vector<1x32xf32> to vector<8x32xf32>
    %289 = arith.mulf %287, %288 : vector<8x32xf32>
    %290 = vector.broadcast %271 : vector<1x32xf32> to vector<8x32xf32>
    %291 = arith.addf %289, %290 : vector<8x32xf32>
    %c0_183 = arith.constant 0 : index
    %c0_184 = arith.constant 0 : index
    %c0_185 = arith.constant 0 : index
    %292 = vector.load %arg32[%c0_183, %c0_184, %c0_185] : memref<1x8x32xf32, #tpu.memory_space<vmem>>, vector<1x8x32xf32>
    %293 = vector.shape_cast %292 : vector<1x8x32xf32> to vector<8x32xf32>
    %294 = vector.shape_cast %291 : vector<8x32xf32> to vector<1x8x32xf32>
    tpu.vector_store %arg32[%c0_183, %c0_184, %c0_185], %294 {strides = array<i32>} : memref<1x8x32xf32, #tpu.memory_space<vmem>>, vector<1x8x32xf32>,
    return
  }
  func.func @transform_0(%arg0: i32) -> (i32, i32, i32) {
    %c0_i32 = arith.constant 0 : i32
    %c0_i32_0 = arith.constant 0 : i32
    %c0_i32_1 = arith.constant 0 : i32
    return %arg0, %c0_i32, %c0_i32_0 : i32, i32, i32
  }
  func.func @transform_1(%arg0: i32) -> (i32, i32, i32) {
    %c0_i32 = arith.constant 0 : i32
    %c0_i32_0 = arith.constant 0 : i32
    %c0_i32_1 = arith.constant 0 : i32
    return %arg0, %c0_i32, %c0_i32_0 : i32, i32, i32
  }
  func.func @transform_2(%arg0: i32) -> (i32, i32) {
    %c0_i32 = arith.constant 0 : i32
    %c0_i32_0 = arith.constant 0 : i32
    %c0_i32_1 = arith.constant 0 : i32
    return %c0_i32, %c0_i32_0 : i32, i32
  }
  func.func @transform_3(%arg0: i32) -> (i32, i32) {
    %c0_i32 = arith.constant 0 : i32
    %c0_i32_0 = arith.constant 0 : i32
    %c0_i32_1 = arith.constant 0 : i32
    return %c0_i32, %c0_i32_0 : i32, i32
  }
  func.func @transform_4(%arg0: i32) -> (i32, i32) {
    %c0_i32 = arith.constant 0 : i32
    %c0_i32_0 = arith.constant 0 : i32
    %c0_i32_1 = arith.constant 0 : i32
    return %c0_i32, %c0_i32_0 : i32, i32
  }
  func.func @transform_5(%arg0: i32) -> (i32, i32, i32) {
    %c0_i32 = arith.constant 0 : i32
    %c0_i32_0 = arith.constant 0 : i32
    %c0_i32_1 = arith.constant 0 : i32
    %c0_i32_2 = arith.constant 0 : i32
    return %c0_i32, %c0_i32_0, %c0_i32_1 : i32, i32, i32
  }
  func.func @transform_6(%arg0: i32) -> (i32, i32, i32) {
    %c0_i32 = arith.constant 0 : i32
    %c0_i32_0 = arith.constant 0 : i32
    %c0_i32_1 = arith.constant 0 : i32
    %c0_i32_2 = arith.constant 0 : i32
    return %c0_i32, %c0_i32_0, %c0_i32_1 : i32, i32, i32
  }
  func.func @transform_7(%arg0: i32) -> (i32, i32, i32) {
    %c0_i32 = arith.constant 0 : i32
    %c0_i32_0 = arith.constant 0 : i32
    %c0_i32_1 = arith.constant 0 : i32
    %c0_i32_2 = arith.constant 0 : i32
    return %c0_i32, %c0_i32_0, %c0_i32_1 : i32, i32, i32
  }
  func.func @transform_8(%arg0: i32) -> (i32, i32, i32) {
    %c0_i32 = arith.constant 0 : i32
    %c0_i32_0 = arith.constant 0 : i32
    %c0_i32_1 = arith.constant 0 : i32
    %c0_i32_2 = arith.constant 0 : i32
    return %c0_i32, %c0_i32_0, %c0_i32_1 : i32, i32, i32
  }
  func.func @transform_9(%arg0: i32) -> (i32, i32, i32) {
    %c0_i32 = arith.constant 0 : i32
    %c0_i32_0 = arith.constant 0 : i32
    %c0_i32_1 = arith.constant 0 : i32
    %c0_i32_2 = arith.constant 0 : i32
    return %c0_i32, %c0_i32_0, %c0_i32_1 : i32, i32, i32
  }
  func.func @transform_10(%arg0: i32) -> (i32, i32, i32) {
    %c0_i32 = arith.constant 0 : i32
    %c0_i32_0 = arith.constant 0 : i32
    %c0_i32_1 = arith.constant 0 : i32
    %c0_i32_2 = arith.constant 0 : i32
    return %c0_i32, %c0_i32_0, %c0_i32_1 : i32, i32, i32
  }
  func.func @transform_11(%arg0: i32) -> (i32, i32) {
    %c0_i32 = arith.constant 0 : i32
    %c0_i32_0 = arith.constant 0 : i32
    %c0_i32_1 = arith.constant 0 : i32
    return %c0_i32, %c0_i32_0 : i32, i32
  }
  func.func @transform_12(%arg0: i32) -> (i32, i32) {
    %c0_i32 = arith.constant 0 : i32
    %c0_i32_0 = arith.constant 0 : i32
    %c0_i32_1 = arith.constant 0 : i32
    return %c0_i32, %c0_i32_0 : i32, i32
  }
  func.func @transform_13(%arg0: i32) -> (i32, i32) {
    %c0_i32 = arith.constant 0 : i32
    %c0_i32_0 = arith.constant 0 : i32
    %c0_i32_1 = arith.constant 0 : i32
    return %c0_i32, %c0_i32_0 : i32, i32
  }
  func.func @transform_14(%arg0: i32) -> (i32, i32) {
    %c0_i32 = arith.constant 0 : i32
    %c0_i32_0 = arith.constant 0 : i32
    %c0_i32_1 = arith.constant 0 : i32
    return %c0_i32, %c0_i32_0 : i32, i32
  }
  func.func @transform_15(%arg0: i32) -> (i32, i32, i32) {
    %c0_i32 = arith.constant 0 : i32
    %c0_i32_0 = arith.constant 0 : i32
    %c0_i32_1 = arith.constant 0 : i32
    %c0_i32_2 = arith.constant 0 : i32
    return %c0_i32, %c0_i32_0, %c0_i32_1 : i32, i32, i32
  }
  func.func @transform_16(%arg0: i32) -> (i32, i32, i32) {
    %c0_i32 = arith.constant 0 : i32
    %c0_i32_0 = arith.constant 0 : i32
    %c0_i32_1 = arith.constant 0 : i32
    %c0_i32_2 = arith.constant 0 : i32
    return %c0_i32, %c0_i32_0, %c0_i32_1 : i32, i32, i32
  }
  func.func @transform_17(%arg0: i32) -> (i32, i32, i32) {
    %c0_i32 = arith.constant 0 : i32
    %c0_i32_0 = arith.constant 0 : i32
    %c0_i32_1 = arith.constant 0 : i32
    %c0_i32_2 = arith.constant 0 : i32
    return %c0_i32, %c0_i32_0, %c0_i32_1 : i32, i32, i32
  }
  func.func @transform_18(%arg0: i32) -> (i32, i32, i32) {
    %c0_i32 = arith.constant 0 : i32
    %c0_i32_0 = arith.constant 0 : i32
    %c0_i32_1 = arith.constant 0 : i32
    %c0_i32_2 = arith.constant 0 : i32
    return %c0_i32, %c0_i32_0, %c0_i32_1 : i32, i32, i32
  }
  func.func @transform_19(%arg0: i32) -> (i32, i32, i32) {
    %c0_i32 = arith.constant 0 : i32
    %c0_i32_0 = arith.constant 0 : i32
    %c0_i32_1 = arith.constant 0 : i32
    %c0_i32_2 = arith.constant 0 : i32
    return %c0_i32, %c0_i32_0, %c0_i32_1 : i32, i32, i32
  }
  func.func @transform_20(%arg0: i32) -> (i32, i32, i32) {
    %c0_i32 = arith.constant 0 : i32
    %c0_i32_0 = arith.constant 0 : i32
    %c0_i32_1 = arith.constant 0 : i32
    %c0_i32_2 = arith.constant 0 : i32
    return %c0_i32, %c0_i32_0, %c0_i32_1 : i32, i32, i32
  }
  func.func @transform_21(%arg0: i32) -> (i32, i32) {
    %c0_i32 = arith.constant 0 : i32
    %c0_i32_0 = arith.constant 0 : i32
    %c0_i32_1 = arith.constant 0 : i32
    return %c0_i32, %c0_i32_0 : i32, i32
  }
  func.func @transform_22(%arg0: i32) -> (i32, i32) {
    %c0_i32 = arith.constant 0 : i32
    %c0_i32_0 = arith.constant 0 : i32
    %c0_i32_1 = arith.constant 0 : i32
    return %c0_i32, %c0_i32_0 : i32, i32
  }
  func.func @transform_23(%arg0: i32) -> (i32, i32) {
    %c0_i32 = arith.constant 0 : i32
    %c0_i32_0 = arith.constant 0 : i32
    %c0_i32_1 = arith.constant 0 : i32
    return %c0_i32, %c0_i32_0 : i32, i32
  }
  func.func @transform_24(%arg0: i32) -> (i32, i32) {
    %c0_i32 = arith.constant 0 : i32
    %c0_i32_0 = arith.constant 0 : i32
    %c0_i32_1 = arith.constant 0 : i32
    return %c0_i32, %c0_i32_0 : i32, i32
  }
  func.func @transform_25(%arg0: i32) -> (i32, i32) {
    %c0_i32 = arith.constant 0 : i32
    %c0_i32_0 = arith.constant 0 : i32
    %c0_i32_1 = arith.constant 0 : i32
    return %c0_i32, %c0_i32_0 : i32, i32
  }
  func.func @transform_26(%arg0: i32) -> (i32, i32) {
    %c0_i32 = arith.constant 0 : i32
    %c0_i32_0 = arith.constant 0 : i32
    %c0_i32_1 = arith.constant 0 : i32
    return %c0_i32, %c0_i32_0 : i32, i32
  }
  func.func @transform_27(%arg0: i32) -> (i32, i32) {
    %c0_i32 = arith.constant 0 : i32
    %c0_i32_0 = arith.constant 0 : i32
    %c0_i32_1 = arith.constant 0 : i32
    return %c0_i32, %c0_i32_0 : i32, i32
  }
  func.func @transform_28(%arg0: i32) -> (i32, i32) {
    %c0_i32 = arith.constant 0 : i32
    %c0_i32_0 = arith.constant 0 : i32
    %c0_i32_1 = arith.constant 0 : i32
    return %c0_i32, %c0_i32_0 : i32, i32
  }
  func.func @transform_29(%arg0: i32) -> (i32, i32) {
    %c0_i32 = arith.constant 0 : i32
    %c0_i32_0 = arith.constant 0 : i32
    %c0_i32_1 = arith.constant 0 : i32
    return %c0_i32, %c0_i32_0 : i32, i32
  }
  func.func @transform_30(%arg0: i32) -> (i32, i32) {
    %c0_i32 = arith.constant 0 : i32
    %c0_i32_0 = arith.constant 0 : i32
    %c0_i32_1 = arith.constant 0 : i32
    return %c0_i32, %c0_i32_0 : i32, i32
  }
  func.func @transform_31(%arg0: i32) -> (i32, i32, i32) {
    %c0_i32 = arith.constant 0 : i32
    %c0_i32_0 = arith.constant 0 : i32
    %c0_i32_1 = arith.constant 0 : i32
    return %arg0, %c0_i32, %c0_i32_0 : i32, i32, i32
  }
}

module attributes {stable_mosaic.version = 11 : i64} {
  func.func @_dec_layer_kernel(%arg0: i32, %arg1: memref<1x8x32xf32, #tpu.memory_space<vmem>>, %arg2: memref<1x8x32xf32, #tpu.memory_space<vmem>>, %arg3: memref<4x32x8xbf16, #tpu.memory_space<vmem>>, %arg4: memref<4x32x8xbf16, #tpu.memory_space<vmem>>, %arg5: memref<4x32x8xbf16, #tpu.memory_space<vmem>>, %arg6: memref<4x1x8xf32, #tpu.memory_space<vmem>>, %arg7: memref<4x1x8xf32, #tpu.memory_space<vmem>>, %arg8: memref<4x1x8xf32, #tpu.memory_space<vmem>>, %arg9: memref<32x32xbf16, #tpu.memory_space<vmem>>, %arg10: memref<1x32xf32, #tpu.memory_space<vmem>>, %arg11: memref<1x32xf32, #tpu.memory_space<vmem>>, %arg12: memref<1x32xf32, #tpu.memory_space<vmem>>, %arg13: memref<4x32x8xbf16, #tpu.memory_space<vmem>>, %arg14: memref<4x32x8xbf16, #tpu.memory_space<vmem>>, %arg15: memref<4x32x8xbf16, #tpu.memory_space<vmem>>, %arg16: memref<4x1x8xf32, #tpu.memory_space<vmem>>, %arg17: memref<4x1x8xf32, #tpu.memory_space<vmem>>, %arg18: memref<4x1x8xf32, #tpu.memory_space<vmem>>, %arg19: memref<32x32xbf16, #tpu.memory_space<vmem>>, %arg20: memref<1x32xf32, #tpu.memory_space<vmem>>, %arg21: memref<1x32xf32, #tpu.memory_space<vmem>>, %arg22: memref<1x32xf32, #tpu.memory_space<vmem>>, %arg23: memref<32x32xbf16, #tpu.memory_space<vmem>>, %arg24: memref<1x32xf32, #tpu.memory_space<vmem>>, %arg25: memref<32x32xbf16, #tpu.memory_space<vmem>>, %arg26: memref<1x32xf32, #tpu.memory_space<vmem>>, %arg27: memref<1x32xf32, #tpu.memory_space<vmem>>, %arg28: memref<1x32xf32, #tpu.memory_space<vmem>>, %arg29: memref<1x32xf32, #tpu.memory_space<vmem>>, %arg30: memref<1x32xf32, #tpu.memory_space<vmem>>, %arg31: memref<1x8x32xf32, #tpu.memory_space<vmem>>) attributes {dimension_semantics = [#tpu.dimension_semantics<parallel>], iteration_bounds = array<i64: 2>, scalar_prefetch = 0 : i64, scratch_operands = 0 : i64, tpu.core_type = #tpu.core_type<tc>, window_params = [{transform_indices = @transform_0, window_bounds = array<i64: 1, 8, 32>}, {transform_indices = @transform_1, window_bounds = array<i64: 1, 8, 32>}, {pipeline_mode = #tpu.pipeline_mode<synchronous>, transform_indices = @transform_2, window_bounds = array<i64: 4, 32, 8>}, {pipeline_mode = #tpu.pipeline_mode<synchronous>, transform_indices = @transform_3, window_bounds = array<i64: 4, 32, 8>}, {pipeline_mode = #tpu.pipeline_mode<synchronous>, transform_indices = @transform_4, window_bounds = array<i64: 4, 32, 8>}, {pipeline_mode = #tpu.pipeline_mode<synchronous>, transform_indices = @transform_5, window_bounds = array<i64: 4, 1, 8>}, {pipeline_mode = #tpu.pipeline_mode<synchronous>, transform_indices = @transform_6, window_bounds = array<i64: 4, 1, 8>}, {pipeline_mode = #tpu.pipeline_mode<synchronous>, transform_indices = @transform_7, window_bounds = array<i64: 4, 1, 8>}, {pipeline_mode = #tpu.pipeline_mode<synchronous>, transform_indices = @transform_8, window_bounds = array<i64: 32, 32>}, {pipeline_mode = #tpu.pipeline_mode<synchronous>, transform_indices = @transform_9, window_bounds = array<i64: 1, 32>}, {pipeline_mode = #tpu.pipeline_mode<synchronous>, transform_indices = @transform_10, window_bounds = array<i64: 1, 32>}, {pipeline_mode = #tpu.pipeline_mode<synchronous>, transform_indices = @transform_11, window_bounds = array<i64: 1, 32>}, {pipeline_mode = #tpu.pipeline_mode<synchronous>, transform_indices = @transform_12, window_bounds = array<i64: 4, 32, 8>}, {pipeline_mode = #tpu.pipeline_mode<synchronous>, transform_indices = @transform_13, window_bounds = array<i64: 4, 32, 8>}, {pipeline_mode = #tpu.pipeline_mode<synchronous>, transform_indices = @transform_14, window_bounds = array<i64: 4, 32, 8>}, {pipeline_mode = #tpu.pipeline_mode<synchronous>, transform_indices = @transform_15, window_bounds = array<i64: 4, 1, 8>}, {pipeline_mode = #tpu.pipeline_mode<synchronous>, transform_indices = @transform_16, window_bounds = array<i64: 4, 1, 8>}, {pipeline_mode = #tpu.pipeline_mode<synchronous>, transform_indices = @transform_17, window_bounds = array<i64: 4, 1, 8>}, {pipeline_mode = #tpu.pipeline_mode<synchronous>, transform_indices = @transform_18, window_bounds = array<i64: 32, 32>}, {pipeline_mode = #tpu.pipeline_mode<synchronous>, transform_indices = @transform_19, window_bounds = array<i64: 1, 32>}, {pipeline_mode = #tpu.pipeline_mode<synchronous>, transform_indices = @transform_20, window_bounds = array<i64: 1, 32>}, {pipeline_mode = #tpu.pipeline_mode<synchronous>, transform_indices = @transform_21, window_bounds = array<i64: 1, 32>}, {pipeline_mode = #tpu.pipeline_mode<synchronous>, transform_indices = @transform_22, window_bounds = array<i64: 32, 32>}, {pipeline_mode = #tpu.pipeline_mode<synchronous>, transform_indices = @transform_23, window_bounds = array<i64: 1, 32>}, {pipeline_mode = #tpu.pipeline_mode<synchronous>, transform_indices = @transform_24, window_bounds = array<i64: 32, 32>}, {pipeline_mode = #tpu.pipeline_mode<synchronous>, transform_indices = @transform_25, window_bounds = array<i64: 1, 32>}, {pipeline_mode = #tpu.pipeline_mode<synchronous>, transform_indices = @transform_26, window_bounds = array<i64: 1, 32>}, {pipeline_mode = #tpu.pipeline_mode<synchronous>, transform_indices = @transform_27, window_bounds = array<i64: 1, 32>}, {pipeline_mode = #tpu.pipeline_mode<synchronous>, transform_indices = @transform_28, window_bounds = array<i64: 1, 32>}, {pipeline_mode = #tpu.pipeline_mode<synchronous>, transform_indices = @transform_29, window_bounds = array<i64: 1, 32>}, {transform_indices = @transform_30, window_bounds = array<i64: 1, 8, 32>}]} {
    %c0 = arith.constant 0 : index
    %c0_0 = arith.constant 0 : index
    %c0_1 = arith.constant 0 : index
    %0 = vector.load %arg1[%c0, %c0_0, %c0_1] : memref<1x8x32xf32, #tpu.memory_space<vmem>>, vector<1x8x32xf32>
    %1 = vector.shape_cast %0 : vector<1x8x32xf32> to vector<8x32xf32>
    %c0_2 = arith.constant 0 : index
    %c0_3 = arith.constant 0 : index
    %c0_4 = arith.constant 0 : index
    %2 = vector.load %arg2[%c0_2, %c0_3, %c0_4] : memref<1x8x32xf32, #tpu.memory_space<vmem>>, vector<1x8x32xf32>
    %3 = vector.shape_cast %2 : vector<1x8x32xf32> to vector<8x32xf32>
    %4 = arith.truncf %1 : vector<8x32xf32> to vector<8x32xbf16>
    %c0_5 = arith.constant 0 : index
    %c0_6 = arith.constant 0 : index
    %c0_7 = arith.constant 0 : index
    %5 = vector.load %arg3[%c0_5, %c0_6, %c0_7] : memref<4x32x8xbf16, #tpu.memory_space<vmem>>, vector<1x32x8xbf16>
    %6 = vector.shape_cast %5 : vector<1x32x8xbf16> to vector<32x8xbf16>
    %cst = arith.constant dense<0.000000e+00> : vector<8x8xf32>
    %7 = tpu.matmul %4, %6, %cst {dimension_numbers = #tpu.dot_dimension_numbers<[1], [0], [0], [1], [0, 0, 1, 1], [], []>} : vector<8x32xbf16>, vector<32x8xbf16>, vector<8x8xf32> -> vector<8x8xf32>
    %c1 = arith.constant 1 : index
    %c0_8 = arith.constant 0 : index
    %c0_9 = arith.constant 0 : index
    %8 = vector.load %arg3[%c1, %c0_8, %c0_9] : memref<4x32x8xbf16, #tpu.memory_space<vmem>>, vector<1x32x8xbf16>
    %9 = vector.shape_cast %8 : vector<1x32x8xbf16> to vector<32x8xbf16>
    %cst_10 = arith.constant dense<0.000000e+00> : vector<8x8xf32>
    %10 = tpu.matmul %4, %9, %cst_10 {dimension_numbers = #tpu.dot_dimension_numbers<[1], [0], [0], [1], [0, 0, 1, 1], [], []>} : vector<8x32xbf16>, vector<32x8xbf16>, vector<8x8xf32> -> vector<8x8xf32>
    %c2 = arith.constant 2 : index
    %c0_11 = arith.constant 0 : index
    %c0_12 = arith.constant 0 : index
    %11 = vector.load %arg3[%c2, %c0_11, %c0_12] : memref<4x32x8xbf16, #tpu.memory_space<vmem>>, vector<1x32x8xbf16>
    %12 = vector.shape_cast %11 : vector<1x32x8xbf16> to vector<32x8xbf16>
    %cst_13 = arith.constant dense<0.000000e+00> : vector<8x8xf32>
    %13 = tpu.matmul %4, %12, %cst_13 {dimension_numbers = #tpu.dot_dimension_numbers<[1], [0], [0], [1], [0, 0, 1, 1], [], []>} : vector<8x32xbf16>, vector<32x8xbf16>, vector<8x8xf32> -> vector<8x8xf32>
    %c3 = arith.constant 3 : index
    %c0_14 = arith.constant 0 : index
    %c0_15 = arith.constant 0 : index
    %14 = vector.load %arg3[%c3, %c0_14, %c0_15] : memref<4x32x8xbf16, #tpu.memory_space<vmem>>, vector<1x32x8xbf16>
    %15 = vector.shape_cast %14 : vector<1x32x8xbf16> to vector<32x8xbf16>
    %cst_16 = arith.constant dense<0.000000e+00> : vector<8x8xf32>
    %16 = tpu.matmul %4, %15, %cst_16 {dimension_numbers = #tpu.dot_dimension_numbers<[1], [0], [0], [1], [0, 0, 1, 1], [], []>} : vector<8x32xbf16>, vector<32x8xbf16>, vector<8x8xf32> -> vector<8x8xf32>
    %17 = vector.shape_cast %7 : vector<8x8xf32> to vector<1x8x8xf32>
    %18 = vector.shape_cast %10 : vector<8x8xf32> to vector<1x8x8xf32>
    %19 = vector.shape_cast %13 : vector<8x8xf32> to vector<1x8x8xf32>
    %20 = vector.shape_cast %16 : vector<8x8xf32> to vector<1x8x8xf32>
    %21 = tpu.concatenate %17, %18, %19, %20 in 0 : vector<1x8x8xf32>, vector<1x8x8xf32>, vector<1x8x8xf32>, vector<1x8x8xf32> -> vector<4x8x8xf32>
    %c0_17 = arith.constant 0 : index
    %c0_18 = arith.constant 0 : index
    %c0_19 = arith.constant 0 : index
    %22 = vector.load %arg6[%c0_17, %c0_18, %c0_19] : memref<4x1x8xf32, #tpu.memory_space<vmem>>, vector<4x1x8xf32>
    %23 = vector.broadcast %22 : vector<4x1x8xf32> to vector<4x8x8xf32>
    %24 = arith.addf %21, %23 : vector<4x8x8xf32>
    %c0_20 = arith.constant 0 : index
    %c0_21 = arith.constant 0 : index
    %c0_22 = arith.constant 0 : index
    %25 = vector.load %arg4[%c0_20, %c0_21, %c0_22] : memref<4x32x8xbf16, #tpu.memory_space<vmem>>, vector<1x32x8xbf16>
    %26 = vector.shape_cast %25 : vector<1x32x8xbf16> to vector<32x8xbf16>
    %cst_23 = arith.constant dense<0.000000e+00> : vector<8x8xf32>
    %27 = tpu.matmul %4, %26, %cst_23 {dimension_numbers = #tpu.dot_dimension_numbers<[1], [0], [0], [1], [0, 0, 1, 1], [], []>} : vector<8x32xbf16>, vector<32x8xbf16>, vector<8x8xf32> -> vector<8x8xf32>
    %c1_24 = arith.constant 1 : index
    %c0_25 = arith.constant 0 : index
    %c0_26 = arith.constant 0 : index
    %28 = vector.load %arg4[%c1_24, %c0_25, %c0_26] : memref<4x32x8xbf16, #tpu.memory_space<vmem>>, vector<1x32x8xbf16>
    %29 = vector.shape_cast %28 : vector<1x32x8xbf16> to vector<32x8xbf16>
    %cst_27 = arith.constant dense<0.000000e+00> : vector<8x8xf32>
    %30 = tpu.matmul %4, %29, %cst_27 {dimension_numbers = #tpu.dot_dimension_numbers<[1], [0], [0], [1], [0, 0, 1, 1], [], []>} : vector<8x32xbf16>, vector<32x8xbf16>, vector<8x8xf32> -> vector<8x8xf32>
    %c2_28 = arith.constant 2 : index
    %c0_29 = arith.constant 0 : index
    %c0_30 = arith.constant 0 : index
    %31 = vector.load %arg4[%c2_28, %c0_29, %c0_30] : memref<4x32x8xbf16, #tpu.memory_space<vmem>>, vector<1x32x8xbf16>
    %32 = vector.shape_cast %31 : vector<1x32x8xbf16> to vector<32x8xbf16>
    %cst_31 = arith.constant dense<0.000000e+00> : vector<8x8xf32>
    %33 = tpu.matmul %4, %32, %cst_31 {dimension_numbers = #tpu.dot_dimension_numbers<[1], [0], [0], [1], [0, 0, 1, 1], [], []>} : vector<8x32xbf16>, vector<32x8xbf16>, vector<8x8xf32> -> vector<8x8xf32>
    %c3_32 = arith.constant 3 : index
    %c0_33 = arith.constant 0 : index
    %c0_34 = arith.constant 0 : index
    %34 = vector.load %arg4[%c3_32, %c0_33, %c0_34] : memref<4x32x8xbf16, #tpu.memory_space<vmem>>, vector<1x32x8xbf16>
    %35 = vector.shape_cast %34 : vector<1x32x8xbf16> to vector<32x8xbf16>
    %cst_35 = arith.constant dense<0.000000e+00> : vector<8x8xf32>
    %36 = tpu.matmul %4, %35, %cst_35 {dimension_numbers = #tpu.dot_dimension_numbers<[1], [0], [0], [1], [0, 0, 1, 1], [], []>} : vector<8x32xbf16>, vector<32x8xbf16>, vector<8x8xf32> -> vector<8x8xf32>
    %37 = vector.shape_cast %27 : vector<8x8xf32> to vector<1x8x8xf32>
    %38 = vector.shape_cast %30 : vector<8x8xf32> to vector<1x8x8xf32>
    %39 = vector.shape_cast %33 : vector<8x8xf32> to vector<1x8x8xf32>
    %40 = vector.shape_cast %36 : vector<8x8xf32> to vector<1x8x8xf32>
    %41 = tpu.concatenate %37, %38, %39, %40 in 0 : vector<1x8x8xf32>, vector<1x8x8xf32>, vector<1x8x8xf32>, vector<1x8x8xf32> -> vector<4x8x8xf32>
    %c0_36 = arith.constant 0 : index
    %c0_37 = arith.constant 0 : index
    %c0_38 = arith.constant 0 : index
    %42 = vector.load %arg7[%c0_36, %c0_37, %c0_38] : memref<4x1x8xf32, #tpu.memory_space<vmem>>, vector<4x1x8xf32>
    %43 = vector.broadcast %42 : vector<4x1x8xf32> to vector<4x8x8xf32>
    %44 = arith.addf %41, %43 : vector<4x8x8xf32>
    %c0_39 = arith.constant 0 : index
    %c0_40 = arith.constant 0 : index
    %c0_41 = arith.constant 0 : index
    %45 = vector.load %arg5[%c0_39, %c0_40, %c0_41] : memref<4x32x8xbf16, #tpu.memory_space<vmem>>, vector<1x32x8xbf16>
    %46 = vector.shape_cast %45 : vector<1x32x8xbf16> to vector<32x8xbf16>
    %cst_42 = arith.constant dense<0.000000e+00> : vector<8x8xf32>
    %47 = tpu.matmul %4, %46, %cst_42 {dimension_numbers = #tpu.dot_dimension_numbers<[1], [0], [0], [1], [0, 0, 1, 1], [], []>} : vector<8x32xbf16>, vector<32x8xbf16>, vector<8x8xf32> -> vector<8x8xf32>
    %c1_43 = arith.constant 1 : index
    %c0_44 = arith.constant 0 : index
    %c0_45 = arith.constant 0 : index
    %48 = vector.load %arg5[%c1_43, %c0_44, %c0_45] : memref<4x32x8xbf16, #tpu.memory_space<vmem>>, vector<1x32x8xbf16>
    %49 = vector.shape_cast %48 : vector<1x32x8xbf16> to vector<32x8xbf16>
    %cst_46 = arith.constant dense<0.000000e+00> : vector<8x8xf32>
    %50 = tpu.matmul %4, %49, %cst_46 {dimension_numbers = #tpu.dot_dimension_numbers<[1], [0], [0], [1], [0, 0, 1, 1], [], []>} : vector<8x32xbf16>, vector<32x8xbf16>, vector<8x8xf32> -> vector<8x8xf32>
    %c2_47 = arith.constant 2 : index
    %c0_48 = arith.constant 0 : index
    %c0_49 = arith.constant 0 : index
    %51 = vector.load %arg5[%c2_47, %c0_48, %c0_49] : memref<4x32x8xbf16, #tpu.memory_space<vmem>>, vector<1x32x8xbf16>
    %52 = vector.shape_cast %51 : vector<1x32x8xbf16> to vector<32x8xbf16>
    %cst_50 = arith.constant dense<0.000000e+00> : vector<8x8xf32>
    %53 = tpu.matmul %4, %52, %cst_50 {dimension_numbers = #tpu.dot_dimension_numbers<[1], [0], [0], [1], [0, 0, 1, 1], [], []>} : vector<8x32xbf16>, vector<32x8xbf16>, vector<8x8xf32> -> vector<8x8xf32>
    %c3_51 = arith.constant 3 : index
    %c0_52 = arith.constant 0 : index
    %c0_53 = arith.constant 0 : index
    %54 = vector.load %arg5[%c3_51, %c0_52, %c0_53] : memref<4x32x8xbf16, #tpu.memory_space<vmem>>, vector<1x32x8xbf16>
    %55 = vector.shape_cast %54 : vector<1x32x8xbf16> to vector<32x8xbf16>
    %cst_54 = arith.constant dense<0.000000e+00> : vector<8x8xf32>
    %56 = tpu.matmul %4, %55, %cst_54 {dimension_numbers = #tpu.dot_dimension_numbers<[1], [0], [0], [1], [0, 0, 1, 1], [], []>} : vector<8x32xbf16>, vector<32x8xbf16>, vector<8x8xf32> -> vector<8x8xf32>
    %57 = vector.shape_cast %47 : vector<8x8xf32> to vector<1x8x8xf32>
    %58 = vector.shape_cast %50 : vector<8x8xf32> to vector<1x8x8xf32>
    %59 = vector.shape_cast %53 : vector<8x8xf32> to vector<1x8x8xf32>
    %60 = vector.shape_cast %56 : vector<8x8xf32> to vector<1x8x8xf32>
    %61 = tpu.concatenate %57, %58, %59, %60 in 0 : vector<1x8x8xf32>, vector<1x8x8xf32>, vector<1x8x8xf32>, vector<1x8x8xf32> -> vector<4x8x8xf32>
    %c0_55 = arith.constant 0 : index
    %c0_56 = arith.constant 0 : index
    %c0_57 = arith.constant 0 : index
    %62 = vector.load %arg8[%c0_55, %c0_56, %c0_57] : memref<4x1x8xf32, #tpu.memory_space<vmem>>, vector<4x1x8xf32>
    %63 = vector.broadcast %62 : vector<4x1x8xf32> to vector<4x8x8xf32>
    %64 = arith.addf %61, %63 : vector<4x8x8xf32>
    %65 = arith.truncf %24 : vector<4x8x8xf32> to vector<4x8x8xbf16>
    %66 = arith.truncf %44 : vector<4x8x8xf32> to vector<4x8x8xbf16>
    "tpu.trace_start"() <{level = 10 : i32, message = "hqd,hkd->hqk"}> : () -> ()
    %cst_58 = arith.constant dense<0.000000e+00> : vector<4x8x8xf32>
    %67 = tpu.matmul %65, %66, %cst_58 {dimension_numbers = #tpu.dot_dimension_numbers<[2], [2], [1], [1], [0, 0, 0, 1, 1, 1], [0], [0]>} : vector<4x8x8xbf16>, vector<4x8x8xbf16>, vector<4x8x8xf32> -> vector<4x8x8xf32>
    "tpu.trace_stop"() : () -> ()
    %cst_59 = arith.constant 0.353553385 : f32
    %68 = vector.broadcast %cst_59 : f32 to vector<4x8x8xf32>
    %69 = arith.mulf %67, %68 : vector<4x8x8xf32>
    %cst_60 = arith.constant dense<0xFF800000> : vector<4x8xf32>
    %70 = vector.multi_reduction <maximumf>, %69, %cst_60 [2] : vector<4x8x8xf32> to vector<4x8xf32>
    %71 = vector.shape_cast %70 : vector<4x8xf32> to vector<4x8x1xf32>
    %72 = vector.broadcast %71 : vector<4x8x1xf32> to vector<4x8x8xf32>
    %73 = arith.subf %69, %72 : vector<4x8x8xf32>
    %74 = math.exp %73 : vector<4x8x8xf32>
    %cst_61 = arith.constant dense<0.000000e+00> : vector<4x8xf32>
    %75 = vector.multi_reduction <add>, %74, %cst_61 [2] : vector<4x8x8xf32> to vector<4x8xf32>
    %76 = vector.shape_cast %75 : vector<4x8xf32> to vector<4x8x1xf32>
    %77 = vector.broadcast %76 : vector<4x8x1xf32> to vector<4x8x8xf32>
    %78 = arith.divf %74, %77 : vector<4x8x8xf32>
    %79 = arith.truncf %78 : vector<4x8x8xf32> to vector<4x8x8xbf16>
    %80 = arith.truncf %64 : vector<4x8x8xf32> to vector<4x8x8xbf16>
    "tpu.trace_start"() <{level = 10 : i32, message = "hqk,hkd->hqd"}> : () -> ()
    %cst_62 = arith.constant dense<0.000000e+00> : vector<4x8x8xf32>
    %81 = tpu.matmul %79, %80, %cst_62 {dimension_numbers = #tpu.dot_dimension_numbers<[2], [1], [1], [2], [0, 0, 0, 1, 1, 2], [0], [0]>} : vector<4x8x8xbf16>, vector<4x8x8xbf16>, vector<4x8x8xf32> -> vector<4x8x8xf32>
    "tpu.trace_stop"() : () -> ()
    %82 = vector.extract_strided_slice %81 {offsets = [0, 0, 0], sizes = [1, 8, 8], strides = [1, 1, 1]} : vector<4x8x8xf32> to vector<1x8x8xf32>
    %83 = vector.shape_cast %82 : vector<1x8x8xf32> to vector<8x8xf32>
    %84 = vector.extract_strided_slice %81 {offsets = [1, 0, 0], sizes = [1, 8, 8], strides = [1, 1, 1]} : vector<4x8x8xf32> to vector<1x8x8xf32>
    %85 = vector.shape_cast %84 : vector<1x8x8xf32> to vector<8x8xf32>
    %86 = vector.extract_strided_slice %81 {offsets = [2, 0, 0], sizes = [1, 8, 8], strides = [1, 1, 1]} : vector<4x8x8xf32> to vector<1x8x8xf32>
    %87 = vector.shape_cast %86 : vector<1x8x8xf32> to vector<8x8xf32>
    %88 = vector.extract_strided_slice %81 {offsets = [3, 0, 0], sizes = [1, 8, 8], strides = [1, 1, 1]} : vector<4x8x8xf32> to vector<1x8x8xf32>
    %89 = vector.shape_cast %88 : vector<1x8x8xf32> to vector<8x8xf32>
    %90 = tpu.concatenate %83, %85, %87, %89 in 1 : vector<8x8xf32>, vector<8x8xf32>, vector<8x8xf32>, vector<8x8xf32> -> vector<8x32xf32>
    %91 = arith.truncf %90 : vector<8x32xf32> to vector<8x32xbf16>
    %c0_63 = arith.constant 0 : index
    %c0_64 = arith.constant 0 : index
    %92 = vector.load %arg9[%c0_63, %c0_64] : memref<32x32xbf16, #tpu.memory_space<vmem>>, vector<32x32xbf16>
    %cst_65 = arith.constant dense<0.000000e+00> : vector<8x32xf32>
    %93 = tpu.matmul %91, %92, %cst_65 {dimension_numbers = #tpu.dot_dimension_numbers<[1], [0], [0], [1], [0, 0, 1, 1], [], []>} : vector<8x32xbf16>, vector<32x32xbf16>, vector<8x32xf32> -> vector<8x32xf32>
    %c0_66 = arith.constant 0 : index
    %c0_67 = arith.constant 0 : index
    %94 = vector.load %arg10[%c0_66, %c0_67] : memref<1x32xf32, #tpu.memory_space<vmem>>, vector<1x32xf32>
    %95 = vector.broadcast %94 : vector<1x32xf32> to vector<8x32xf32>
    %96 = arith.addf %93, %95 : vector<8x32xf32>
    %97 = arith.addf %1, %96 : vector<8x32xf32>
    %c0_68 = arith.constant 0 : index
    %c0_69 = arith.constant 0 : index
    %98 = vector.load %arg11[%c0_68, %c0_69] : memref<1x32xf32, #tpu.memory_space<vmem>>, vector<1x32xf32>
    %c0_70 = arith.constant 0 : index
    %c0_71 = arith.constant 0 : index
    %99 = vector.load %arg12[%c0_70, %c0_71] : memref<1x32xf32, #tpu.memory_space<vmem>>, vector<1x32xf32>
    %cst_72 = arith.constant dense<0.000000e+00> : vector<8xf32>
    %100 = vector.multi_reduction <add>, %97, %cst_72 [1] : vector<8x32xf32> to vector<8xf32>
    %101 = vector.shape_cast %100 : vector<8xf32> to vector<8x1xf32>
    %cst_73 = arith.constant 3.200000e+01 : f32
    %102 = vector.broadcast %cst_73 : f32 to vector<8x1xf32>
    %103 = arith.divf %101, %102 : vector<8x1xf32>
    %104 = vector.broadcast %103 : vector<8x1xf32> to vector<8x32xf32>
    %105 = arith.subf %97, %104 : vector<8x32xf32>
    %106 = arith.mulf %105, %105 : vector<8x32xf32>
    %cst_74 = arith.constant dense<0.000000e+00> : vector<8xf32>
    %107 = vector.multi_reduction <add>, %106, %cst_74 [1] : vector<8x32xf32> to vector<8xf32>
    %108 = vector.shape_cast %107 : vector<8xf32> to vector<8x1xf32>
    %cst_75 = arith.constant 3.200000e+01 : f32
    %109 = vector.broadcast %cst_75 : f32 to vector<8x1xf32>
    %110 = arith.divf %108, %109 : vector<8x1xf32>
    %cst_76 = arith.constant 9.99999974E-6 : f32
    %111 = vector.broadcast %cst_76 : f32 to vector<8x1xf32>
    %112 = arith.addf %110, %111 : vector<8x1xf32>
    %113 = math.rsqrt %112 : vector<8x1xf32>
    %114 = vector.broadcast %113 : vector<8x1xf32> to vector<8x32xf32>
    %115 = arith.mulf %105, %114 : vector<8x32xf32>
    %116 = vector.broadcast %98 : vector<1x32xf32> to vector<8x32xf32>
    %117 = arith.mulf %115, %116 : vector<8x32xf32>
    %118 = vector.broadcast %99 : vector<1x32xf32> to vector<8x32xf32>
    %119 = arith.addf %117, %118 : vector<8x32xf32>
    %120 = arith.truncf %119 : vector<8x32xf32> to vector<8x32xbf16>
    %121 = arith.truncf %3 : vector<8x32xf32> to vector<8x32xbf16>
    %c0_77 = arith.constant 0 : index
    %c0_78 = arith.constant 0 : index
    %c0_79 = arith.constant 0 : index
    %122 = vector.load %arg13[%c0_77, %c0_78, %c0_79] : memref<4x32x8xbf16, #tpu.memory_space<vmem>>, vector<1x32x8xbf16>
    %123 = vector.shape_cast %122 : vector<1x32x8xbf16> to vector<32x8xbf16>
    %cst_80 = arith.constant dense<0.000000e+00> : vector<8x8xf32>
    %124 = tpu.matmul %120, %123, %cst_80 {dimension_numbers = #tpu.dot_dimension_numbers<[1], [0], [0], [1], [0, 0, 1, 1], [], []>} : vector<8x32xbf16>, vector<32x8xbf16>, vector<8x8xf32> -> vector<8x8xf32>
    %c1_81 = arith.constant 1 : index
    %c0_82 = arith.constant 0 : index
    %c0_83 = arith.constant 0 : index
    %125 = vector.load %arg13[%c1_81, %c0_82, %c0_83] : memref<4x32x8xbf16, #tpu.memory_space<vmem>>, vector<1x32x8xbf16>
    %126 = vector.shape_cast %125 : vector<1x32x8xbf16> to vector<32x8xbf16>
    %cst_84 = arith.constant dense<0.000000e+00> : vector<8x8xf32>
    %127 = tpu.matmul %120, %126, %cst_84 {dimension_numbers = #tpu.dot_dimension_numbers<[1], [0], [0], [1], [0, 0, 1, 1], [], []>} : vector<8x32xbf16>, vector<32x8xbf16>, vector<8x8xf32> -> vector<8x8xf32>
    %c2_85 = arith.constant 2 : index
    %c0_86 = arith.constant 0 : index
    %c0_87 = arith.constant 0 : index
    %128 = vector.load %arg13[%c2_85, %c0_86, %c0_87] : memref<4x32x8xbf16, #tpu.memory_space<vmem>>, vector<1x32x8xbf16>
    %129 = vector.shape_cast %128 : vector<1x32x8xbf16> to vector<32x8xbf16>
    %cst_88 = arith.constant dense<0.000000e+00> : vector<8x8xf32>
    %130 = tpu.matmul %120, %129, %cst_88 {dimension_numbers = #tpu.dot_dimension_numbers<[1], [0], [0], [1], [0, 0, 1, 1], [], []>} : vector<8x32xbf16>, vector<32x8xbf16>, vector<8x8xf32> -> vector<8x8xf32>
    %c3_89 = arith.constant 3 : index
    %c0_90 = arith.constant 0 : index
    %c0_91 = arith.constant 0 : index
    %131 = vector.load %arg13[%c3_89, %c0_90, %c0_91] : memref<4x32x8xbf16, #tpu.memory_space<vmem>>, vector<1x32x8xbf16>
    %132 = vector.shape_cast %131 : vector<1x32x8xbf16> to vector<32x8xbf16>
    %cst_92 = arith.constant dense<0.000000e+00> : vector<8x8xf32>
    %133 = tpu.matmul %120, %132, %cst_92 {dimension_numbers = #tpu.dot_dimension_numbers<[1], [0], [0], [1], [0, 0, 1, 1], [], []>} : vector<8x32xbf16>, vector<32x8xbf16>, vector<8x8xf32> -> vector<8x8xf32>
    %134 = vector.shape_cast %124 : vector<8x8xf32> to vector<1x8x8xf32>
    %135 = vector.shape_cast %127 : vector<8x8xf32> to vector<1x8x8xf32>
    %136 = vector.shape_cast %130 : vector<8x8xf32> to vector<1x8x8xf32>
    %137 = vector.shape_cast %133 : vector<8x8xf32> to vector<1x8x8xf32>
    %138 = tpu.concatenate %134, %135, %136, %137 in 0 : vector<1x8x8xf32>, vector<1x8x8xf32>, vector<1x8x8xf32>, vector<1x8x8xf32> -> vector<4x8x8xf32>
    %c0_93 = arith.constant 0 : index
    %c0_94 = arith.constant 0 : index
    %c0_95 = arith.constant 0 : index
    %139 = vector.load %arg16[%c0_93, %c0_94, %c0_95] : memref<4x1x8xf32, #tpu.memory_space<vmem>>, vector<4x1x8xf32>
    %140 = vector.broadcast %139 : vector<4x1x8xf32> to vector<4x8x8xf32>
    %141 = arith.addf %138, %140 : vector<4x8x8xf32>
    %c0_96 = arith.constant 0 : index
    %c0_97 = arith.constant 0 : index
    %c0_98 = arith.constant 0 : index
    %142 = vector.load %arg14[%c0_96, %c0_97, %c0_98] : memref<4x32x8xbf16, #tpu.memory_space<vmem>>, vector<1x32x8xbf16>
    %143 = vector.shape_cast %142 : vector<1x32x8xbf16> to vector<32x8xbf16>
    %cst_99 = arith.constant dense<0.000000e+00> : vector<8x8xf32>
    %144 = tpu.matmul %121, %143, %cst_99 {dimension_numbers = #tpu.dot_dimension_numbers<[1], [0], [0], [1], [0, 0, 1, 1], [], []>} : vector<8x32xbf16>, vector<32x8xbf16>, vector<8x8xf32> -> vector<8x8xf32>
    %c1_100 = arith.constant 1 : index
    %c0_101 = arith.constant 0 : index
    %c0_102 = arith.constant 0 : index
    %145 = vector.load %arg14[%c1_100, %c0_101, %c0_102] : memref<4x32x8xbf16, #tpu.memory_space<vmem>>, vector<1x32x8xbf16>
    %146 = vector.shape_cast %145 : vector<1x32x8xbf16> to vector<32x8xbf16>
    %cst_103 = arith.constant dense<0.000000e+00> : vector<8x8xf32>
    %147 = tpu.matmul %121, %146, %cst_103 {dimension_numbers = #tpu.dot_dimension_numbers<[1], [0], [0], [1], [0, 0, 1, 1], [], []>} : vector<8x32xbf16>, vector<32x8xbf16>, vector<8x8xf32> -> vector<8x8xf32>
    %c2_104 = arith.constant 2 : index
    %c0_105 = arith.constant 0 : index
    %c0_106 = arith.constant 0 : index
    %148 = vector.load %arg14[%c2_104, %c0_105, %c0_106] : memref<4x32x8xbf16, #tpu.memory_space<vmem>>, vector<1x32x8xbf16>
    %149 = vector.shape_cast %148 : vector<1x32x8xbf16> to vector<32x8xbf16>
    %cst_107 = arith.constant dense<0.000000e+00> : vector<8x8xf32>
    %150 = tpu.matmul %121, %149, %cst_107 {dimension_numbers = #tpu.dot_dimension_numbers<[1], [0], [0], [1], [0, 0, 1, 1], [], []>} : vector<8x32xbf16>, vector<32x8xbf16>, vector<8x8xf32> -> vector<8x8xf32>
    %c3_108 = arith.constant 3 : index
    %c0_109 = arith.constant 0 : index
    %c0_110 = arith.constant 0 : index
    %151 = vector.load %arg14[%c3_108, %c0_109, %c0_110] : memref<4x32x8xbf16, #tpu.memory_space<vmem>>, vector<1x32x8xbf16>
    %152 = vector.shape_cast %151 : vector<1x32x8xbf16> to vector<32x8xbf16>
    %cst_111 = arith.constant dense<0.000000e+00> : vector<8x8xf32>
    %153 = tpu.matmul %121, %152, %cst_111 {dimension_numbers = #tpu.dot_dimension_numbers<[1], [0], [0], [1], [0, 0, 1, 1], [], []>} : vector<8x32xbf16>, vector<32x8xbf16>, vector<8x8xf32> -> vector<8x8xf32>
    %154 = vector.shape_cast %144 : vector<8x8xf32> to vector<1x8x8xf32>
    %155 = vector.shape_cast %147 : vector<8x8xf32> to vector<1x8x8xf32>
    %156 = vector.shape_cast %150 : vector<8x8xf32> to vector<1x8x8xf32>
    %157 = vector.shape_cast %153 : vector<8x8xf32> to vector<1x8x8xf32>
    %158 = tpu.concatenate %154, %155, %156, %157 in 0 : vector<1x8x8xf32>, vector<1x8x8xf32>, vector<1x8x8xf32>, vector<1x8x8xf32> -> vector<4x8x8xf32>
    %c0_112 = arith.constant 0 : index
    %c0_113 = arith.constant 0 : index
    %c0_114 = arith.constant 0 : index
    %159 = vector.load %arg17[%c0_112, %c0_113, %c0_114] : memref<4x1x8xf32, #tpu.memory_space<vmem>>, vector<4x1x8xf32>
    %160 = vector.broadcast %159 : vector<4x1x8xf32> to vector<4x8x8xf32>
    %161 = arith.addf %158, %160 : vector<4x8x8xf32>
    %c0_115 = arith.constant 0 : index
    %c0_116 = arith.constant 0 : index
    %c0_117 = arith.constant 0 : index
    %162 = vector.load %arg15[%c0_115, %c0_116, %c0_117] : memref<4x32x8xbf16, #tpu.memory_space<vmem>>, vector<1x32x8xbf16>
    %163 = vector.shape_cast %162 : vector<1x32x8xbf16> to vector<32x8xbf16>
    %cst_118 = arith.constant dense<0.000000e+00> : vector<8x8xf32>
    %164 = tpu.matmul %121, %163, %cst_118 {dimension_numbers = #tpu.dot_dimension_numbers<[1], [0], [0], [1], [0, 0, 1, 1], [], []>} : vector<8x32xbf16>, vector<32x8xbf16>, vector<8x8xf32> -> vector<8x8xf32>
    %c1_119 = arith.constant 1 : index
    %c0_120 = arith.constant 0 : index
    %c0_121 = arith.constant 0 : index
    %165 = vector.load %arg15[%c1_119, %c0_120, %c0_121] : memref<4x32x8xbf16, #tpu.memory_space<vmem>>, vector<1x32x8xbf16>
    %166 = vector.shape_cast %165 : vector<1x32x8xbf16> to vector<32x8xbf16>
    %cst_122 = arith.constant dense<0.000000e+00> : vector<8x8xf32>
    %167 = tpu.matmul %121, %166, %cst_122 {dimension_numbers = #tpu.dot_dimension_numbers<[1], [0], [0], [1], [0, 0, 1, 1], [], []>} : vector<8x32xbf16>, vector<32x8xbf16>, vector<8x8xf32> -> vector<8x8xf32>
    %c2_123 = arith.constant 2 : index
    %c0_124 = arith.constant 0 : index
    %c0_125 = arith.constant 0 : index
    %168 = vector.load %arg15[%c2_123, %c0_124, %c0_125] : memref<4x32x8xbf16, #tpu.memory_space<vmem>>, vector<1x32x8xbf16>
    %169 = vector.shape_cast %168 : vector<1x32x8xbf16> to vector<32x8xbf16>
    %cst_126 = arith.constant dense<0.000000e+00> : vector<8x8xf32>
    %170 = tpu.matmul %121, %169, %cst_126 {dimension_numbers = #tpu.dot_dimension_numbers<[1], [0], [0], [1], [0, 0, 1, 1], [], []>} : vector<8x32xbf16>, vector<32x8xbf16>, vector<8x8xf32> -> vector<8x8xf32>
    %c3_127 = arith.constant 3 : index
    %c0_128 = arith.constant 0 : index
    %c0_129 = arith.constant 0 : index
    %171 = vector.load %arg15[%c3_127, %c0_128, %c0_129] : memref<4x32x8xbf16, #tpu.memory_space<vmem>>, vector<1x32x8xbf16>
    %172 = vector.shape_cast %171 : vector<1x32x8xbf16> to vector<32x8xbf16>
    %cst_130 = arith.constant dense<0.000000e+00> : vector<8x8xf32>
    %173 = tpu.matmul %121, %172, %cst_130 {dimension_numbers = #tpu.dot_dimension_numbers<[1], [0], [0], [1], [0, 0, 1, 1], [], []>} : vector<8x32xbf16>, vector<32x8xbf16>, vector<8x8xf32> -> vector<8x8xf32>
    %174 = vector.shape_cast %164 : vector<8x8xf32> to vector<1x8x8xf32>
    %175 = vector.shape_cast %167 : vector<8x8xf32> to vector<1x8x8xf32>
    %176 = vector.shape_cast %170 : vector<8x8xf32> to vector<1x8x8xf32>
    %177 = vector.shape_cast %173 : vector<8x8xf32> to vector<1x8x8xf32>
    %178 = tpu.concatenate %174, %175, %176, %177 in 0 : vector<1x8x8xf32>, vector<1x8x8xf32>, vector<1x8x8xf32>, vector<1x8x8xf32> -> vector<4x8x8xf32>
    %c0_131 = arith.constant 0 : index
    %c0_132 = arith.constant 0 : index
    %c0_133 = arith.constant 0 : index
    %179 = vector.load %arg18[%c0_131, %c0_132, %c0_133] : memref<4x1x8xf32, #tpu.memory_space<vmem>>, vector<4x1x8xf32>
    %180 = vector.broadcast %179 : vector<4x1x8xf32> to vector<4x8x8xf32>
    %181 = arith.addf %178, %180 : vector<4x8x8xf32>
    %182 = arith.truncf %141 : vector<4x8x8xf32> to vector<4x8x8xbf16>
    %183 = arith.truncf %161 : vector<4x8x8xf32> to vector<4x8x8xbf16>
    "tpu.trace_start"() <{level = 10 : i32, message = "hqd,hkd->hqk"}> : () -> ()
    %cst_134 = arith.constant dense<0.000000e+00> : vector<4x8x8xf32>
    %184 = tpu.matmul %182, %183, %cst_134 {dimension_numbers = #tpu.dot_dimension_numbers<[2], [2], [1], [1], [0, 0, 0, 1, 1, 1], [0], [0]>} : vector<4x8x8xbf16>, vector<4x8x8xbf16>, vector<4x8x8xf32> -> vector<4x8x8xf32>
    "tpu.trace_stop"() : () -> ()
    %cst_135 = arith.constant 0.353553385 : f32
    %185 = vector.broadcast %cst_135 : f32 to vector<4x8x8xf32>
    %186 = arith.mulf %184, %185 : vector<4x8x8xf32>
    %cst_136 = arith.constant dense<0xFF800000> : vector<4x8xf32>
    %187 = vector.multi_reduction <maximumf>, %186, %cst_136 [2] : vector<4x8x8xf32> to vector<4x8xf32>
    %188 = vector.shape_cast %187 : vector<4x8xf32> to vector<4x8x1xf32>
    %189 = vector.broadcast %188 : vector<4x8x1xf32> to vector<4x8x8xf32>
    %190 = arith.subf %186, %189 : vector<4x8x8xf32>
    %191 = math.exp %190 : vector<4x8x8xf32>
    %cst_137 = arith.constant dense<0.000000e+00> : vector<4x8xf32>
    %192 = vector.multi_reduction <add>, %191, %cst_137 [2] : vector<4x8x8xf32> to vector<4x8xf32>
    %193 = vector.shape_cast %192 : vector<4x8xf32> to vector<4x8x1xf32>
    %194 = vector.broadcast %193 : vector<4x8x1xf32> to vector<4x8x8xf32>
    %195 = arith.divf %191, %194 : vector<4x8x8xf32>
    %196 = arith.truncf %195 : vector<4x8x8xf32> to vector<4x8x8xbf16>
    %197 = arith.truncf %181 : vector<4x8x8xf32> to vector<4x8x8xbf16>
    "tpu.trace_start"() <{level = 10 : i32, message = "hqk,hkd->hqd"}> : () -> ()
    %cst_138 = arith.constant dense<0.000000e+00> : vector<4x8x8xf32>
    %198 = tpu.matmul %196, %197, %cst_138 {dimension_numbers = #tpu.dot_dimension_numbers<[2], [1], [1], [2], [0, 0, 0, 1, 1, 2], [0], [0]>} : vector<4x8x8xbf16>, vector<4x8x8xbf16>, vector<4x8x8xf32> -> vector<4x8x8xf32>
    "tpu.trace_stop"() : () -> ()
    %199 = vector.extract_strided_slice %198 {offsets = [0, 0, 0], sizes = [1, 8, 8], strides = [1, 1, 1]} : vector<4x8x8xf32> to vector<1x8x8xf32>
    %200 = vector.shape_cast %199 : vector<1x8x8xf32> to vector<8x8xf32>
    %201 = vector.extract_strided_slice %198 {offsets = [1, 0, 0], sizes = [1, 8, 8], strides = [1, 1, 1]} : vector<4x8x8xf32> to vector<1x8x8xf32>
    %202 = vector.shape_cast %201 : vector<1x8x8xf32> to vector<8x8xf32>
    %203 = vector.extract_strided_slice %198 {offsets = [2, 0, 0], sizes = [1, 8, 8], strides = [1, 1, 1]} : vector<4x8x8xf32> to vector<1x8x8xf32>
    %204 = vector.shape_cast %203 : vector<1x8x8xf32> to vector<8x8xf32>
    %205 = vector.extract_strided_slice %198 {offsets = [3, 0, 0], sizes = [1, 8, 8], strides = [1, 1, 1]} : vector<4x8x8xf32> to vector<1x8x8xf32>
    %206 = vector.shape_cast %205 : vector<1x8x8xf32> to vector<8x8xf32>
    %207 = tpu.concatenate %200, %202, %204, %206 in 1 : vector<8x8xf32>, vector<8x8xf32>, vector<8x8xf32>, vector<8x8xf32> -> vector<8x32xf32>
    %208 = arith.truncf %207 : vector<8x32xf32> to vector<8x32xbf16>
    %c0_139 = arith.constant 0 : index
    %c0_140 = arith.constant 0 : index
    %209 = vector.load %arg19[%c0_139, %c0_140] : memref<32x32xbf16, #tpu.memory_space<vmem>>, vector<32x32xbf16>
    %cst_141 = arith.constant dense<0.000000e+00> : vector<8x32xf32>
    %210 = tpu.matmul %208, %209, %cst_141 {dimension_numbers = #tpu.dot_dimension_numbers<[1], [0], [0], [1], [0, 0, 1, 1], [], []>} : vector<8x32xbf16>, vector<32x32xbf16>, vector<8x32xf32> -> vector<8x32xf32>
    %c0_142 = arith.constant 0 : index
    %c0_143 = arith.constant 0 : index
    %211 = vector.load %arg20[%c0_142, %c0_143] : memref<1x32xf32, #tpu.memory_space<vmem>>, vector<1x32xf32>
    %212 = vector.broadcast %211 : vector<1x32xf32> to vector<8x32xf32>
    %213 = arith.addf %210, %212 : vector<8x32xf32>
    %214 = arith.addf %119, %213 : vector<8x32xf32>
    %c0_144 = arith.constant 0 : index
    %c0_145 = arith.constant 0 : index
    %215 = vector.load %arg21[%c0_144, %c0_145] : memref<1x32xf32, #tpu.memory_space<vmem>>, vector<1x32xf32>
    %c0_146 = arith.constant 0 : index
    %c0_147 = arith.constant 0 : index
    %216 = vector.load %arg22[%c0_146, %c0_147] : memref<1x32xf32, #tpu.memory_space<vmem>>, vector<1x32xf32>
    %cst_148 = arith.constant dense<0.000000e+00> : vector<8xf32>
    %217 = vector.multi_reduction <add>, %214, %cst_148 [1] : vector<8x32xf32> to vector<8xf32>
    %218 = vector.shape_cast %217 : vector<8xf32> to vector<8x1xf32>
    %cst_149 = arith.constant 3.200000e+01 : f32
    %219 = vector.broadcast %cst_149 : f32 to vector<8x1xf32>
    %220 = arith.divf %218, %219 : vector<8x1xf32>
    %221 = vector.broadcast %220 : vector<8x1xf32> to vector<8x32xf32>
    %222 = arith.subf %214, %221 : vector<8x32xf32>
    %223 = arith.mulf %222, %222 : vector<8x32xf32>
    %cst_150 = arith.constant dense<0.000000e+00> : vector<8xf32>
    %224 = vector.multi_reduction <add>, %223, %cst_150 [1] : vector<8x32xf32> to vector<8xf32>
    %225 = vector.shape_cast %224 : vector<8xf32> to vector<8x1xf32>
    %cst_151 = arith.constant 3.200000e+01 : f32
    %226 = vector.broadcast %cst_151 : f32 to vector<8x1xf32>
    %227 = arith.divf %225, %226 : vector<8x1xf32>
    %cst_152 = arith.constant 9.99999974E-6 : f32
    %228 = vector.broadcast %cst_152 : f32 to vector<8x1xf32>
    %229 = arith.addf %227, %228 : vector<8x1xf32>
    %230 = math.rsqrt %229 : vector<8x1xf32>
    %231 = vector.broadcast %230 : vector<8x1xf32> to vector<8x32xf32>
    %232 = arith.mulf %222, %231 : vector<8x32xf32>
    %233 = vector.broadcast %215 : vector<1x32xf32> to vector<8x32xf32>
    %234 = arith.mulf %232, %233 : vector<8x32xf32>
    %235 = vector.broadcast %216 : vector<1x32xf32> to vector<8x32xf32>
    %236 = arith.addf %234, %235 : vector<8x32xf32>
    %237 = arith.truncf %236 : vector<8x32xf32> to vector<8x32xbf16>
    %c0_153 = arith.constant 0 : index
    %c0_154 = arith.constant 0 : index
    %238 = vector.load %arg23[%c0_153, %c0_154] : memref<32x32xbf16, #tpu.memory_space<vmem>>, vector<32x32xbf16>
    %cst_155 = arith.constant dense<0.000000e+00> : vector<8x32xf32>
    %239 = tpu.matmul %237, %238, %cst_155 {dimension_numbers = #tpu.dot_dimension_numbers<[1], [0], [0], [1], [0, 0, 1, 1], [], []>} : vector<8x32xbf16>, vector<32x32xbf16>, vector<8x32xf32> -> vector<8x32xf32>
    %c0_156 = arith.constant 0 : index
    %c0_157 = arith.constant 0 : index
    %240 = vector.load %arg24[%c0_156, %c0_157] : memref<1x32xf32, #tpu.memory_space<vmem>>, vector<1x32xf32>
    %241 = vector.broadcast %240 : vector<1x32xf32> to vector<8x32xf32>
    %242 = arith.addf %239, %241 : vector<8x32xf32>
    %cst_158 = arith.constant 5.000000e-01 : f32
    %243 = vector.broadcast %cst_158 : f32 to vector<8x32xf32>
    %244 = arith.mulf %243, %242 : vector<8x32xf32>
    %cst_159 = arith.constant 4.471500e-02 : f32
    %245 = vector.broadcast %cst_159 : f32 to vector<8x32xf32>
    %246 = arith.mulf %245, %242 : vector<8x32xf32>
    %247 = arith.mulf %246, %242 : vector<8x32xf32>
    %248 = arith.mulf %247, %242 : vector<8x32xf32>
    %249 = arith.addf %242, %248 : vector<8x32xf32>
    %cst_160 = arith.constant 0.797884583 : f32
    %250 = vector.broadcast %cst_160 : f32 to vector<8x32xf32>
    %251 = arith.mulf %250, %249 : vector<8x32xf32>
    %252 = math.tanh %251 : vector<8x32xf32>
    %cst_161 = arith.constant 1.000000e+00 : f32
    %253 = vector.broadcast %cst_161 : f32 to vector<8x32xf32>
    %254 = arith.addf %253, %252 : vector<8x32xf32>
    %255 = arith.mulf %244, %254 : vector<8x32xf32>
    %256 = arith.truncf %255 : vector<8x32xf32> to vector<8x32xbf16>
    %c0_162 = arith.constant 0 : index
    %c0_163 = arith.constant 0 : index
    %257 = vector.load %arg25[%c0_162, %c0_163] : memref<32x32xbf16, #tpu.memory_space<vmem>>, vector<32x32xbf16>
    %cst_164 = arith.constant dense<0.000000e+00> : vector<8x32xf32>
    %258 = tpu.matmul %256, %257, %cst_164 {dimension_numbers = #tpu.dot_dimension_numbers<[1], [0], [0], [1], [0, 0, 1, 1], [], []>} : vector<8x32xbf16>, vector<32x32xbf16>, vector<8x32xf32> -> vector<8x32xf32>
    %c0_165 = arith.constant 0 : index
    %c0_166 = arith.constant 0 : index
    %259 = vector.load %arg26[%c0_165, %c0_166] : memref<1x32xf32, #tpu.memory_space<vmem>>, vector<1x32xf32>
    %260 = vector.broadcast %259 : vector<1x32xf32> to vector<8x32xf32>
    %261 = arith.addf %258, %260 : vector<8x32xf32>
    %262 = arith.addf %236, %261 : vector<8x32xf32>
    %c0_167 = arith.constant 0 : index
    %c0_168 = arith.constant 0 : index
    %263 = vector.load %arg27[%c0_167, %c0_168] : memref<1x32xf32, #tpu.memory_space<vmem>>, vector<1x32xf32>
    %c0_169 = arith.constant 0 : index
    %c0_170 = arith.constant 0 : index
    %264 = vector.load %arg28[%c0_169, %c0_170] : memref<1x32xf32, #tpu.memory_space<vmem>>, vector<1x32xf32>
    %cst_171 = arith.constant dense<0.000000e+00> : vector<8xf32>
    %265 = vector.multi_reduction <add>, %262, %cst_171 [1] : vector<8x32xf32> to vector<8xf32>
    %266 = vector.shape_cast %265 : vector<8xf32> to vector<8x1xf32>
    %cst_172 = arith.constant 3.200000e+01 : f32
    %267 = vector.broadcast %cst_172 : f32 to vector<8x1xf32>
    %268 = arith.divf %266, %267 : vector<8x1xf32>
    %269 = vector.broadcast %268 : vector<8x1xf32> to vector<8x32xf32>
    %270 = arith.subf %262, %269 : vector<8x32xf32>
    %271 = arith.mulf %270, %270 : vector<8x32xf32>
    %cst_173 = arith.constant dense<0.000000e+00> : vector<8xf32>
    %272 = vector.multi_reduction <add>, %271, %cst_173 [1] : vector<8x32xf32> to vector<8xf32>
    %273 = vector.shape_cast %272 : vector<8xf32> to vector<8x1xf32>
    %cst_174 = arith.constant 3.200000e+01 : f32
    %274 = vector.broadcast %cst_174 : f32 to vector<8x1xf32>
    %275 = arith.divf %273, %274 : vector<8x1xf32>
    %cst_175 = arith.constant 9.99999974E-6 : f32
    %276 = vector.broadcast %cst_175 : f32 to vector<8x1xf32>
    %277 = arith.addf %275, %276 : vector<8x1xf32>
    %278 = math.rsqrt %277 : vector<8x1xf32>
    %279 = vector.broadcast %278 : vector<8x1xf32> to vector<8x32xf32>
    %280 = arith.mulf %270, %279 : vector<8x32xf32>
    %281 = vector.broadcast %263 : vector<1x32xf32> to vector<8x32xf32>
    %282 = arith.mulf %280, %281 : vector<8x32xf32>
    %283 = vector.broadcast %264 : vector<1x32xf32> to vector<8x32xf32>
    %284 = arith.addf %282, %283 : vector<8x32xf32>
    %c0_176 = arith.constant 0 : index
    %c0_177 = arith.constant 0 : index
    %285 = vector.load %arg29[%c0_176, %c0_177] : memref<1x32xf32, #tpu.memory_space<vmem>>, vector<1x32xf32>
    %c0_178 = arith.constant 0 : index
    %c0_179 = arith.constant 0 : index
    %286 = vector.load %arg30[%c0_178, %c0_179] : memref<1x32xf32, #tpu.memory_space<vmem>>, vector<1x32xf32>
    %cst_180 = arith.constant dense<0.000000e+00> : vector<8xf32>
    %287 = vector.multi_reduction <add>, %284, %cst_180 [1] : vector<8x32xf32> to vector<8xf32>
    %288 = vector.shape_cast %287 : vector<8xf32> to vector<8x1xf32>
    %cst_181 = arith.constant 3.200000e+01 : f32
    %289 = vector.broadcast %cst_181 : f32 to vector<8x1xf32>
    %290 = arith.divf %288, %289 : vector<8x1xf32>
    %291 = vector.broadcast %290 : vector<8x1xf32> to vector<8x32xf32>
    %292 = arith.subf %284, %291 : vector<8x32xf32>
    %293 = arith.mulf %292, %292 : vector<8x32xf32>
    %cst_182 = arith.constant dense<0.000000e+00> : vector<8xf32>
    %294 = vector.multi_reduction <add>, %293, %cst_182 [1] : vector<8x32xf32> to vector<8xf32>
    %295 = vector.shape_cast %294 : vector<8xf32> to vector<8x1xf32>
    %cst_183 = arith.constant 3.200000e+01 : f32
    %296 = vector.broadcast %cst_183 : f32 to vector<8x1xf32>
    %297 = arith.divf %295, %296 : vector<8x1xf32>
    %cst_184 = arith.constant 9.99999974E-6 : f32
    %298 = vector.broadcast %cst_184 : f32 to vector<8x1xf32>
    %299 = arith.addf %297, %298 : vector<8x1xf32>
    %300 = math.rsqrt %299 : vector<8x1xf32>
    %301 = vector.broadcast %300 : vector<8x1xf32> to vector<8x32xf32>
    %302 = arith.mulf %292, %301 : vector<8x32xf32>
    %303 = vector.broadcast %285 : vector<1x32xf32> to vector<8x32xf32>
    %304 = arith.mulf %302, %303 : vector<8x32xf32>
    %305 = vector.broadcast %286 : vector<1x32xf32> to vector<8x32xf32>
    %306 = arith.addf %304, %305 : vector<8x32xf32>
    %c0_185 = arith.constant 0 : index
    %c0_186 = arith.constant 0 : index
    %c0_187 = arith.constant 0 : index
    %307 = vector.load %arg31[%c0_185, %c0_186, %c0_187] : memref<1x8x32xf32, #tpu.memory_space<vmem>>, vector<1x8x32xf32>
    %308 = vector.shape_cast %307 : vector<1x8x32xf32> to vector<8x32xf32>
    %309 = vector.shape_cast %306 : vector<8x32xf32> to vector<1x8x32xf32>
    tpu.vector_store %arg31[%c0_185, %c0_186, %c0_187], %309 {strides = array<i32>} : memref<1x8x32xf32, #tpu.memory_space<vmem>>, vector<1x8x32xf32>,
    return
  }
  func.func @transform_0(%arg0: i32) -> (i32, i32, i32) {
    %c0_i32 = arith.constant 0 : i32
    %c0_i32_0 = arith.constant 0 : i32
    %c0_i32_1 = arith.constant 0 : i32
    return %arg0, %c0_i32, %c0_i32_0 : i32, i32, i32
  }
  func.func @transform_1(%arg0: i32) -> (i32, i32, i32) {
    %c0_i32 = arith.constant 0 : i32
    %c0_i32_0 = arith.constant 0 : i32
    %c0_i32_1 = arith.constant 0 : i32
    return %arg0, %c0_i32, %c0_i32_0 : i32, i32, i32
  }
  func.func @transform_2(%arg0: i32) -> (i32, i32, i32) {
    %c0_i32 = arith.constant 0 : i32
    %c0_i32_0 = arith.constant 0 : i32
    %c0_i32_1 = arith.constant 0 : i32
    %c0_i32_2 = arith.constant 0 : i32
    return %c0_i32, %c0_i32_0, %c0_i32_1 : i32, i32, i32
  }
  func.func @transform_3(%arg0: i32) -> (i32, i32, i32) {
    %c0_i32 = arith.constant 0 : i32
    %c0_i32_0 = arith.constant 0 : i32
    %c0_i32_1 = arith.constant 0 : i32
    %c0_i32_2 = arith.constant 0 : i32
    return %c0_i32, %c0_i32_0, %c0_i32_1 : i32, i32, i32
  }
  func.func @transform_4(%arg0: i32) -> (i32, i32, i32) {
    %c0_i32 = arith.constant 0 : i32
    %c0_i32_0 = arith.constant 0 : i32
    %c0_i32_1 = arith.constant 0 : i32
    %c0_i32_2 = arith.constant 0 : i32
    return %c0_i32, %c0_i32_0, %c0_i32_1 : i32, i32, i32
  }
  func.func @transform_5(%arg0: i32) -> (i32, i32, i32) {
    %c0_i32 = arith.constant 0 : i32
    %c0_i32_0 = arith.constant 0 : i32
    %c0_i32_1 = arith.constant 0 : i32
    %c0_i32_2 = arith.constant 0 : i32
    return %c0_i32, %c0_i32_0, %c0_i32_1 : i32, i32, i32
  }
  func.func @transform_6(%arg0: i32) -> (i32, i32, i32) {
    %c0_i32 = arith.constant 0 : i32
    %c0_i32_0 = arith.constant 0 : i32
    %c0_i32_1 = arith.constant 0 : i32
    %c0_i32_2 = arith.constant 0 : i32
    return %c0_i32, %c0_i32_0, %c0_i32_1 : i32, i32, i32
  }
  func.func @transform_7(%arg0: i32) -> (i32, i32, i32) {
    %c0_i32 = arith.constant 0 : i32
    %c0_i32_0 = arith.constant 0 : i32
    %c0_i32_1 = arith.constant 0 : i32
    %c0_i32_2 = arith.constant 0 : i32
    return %c0_i32, %c0_i32_0, %c0_i32_1 : i32, i32, i32
  }
  func.func @transform_8(%arg0: i32) -> (i32, i32) {
    %c0_i32 = arith.constant 0 : i32
    %c0_i32_0 = arith.constant 0 : i32
    %c0_i32_1 = arith.constant 0 : i32
    return %c0_i32, %c0_i32_0 : i32, i32
  }
  func.func @transform_9(%arg0: i32) -> (i32, i32) {
    %c0_i32 = arith.constant 0 : i32
    %c0_i32_0 = arith.constant 0 : i32
    %c0_i32_1 = arith.constant 0 : i32
    return %c0_i32, %c0_i32_0 : i32, i32
  }
  func.func @transform_10(%arg0: i32) -> (i32, i32) {
    %c0_i32 = arith.constant 0 : i32
    %c0_i32_0 = arith.constant 0 : i32
    %c0_i32_1 = arith.constant 0 : i32
    return %c0_i32, %c0_i32_0 : i32, i32
  }
  func.func @transform_11(%arg0: i32) -> (i32, i32) {
    %c0_i32 = arith.constant 0 : i32
    %c0_i32_0 = arith.constant 0 : i32
    %c0_i32_1 = arith.constant 0 : i32
    return %c0_i32, %c0_i32_0 : i32, i32
  }
  func.func @transform_12(%arg0: i32) -> (i32, i32, i32) {
    %c0_i32 = arith.constant 0 : i32
    %c0_i32_0 = arith.constant 0 : i32
    %c0_i32_1 = arith.constant 0 : i32
    %c0_i32_2 = arith.constant 0 : i32
    return %c0_i32, %c0_i32_0, %c0_i32_1 : i32, i32, i32
  }
  func.func @transform_13(%arg0: i32) -> (i32, i32, i32) {
    %c0_i32 = arith.constant 0 : i32
    %c0_i32_0 = arith.constant 0 : i32
    %c0_i32_1 = arith.constant 0 : i32
    %c0_i32_2 = arith.constant 0 : i32
    return %c0_i32, %c0_i32_0, %c0_i32_1 : i32, i32, i32
  }
  func.func @transform_14(%arg0: i32) -> (i32, i32, i32) {
    %c0_i32 = arith.constant 0 : i32
    %c0_i32_0 = arith.constant 0 : i32
    %c0_i32_1 = arith.constant 0 : i32
    %c0_i32_2 = arith.constant 0 : i32
    return %c0_i32, %c0_i32_0, %c0_i32_1 : i32, i32, i32
  }
  func.func @transform_15(%arg0: i32) -> (i32, i32, i32) {
    %c0_i32 = arith.constant 0 : i32
    %c0_i32_0 = arith.constant 0 : i32
    %c0_i32_1 = arith.constant 0 : i32
    %c0_i32_2 = arith.constant 0 : i32
    return %c0_i32, %c0_i32_0, %c0_i32_1 : i32, i32, i32
  }
  func.func @transform_16(%arg0: i32) -> (i32, i32, i32) {
    %c0_i32 = arith.constant 0 : i32
    %c0_i32_0 = arith.constant 0 : i32
    %c0_i32_1 = arith.constant 0 : i32
    %c0_i32_2 = arith.constant 0 : i32
    return %c0_i32, %c0_i32_0, %c0_i32_1 : i32, i32, i32
  }
  func.func @transform_17(%arg0: i32) -> (i32, i32, i32) {
    %c0_i32 = arith.constant 0 : i32
    %c0_i32_0 = arith.constant 0 : i32
    %c0_i32_1 = arith.constant 0 : i32
    %c0_i32_2 = arith.constant 0 : i32
    return %c0_i32, %c0_i32_0, %c0_i32_1 : i32, i32, i32
  }
  func.func @transform_18(%arg0: i32) -> (i32, i32) {
    %c0_i32 = arith.constant 0 : i32
    %c0_i32_0 = arith.constant 0 : i32
    %c0_i32_1 = arith.constant 0 : i32
    return %c0_i32, %c0_i32_0 : i32, i32
  }
  func.func @transform_19(%arg0: i32) -> (i32, i32) {
    %c0_i32 = arith.constant 0 : i32
    %c0_i32_0 = arith.constant 0 : i32
    %c0_i32_1 = arith.constant 0 : i32
    return %c0_i32, %c0_i32_0 : i32, i32
  }
  func.func @transform_20(%arg0: i32) -> (i32, i32) {
    %c0_i32 = arith.constant 0 : i32
    %c0_i32_0 = arith.constant 0 : i32
    %c0_i32_1 = arith.constant 0 : i32
    return %c0_i32, %c0_i32_0 : i32, i32
  }
  func.func @transform_21(%arg0: i32) -> (i32, i32) {
    %c0_i32 = arith.constant 0 : i32
    %c0_i32_0 = arith.constant 0 : i32
    %c0_i32_1 = arith.constant 0 : i32
    return %c0_i32, %c0_i32_0 : i32, i32
  }
  func.func @transform_22(%arg0: i32) -> (i32, i32) {
    %c0_i32 = arith.constant 0 : i32
    %c0_i32_0 = arith.constant 0 : i32
    %c0_i32_1 = arith.constant 0 : i32
    return %c0_i32, %c0_i32_0 : i32, i32
  }
  func.func @transform_23(%arg0: i32) -> (i32, i32) {
    %c0_i32 = arith.constant 0 : i32
    %c0_i32_0 = arith.constant 0 : i32
    %c0_i32_1 = arith.constant 0 : i32
    return %c0_i32, %c0_i32_0 : i32, i32
  }
  func.func @transform_24(%arg0: i32) -> (i32, i32) {
    %c0_i32 = arith.constant 0 : i32
    %c0_i32_0 = arith.constant 0 : i32
    %c0_i32_1 = arith.constant 0 : i32
    return %c0_i32, %c0_i32_0 : i32, i32
  }
  func.func @transform_25(%arg0: i32) -> (i32, i32) {
    %c0_i32 = arith.constant 0 : i32
    %c0_i32_0 = arith.constant 0 : i32
    %c0_i32_1 = arith.constant 0 : i32
    return %c0_i32, %c0_i32_0 : i32, i32
  }
  func.func @transform_26(%arg0: i32) -> (i32, i32) {
    %c0_i32 = arith.constant 0 : i32
    %c0_i32_0 = arith.constant 0 : i32
    %c0_i32_1 = arith.constant 0 : i32
    return %c0_i32, %c0_i32_0 : i32, i32
  }
  func.func @transform_27(%arg0: i32) -> (i32, i32) {
    %c0_i32 = arith.constant 0 : i32
    %c0_i32_0 = arith.constant 0 : i32
    %c0_i32_1 = arith.constant 0 : i32
    return %c0_i32, %c0_i32_0 : i32, i32
  }
  func.func @transform_28(%arg0: i32) -> (i32, i32) {
    %c0_i32 = arith.constant 0 : i32
    %c0_i32_0 = arith.constant 0 : i32
    %c0_i32_1 = arith.constant 0 : i32
    return %c0_i32, %c0_i32_0 : i32, i32
  }
  func.func @transform_29(%arg0: i32) -> (i32, i32) {
    %c0_i32 = arith.constant 0 : i32
    %c0_i32_0 = arith.constant 0 : i32
    %c0_i32_1 = arith.constant 0 : i32
    return %c0_i32, %c0_i32_0 : i32, i32
  }
  func.func @transform_30(%arg0: i32) -> (i32, i32, i32) {
    %c0_i32 = arith.constant 0 : i32
    %c0_i32_0 = arith.constant 0 : i32
    %c0_i32_1 = arith.constant 0 : i32
    return %arg0, %c0_i32, %c0_i32_0 : i32, i32, i32
  }
}

</mosaic_0001>

<bundles_post_ra>
// kernel: informer_forward.5
= control target key start
LH: loop header
LB: loop body
LE: loop exit
PB: predicated region body
PF: predicated region fallthrough
CT: control target
= control target key end

     0   :  { %s3048_s0 = inlined_call_operand.vmem [shape: f32[2,8,32], index: 0, kind: input, shape index: {}]   ;;  %s3049_s1 = inlined_call_operand.vmem [shape: bf16[4,32,8], index: 1, kind: input, shape index: {}]   ;;  %s3050_s2 = inlined_call_operand.vmem [shape: bf16[4,32,8], index: 2, kind: input, shape index: {}]   ;;  %s3051_s3 = inlined_call_operand.vmem [shape: bf16[4,32,8], index: 3, kind: input, shape index: {}]   ;;  %s3052_s4 = inlined_call_operand.vmem [shape: f32[4,1,8], index: 4, kind: input, shape index: {}]   ;;  %s3053_s5 = inlined_call_operand.vmem [shape: f32[4,1,8], index: 5, kind: input, shape index: {}]   ;;  %s3054_s6 = inlined_call_operand.vmem [shape: f32[4,1,8], index: 6, kind: input, shape index: {}]   ;;  %s3055_s7 = inlined_call_operand.vmem [shape: bf16[32,32], index: 7, kind: input, shape index: {}]   ;;  %s3056_s8 = inlined_call_operand.vmem [shape: f32[1,32], index: 8, kind: input, shape index: {}]   ;;  %s3057_s9 = inlined_call_operand.vmem [shape: f32[1,32], index: 9, kind: input, shape index: {}]   ;;  %s3058_s10 = inlined_call_operand.vmem [shape: f32[1,32], index: 10, kind: input, shape index: {}]   ;;  %s3059_s11 = inlined_call_operand.vmem [shape: bf16[32,32], index: 11, kind: input, shape index: {}]   ;;  %s3060_s12 = inlined_call_operand.vmem [shape: f32[1,32], index: 12, kind: input, shape index: {}]   ;;  %s3061_s13 = inlined_call_operand.vmem [shape: bf16[32,32], index: 13, kind: input, shape index: {}]   ;;  %s3062_s14 = inlined_call_operand.vmem [shape: f32[1,32], index: 14, kind: input, shape index: {}]   ;;  %s3063_s15 = inlined_call_operand.vmem [shape: f32[1,32], index: 15, kind: input, shape index: {}]   ;;  %s3064_s16 = inlined_call_operand.vmem [shape: f32[1,32], index: 16, kind: input, shape index: {}]   ;;  %s3065_s17 = inlined_call_operand.vmem [shape: f32[1,32], index: 17, kind: input, shape index: {}]   ;;  %s3066_s18 = inlined_call_operand.vmem [shape: f32[1,32], index: 18, kind: input, shape index: {}]   ;;  %s3067_s19 = inlined_call_operand.vmem [shape: f32[2,8,32], index: 19, kind: output, shape index: {}]  }
   0x1   :  { %3071 = sst [smem:[#allocation2_spill]] %s3048_s0  ;;  %s2715_s0 = smov 0  }
   0x2   :  { %3072 = sst [smem:[#allocation3_spill]] %s3049_s1 }
   0x3   :  { %3073 = sst [smem:[#allocation4_spill]] %s3050_s2 }
   0x4   :  { %3074 = sst [smem:[#allocation5_spill]] %s3051_s3 }
   0x5 LB: > { %s2187_s30 = sadd.s32 4294967295, %s2608_s0   ;;  %p2191_p0 = scmp.ge.s32.totalorder %s2608_s0, 1  ;;  %s2608_s0 = sphi %s2715_s0, %s29_s0  }
   0x6   : > { %p536_p1 = scmp.lt.s32.totalorder %s2608_s0, 3 }
   0x8   : > { %p537_p2 = pnand %p2191_p0, %p536_p1 }
   0x9   : > { %s3075_s1 = sld [smem:[#allocation3_spill]] (!%p537_p2)  ;;  %p590_p3 = scmp.lt.s32.totalorder (!%p537_p2), %s2187_s30, 1 }
   0xa   : > { %540 = sbr.rel (%p537_p2) target bundleno = 2623 (0xa3f), region = 96  ;;  %s3076_s21 = sld [smem:[#allocation2_spill]] (!%p537_p2) }
   0xb   : > { %s3077_s20 = sld [smem:[#allocation4_spill]] (!%p537_p2)  ;;  %s2612_s23 = smov (!%p537_p2), 8  }
   0xc   : > { %s3078_s3 = sld [smem:[#allocation5_spill]] (!%p537_p2)  ;;  %s2613_s24 = smov (!%p537_p2), 16  }
   0xd   : > { %s2614_s25 = smov (!%p537_p2), 24  }
   0xf   : > { %v2548_v0 = vld [vmem:[%s3075_s1 + $0x8] sm:$0xff]   ;;  %v2610_v1 = vmov 0.0   ;;  %v2549_v2 = vld [vmem:[%s3075_s1 + $0x18] sm:$0xff]   ;;  %v2550_v3 = vld [vmem:[%s3075_s1] sm:$0xff]   ;;  %vm2611_vm0 = vmmov 0   ;;  %s3080_s30 = smov (!%p590_p3, %s2187_s30), 1 }
  0x10   : > { %2367 = vmatprep.subr.bf16.mxu0 %v2610_v1  ;;  %2375 = vmatprep.subr.bf16.mxu1 %v2610_v1  ;;  %v2551_v4 = vld [vmem:[%s3075_s1 + $0x10] sm:$0xff]   ;;  %s2192_s26 = sshll.u32 %s3080_s30, 3  ;;  %v2552_v5 = vld [vmem:[%s3075_s1 + $0x28] sm:$0xff]   ;;  %v2553_v6 = vld [vmem:[%s3075_s1 + $0x38] sm:$0xff]   ;;  %vm617_vm1 = vcmask 261120   ;;  %vm1390_vm2 = vcmask 64512  }
  0x11   : > { %2368 = vmatpush3.bf16.msra.mxu0 %v2548_v0  ;;  %2371 = vmatprep.mubr.msk.bf16.mxu0 %vm2611_vm0, %v2610_v1  ;;  %s593_s22 = scalar_lea.vmem %s3076_s21, %s2192_s26  ;;  %v2554_v9 = vld [vmem:[%s3075_s1 + $0x20] sm:$0xff]   ;;  %v2555_v10 = vld [vmem:[%s3075_s1 + $0x30] sm:$0xff]   ;;  %v2556_v11 = vld [vmem:[%s3077_s20 + $0x8] sm:$0xff]   ;;  %vm1634_vm3 = vcmask 1043456   ;;  %vm1829_vm4 = vcmask 130048   ;;  %vm1831_vm5 = vcmask 195584   ;;  %s597_s28 = scalar_lea.vmem %s3067_s19, %s2192_s26 }
  0x12   : > { %2376 = vmatpush3.bf16.msra.mxu1 %v2549_v2  ;;  %2369 = vmatprep.subr.bf16.mxu0 %v2610_v1  ;;  %v2758_v7 = vld [vmem:[%s593_s22] sm:$0xff]  ;;  %v2557_v12 = vld [vmem:[%s3077_s20 + $0x18] sm:$0xff]   ;;  %v2559_v14 = vld [vmem:[%s3077_s20 + $0x10] sm:$0xff]  }
  0x13   : > { %2377 = vmatprep.subr.bf16.mxu1 %v2610_v1  ;;  %2379 = vmatprep.mubr.msk.bf16.mxu1 %vm2611_vm0, %v2610_v1  ;;  %v2763_v8 = vpack.c.bf16 %v2758_v7, %v2758_v7  ;;  %v2558_v13 = vld [vmem:[%s3077_s20] sm:$0xff]   ;;  %v2560_v15 = vld [vmem:[%s3077_s20 + $0x28] sm:$0xff]   ;;  %v2561_v16 = vld [vmem:[%s3077_s20 + $0x38] sm:$0xff]  }
  0x14   : > { %v2562_v17 = vld [vmem:[%s3077_s20 + $0x20] sm:$0xff]   ;;  %v2563_v18 = vld [vmem:[%s3077_s20 + $0x30] sm:$0xff]   ;;  %v2564_v19 = vld [vmem:[%s3078_s3 + $0x8] sm:$0xff]  }
  0x15   : > { %2370 = vmatpush3.bf16.msra.mxu0 %v2550_v3  ;;  %v2565_v20 = vld [vmem:[%s3078_s3] sm:$0xff]   ;;  %v2566_v21 = vld [vmem:[%s3078_s3 + $0x18] sm:$0xff]   ;;  %v2567_v22 = vld [vmem:[%s3078_s3 + $0x10] sm:$0xff]  }
  0x16   : > { %2378 = vmatpush3.bf16.msra.mxu1 %v2551_v4  ;;  %2383 = vmatprep.subr.bf16.mxu0 %v2610_v1  ;;  %v2568_v23 = vld [vmem:[%s3078_s3 + $0x28] sm:$0xff]   ;;  %v2569_v24 = vld [vmem:[%s3078_s3 + $0x20] sm:$0xff]   ;;  %v2570_v25 = vld [vmem:[%s3078_s3 + $0x38] sm:$0xff]  }
  0x17   : > { %2391 = vmatprep.subr.bf16.mxu1 %v2610_v1  ;;  %v2571_v26 = vld [vmem:[%s3078_s3 + $0x30] sm:$0xff]   ;;  %v2246_v43 = vld [vmem:[%s3053_s5] ss:$0 sm:$0xff]  ;;  %v2247_v44 = vld [vmem:[%s3053_s5 + $0x1] ss:$0 sm:$0xff] }
  0x18   : > { %2372 = vmatmul.mubr.msk.bf16.vlgmr.msra.gmra.mxu0 %vm617_vm1, %v2763_v8  ;;  %v2218_v53 = vld [vmem:[%s3052_s4] ss:$0 sm:$0xff]  ;;  %v2219_v54 = vld [vmem:[%s3052_s4 + $0x1] ss:$0 sm:$0xff]  ;;  %v2248_v61 = vld [vmem:[%s3053_s5 + $0x2] ss:$0 sm:$0xff] }
  0x19   : > { %2380 = vmatmul.mubr.msk.bf16.vlgmr.msra.gmra.mxu1 %vm617_vm1, %v2763_v8  ;;  %2384 = vmatpush3.bf16.msra.mxu0 %v2552_v5  ;;  %v2249_v62 = vld [vmem:[%s3053_s5 + $0x3] ss:$0 sm:$0xff] }
  0x1a   : > { %2392 = vmatpush3.bf16.msra.mxu1 %v2553_v6  ;;  %2385 = vmatprep.subr.bf16.mxu0 %v2610_v1 }
  0x1b   : > { %2393 = vmatprep.subr.bf16.mxu1 %v2610_v1  ;;  %2387 = vmatprep.mubr.msk.bf16.mxu0 %vm2611_vm0, %v2610_v1 }
  0x1c   : > { %2395 = vmatprep.mubr.msk.bf16.mxu1 %vm2611_vm0, %v2610_v1 }
  0x1d   : > { %2386 = vmatpush3.bf16.msra.mxu0 %v2554_v9 }
  0x1e   : > { %2394 = vmatpush3.bf16.msra.mxu1 %v2555_v10  ;;  %2399 = vmatprep.subr.bf16.mxu0 %v2610_v1 }
  0x1f   : > { %2407 = vmatprep.subr.bf16.mxu1 %v2610_v1 }
  0x20   : > { %2388 = vmatmul.mubr.msk.bf16.vlgmr.msra.gmra.mxu0 %vm617_vm1, %v2763_v8 }
  0x21   : > { %2396 = vmatmul.mubr.msk.bf16.vlgmr.msra.gmra.mxu1 %vm617_vm1, %v2763_v8  ;;  %2400 = vmatpush3.bf16.msra.mxu0 %v2556_v11 }
  0x22   : > { %2408 = vmatpush3.bf16.msra.mxu1 %v2557_v12  ;;  %2401 = vmatprep.subr.bf16.mxu0 %v2610_v1 }
  0x23   : > { %2409 = vmatprep.subr.bf16.mxu1 %v2610_v1  ;;  %2403 = vmatprep.mubr.msk.bf16.mxu0 %vm2611_vm0, %v2610_v1 }
  0x24   : > { %2411 = vmatprep.mubr.msk.bf16.mxu1 %vm2611_vm0, %v2610_v1 }
  0x25   : > { %2402 = vmatpush3.bf16.msra.mxu0 %v2558_v13  ;;  %v2220_v13 = vld [vmem:[%s3052_s4 + $0x2] ss:$0 sm:$0xff] }
  0x26   : > { %2410 = vmatpush3.bf16.msra.mxu1 %v2559_v14  ;;  %2415 = vmatprep.subr.bf16.mxu0 %v2610_v1  ;;  %v2221_v14 = vld [vmem:[%s3052_s4 + $0x3] ss:$0 sm:$0xff] }
  0x27   : > { %2423 = vmatprep.subr.bf16.mxu1 %v2610_v1 }
  0x28   : > { %2404 = vmatmul.mubr.msk.bf16.vlgmr.msra.gmra.mxu0 %vm617_vm1, %v2763_v8 }
  0x29   : > { %2412 = vmatmul.mubr.msk.bf16.vlgmr.msra.gmra.mxu1 %vm617_vm1, %v2763_v8  ;;  %2416 = vmatpush3.bf16.msra.mxu0 %v2560_v15 }
  0x2a   : > { %2424 = vmatpush3.bf16.msra.mxu1 %v2561_v16  ;;  %2417 = vmatprep.subr.bf16.mxu0 %v2610_v1 }
  0x2b   : > { %2425 = vmatprep.subr.bf16.mxu1 %v2610_v1  ;;  %2419 = vmatprep.mubr.msk.bf16.mxu0 %vm2611_vm0, %v2610_v1 }
  0x2c   : > { %2427 = vmatprep.mubr.msk.bf16.mxu1 %vm2611_vm0, %v2610_v1 }
  0x2d   : > { %2418 = vmatpush3.bf16.msra.mxu0 %v2562_v17 }
  0x2e   : > { %2426 = vmatpush3.bf16.msra.mxu1 %v2563_v18  ;;  %2431 = vmatprep.subr.bf16.mxu0 %v2610_v1 }
  0x2f   : > { %2439 = vmatprep.subr.bf16.mxu1 %v2610_v1 }
  0x30   : > { %2420 = vmatmul.mubr.msk.bf16.vlgmr.msra.gmra.mxu0 %vm617_vm1, %v2763_v8 }
  0x31   : > { %2428 = vmatmul.mubr.msk.bf16.vlgmr.msra.gmra.mxu1 %vm617_vm1, %v2763_v8  ;;  %2435 = vmatprep.mubr.msk.bf16.mxu0 %vm2611_vm0, %v2610_v1 }
  0x32   : > { %2443 = vmatprep.mubr.msk.bf16.mxu1 %vm2611_vm0, %v2610_v1  ;;  %2432 = vmatpush3.bf16.msra.mxu0 %v2564_v19 }
  0x33   : > { %2433 = vmatprep.subr.bf16.mxu0 %v2610_v1  ;;  %2440 = vmatpush3.bf16.msra.mxu1 %v2566_v21 }
  0x34   : > { %2441 = vmatprep.subr.bf16.mxu1 %v2610_v1 }
  0x36   : > { %2434 = vmatpush3.bf16.msra.mxu0 %v2565_v20 }
  0x37   : > { %2447 = vmatprep.subr.bf16.mxu0 %v2610_v1  ;;  %2442 = vmatpush3.bf16.msra.mxu1 %v2567_v22 }
  0x38   : > { %2455 = vmatprep.subr.bf16.mxu1 %v2610_v1 }
  0x39   : > { %2436 = vmatmul.mubr.msk.bf16.vlgmr.msra.gmra.mxu0 %vm617_vm1, %v2763_v8 }
  0x3a   : > { %2448 = vmatpush3.bf16.msra.mxu0 %v2568_v23  ;;  %2451 = vmatprep.mubr.msk.bf16.mxu0 %vm2611_vm0, %v2610_v1 }
  0x3b   : > { %2449 = vmatprep.subr.bf16.mxu0 %v2610_v1  ;;  %2444 = vmatmul.mubr.msk.bf16.vlgmr.msra.gmra.mxu1 %vm617_vm1, %v2763_v8 }
  0x3c   : > { %2456 = vmatpush3.bf16.msra.mxu1 %v2570_v25  ;;  %2459 = vmatprep.mubr.msk.bf16.mxu1 %vm2611_vm0, %v2610_v1  ;;  %v2274_v25 = vld [vmem:[%s3054_s6] ss:$0 sm:$0xff] }
  0x3d   : > { %2457 = vmatprep.subr.bf16.mxu1 %v2610_v1 }
  0x3e   : > { %2450 = vmatpush3.bf16.msra.mxu0 %v2569_v24 }
  0x3f   : > { %2463 = vmatprep.subr.bf16.mxu0 %v2610_v1 }
  0x40   : > { %2458 = vmatpush3.bf16.msra.mxu1 %v2571_v26 }
  0x41   : > { %2452 = vmatmul.mubr.msk.bf16.vlgmr.msra.gmra.mxu0 %vm617_vm1, %v2763_v8  ;;  %2469 = vmatprep.subr.bf16.mxu1 %v2610_v1 }
  0x42   : > { %2465 = vmatprep.mubr.msk.bf16.mxu0 %vm2611_vm0, %v2610_v1 }
  0x43   : > { %2460 = vmatmul.mubr.msk.bf16.vlgmr.msra.gmra.mxu1 %vm617_vm1, %v2763_v8 }
  0x44   : > { %2471 = vmatprep.mubr.msk.bf16.mxu1 %vm2611_vm0, %v2610_v1 }
  0xd8   : > { %v655_v27 = vpop.f32.mrf.mxu0 }
  0xd9   : > { %v712_v28 = vpop.f32.mrf.mxu1  ;;  %v860_v63 = vadd.f32 %v2218_v53, %v655_v27 }
  0xda   : > { %v2373_v29 = vpop.f32.mrf.mxu0  ;;  %v861_v0 = vadd.f32 %v2219_v54, %v712_v28 }
  0xdb   : > { %v2381_v30 = vpop.f32.mrf.mxu1  ;;  %v1382_v9 = vpack.c.bf16 %v860_v63, %v860_v63  ;;  %v2275_v29 = vld [vmem:[%s3054_s6 + $0x1] ss:$0 sm:$0xff] }
  0xdc   : > { %v658_v31 = vpop.f32.mrf.mxu0  ;;  %v1383_v10 = vpack.c.bf16 %v861_v0, %v861_v0 }
  0xdd   : > { %v715_v32 = vpop.f32.mrf.mxu1 }
  0xde   : > { %v2374_v33 = vpop.f32.mrf.mxu0 }
  0xdf   : > { %v2382_v34 = vpop.f32.mrf.mxu1 }
  0xe0   : > { %v769_v35 = vpop.f32.mrf.mxu0 }
  0xe1   : > { %v826_v36 = vpop.f32.mrf.mxu1  ;;  %v862_v21 = vadd.f32 %v2220_v13, %v769_v35 }
  0xe2   : > { %v2389_v37 = vpop.f32.mrf.mxu0  ;;  %v863_v22 = vadd.f32 %v2221_v14, %v826_v36 }
  0xe3   : > { %v2397_v38 = vpop.f32.mrf.mxu1  ;;  %v1384_v23 = vpack.c.bf16 %v862_v21, %v862_v21  ;;  %v2276_v37 = vld [vmem:[%s3054_s6 + $0x2] ss:$0 sm:$0xff] }
  0xe4   : > { %v772_v39 = vpop.f32.mrf.mxu0  ;;  %v1385_v24 = vpack.c.bf16 %v863_v22, %v863_v22 }
  0xe5   : > { %v829_v40 = vpop.f32.mrf.mxu1 }
  0xe6   : > { %v2390_v41 = vpop.f32.mrf.mxu0 }
  0xe7   : > { %v2398_v42 = vpop.f32.mrf.mxu1 }
  0xe8   : > { %v914_v45 = vpop.f32.mrf.mxu0 }
  0xe9   : > { %v971_v46 = vpop.f32.mrf.mxu1  ;;  %v1119_v47 = vadd.f32 %v2246_v43, %v914_v45  ;;  %v2277_v45 = vld [vmem:[%s3054_s6 + $0x3] ss:$0 sm:$0xff] }
  0xea   : > { %v1120_v48 = vadd.f32 %v2247_v44, %v971_v46  ;;  %v2405_v49 = vpop.f32.mrf.mxu0 }
  0xeb   : > { %v2413_v50 = vpop.f32.mrf.mxu1  ;;  %v1386_v51 = vpack.c.bf16 %v1119_v47, %v1119_v47 }
  0xec   : > { %v1387_v52 = vpack.c.bf16 %v1120_v48, %v1120_v48  ;;  %v917_v55 = vpop.f32.mrf.mxu0 }
  0xed   : > { %v974_v56 = vpop.f32.mrf.mxu1  ;;  %v1395_v57 = vsel %vm1390_vm2, %v1386_v51, 0 }
  0xee   : > { %v1441_v58 = vsel %vm1390_vm2, %v1387_v52, 0  ;;  %v2406_v59 = vpop.f32.mrf.mxu0  ;;  %2464 = vmatpush3.bf16.xpose.msra.mxu0 %v1395_v57 }
  0xef   : > { %v2414_v60 = vpop.f32.mrf.mxu1  ;;  %2470 = vmatpush3.bf16.xpose.msra.mxu1 %v1441_v58  ;;  %2475 = vmatprep.subr.bf16.mxu0 %v2610_v1 }
  0xf0   : > { %2481 = vmatprep.subr.bf16.mxu1 %v2610_v1  ;;  %v1028_v2 = vpop.f32.mrf.mxu0 }
  0xf1   : > { %v1085_v3 = vpop.f32.mrf.mxu1  ;;  %v1121_v4 = vadd.f32 %v2248_v61, %v1028_v2 }
  0xf2   : > { %v1122_v5 = vadd.f32 %v2249_v62, %v1085_v3  ;;  %v2421_v6 = vpop.f32.mrf.mxu0 }
  0xf3   : > { %v2429_v8 = vpop.f32.mrf.mxu1  ;;  %v1388_v11 = vpack.c.bf16 %v1121_v4, %v1121_v4 }
  0xf4   : > { %v1389_v12 = vpack.c.bf16 %v1122_v5, %v1122_v5  ;;  %v1031_v15 = vpop.f32.mrf.mxu0 }
  0xf5   : > { %v1088_v16 = vpop.f32.mrf.mxu1  ;;  %v1487_v17 = vsel %vm1390_vm2, %v1388_v11, 0  ;;  %2466 = vmatmul.mubr.msk.bf16.vlgmr.msra.gmra.mxu0 %vm1390_vm2, %v1382_v9 }
  0xf6   : > { %v1533_v18 = vsel %vm1390_vm2, %v1389_v12, 0  ;;  %2472 = vmatmul.mubr.msk.bf16.vlgmr.msra.gmra.mxu1 %vm1390_vm2, %v1383_v10  ;;  %v2422_v19 = vpop.f32.mrf.mxu0  ;;  %2476 = vmatpush3.bf16.xpose.msra.mxu0 %v1487_v17 }
  0xf7   : > { %v2430_v20 = vpop.f32.mrf.mxu1  ;;  %2482 = vmatpush3.bf16.xpose.msra.mxu1 %v1533_v18  ;;  %2477 = vmatprep.mubr.msk.bf16.mxu0 %vm2611_vm0, %v2610_v1 }
  0xf8   : > { %2483 = vmatprep.mubr.msk.bf16.mxu1 %vm2611_vm0, %v2610_v1  ;;  %2487 = vmatprep.subr.bf16.mxu0 %v2610_v1 }
  0xf9   : > { %2493 = vmatprep.subr.bf16.mxu1 %v2610_v1  ;;  %v1173_v26 = vpop.f32.mrf.mxu0 }
  0xfa   : > { %v1378_v27 = vadd.f32 %v2274_v25, %v1173_v26 }
  0xfb   : > { %v2437_v28 = vpop.f32.mrf.mxu0  ;;  %v1230_v32 = vpop.f32.mrf.mxu1 }
  0xfc   : > { %v1627_v30 = vpack.c.bf16 %v1378_v27, %v1378_v27  ;;  %v1379_v34 = vadd.f32 %v2275_v29, %v1230_v32 }
  0xfd   : > { %2478 = vmatmul.mubr.msk.bf16.vlgmr.msra.gmra.mxu0 %vm1390_vm2, %v1384_v23  ;;  %v1176_v31 = vpop.f32.mrf.mxu0  ;;  %v2445_v36 = vpop.f32.mrf.mxu1 }
  0xfe   : > { %2484 = vmatmul.mubr.msk.bf16.vlgmr.msra.gmra.mxu1 %vm1390_vm2, %v1385_v24  ;;  %2489 = vmatprep.mubr.msk.bf16.mxu0 %vm2611_vm0, %v2610_v1  ;;  %v1636_v33 = vsel %vm1634_vm3, %v1627_v30, 0  ;;  %v1628_v38 = vpack.c.bf16 %v1379_v34, %v1379_v34 }
  0xff   : > { %2495 = vmatprep.mubr.msk.bf16.mxu1 %vm2611_vm0, %v2610_v1  ;;  %v2438_v35 = vpop.f32.mrf.mxu0  ;;  %2488 = vmatpush3.bf16.msra.mxu0 %v1636_v33  ;;  %v1233_v39 = vpop.f32.mrf.mxu1 }
 0x100   : > { %2499 = vmatprep.subr.bf16.mxu0 %v2610_v1  ;;  %v1682_v41 = vsel %vm1634_vm3, %v1628_v38, 0 }
 0x101   : > { %v1287_v40 = vpop.f32.mrf.mxu0  ;;  %v2446_v43 = vpop.f32.mrf.mxu1  ;;  %2494 = vmatpush3.bf16.msra.mxu1 %v1682_v41 }
 0x102   : > { %v1380_v42 = vadd.f32 %v2276_v37, %v1287_v40  ;;  %2505 = vmatprep.subr.bf16.mxu1 %v2610_v1 }
 0x103   : > { %v2453_v44 = vpop.f32.mrf.mxu0  ;;  %v1344_v48 = vpop.f32.mrf.mxu1 }
 0x104   : > { %v1629_v46 = vpack.c.bf16 %v1380_v42, %v1380_v42  ;;  %v1381_v50 = vadd.f32 %v2277_v45, %v1344_v48 }
 0x105   : > { %v1290_v47 = vpop.f32.mrf.mxu0  ;;  %v2461_v52 = vpop.f32.mrf.mxu1 }
 0x106   : > { %v2948_v49 = vsel %vm1634_vm3, %v1629_v46, 0  ;;  %v1630_v53 = vpack.c.bf16 %v1381_v50, %v1381_v50 }
 0x107   : > { %v2454_v51 = vpop.f32.mrf.mxu0  ;;  %v1347_v54 = vpop.f32.mrf.mxu1 }
 0x108   : > { %v2951_v55 = vsel %vm1634_vm3, %v1630_v53, 0 }
 0x109   : > { %v2462_v56 = vpop.f32.mrf.mxu1 }
 0x10a   : > { %v2573_v56 = vld [vmem:[%s3055_s7] sm:$0xff]  }
 0x1b5   : > { %v1431_v57 = vpop.f32.mrf.mxu0 }
 0x1b6   : > { %v1477_v58 = vpop.f32.mrf.mxu1  ;;  %v1575_v59 = vmul.f32 0.35355338, %v1431_v57 }
 0x1b7   : > { %v2467_v60 = vpop.f32.mrf.mxu0  ;;  %v1576_v62 = vmul.f32 0.35355338, %v1477_v58 }
 0x1b8   : > { %v2473_v61 = vpop.f32.mrf.mxu1  ;;  %v1579_v63 = vsel %vm1390_vm2, %v1575_v59, -inf }
 0x1b9   : > { %1580 = vmax.xlane.f32.xlu0 %v1579_v63  ;;  %v1434_v2 = vpop.f32.mrf.mxu0  ;;  %v1582_v5 = vsel %vm1390_vm2, %v1576_v62, -inf }
 0x1ba   : > { %v1480_v0 = vpop.f32.mrf.mxu1 }
 0x1bb   : > { %v2468_v3 = vpop.f32.mrf.mxu0 }
 0x1bc   : > { %v2474_v4 = vpop.f32.mrf.mxu1 }
 0x1bd   : > { %1583 = vmax.xlane.f32.xlu0 %v1582_v5  ;;  %v1523_v8 = vpop.f32.mrf.mxu0 }
 0x1be   : > { %v1569_v6 = vpop.f32.mrf.mxu1  ;;  %v1577_v9 = vmul.f32 0.35355338, %v1523_v8 }
 0x1bf   : > { %v2479_v10 = vpop.f32.mrf.mxu0  ;;  %v1578_v12 = vmul.f32 0.35355338, %v1569_v6 }
 0x1c0   : > { %v2485_v11 = vpop.f32.mrf.mxu1  ;;  %v1585_v13 = vsel %vm1390_vm2, %v1577_v9, -inf }
 0x1c1   : > { %1586 = vmax.xlane.f32.xlu1 %v1585_v13  ;;  %v1526_v15 = vpop.f32.mrf.mxu0  ;;  %v1588_v18 = vsel %vm1390_vm2, %v1578_v12, -inf }
 0x1c2   : > { %v1572_v14 = vpop.f32.mrf.mxu1 }
 0x1c3   : > { %v2480_v16 = vpop.f32.mrf.mxu0 }
 0x1c4   : > { %v2486_v17 = vpop.f32.mrf.mxu1 }
 0x1c5   : > { %1589 = vmax.xlane.f32.xlu1 %v1588_v18  ;;  %v2286_v18 = vld [vmem:[%s3056_s8] ss:$0 sm:$0xff] }
 0x242   : > { %v1581_v19 = vpop.xlane.xlu0 %1580 }
 0x243   : > { %v1591_v20 = vsub.f32 %v1575_v59, %v1581_v19 }
 0x245   : > { %v1595_v21 = vmul.f32 1.442695, %v1591_v20 }
 0x246   : > { %v1584_v22 = vpop.xlane.xlu0 %1583 }
 0x247   : > { %2578 = vpow2.f32 %v1595_v21  ;;  %v1592_v23 = vsub.f32 %v1576_v62, %v1584_v22 }
 0x249   : > { %v1597_v24 = vmul.f32 1.442695, %v1592_v23 }
 0x24a   : > { %v1587_v25 = vpop.xlane.xlu1 %1586 }
 0x24b   : > { %2580 = vpow2.f32 %v1597_v24  ;;  %v1593_v26 = vsub.f32 %v1577_v9, %v1587_v25 }
 0x24d   : > { %v1599_v27 = vmul.f32 1.442695, %v1593_v26 }
 0x24e   : > { %v1590_v28 = vpop.xlane.xlu1 %1589 }
 0x24f   : > { %2582 = vpow2.f32 %v1599_v27  ;;  %v1594_v29 = vsub.f32 %v1578_v12, %v1590_v28 }
 0x251   : > { %v1601_v30 = vmul.f32 1.442695, %v1594_v29 }
 0x253   : > { %2584 = vpow2.f32 %v1601_v30 }
 0x254   : > { %v2579_v31 = vpop.eup %2578 }
 0x255   : > { %v1603_v32 = vsel %vm1390_vm2, %v2579_v31, 0.0 }
 0x256   : > { %1604 = vadd.xlane.f32.xlu0 %v1603_v32 }
 0x258   : > { %v2581_v33 = vpop.eup %2580 }
 0x259   : > { %v1606_v34 = vsel %vm1390_vm2, %v2581_v33, 0.0 }
 0x25a   : > { %1607 = vadd.xlane.f32.xlu1 %v1606_v34 }
 0x25c   : > { %v2583_v35 = vpop.eup %2582 }
 0x25d   : > { %v1609_v36 = vsel %vm1390_vm2, %v2583_v35, 0.0 }
 0x25e   : > { %1610 = vadd.xlane.f32.xlu0 %v1609_v36  ;;  %v2290_v36 = vld [vmem:[%s3057_s9] ss:$0 sm:$0xff] }
 0x260   : > { %v2585_v37 = vpop.eup %2584 }
 0x261   : > { %v1612_v38 = vsel %vm1390_vm2, %v2585_v37, 0.0 }
 0x262   : > { %1613 = vadd.xlane.f32.xlu1 %v1612_v38  ;;  %v2291_v38 = vld [vmem:[%s3058_s10] ss:$0 sm:$0xff] }
 0x2df   : > { %v1605_v39 = vpop.xlane.xlu0 %1604 }
 0x2e0   : > { %2586 = vrcp.f32 %v1605_v39 }
 0x2e3   : > { %v1608_v40 = vpop.xlane.xlu1 %1607 }
 0x2e4   : > { %2588 = vrcp.f32 %v1608_v40 }
 0x2e7   : > { %v1611_v41 = vpop.xlane.xlu0 %1610 }
 0x2e8   : > { %2590 = vrcp.f32 %v1611_v41 }
 0x2eb   : > { %v1614_v42 = vpop.xlane.xlu1 %1613 }
 0x2ec   : > { %2592 = vrcp.f32 %v1614_v42  ;;  %v2576_v42 = vld [vmem:[%s3061_s13 + $0x8] sm:$0xff]  }
 0x2ed   : > { %v2587_v43 = vpop.eup %2586 }
 0x2ee   : > { %v1616_v44 = vmul.f32 %v2587_v43, %v2579_v31  ;;  %v2574_v31 = vld [vmem:[%s3059_s11 + $0x8] sm:$0xff]   ;;  %v2577_v43 = vld [vmem:[%s3061_s13] sm:$0xff]  }
 0x2f0   : > { %v1623_v45 = vpack.c.bf16 %v1616_v44, %v1616_v44  ;;  %v2292_v44 = vld [vmem:[%s3060_s12] ss:$0 sm:$0xff] }
 0x2f1   : > { %v2589_v46 = vpop.eup %2588 }
 0x2f2   : > { %2490 = vmatmul.mubr.msk.bf16.vlgmr.msra.gmra.mxu0 %vm1390_vm2, %v1623_v45  ;;  %v1618_v47 = vmul.f32 %v2589_v46, %v2581_v33 }
 0x2f3   : > { %2500 = vmatpush3.bf16.msra.mxu0 %v2948_v49  ;;  %2501 = vmatprep.mubr.msk.bf16.mxu0 %vm2611_vm0, %v2610_v1 }
 0x2f4   : > { %v1624_v48 = vpack.c.bf16 %v1618_v47, %v1618_v47  ;;  %2511 = vmatprep.subr.bf16.mxu0 %v2610_v1 }
 0x2f5   : > { %v2591_v50 = vpop.eup %2590 }
 0x2f6   : > { %2496 = vmatmul.mubr.msk.bf16.vlgmr.msra.gmra.mxu1 %vm1390_vm2, %v1624_v48  ;;  %v1620_v51 = vmul.f32 %v2591_v50, %v2583_v35 }
 0x2f7   : > { %2506 = vmatpush3.bf16.msra.mxu1 %v2951_v55  ;;  %2507 = vmatprep.mubr.msk.bf16.mxu1 %vm2611_vm0, %v2610_v1  ;;  %v2572_v55 = vld [vmem:[%s3055_s7 + $0x8] sm:$0xff]  }
 0x2f8   : > { %v1625_v52 = vpack.c.bf16 %v1620_v51, %v1620_v51  ;;  %2519 = vmatprep.subr.bf16.mxu1 %v2610_v1 }
 0x2f9   : > { %v2593_v53 = vpop.eup %2592 }
 0x2fa   : > { %2502 = vmatmul.mubr.msk.bf16.vlgmr.msra.gmra.mxu0 %vm1390_vm2, %v1625_v52  ;;  %v1622_v49 = vmul.f32 %v2593_v53, %v2585_v37 }
 0x2fb   : > { %2515 = vmatprep.mubr.msk.bf16.mxu0 %vm2611_vm0, %v2610_v1  ;;  %2512 = vmatpush3.bf16.msra.mxu0 %v2572_v55 }
 0x2fc   : > { %v1626_v54 = vpack.c.bf16 %v1622_v49, %v1622_v49  ;;  %2513 = vmatprep.subr.bf16.mxu0 %v2610_v1 }
 0x2fe   : > { %2508 = vmatmul.mubr.msk.bf16.vlgmr.msra.gmra.mxu1 %vm1390_vm2, %v1626_v54 }
 0x2ff   : > { %2523 = vmatprep.mubr.msk.bf16.mxu1 %vm2611_vm0, %v2610_v1  ;;  %2514 = vmatpush3.bf16.msra.mxu0 %v2573_v56 }
 0x300   : > { %2527 = vmatprep.subr.bf16.mxu0 %v2610_v1  ;;  %2520 = vmatpush3.bf16.msra.mxu1 %v2574_v31  ;;  %v2303_v31 = vld [vmem:[%s3066_s18] ss:$0 sm:$0xff] }
 0x301   : > { %2521 = vmatprep.subr.bf16.mxu1 %v2610_v1 }
 0x3b2   : > { %v1672_v57 = vpop.f32.mrf.mxu0 }
 0x3b4   : > { %v2491_v58 = vpop.f32.mrf.mxu0 }
 0x3b6   : > { %v1675_v59 = vpop.f32.mrf.mxu0  ;;  %v1718_v60 = vpop.f32.mrf.mxu1 }
 0x3b7   : > { %1817 = vrot.lane.b32.xlu0 %v1718_v60, %s2612_s23  ;;  %v2296_v59 = vld [vmem:[%s3062_s14] ss:$0 sm:$0xff] }
 0x3b8   : > { %v2492_v61 = vpop.f32.mrf.mxu0  ;;  %v2497_v62 = vpop.f32.mrf.mxu1 }
 0x3ba   : > { %v1721_v63 = vpop.f32.mrf.mxu1  ;;  %v1764_v0 = vpop.f32.mrf.mxu0 }
 0x3bb   : > { %1821 = vrot.lane.b32.xlu1 %v1764_v0, %s2613_s24 }
 0x3bc   : > { %v2498_v2 = vpop.f32.mrf.mxu1  ;;  %v2503_v3 = vpop.f32.mrf.mxu0 }
 0x3be   : > { %v1767_v4 = vpop.f32.mrf.mxu0  ;;  %v1810_v5 = vpop.f32.mrf.mxu1 }
 0x3bf   : > { %1825 = vrot.lane.b32.xlu1 %v1810_v5, %s2614_s25 }
 0x3c0   : > { %v2504_v6 = vpop.f32.mrf.mxu0  ;;  %v2509_v8 = vpop.f32.mrf.mxu1 }
 0x3c2   : > { %v1813_v9 = vpop.f32.mrf.mxu1 }
 0x3c4   : > { %v2510_v10 = vpop.f32.mrf.mxu1 }
 0x429   : > { %v1818_v11 = vpop.permute.xlu0 %1817 }
 0x42a   : > { %v1828_v13 = vsel %vm1390_vm2, %v1672_v57, %v1818_v11 }
 0x42d   : > { %v1822_v12 = vpop.permute.xlu1 %1821 }
 0x42e   : > { %v1830_v14 = vsel %vm1829_vm4, %v1828_v13, %v1822_v12 }
 0x431   : > { %v1826_v15 = vpop.permute.xlu1 %1825 }
 0x432   : > { %v1832_v16 = vsel %vm1831_vm5, %v1830_v14, %v1826_v15  ;;  %v2300_v14 = vld [vmem:[%s3063_s15] ss:$0 sm:$0xff] }
 0x433   : > { %v1833_v17 = vpack.c.bf16 %v1832_v16, %v1832_v16  ;;  %v2301_v16 = vld [vmem:[%s3064_s16] ss:$0 sm:$0xff] }
 0x435   : > { %2516 = vmatmul.mubr.msk.bf16.vlgmr.msra.gmra.mxu0 %vm617_vm1, %v1833_v17 }
 0x436   : > { %2531 = vmatprep.mubr.msk.bf16.mxu0 %vm2611_vm0, %v2610_v1  ;;  %2528 = vmatpush3.bf16.msra.mxu0 %v2576_v42 }
 0x437   : > { %2529 = vmatprep.subr.bf16.mxu0 %v2610_v1 }
 0x43a   : > { %2530 = vmatpush3.bf16.msra.mxu0 %v2577_v43 }
 0x4f5   : > { %v1894_v19 = vpop.f32.mrf.mxu0 }
 0x4f6   : > { %v1895_v20 = vadd.f32 %v2286_v18, %v1894_v19 }
 0x4f7   : > { %v2517_v21 = vpop.f32.mrf.mxu0 }
 0x4f8   : > { %v1900_v22 = vadd.f32 %v1895_v20, %v2758_v7  ;;  %v2575_v7 = vld [vmem:[%s3059_s11] sm:$0xff]  }
 0x4f9   : > { %v1897_v23 = vpop.f32.mrf.mxu0  ;;  %2522 = vmatpush3.bf16.msra.mxu1 %v2575_v7 }
 0x4fa   : > { %v1903_v24 = vsel %vm617_vm1, %v1900_v22, 0.0 }
 0x4fb   : > { %1904 = vadd.xlane.f32.xlu1 %v1903_v24  ;;  %v2518_v25 = vpop.f32.mrf.mxu0 }
 0x584   : > { %v1905_v26 = vpop.xlane.xlu1 %1904 }
 0x585   : > { %v1907_v27 = vmul.f32 0.03125, %v1905_v26 }
 0x587   : > { %v1908_v28 = vsub.f32 %v1900_v22, %v1907_v27 }
 0x589   : > { %v1909_v29 = vmul.f32 %v1908_v28, %v1908_v28 }
 0x58b   : > { %v1910_v30 = vsel %vm617_vm1, %v1909_v29, 0.0  ;;  %v2302_v29 = vld [vmem:[%s3065_s17] ss:$0 sm:$0xff] }
 0x58c   : > { %1911 = vadd.xlane.f32.xlu0 %v1910_v30 }
 0x615   : > { %v1912_v32 = vpop.xlane.xlu0 %1911 }
 0x616   : > { %v1913_v33 = vmul.f32 0.03125, %v1912_v32 }
 0x618   : > { %v1914_v34 = vadd.f32 1e-05, %v1913_v33 }
 0x61a   : > { %2594 = vrsqrt.f32 %v1914_v34 }
 0x627   : > { %v2595_v35 = vpop.eup %2594 }
 0x628   : > { %v1916_v37 = vmul.f32 %v2595_v35, %v1908_v28 }
 0x62a   : > { %v1923_v39 = vmul.f32 %v2290_v36, %v1916_v37 }
 0x62c   : > { %v1930_v40 = vadd.f32 %v2291_v38, %v1923_v39 }
 0x62e   : > { %v1931_v41 = vpack.c.bf16 %v1930_v40, %v1930_v40 }
 0x630   : > { %2524 = vmatmul.mubr.msk.bf16.vlgmr.msra.gmra.mxu1 %vm617_vm1, %v1931_v41 }
 0x6f0   : > { %v1992_v45 = vpop.f32.mrf.mxu1 }
 0x6f1   : > { %v1993_v46 = vadd.f32 %v2292_v44, %v1992_v45 }
 0x6f2   : > { %v2525_v47 = vpop.f32.mrf.mxu1 }
 0x6f3   : > { %v1999_v48 = vmul.f32 0.044715, %v1993_v46  ;;  %v1998_v56 = vmul.f32 0.5, %v1993_v46 }
 0x6f4   : > { %v1995_v50 = vpop.f32.mrf.mxu1 }
 0x6f5   : > { %v2000_v51 = vmul.f32 %v1999_v48, %v1993_v46 }
 0x6f6   : > { %v2526_v52 = vpop.f32.mrf.mxu1 }
 0x6f7   : > { %v2001_v53 = vmul.f32 %v2000_v51, %v1993_v46 }
 0x6f9   : > { %v2002_v49 = vadd.f32 %v2001_v53, %v1993_v46 }
 0x6fb   : > { %v2003_v54 = vmul.f32 0.7978846, %v2002_v49 }
 0x6fd   : > { %2596 = vtanh.f32 %v2003_v54 }
 0x70a   : > { %v2597_v55 = vpop.eup %2596 }
 0x70b   : > { %v2005_v57 = vadd.f32 1.0, %v2597_v55 }
 0x70d   : > { %v2006_v1 = vmul.f32 %v2005_v57, %v1998_v56 }
 0x70f   : > { %v2007_v58 = vpack.c.bf16 %v2006_v1, %v2006_v1 }
 0x711   : > { %2532 = vmatmul.mubr.msk.bf16.vlgmr.msra.gmra.mxu0 %vm617_vm1, %v2007_v58 }
 0x7d1   : > { %v2068_v60 = vpop.f32.mrf.mxu0 }
 0x7d2   : > { %v2069_v61 = vadd.f32 %v2296_v59, %v2068_v60 }
 0x7d3   : > { %v2533_v62 = vpop.f32.mrf.mxu0 }
 0x7d4   : > { %v2074_v63 = vadd.f32 %v2069_v61, %v1930_v40 }
 0x7d5   : > { %v2071_v0 = vpop.f32.mrf.mxu0 }
 0x7d6   : > { %v2077_v2 = vsel %vm617_vm1, %v2074_v63, 0.0 }
 0x7d7   : > { %2078 = vadd.xlane.f32.xlu0 %v2077_v2  ;;  %v2534_v3 = vpop.f32.mrf.mxu0 }
 0x860   : > { %v2079_v4 = vpop.xlane.xlu0 %2078 }
 0x861   : > { %v2080_v5 = vmul.f32 0.03125, %v2079_v4 }
 0x863   : > { %v2081_v6 = vsub.f32 %v2074_v63, %v2080_v5 }
 0x865   : > { %v2082_v8 = vmul.f32 %v2081_v6, %v2081_v6 }
 0x867   : > { %v2083_v9 = vsel %vm617_vm1, %v2082_v8, 0.0 }
 0x868   : > { %2084 = vadd.xlane.f32.xlu0 %v2083_v9 }
 0x8f1   : > { %v2085_v10 = vpop.xlane.xlu0 %2084 }
 0x8f2   : > { %v2086_v11 = vmul.f32 0.03125, %v2085_v10 }
 0x8f4   : > { %v2087_v12 = vadd.f32 1e-05, %v2086_v11 }
 0x8f6   : > { %2598 = vrsqrt.f32 %v2087_v12 }
 0x903   : > { %v2599_v13 = vpop.eup %2598 }
 0x904   : > { %v2089_v15 = vmul.f32 %v2599_v13, %v2081_v6 }
 0x906   : > { %v2096_v17 = vmul.f32 %v2300_v14, %v2089_v15 }
 0x908   : > { %v2103_v18 = vadd.f32 %v2301_v16, %v2096_v17 }
 0x90a   : > { %v2106_v19 = vsel %vm617_vm1, %v2103_v18, 0.0 }
 0x90b   : > { %2107 = vadd.xlane.f32.xlu1 %v2106_v19 }
 0x994   : > { %v2108_v20 = vpop.xlane.xlu1 %2107 }
 0x995   : > { %v2109_v21 = vmul.f32 0.03125, %v2108_v20 }
 0x997   : > { %v2110_v22 = vsub.f32 %v2103_v18, %v2109_v21 }
 0x999   : > { %v2111_v23 = vmul.f32 %v2110_v22, %v2110_v22 }
 0x99b   : > { %v2112_v24 = vsel %vm617_vm1, %v2111_v23, 0.0 }
 0x99c   : > { %2113 = vadd.xlane.f32.xlu0 %v2112_v24 }
 0xa25   : > { %v2114_v25 = vpop.xlane.xlu0 %2113 }
 0xa26   : > { %v2115_v26 = vmul.f32 0.03125, %v2114_v25 }
 0xa28   : > { %v2116_v27 = vadd.f32 1e-05, %v2115_v26 }
 0xa2a   : > { %2600 = vrsqrt.f32 %v2116_v27 }
 0xa37   : > { %v2601_v28 = vpop.eup %2600 }
 0xa38   : > { %v2118_v30 = vmul.f32 %v2601_v28, %v2110_v22 }
 0xa3a   : > { %v2125_v7 = vmul.f32 %v2302_v29, %v2118_v30 }
 0xa3c   : > { %v2132_v32 = vadd.f32 %v2303_v31, %v2125_v7 }
 0xa3e   : > { %2133 = vst.msk [vmem:[%s597_s28] sm:$0xff] %vm617_vm1, %v2132_v32 }
 0xa3f PF: > { %s29_s0 = sadd.s32 1, %s2608_s0  }
 0xa40   : > { %p26_p4 = scmp.ge.s32.totalorder %s29_s0, 4  }
 0xa42   :  { %28 = sbr.rel (!%p26_p4) target bundleno = 5 (0x5), region = 135 }

// kernel: informer_forward.4
= control target key start
LH: loop header
LB: loop body
LE: loop exit
PB: predicated region body
PF: predicated region fallthrough
CT: control target
= control target key end

     0   :  { %s3785_s0 = inlined_call_operand.vmem [shape: f32[2,16,4], index: 0, kind: input, shape index: {}]   ;;  %s3786_s1 = inlined_call_operand.vmem [shape: f32[4,32], index: 1, kind: input, shape index: {}]   ;;  %s3787_s2 = inlined_call_operand.vmem [shape: f32[1,32], index: 2, kind: input, shape index: {}]   ;;  %s3788_s3 = inlined_call_operand.vmem [shape: f32[16,32], index: 3, kind: input, shape index: {}]   ;;  %s3789_s4 = inlined_call_operand.vmem [shape: bf16[4,32,8], index: 4, kind: input, shape index: {}]   ;;  %s3790_s5 = inlined_call_operand.vmem [shape: bf16[4,32,8], index: 5, kind: input, shape index: {}]   ;;  %s3791_s6 = inlined_call_operand.vmem [shape: bf16[4,32,8], index: 6, kind: input, shape index: {}]   ;;  %s3792_s7 = inlined_call_operand.vmem [shape: f32[4,1,8], index: 7, kind: input, shape index: {}]   ;;  %s3793_s8 = inlined_call_operand.vmem [shape: f32[4,1,8], index: 8, kind: input, shape index: {}]   ;;  %s3794_s9 = inlined_call_operand.vmem [shape: f32[4,1,8], index: 9, kind: input, shape index: {}]   ;;  %s3795_s10 = inlined_call_operand.vmem [shape: bf16[32,32], index: 10, kind: input, shape index: {}]   ;;  %s3796_s11 = inlined_call_operand.vmem [shape: f32[1,32], index: 11, kind: input, shape index: {}]   ;;  %s3797_s12 = inlined_call_operand.vmem [shape: f32[1,32], index: 12, kind: input, shape index: {}]   ;;  %s3798_s13 = inlined_call_operand.vmem [shape: f32[1,32], index: 13, kind: input, shape index: {}]   ;;  %s3799_s14 = inlined_call_operand.vmem [shape: bf16[32,32], index: 14, kind: input, shape index: {}]   ;;  %s3800_s15 = inlined_call_operand.vmem [shape: f32[1,32], index: 15, kind: input, shape index: {}]   ;;  %s3801_s16 = inlined_call_operand.vmem [shape: bf16[32,32], index: 16, kind: input, shape index: {}]   ;;  %s3802_s17 = inlined_call_operand.vmem [shape: f32[1,32], index: 17, kind: input, shape index: {}]   ;;  %s3803_s18 = inlined_call_operand.vmem [shape: f32[1,32], index: 18, kind: input, shape index: {}]   ;;  %s3804_s19 = inlined_call_operand.vmem [shape: f32[1,32], index: 19, kind: input, shape index: {}]   ;;  %s3805_s20 = inlined_call_operand.vmem [shape: bf16[3,32,32], index: 20, kind: input, shape index: {}]   ;;  %s3806_s21 = inlined_call_operand.vmem [shape: f32[1,32], index: 21, kind: input, shape index: {}]   ;;  %s3807_s22 = inlined_call_operand.vmem [shape: f32[2,8,32], index: 22, kind: output, shape index: {}]  }
   0x1   :  { %3812 = sst [smem:[#allocation3_spill]] %s3785_s0 }
   0x2   :  { %3813 = sst [smem:[#allocation4_spill]] %s3786_s1 }
   0x3   :  { %3814 = sst [smem:[#allocation5_spill]] %s3787_s2 }
   0x4   :  { %3815 = sst [smem:[#allocation6_spill]] %s3788_s3  ;;  %s3367_s3 = smov 0  }
   0x5   :  { %3816 = sst [smem:[#allocation7_spill]] %s3789_s4 }
   0x6   :  { %3817 = sst [smem:[#allocation8_spill]] %s3790_s5 }
   0x7   :  { %3818 = sst [smem:[#allocation9_spill]] %s3791_s6 }
   0x8 LB: > { %s2714_s28 = sadd.s32 4294967295, %s3245_s3   ;;  %p2718_p0 = scmp.ge.s32.totalorder %s3245_s3, 1  ;;  %s3245_s3 = sphi %s3367_s3, %s32_s3  }
   0x9   : > { %p612_p1 = scmp.lt.s32.totalorder %s3245_s3, 3 }
   0xb   : > { %p613_p2 = pnand %p2718_p0, %p612_p1 }
   0xc   : > { %s3819_s4 = sld [smem:[#allocation4_spill]] (!%p613_p2)  ;;  %p673_p3 = scmp.lt.s32.totalorder (!%p613_p2), %s2714_s28, 1 }
   0xd   : > { %616 = sbr.rel (%p613_p2) target bundleno = 2791 (0xae7), region = 108  ;;  %s3820_s5 = sld [smem:[#allocation3_spill]] (!%p613_p2) }
   0xe   : > { %s3821_s26 = sld [smem:[#allocation7_spill]] (!%p613_p2)  ;;  %s3250_s23 = smov (!%p613_p2), 16  }
   0xf   : > { %s3823_s25 = sld [smem:[#allocation6_spill]] (!%p613_p2)  ;;  %s3251_s1 = smov (!%p613_p2), 24  }
  0x10   : > { %s3824_s27 = sld [smem:[#allocation8_spill]] (!%p613_p2) }
  0x12   : > { %v685_v0 = vld [vmem:[%s3819_s4] sm:$0xf]  ;;  %vm700_vm0 = vcmask 1043456   ;;  %s3827_s28 = smov (!%p673_p3, %s2714_s28), 1  ;;  %vm693_vm1 = vcmask 31744   ;;  %v3247_v5 = vmov 0.0  }
  0x13   : > { %2930 = vmatprep.subr.msk.mxu0 %vm700_vm0, %v685_v0  ;;  %s2856_s0 = sshll.u32 %s3827_s28, 4  ;;  %2935 = vmatprep.subr.bf16.mxu1 %v3247_v5  ;;  %vm3248_vm2 = vmmov 0   ;;  %vm800_vm3 = vcmask 261120   ;;  %v2778_v56 = vld [vmem:[%s3793_s8] ss:$0 sm:$0xff]  ;;  %vm1597_vm4 = vcmask 64512  }
  0x14   : > { %2931 = vmatpush3.msk.msra.mxu0 %vm700_vm0, %v685_v0  ;;  %s677_s24 = scalar_lea.vmem %s3820_s5, %s2856_s0  ;;  %v3155_v3 = vld [vmem:[%s3821_s26 + $0x8] sm:$0xff]   ;;  %v3156_v4 = vld [vmem:[%s3821_s26 + $0x18] sm:$0xff]   ;;  %v3157_v6 = vld [vmem:[%s3821_s26] sm:$0xff]   ;;  %2939 = vmatprep.mubr.msk.bf16.mxu1 %vm3248_vm2, %v3247_v5  ;;  %s3822_s5 = sld [smem:[#allocation5_spill]]  ;;  %vm1794_vm5 = vcmask 130048   ;;  %vm2095_vm6 = vcmask 195584  }
  0x15   : > { %v683_v1 = vld [vmem:[%s677_s24] sm:$0xff]  ;;  %v684_v2 = vld [vmem:[%s677_s24 + $0x8] sm:$0xff]  ;;  %2943 = vmatprep.subr.bf16.mxu0 %v3247_v5  ;;  %2936 = vmatpush3.bf16.msra.mxu1 %v3155_v3  ;;  %v3158_v7 = vld [vmem:[%s3821_s26 + $0x10] sm:$0xff]   ;;  %s3249_s0 = smov 8   ;;  %vm2417_vm7 = vcmask 1040384   ;;  %vm2423_vm8 = vcmask 1046528  }
  0x16   : > { %2932 = vmatprep.mubr.msk.f32.mxu0 %vm693_vm1, %v683_v1  ;;  %2937 = vmatprep.subr.bf16.mxu1 %v3247_v5  ;;  %v780_v11 = vld [vmem:[%s3823_s25 + $0x8] sm:$0xff]  ;;  %v779_v13 = vld [vmem:[%s3823_s25] sm:$0xff]  ;;  %v3160_v18 = vld [vmem:[%s3821_s26 + $0x38] sm:$0xff]   ;;  %s2721_s24 = sshll.u32 %s3827_s28, 3 }
  0x17   : > { %2933 = vmatmul.mubr.msk.f32.vlgmr.msra.gmra.mxu0 %vm693_vm1, %v684_v2  ;;  %v3159_v17 = vld [vmem:[%s3821_s26 + $0x28] sm:$0xff]   ;;  %v3161_v20 = vld [vmem:[%s3821_s26 + $0x20] sm:$0xff]   ;;  %v3162_v21 = vld [vmem:[%s3821_s26 + $0x30] sm:$0xff]   ;;  %s681_s29 = scalar_lea.vmem %s3807_s22, %s2721_s24 }
  0x18   : > { %2944 = vmatpush3.bf16.msra.mxu0 %v3156_v4  ;;  %2947 = vmatprep.mubr.msk.bf16.mxu0 %vm3248_vm2, %v3247_v5  ;;  %v3163_v22 = vld [vmem:[%s3824_s27 + $0x8] sm:$0xff]   ;;  %v3164_v23 = vld [vmem:[%s3824_s27 + $0x18] sm:$0xff]   ;;  %v3165_v24 = vld [vmem:[%s3824_s27] sm:$0xff]  }
  0x19   : > { %2945 = vmatprep.subr.bf16.mxu0 %v3247_v5  ;;  %2938 = vmatpush3.bf16.msra.mxu1 %v3157_v6  ;;  %v3166_v25 = vld [vmem:[%s3824_s27 + $0x10] sm:$0xff]   ;;  %v3167_v26 = vld [vmem:[%s3824_s27 + $0x28] sm:$0xff]   ;;  %v3168_v27 = vld [vmem:[%s3824_s27 + $0x38] sm:$0xff]  }
  0x1a   : > { %2951 = vmatprep.subr.bf16.mxu1 %v3247_v5  ;;  %v2722_v8 = vld [vmem:[%s3822_s5] ss:$0 sm:$0xff]  ;;  %v3170_v29 = vld [vmem:[%s3824_s27 + $0x30] sm:$0xff]   ;;  %s3825_s5 = sld [smem:[#allocation9_spill]]  ;;  %v2779_v57 = vld [vmem:[%s3793_s8 + $0x1] ss:$0 sm:$0xff] }
  0x1b   : > { %v3169_v28 = vld [vmem:[%s3824_s27 + $0x20] sm:$0xff]  }
  0x1c   : > { %2946 = vmatpush3.bf16.msra.mxu0 %v3158_v7 }
  0x1d   : > { %2959 = vmatprep.subr.bf16.mxu0 %v3247_v5 }
  0x20   : > { %v3171_v30 = vld [vmem:[%s3825_s5 + $0x8] sm:$0xff]   ;;  %v3172_v31 = vld [vmem:[%s3825_s5 + $0x18] sm:$0xff]   ;;  %v3173_v32 = vld [vmem:[%s3825_s5] sm:$0xff]  }
  0x21   : > { %v3174_v33 = vld [vmem:[%s3825_s5 + $0x10] sm:$0xff]   ;;  %v3175_v34 = vld [vmem:[%s3825_s5 + $0x28] sm:$0xff]   ;;  %v3176_v35 = vld [vmem:[%s3825_s5 + $0x38] sm:$0xff]  }
  0x22   : > { %v3177_v36 = vld [vmem:[%s3825_s5 + $0x20] sm:$0xff]   ;;  %v3178_v37 = vld [vmem:[%s3825_s5 + $0x30] sm:$0xff]  }
  0xd7   : > { %v2934_v9 = vpop.f32.mrf.mxu0 }
  0xd8   : > { %v776_v10 = vadd.f32 %v2934_v9, %v2722_v8  ;;  %v2750_v9 = vld [vmem:[%s3792_s7] ss:$0 sm:$0xff] }
  0xd9   : > { %v770_v12 = vpop.f32.mrf.mxu0 }
  0xda   : > { %v771_v14 = vadd.f32 %v2722_v8, %v770_v12  ;;  %v3415_v15 = vadd.f32 %v780_v11, %v776_v10  ;;  %v2751_v10 = vld [vmem:[%s3792_s7 + $0x1] ss:$0 sm:$0xff] }
  0xdc   : > { %v3417_v16 = vadd.f32 %v779_v13, %v771_v14  ;;  %v2780_v13 = vld [vmem:[%s3793_s8 + $0x2] ss:$0 sm:$0xff]  ;;  %v2781_v14 = vld [vmem:[%s3793_s8 + $0x3] ss:$0 sm:$0xff] }
  0xde   : > { %v3427_v19 = vpack.c.bf16 %v3415_v15, %v3417_v16 }
  0xe0   : > { %2940 = vmatmul.mubr.msk.bf16.vlgmr.msra.gmra.mxu1 %vm800_vm3, %v3427_v19  ;;  %2948 = vmatmul.mubr.msk.bf16.vlgmr.msra.gmra.mxu0 %vm800_vm3, %v3427_v19 }
  0xe1   : > { %2952 = vmatpush3.bf16.msra.mxu1 %v3159_v17  ;;  %2960 = vmatpush3.bf16.msra.mxu0 %v3160_v18 }
  0xe2   : > { %2953 = vmatprep.subr.bf16.mxu1 %v3247_v5  ;;  %2961 = vmatprep.subr.bf16.mxu0 %v3247_v5 }
  0xe3   : > { %2955 = vmatprep.mubr.msk.bf16.mxu1 %vm3248_vm2, %v3247_v5  ;;  %2963 = vmatprep.mubr.msk.bf16.mxu0 %vm3248_vm2, %v3247_v5 }
  0xe5   : > { %2954 = vmatpush3.bf16.msra.mxu1 %v3161_v20  ;;  %2962 = vmatpush3.bf16.msra.mxu0 %v3162_v21 }
  0xe6   : > { %2967 = vmatprep.subr.bf16.mxu1 %v3247_v5  ;;  %2975 = vmatprep.subr.bf16.mxu0 %v3247_v5 }
  0xe8   : > { %2956 = vmatmul.mubr.msk.bf16.vlgmr.msra.gmra.mxu1 %vm800_vm3, %v3427_v19  ;;  %2964 = vmatmul.mubr.msk.bf16.vlgmr.msra.gmra.mxu0 %vm800_vm3, %v3427_v19 }
  0xe9   : > { %2968 = vmatpush3.bf16.msra.mxu1 %v3163_v22  ;;  %2976 = vmatpush3.bf16.msra.mxu0 %v3164_v23 }
  0xea   : > { %2969 = vmatprep.subr.bf16.mxu1 %v3247_v5  ;;  %2977 = vmatprep.subr.bf16.mxu0 %v3247_v5 }
  0xeb   : > { %2971 = vmatprep.mubr.msk.bf16.mxu1 %vm3248_vm2, %v3247_v5  ;;  %2979 = vmatprep.mubr.msk.bf16.mxu0 %vm3248_vm2, %v3247_v5 }
  0xed   : > { %2970 = vmatpush3.bf16.msra.mxu1 %v3165_v24  ;;  %2978 = vmatpush3.bf16.msra.mxu0 %v3166_v25 }
  0xee   : > { %2983 = vmatprep.subr.bf16.mxu1 %v3247_v5  ;;  %2991 = vmatprep.subr.bf16.mxu0 %v3247_v5 }
  0xf0   : > { %2972 = vmatmul.mubr.msk.bf16.vlgmr.msra.gmra.mxu1 %vm800_vm3, %v3427_v19  ;;  %2980 = vmatmul.mubr.msk.bf16.vlgmr.msra.gmra.mxu0 %vm800_vm3, %v3427_v19 }
  0xf1   : > { %2984 = vmatpush3.bf16.msra.mxu1 %v3167_v26  ;;  %2992 = vmatpush3.bf16.msra.mxu0 %v3168_v27 }
  0xf2   : > { %2985 = vmatprep.subr.bf16.mxu1 %v3247_v5  ;;  %2993 = vmatprep.subr.bf16.mxu0 %v3247_v5 }
  0xf3   : > { %2987 = vmatprep.mubr.msk.bf16.mxu1 %vm3248_vm2, %v3247_v5  ;;  %2995 = vmatprep.mubr.msk.bf16.mxu0 %vm3248_vm2, %v3247_v5 }
  0xf5   : > { %2986 = vmatpush3.bf16.msra.mxu1 %v3169_v28  ;;  %2994 = vmatpush3.bf16.msra.mxu0 %v3170_v29 }
  0xf6   : > { %2999 = vmatprep.subr.bf16.mxu1 %v3247_v5  ;;  %3007 = vmatprep.subr.bf16.mxu0 %v3247_v5 }
  0xf8   : > { %2988 = vmatmul.mubr.msk.bf16.vlgmr.msra.gmra.mxu1 %vm800_vm3, %v3427_v19  ;;  %2996 = vmatmul.mubr.msk.bf16.vlgmr.msra.gmra.mxu0 %vm800_vm3, %v3427_v19 }
  0xf9   : > { %3000 = vmatpush3.bf16.msra.mxu1 %v3171_v30  ;;  %3008 = vmatpush3.bf16.msra.mxu0 %v3172_v31 }
  0xfa   : > { %3001 = vmatprep.subr.bf16.mxu1 %v3247_v5  ;;  %3009 = vmatprep.subr.bf16.mxu0 %v3247_v5 }
  0xfb   : > { %3003 = vmatprep.mubr.msk.bf16.mxu1 %vm3248_vm2, %v3247_v5  ;;  %3011 = vmatprep.mubr.msk.bf16.mxu0 %vm3248_vm2, %v3247_v5 }
  0xfd   : > { %3002 = vmatpush3.bf16.msra.mxu1 %v3173_v32  ;;  %3010 = vmatpush3.bf16.msra.mxu0 %v3174_v33 }
  0xfe   : > { %3015 = vmatprep.subr.bf16.mxu1 %v3247_v5  ;;  %3023 = vmatprep.subr.bf16.mxu0 %v3247_v5 }
 0x100   : > { %3004 = vmatmul.mubr.msk.bf16.vlgmr.msra.gmra.mxu1 %vm800_vm3, %v3427_v19  ;;  %3012 = vmatmul.mubr.msk.bf16.vlgmr.msra.gmra.mxu0 %vm800_vm3, %v3427_v19 }
 0x101   : > { %3016 = vmatpush3.bf16.msra.mxu1 %v3175_v34  ;;  %3024 = vmatpush3.bf16.msra.mxu0 %v3176_v35 }
 0x102   : > { %3017 = vmatprep.subr.bf16.mxu1 %v3247_v5  ;;  %3025 = vmatprep.subr.bf16.mxu0 %v3247_v5 }
 0x103   : > { %3019 = vmatprep.mubr.msk.bf16.mxu1 %vm3248_vm2, %v3247_v5  ;;  %3027 = vmatprep.mubr.msk.bf16.mxu0 %vm3248_vm2, %v3247_v5 }
 0x105   : > { %3018 = vmatpush3.bf16.msra.mxu1 %v3177_v36  ;;  %3026 = vmatpush3.bf16.msra.mxu0 %v3178_v37  ;;  %v2752_v37 = vld [vmem:[%s3792_s7 + $0x2] ss:$0 sm:$0xff] }
 0x106   : > { %3031 = vmatprep.subr.bf16.mxu1 %v3247_v5  ;;  %3037 = vmatprep.subr.bf16.mxu0 %v3247_v5 }
 0x108   : > { %3020 = vmatmul.mubr.msk.bf16.vlgmr.msra.gmra.mxu1 %vm800_vm3, %v3427_v19  ;;  %3028 = vmatmul.mubr.msk.bf16.vlgmr.msra.gmra.mxu0 %vm800_vm3, %v3427_v19 }
 0x109   : > { %3033 = vmatprep.mubr.msk.bf16.mxu1 %vm3248_vm2, %v3247_v5  ;;  %3039 = vmatprep.mubr.msk.bf16.mxu0 %vm3248_vm2, %v3247_v5 }
 0x1a0   : > { %v838_v38 = vpop.f32.mrf.mxu1  ;;  %v896_v39 = vpop.f32.mrf.mxu0 }
 0x1a1   : > { %v1047_v21 = vadd.f32 %v2750_v9, %v838_v38  ;;  %v1049_v22 = vadd.f32 %v2751_v10, %v896_v39  ;;  %v2753_v38 = vld [vmem:[%s3792_s7 + $0x3] ss:$0 sm:$0xff] }
 0x1a2   : > { %v2941_v40 = vpop.f32.mrf.mxu1  ;;  %v2949_v41 = vpop.f32.mrf.mxu0 }
 0x1a3   : > { %v2806_v41 = vld [vmem:[%s3794_s9] ss:$0 sm:$0xff] }
 0x1a4   : > { %v841_v42 = vpop.f32.mrf.mxu1  ;;  %v899_v43 = vpop.f32.mrf.mxu0 }
 0x1a5   : > { %v1048_v19 = vadd.f32 %v2750_v9, %v841_v42  ;;  %v1050_v20 = vadd.f32 %v2751_v10, %v899_v43  ;;  %v2807_v42 = vld [vmem:[%s3794_s9 + $0x1] ss:$0 sm:$0xff] }
 0x1a6   : > { %v2942_v44 = vpop.f32.mrf.mxu1  ;;  %v2950_v45 = vpop.f32.mrf.mxu0 }
 0x1a7   : > { %v1589_v31 = vpack.c.bf16 %v1048_v19, %v1047_v21  ;;  %v1590_v32 = vpack.c.bf16 %v1050_v20, %v1049_v22 }
 0x1a8   : > { %v3551_v46 = vpop.f32.mrf.mxu1  ;;  %v3553_v47 = vpop.f32.mrf.mxu0 }
 0x1aa   : > { %v2957_v48 = vpop.f32.mrf.mxu1  ;;  %v2965_v49 = vpop.f32.mrf.mxu0 }
 0x1ab   : > { %v1051_v49 = vadd.f32 %v2752_v37, %v3551_v46 }
 0x1ac   : > { %v3555_v50 = vpop.f32.mrf.mxu1  ;;  %v3557_v51 = vpop.f32.mrf.mxu0 }
 0x1ad   : > { %v1052_v45 = vadd.f32 %v2752_v37, %v3555_v50  ;;  %v1054_v48 = vadd.f32 %v2753_v38, %v3557_v51 }
 0x1ae   : > { %v2958_v52 = vpop.f32.mrf.mxu1  ;;  %v2966_v53 = vpop.f32.mrf.mxu0 }
 0x1af   : > { %v1053_v52 = vadd.f32 %v2753_v38, %v3553_v47  ;;  %v2808_v47 = vld [vmem:[%s3794_s9 + $0x2] ss:$0 sm:$0xff] }
 0x1b0   : > { %v1105_v54 = vpop.f32.mrf.mxu1  ;;  %v1163_v55 = vpop.f32.mrf.mxu0 }
 0x1b1   : > { %v1314_v62 = vadd.f32 %v2778_v56, %v1105_v54  ;;  %v1316_v63 = vadd.f32 %v2779_v57, %v1163_v55 }
 0x1b2   : > { %v2973_v58 = vpop.f32.mrf.mxu1  ;;  %v2981_v59 = vpop.f32.mrf.mxu0 }
 0x1b3   : > { %v1591_v59 = vpack.c.bf16 %v1052_v45, %v1051_v49 }
 0x1b4   : > { %v1108_v60 = vpop.f32.mrf.mxu1  ;;  %v1166_v61 = vpop.f32.mrf.mxu0 }
 0x1b5   : > { %v1315_v0 = vadd.f32 %v2778_v56, %v1108_v60  ;;  %v1317_v1 = vadd.f32 %v2779_v57, %v1166_v61  ;;  %v1592_v60 = vpack.c.bf16 %v1054_v48, %v1053_v52 }
 0x1b6   : > { %v2974_v2 = vpop.f32.mrf.mxu1  ;;  %v2982_v3 = vpop.f32.mrf.mxu0 }
 0x1b7   : > { %v1593_v4 = vpack.c.bf16 %v1315_v0, %v1314_v62  ;;  %v1594_v6 = vpack.c.bf16 %v1317_v1, %v1316_v63  ;;  %v2809_v0 = vld [vmem:[%s3794_s9 + $0x3] ss:$0 sm:$0xff] }
 0x1b8   : > { %v1221_v7 = vpop.f32.mrf.mxu1  ;;  %v1279_v8 = vpop.f32.mrf.mxu0 }
 0x1b9   : > { %v1602_v11 = vsel %vm1597_vm4, %v1593_v4, 0  ;;  %v1649_v12 = vsel %vm1597_vm4, %v1594_v6, 0  ;;  %v1318_v25 = vadd.f32 %v2780_v13, %v1221_v7  ;;  %v1320_v26 = vadd.f32 %v2781_v14, %v1279_v8 }
 0x1ba   : > { %v2989_v17 = vpop.f32.mrf.mxu1  ;;  %v2997_v18 = vpop.f32.mrf.mxu0  ;;  %3032 = vmatpush3.bf16.xpose.msra.mxu1 %v1602_v11  ;;  %3038 = vmatpush3.bf16.xpose.msra.mxu0 %v1649_v12 }
 0x1bb   : > { %3043 = vmatprep.subr.bf16.mxu1 %v3247_v5  ;;  %3049 = vmatprep.subr.bf16.mxu0 %v3247_v5 }
 0x1bc   : > { %v1224_v23 = vpop.f32.mrf.mxu1  ;;  %v1282_v24 = vpop.f32.mrf.mxu0 }
 0x1bd   : > { %v1319_v27 = vadd.f32 %v2780_v13, %v1224_v23  ;;  %v1321_v28 = vadd.f32 %v2781_v14, %v1282_v24 }
 0x1be   : > { %v2990_v29 = vpop.f32.mrf.mxu1  ;;  %v2998_v30 = vpop.f32.mrf.mxu0 }
 0x1bf   : > { %v1595_v33 = vpack.c.bf16 %v1319_v27, %v1318_v25  ;;  %v1596_v34 = vpack.c.bf16 %v1321_v28, %v1320_v26 }
 0x1c0   : > { %v1372_v35 = vpop.f32.mrf.mxu1  ;;  %v1430_v36 = vpop.f32.mrf.mxu0 }
 0x1c1   : > { %3034 = vmatmul.mubr.msk.bf16.vlgmr.msra.gmra.mxu1 %vm1597_vm4, %v1589_v31  ;;  %3040 = vmatmul.mubr.msk.bf16.vlgmr.msra.gmra.mxu0 %vm1597_vm4, %v1590_v32  ;;  %v1696_v39 = vsel %vm1597_vm4, %v1595_v33, 0  ;;  %v1743_v40 = vsel %vm1597_vm4, %v1596_v34, 0  ;;  %v1581_v55 = vadd.f32 %v2806_v41, %v1372_v35  ;;  %v1583_v50 = vadd.f32 %v2807_v42, %v1430_v36 }
 0x1c2   : > { %v3005_v43 = vpop.f32.mrf.mxu1  ;;  %v3013_v44 = vpop.f32.mrf.mxu0  ;;  %3044 = vmatpush3.bf16.xpose.msra.mxu1 %v1696_v39  ;;  %3050 = vmatpush3.bf16.xpose.msra.mxu0 %v1743_v40 }
 0x1c3   : > { %3045 = vmatprep.mubr.msk.bf16.mxu1 %vm3248_vm2, %v3247_v5  ;;  %3051 = vmatprep.mubr.msk.bf16.mxu0 %vm3248_vm2, %v3247_v5 }
 0x1c4   : > { %v1375_v53 = vpop.f32.mrf.mxu1  ;;  %v1433_v54 = vpop.f32.mrf.mxu0  ;;  %3055 = vmatprep.subr.bf16.mxu1 %v3247_v5  ;;  %3061 = vmatprep.subr.bf16.mxu0 %v3247_v5 }
 0x1c5   : > { %v1582_v56 = vadd.f32 %v2806_v41, %v1375_v53  ;;  %v1584_v51 = vadd.f32 %v2807_v42, %v1433_v54 }
 0x1c6   : > { %v3006_v57 = vpop.f32.mrf.mxu1  ;;  %v3014_v58 = vpop.f32.mrf.mxu0 }
 0x1c7   : > { %v1887_v61 = vpack.c.bf16 %v1582_v56, %v1581_v55  ;;  %v1888_v62 = vpack.c.bf16 %v1584_v51, %v1583_v50 }
 0x1c8   : > { %v1488_v63 = vpop.f32.mrf.mxu1  ;;  %v1546_v46 = vpop.f32.mrf.mxu0 }
 0x1c9   : > { %3046 = vmatmul.mubr.msk.bf16.vlgmr.msra.gmra.mxu1 %vm1597_vm4, %v1591_v59  ;;  %3052 = vmatmul.mubr.msk.bf16.vlgmr.msra.gmra.mxu0 %vm1597_vm4, %v1592_v60  ;;  %v3621_v6 = vadd.f32 %v2808_v47, %v1488_v63  ;;  %v3623_v7 = vadd.f32 %v2809_v0, %v1546_v46 }
 0x1ca   : > { %v3021_v1 = vpop.f32.mrf.mxu1  ;;  %v3029_v2 = vpop.f32.mrf.mxu0  ;;  %3056 = vmatpush3.bf16.msra.mxu1 %v1887_v61  ;;  %3062 = vmatpush3.bf16.msra.mxu0 %v1888_v62 }
 0x1cb   : > { %3057 = vmatprep.mubr.msk.bf16.mxu1 %vm3248_vm2, %v3247_v5  ;;  %3067 = vmatprep.subr.bf16.mxu1 %v3247_v5 }
 0x1cc   : > { %v1491_v3 = vpop.f32.mrf.mxu1  ;;  %v1549_v4 = vpop.f32.mrf.mxu0  ;;  %3063 = vmatprep.mubr.msk.bf16.mxu0 %vm3248_vm2, %v3247_v5  ;;  %3073 = vmatprep.subr.bf16.mxu0 %v3247_v5 }
 0x1cd   : > { %v3625_v8 = vadd.f32 %v2808_v47, %v1491_v3  ;;  %v3627_v9 = vadd.f32 %v2809_v0, %v1549_v4 }
 0x1ce   : > { %v3022_v10 = vpop.f32.mrf.mxu1  ;;  %v3030_v11 = vpop.f32.mrf.mxu0 }
 0x1cf   : > { %v1889_v12 = vpack.c.bf16 %v3625_v8, %v3621_v6  ;;  %v1890_v13 = vpack.c.bf16 %v3627_v9, %v3623_v7 }
 0x281   : > { %v1638_v14 = vpop.f32.mrf.mxu1  ;;  %v1685_v17 = vpop.f32.mrf.mxu0 }
 0x282   : > { %v1786_v18 = vmul.f32 0.35355338, %v1638_v14  ;;  %v1788_v19 = vmul.f32 0.35355338, %v1685_v17 }
 0x283   : > { %v3035_v20 = vpop.f32.mrf.mxu1  ;;  %v3041_v21 = vpop.f32.mrf.mxu0 }
 0x284   : > { %v1801_v22 = vsel %vm1794_vm5, %v1788_v19, -inf  ;;  %v1795_v23 = vsel %vm1794_vm5, %v1786_v18, -inf }
 0x285   : > { %1802 = vmax.xlane.f32.xlu1 %v1801_v22  ;;  %v1688_v24 = vpop.f32.mrf.mxu0  ;;  %1796 = vmax.xlane.f32.xlu0 %v1795_v23  ;;  %v1641_v25 = vpop.f32.mrf.mxu1 }
 0x286   : > { %v1789_v26 = vmul.f32 0.35355338, %v1688_v24  ;;  %v1787_v27 = vmul.f32 0.35355338, %v1641_v25 }
 0x287   : > { %v3036_v28 = vpop.f32.mrf.mxu1  ;;  %v3042_v29 = vpop.f32.mrf.mxu0 }
 0x288   : > { %v1804_v30 = vsel %vm1794_vm5, %v1789_v26, -inf  ;;  %v1798_v31 = vsel %vm1794_vm5, %v1787_v27, -inf }
 0x289   : > { %1805 = vmax.xlane.f32.xlu1 %v1804_v30  ;;  %v1779_v32 = vpop.f32.mrf.mxu0  ;;  %1799 = vmax.xlane.f32.xlu0 %v1798_v31  ;;  %v1732_v33 = vpop.f32.mrf.mxu1 }
 0x28a   : > { %v1790_v34 = vmul.f32 0.35355338, %v1732_v33  ;;  %v1792_v37 = vmul.f32 0.35355338, %v1779_v32 }
 0x28b   : > { %v3047_v35 = vpop.f32.mrf.mxu1  ;;  %v3053_v36 = vpop.f32.mrf.mxu0 }
 0x28c   : > { %v1807_v38 = vsel %vm1794_vm5, %v1790_v34, -inf  ;;  %v1813_v45 = vsel %vm1794_vm5, %v1792_v37, -inf }
 0x28d   : > { %v1782_v39 = vpop.f32.mrf.mxu0  ;;  %1808 = vmax.xlane.f32.xlu0 %v1807_v38  ;;  %v1735_v40 = vpop.f32.mrf.mxu1 }
 0x28e   : > { %v1791_v41 = vmul.f32 0.35355338, %v1735_v40  ;;  %v1793_v44 = vmul.f32 0.35355338, %v1782_v39 }
 0x28f   : > { %v3048_v42 = vpop.f32.mrf.mxu1  ;;  %v3054_v43 = vpop.f32.mrf.mxu0 }
 0x290   : > { %v1810_v48 = vsel %vm1794_vm5, %v1791_v41, -inf  ;;  %v1816_v49 = vsel %vm1794_vm5, %v1793_v44, -inf }
 0x291   : > { %1814 = vmax.xlane.f32.xlu0 %v1813_v45  ;;  %1811 = vmax.xlane.f32.xlu1 %v1810_v48 }
 0x295   : > { %1817 = vmax.xlane.f32.xlu1 %v1816_v49 }
 0x30e   : > { %v1803_v52 = vpop.xlane.xlu1 %1802  ;;  %v1797_v53 = vpop.xlane.xlu0 %1796 }
 0x30f   : > { %v1821_v54 = vsub.f32 %v1788_v19, %v1803_v52  ;;  %v1819_v55 = vsub.f32 %v1786_v18, %v1797_v53 }
 0x311   : > { %v1827_v50 = vmul.f32 1.442695, %v1819_v55  ;;  %v1831_v56 = vmul.f32 1.442695, %v1821_v54 }
 0x312   : > { %v1806_v51 = vpop.xlane.xlu1 %1805  ;;  %v1800_v57 = vpop.xlane.xlu0 %1799 }
 0x313   : > { %v1822_v58 = vsub.f32 %v1789_v26, %v1806_v51  ;;  %v1820_v59 = vsub.f32 %v1787_v27, %v1800_v57  ;;  %3191 = vpow2.f32 %v1827_v50 }
 0x314   : > { %3193 = vpow2.f32 %v1831_v56 }
 0x315   : > { %v1829_v60 = vmul.f32 1.442695, %v1820_v59  ;;  %v1833_v61 = vmul.f32 1.442695, %v1822_v58 }
 0x316   : > { %v1809_v62 = vpop.xlane.xlu0 %1808 }
 0x317   : > { %v1823_v63 = vsub.f32 %v1790_v34, %v1809_v62  ;;  %3195 = vpow2.f32 %v1829_v60 }
 0x318   : > { %3197 = vpow2.f32 %v1833_v61 }
 0x319   : > { %v1835_v46 = vmul.f32 1.442695, %v1823_v63 }
 0x31a   : > { %v1815_v47 = vpop.xlane.xlu0 %1814  ;;  %v1812_v0 = vpop.xlane.xlu1 %1811 }
 0x31b   : > { %3199 = vpow2.f32 %v1835_v46  ;;  %v1825_v1 = vsub.f32 %v1792_v37, %v1815_v47  ;;  %v1824_v2 = vsub.f32 %v1791_v41, %v1812_v0  ;;  %v3180_v46 = vld [vmem:[%s3795_s10] sm:$0xff]  }
 0x31d   : > { %v1839_v3 = vmul.f32 1.442695, %v1825_v1  ;;  %v1837_v4 = vmul.f32 1.442695, %v1824_v2 }
 0x31e   : > { %v1818_v10 = vpop.xlane.xlu1 %1817 }
 0x31f   : > { %3201 = vpow2.f32 %v1839_v3  ;;  %v1826_v11 = vsub.f32 %v1793_v44, %v1818_v10 }
 0x320   : > { %3203 = vpow2.f32 %v1837_v4  ;;  %v3192_v14 = vpop.eup %3191 }
 0x321   : > { %v1841_v17 = vmul.f32 1.442695, %v1826_v11  ;;  %v1843_v18 = vsel %vm1794_vm5, %v3192_v14, 0.0  ;;  %v3194_v19 = vpop.eup %3193 }
 0x322   : > { %1844 = vadd.xlane.f32.xlu0 %v1843_v18  ;;  %v1849_v21 = vsel %vm1794_vm5, %v3194_v19, 0.0 }
 0x323   : > { %3205 = vpow2.f32 %v1841_v17 }
 0x324   : > { %v3196_v20 = vpop.eup %3195 }
 0x325   : > { %v1846_v22 = vsel %vm1794_vm5, %v3196_v20, 0.0  ;;  %v3198_v23 = vpop.eup %3197 }
 0x326   : > { %1850 = vadd.xlane.f32.xlu0 %v1849_v21  ;;  %1847 = vadd.xlane.f32.xlu1 %v1846_v22  ;;  %v1852_v26 = vsel %vm1794_vm5, %v3198_v23, 0.0 }
 0x328   : > { %v3200_v24 = vpop.eup %3199 }
 0x329   : > { %v1855_v25 = vsel %vm1794_vm5, %v3200_v24, 0.0 }
 0x32a   : > { %1856 = vadd.xlane.f32.xlu0 %v1855_v25  ;;  %1853 = vadd.xlane.f32.xlu1 %v1852_v26 }
 0x32c   : > { %v3202_v27 = vpop.eup %3201 }
 0x32d   : > { %v3204_v28 = vpop.eup %3203  ;;  %v1861_v29 = vsel %vm1794_vm5, %v3202_v27, 0.0 }
 0x32e   : > { %v1858_v30 = vsel %vm1794_vm5, %v3204_v28, 0.0  ;;  %1862 = vadd.xlane.f32.xlu0 %v1861_v29 }
 0x32f   : > { %1859 = vadd.xlane.f32.xlu1 %v1858_v30 }
 0x330   : > { %v3206_v31 = vpop.eup %3205 }
 0x331   : > { %v1864_v32 = vsel %vm1794_vm5, %v3206_v31, 0.0 }
 0x333   : > { %1865 = vadd.xlane.f32.xlu1 %v1864_v32 }
 0x3ab   : > { %v1845_v33 = vpop.xlane.xlu0 %1844 }
 0x3ac   : > { %3207 = vrcp.f32 %v1845_v33 }
 0x3af   : > { %v1851_v34 = vpop.xlane.xlu0 %1850  ;;  %v1848_v35 = vpop.xlane.xlu1 %1847 }
 0x3b0   : > { %3209 = vrcp.f32 %v1848_v35 }
 0x3b1   : > { %3211 = vrcp.f32 %v1851_v34 }
 0x3b3   : > { %v1857_v36 = vpop.xlane.xlu0 %1856  ;;  %v1854_v37 = vpop.xlane.xlu1 %1853 }
 0x3b4   : > { %3213 = vrcp.f32 %v1854_v37  ;;  %v2818_v37 = vld [vmem:[%s3796_s11] ss:$0 sm:$0xff] }
 0x3b5   : > { %3215 = vrcp.f32 %v1857_v36 }
 0x3b7   : > { %v1863_v38 = vpop.xlane.xlu0 %1862 }
 0x3b8   : > { %v1860_v39 = vpop.xlane.xlu1 %1859 }
 0x3b9   : > { %3217 = vrcp.f32 %v1860_v39  ;;  %v3208_v41 = vpop.eup %3207 }
 0x3ba   : > { %3219 = vrcp.f32 %v1863_v38  ;;  %v1868_v43 = vmul.f32 %v3208_v41, %v3192_v14 }
 0x3bc   : > { %v1866_v40 = vpop.xlane.xlu1 %1865 }
 0x3bd   : > { %3221 = vrcp.f32 %v1866_v40  ;;  %v3210_v42 = vpop.eup %3209 }
 0x3be   : > { %v1870_v44 = vmul.f32 %v3210_v42, %v3196_v20  ;;  %v3212_v45 = vpop.eup %3211 }
 0x3bf   : > { %v1872_v52 = vmul.f32 %v3212_v45, %v3194_v19 }
 0x3c0   : > { %v1883_v48 = vpack.c.bf16 %v1870_v44, %v1868_v43 }
 0x3c1   : > { %v3214_v49 = vpop.eup %3213 }
 0x3c2   : > { %3058 = vmatmul.mubr.msk.bf16.vlgmr.msra.gmra.mxu1 %vm1794_vm5, %v1883_v48  ;;  %v1874_v53 = vmul.f32 %v3214_v49, %v3198_v23  ;;  %v3216_v54 = vpop.eup %3215 }
 0x3c3   : > { %3068 = vmatpush3.bf16.msra.mxu1 %v1889_v12  ;;  %3069 = vmatprep.mubr.msk.bf16.mxu1 %vm3248_vm2, %v3247_v5  ;;  %v1876_v51 = vmul.f32 %v3216_v54, %v3200_v24 }
 0x3c4   : > { %v1884_v55 = vpack.c.bf16 %v1874_v53, %v1872_v52  ;;  %3079 = vmatprep.subr.bf16.mxu1 %v3247_v5 }
 0x3c6   : > { %v3218_v50 = vpop.eup %3217  ;;  %3064 = vmatmul.mubr.msk.bf16.vlgmr.msra.gmra.mxu0 %vm1794_vm5, %v1884_v55 }
 0x3c7   : > { %v3220_v56 = vpop.eup %3219  ;;  %v1878_v57 = vmul.f32 %v3218_v50, %v3204_v28  ;;  %3074 = vmatpush3.bf16.msra.mxu0 %v1890_v13  ;;  %3075 = vmatprep.mubr.msk.bf16.mxu0 %vm3248_vm2, %v3247_v5  ;;  %v3179_v13 = vld [vmem:[%s3795_s10 + $0x8] sm:$0xff]  }
 0x3c8   : > { %3087 = vmatprep.subr.bf16.mxu0 %v3247_v5  ;;  %v1880_v12 = vmul.f32 %v3220_v56, %v3202_v27 }
 0x3c9   : > { %v1885_v8 = vpack.c.bf16 %v1878_v57, %v1876_v51 }
 0x3ca   : > { %v3222_v6 = vpop.eup %3221 }
 0x3cb   : > { %v1882_v58 = vmul.f32 %v3222_v6, %v3206_v31  ;;  %3070 = vmatmul.mubr.msk.bf16.vlgmr.msra.gmra.mxu1 %vm1794_vm5, %v1885_v8  ;;  %v3182_v8 = vld [vmem:[%s3799_s14] sm:$0xff]  }
 0x3cc   : > { %3083 = vmatprep.mubr.msk.bf16.mxu1 %vm3248_vm2, %v3247_v5  ;;  %3080 = vmatpush3.bf16.msra.mxu1 %v3179_v13 }
 0x3cd   : > { %v1886_v59 = vpack.c.bf16 %v1882_v58, %v1880_v12  ;;  %3081 = vmatprep.subr.bf16.mxu1 %v3247_v5 }
 0x3cf   : > { %3076 = vmatmul.mubr.msk.bf16.vlgmr.msra.gmra.mxu0 %vm1794_vm5, %v1886_v59 }
 0x3d0   : > { %3091 = vmatprep.mubr.msk.bf16.mxu0 %vm3248_vm2, %v3247_v5  ;;  %3082 = vmatpush3.bf16.msra.mxu1 %v3180_v46 }
 0x3d1   : > { %3095 = vmatprep.subr.bf16.mxu1 %v3247_v5 }
 0x482   : > { %v1928_v7 = vpop.f32.mrf.mxu1 }
 0x484   : > { %v3059_v9 = vpop.f32.mrf.mxu1 }
 0x486   : > { %v1931_v60 = vpop.f32.mrf.mxu1  ;;  %v1972_v61 = vpop.f32.mrf.mxu0 }
 0x488   : > { %v3060_v62 = vpop.f32.mrf.mxu1  ;;  %v3065_v63 = vpop.f32.mrf.mxu0 }
 0x489   : > { %v2822_v62 = vld [vmem:[%s3797_s12] ss:$0 sm:$0xff] }
 0x48a   : > { %v1975_v47 = vpop.f32.mrf.mxu0 }
 0x48b   : > { %v2016_v0 = vpop.f32.mrf.mxu1  ;;  %v3140_v1 = vpack.i.bf16 %v1975_v47, %v1972_v61 }
 0x48c   : > { %v3066_v2 = vpop.f32.mrf.mxu0 }
 0x48d   : > { %v3071_v3 = vpop.f32.mrf.mxu1  ;;  %3141 = vrot.lane.b32.xlu0 %v3140_v1, %s3249_s0 }
 0x48f   : > { %v2019_v4 = vpop.f32.mrf.mxu1  ;;  %v2060_v10 = vpop.f32.mrf.mxu0 }
 0x490   : > { %v3145_v11 = vpack.i.bf16 %v2019_v4, %v2016_v0  ;;  %v2823_v0 = vld [vmem:[%s3798_s13] ss:$0 sm:$0xff] }
 0x491   : > { %v3072_v14 = vpop.f32.mrf.mxu1  ;;  %v3077_v17 = vpop.f32.mrf.mxu0 }
 0x492   : > { %3146 = vrot.lane.b32.xlu1 %v3145_v11, %s3250_s23  ;;  %v3184_v11 = vld [vmem:[%s3801_s16] sm:$0xff]  }
 0x493   : > { %v2063_v18 = vpop.f32.mrf.mxu0  ;;  %v2824_v14 = vld [vmem:[%s3800_s15] ss:$0 sm:$0xff] }
 0x494   : > { %v3150_v19 = vpack.i.bf16 %v2063_v18, %v2060_v10  ;;  %v3183_v10 = vld [vmem:[%s3801_s16 + $0x8] sm:$0xff]  }
 0x495   : > { %v3078_v20 = vpop.f32.mrf.mxu0 }
 0x496   : > { %3151 = vrot.lane.b32.xlu1 %v3150_v19, %s3251_s1 }
 0x4ff   : > { %v3142_v21 = vpop.permute.xlu0 %3141 }
 0x500   : > { %v3144_v23 = vunpack.i.h.bf16 %v3142_v21  ;;  %v3143_v24 = vunpack.i.l.bf16 %v3142_v21 }
 0x502   : > { %v2091_v28 = vsel %vm1597_vm4, %v1928_v7, %v3143_v24  ;;  %v2092_v29 = vsel %vm1597_vm4, %v1931_v60, %v3144_v23 }
 0x504   : > { %v3147_v22 = vpop.permute.xlu1 %3146 }
 0x505   : > { %v3149_v25 = vunpack.i.h.bf16 %v3147_v22  ;;  %v3148_v26 = vunpack.i.l.bf16 %v3147_v22 }
 0x507   : > { %v2094_v32 = vsel %vm1794_vm5, %v2092_v29, %v3149_v25  ;;  %v2093_v33 = vsel %vm1794_vm5, %v2091_v28, %v3148_v26 }
 0x508   : > { %v3152_v27 = vpop.permute.xlu1 %3151 }
 0x509   : > { %v3154_v30 = vunpack.i.h.bf16 %v3152_v27  ;;  %v3153_v31 = vunpack.i.l.bf16 %v3152_v27 }
 0x50b   : > { %v2096_v34 = vsel %vm2095_vm6, %v2093_v33, %v3153_v31  ;;  %v2097_v35 = vsel %vm2095_vm6, %v2094_v32, %v3154_v30 }
 0x50c   : > { %v2098_v36 = vpack.c.bf16 %v2097_v35, %v2096_v34 }
 0x50e   : > { %3084 = vmatmul.mubr.msk.bf16.vlgmr.msra.gmra.mxu1 %vm800_vm3, %v2098_v36 }
 0x50f   : > { %3099 = vmatprep.mubr.msk.bf16.mxu1 %vm3248_vm2, %v3247_v5  ;;  %3096 = vmatpush3.bf16.msra.mxu1 %v3183_v10 }
 0x510   : > { %3097 = vmatprep.subr.bf16.mxu1 %v3247_v5 }
 0x513   : > { %3098 = vmatpush3.bf16.msra.mxu1 %v3184_v11  ;;  %v2833_v11 = vld [vmem:[%s3804_s19] ss:$0 sm:$0xff] }
 0x514   : > { %3111 = vmatprep.subr.bf16.mxu1 %v3247_v5 }
 0x5ce   : > { %v2159_v38 = vpop.f32.mrf.mxu1 }
 0x5cf   : > { %v2160_v39 = vadd.f32 %v2818_v37, %v2159_v38 }
 0x5d0   : > { %v3085_v40 = vpop.f32.mrf.mxu1 }
 0x5d1   : > { %v2166_v41 = vadd.f32 %v2160_v39, %v3417_v16 }
 0x5d2   : > { %v2162_v42 = vpop.f32.mrf.mxu1 }
 0x5d3   : > { %v2163_v43 = vadd.f32 %v2818_v37, %v2162_v42  ;;  %v2170_v44 = vsel %vm800_vm3, %v2166_v41, 0.0  ;;  %v2828_v42 = vld [vmem:[%s3802_s17] ss:$0 sm:$0xff] }
 0x5d4   : > { %2171 = vadd.xlane.f32.xlu1 %v2170_v44  ;;  %v3086_v45 = vpop.f32.mrf.mxu1 }
 0x5d5   : > { %v2167_v48 = vadd.f32 %v2163_v43, %v3415_v15  ;;  %v3181_v15 = vld [vmem:[%s3799_s14 + $0x8] sm:$0xff]  }
 0x5d6   : > { %3088 = vmatpush3.bf16.msra.mxu0 %v3181_v15 }
 0x5d7   : > { %v2173_v49 = vsel %vm800_vm3, %v2167_v48, 0.0  ;;  %3089 = vmatprep.subr.bf16.mxu0 %v3247_v5 }
 0x5d8   : > { %2174 = vadd.xlane.f32.xlu0 %v2173_v49 }
 0x5da   : > { %3090 = vmatpush3.bf16.msra.mxu0 %v3182_v8 }
 0x5db   : > { %3103 = vmatprep.subr.bf16.mxu0 %v3247_v5 }
 0x65d   : > { %v2172_v52 = vpop.xlane.xlu1 %2171 }
 0x65e   : > { %v2177_v53 = vmul.f32 0.03125, %v2172_v52 }
 0x660   : > { %v2179_v54 = vsub.f32 %v2166_v41, %v2177_v53 }
 0x661   : > { %v2175_v55 = vpop.xlane.xlu0 %2174 }
 0x662   : > { %v2178_v50 = vmul.f32 0.03125, %v2175_v55  ;;  %v2181_v56 = vmul.f32 %v2179_v54, %v2179_v54 }
 0x664   : > { %v2180_v51 = vsub.f32 %v2167_v48, %v2178_v50  ;;  %v2183_v16 = vsel %vm800_vm3, %v2181_v56, 0.0 }
 0x665   : > { %2184 = vadd.xlane.f32.xlu0 %v2183_v16 }
 0x666   : > { %v2182_v57 = vmul.f32 %v2180_v51, %v2180_v51 }
 0x668   : > { %v2186_v6 = vsel %vm800_vm3, %v2182_v57, 0.0 }
 0x669   : > { %2187 = vadd.xlane.f32.xlu0 %v2186_v6 }
 0x6ee   : > { %v2185_v12 = vpop.xlane.xlu0 %2184 }
 0x6ef   : > { %v2189_v58 = vmul.f32 0.03125, %v2185_v12 }
 0x6f1   : > { %v2191_v59 = vadd.f32 1e-05, %v2189_v58 }
 0x6f2   : > { %v2188_v7 = vpop.xlane.xlu0 %2187 }
 0x6f3   : > { %3223 = vrsqrt.f32 %v2191_v59  ;;  %v2190_v9 = vmul.f32 0.03125, %v2188_v7  ;;  %v3185_v7 = vld [vmem:[%s3805_s20 + $0x18] sm:$0xff]  }
 0x6f5   : > { %v2192_v13 = vadd.f32 1e-05, %v2190_v9  ;;  %v3186_v9 = vld [vmem:[%s3805_s20 + $0x8] sm:$0xff]  }
 0x6f7   : > { %3225 = vrsqrt.f32 %v2192_v13  ;;  %v3187_v13 = vld [vmem:[%s3805_s20 + $0x10] sm:$0xff]  }
 0x700   : > { %v3224_v60 = vpop.eup %3223 }
 0x701   : > { %v2195_v61 = vmul.f32 %v3224_v60, %v2179_v54  ;;  %v3188_v60 = vld [vmem:[%s3805_s20] sm:$0xff]  }
 0x703   : > { %v2203_v47 = vmul.f32 %v2822_v62, %v2195_v61 }
 0x704   : > { %v3226_v63 = vpop.eup %3225 }
 0x705   : > { %v2196_v46 = vmul.f32 %v3226_v63, %v2180_v51  ;;  %v2211_v2 = vadd.f32 %v2823_v0, %v2203_v47 }
 0x707   : > { %v2204_v1 = vmul.f32 %v2822_v62, %v2196_v46 }
 0x709   : > { %v2212_v3 = vadd.f32 %v2823_v0, %v2204_v1 }
 0x70b   : > { %v2213_v4 = vpack.c.bf16 %v2212_v3, %v2211_v2 }
 0x70d   : > { %3092 = vmatmul.mubr.msk.bf16.vlgmr.msra.gmra.mxu0 %vm800_vm3, %v2213_v4 }
 0x70e   : > { %3107 = vmatprep.mubr.msk.bf16.mxu0 %vm3248_vm2, %v3247_v5  ;;  %3104 = vmatpush3.bf16.msra.mxu0 %v3185_v7 }
 0x70f   : > { %3105 = vmatprep.subr.bf16.mxu0 %v3247_v5 }
 0x712   : > { %3106 = vmatpush3.bf16.msra.mxu0 %v3187_v13 }
 0x713   : > { %3119 = vmatprep.subr.bf16.mxu0 %v3247_v5 }
 0x7cd   : > { %v2274_v17 = vpop.f32.mrf.mxu0 }
 0x7ce   : > { %v2275_v18 = vadd.f32 %v2824_v14, %v2274_v17 }
 0x7cf   : > { %v3093_v19 = vpop.f32.mrf.mxu0 }
 0x7d0   : > { %v2283_v20 = vmul.f32 0.044715, %v2275_v18  ;;  %v2281_v36 = vmul.f32 0.5, %v2275_v18 }
 0x7d1   : > { %v2277_v21 = vpop.f32.mrf.mxu0 }
 0x7d2   : > { %v2285_v22 = vmul.f32 %v2283_v20, %v2275_v18  ;;  %v2278_v23 = vadd.f32 %v2824_v14, %v2277_v21  ;;  %v3189_v20 = vld [vmem:[%s3805_s20 + $0x28] sm:$0xff]  }
 0x7d3   : > { %v3094_v24 = vpop.f32.mrf.mxu0 }
 0x7d4   : > { %v2287_v25 = vmul.f32 %v2285_v22, %v2275_v18  ;;  %v2284_v26 = vmul.f32 0.044715, %v2278_v23  ;;  %v2282_v37 = vmul.f32 0.5, %v2278_v23 }
 0x7d6   : > { %v2289_v27 = vadd.f32 %v2287_v25, %v2275_v18  ;;  %v2286_v28 = vmul.f32 %v2284_v26, %v2278_v23 }
 0x7d8   : > { %v2291_v29 = vmul.f32 0.7978846, %v2289_v27  ;;  %v2288_v30 = vmul.f32 %v2286_v28, %v2278_v23  ;;  %v3190_v28 = vld [vmem:[%s3805_s20 + $0x20] sm:$0xff]  }
 0x7da   : > { %3227 = vtanh.f32 %v2291_v29  ;;  %v2290_v31 = vadd.f32 %v2288_v30, %v2278_v23 }
 0x7dc   : > { %v2292_v32 = vmul.f32 0.7978846, %v2290_v31 }
 0x7de   : > { %3229 = vtanh.f32 %v2292_v32 }
 0x7e7   : > { %v3228_v33 = vpop.eup %3227 }
 0x7e8   : > { %v2295_v34 = vadd.f32 1.0, %v3228_v33 }
 0x7ea   : > { %v2297_v39 = vmul.f32 %v2295_v34, %v2281_v36 }
 0x7eb   : > { %v3230_v35 = vpop.eup %3229 }
 0x7ec   : > { %v2296_v38 = vadd.f32 1.0, %v3230_v35 }
 0x7ee   : > { %v2298_v40 = vmul.f32 %v2296_v38, %v2282_v37 }
 0x7f0   : > { %v2299_v41 = vpack.c.bf16 %v2298_v40, %v2297_v39 }
 0x7f2   : > { %3100 = vmatmul.mubr.msk.bf16.vlgmr.msra.gmra.mxu1 %vm800_vm3, %v2299_v41 }
 0x7f3   : > { %3115 = vmatprep.mubr.msk.bf16.mxu1 %vm3248_vm2, %v3247_v5  ;;  %3112 = vmatpush3.bf16.msra.mxu1 %v3186_v9 }
 0x7f4   : > { %3113 = vmatprep.subr.bf16.mxu1 %v3247_v5 }
 0x7f7   : > { %3114 = vmatpush3.bf16.msra.mxu1 %v3188_v60 }
 0x8b2   : > { %v2360_v43 = vpop.f32.mrf.mxu1 }
 0x8b3   : > { %v2361_v44 = vadd.f32 %v2828_v42, %v2360_v43 }
 0x8b4   : > { %v3101_v45 = vpop.f32.mrf.mxu1 }
 0x8b5   : > { %v2367_v48 = vadd.f32 %v2361_v44, %v2211_v2  ;;  %v2832_v2 = vld [vmem:[%s3803_s18] ss:$0 sm:$0xff] }
 0x8b6   : > { %v2363_v49 = vpop.f32.mrf.mxu1 }
 0x8b7   : > { %v2364_v52 = vadd.f32 %v2828_v42, %v2363_v49  ;;  %v2371_v53 = vsel %vm800_vm3, %v2367_v48, 0.0 }
 0x8b8   : > { %2372 = vadd.xlane.f32.xlu1 %v2371_v53  ;;  %v3102_v54 = vpop.f32.mrf.mxu1 }
 0x8b9   : > { %v2368_v55 = vadd.f32 %v2364_v52, %v2212_v3 }
 0x8bb   : > { %v2374_v50 = vsel %vm800_vm3, %v2368_v55, 0.0 }
 0x8bc   : > { %2375 = vadd.xlane.f32.xlu0 %v2374_v50 }
 0x941   : > { %v2373_v56 = vpop.xlane.xlu1 %2372 }
 0x942   : > { %v2377_v51 = vmul.f32 0.03125, %v2373_v56 }
 0x944   : > { %v2379_v16 = vsub.f32 %v2367_v48, %v2377_v51 }
 0x945   : > { %v2376_v57 = vpop.xlane.xlu0 %2375 }
 0x946   : > { %v2378_v6 = vmul.f32 0.03125, %v2376_v57  ;;  %v2381_v15 = vmul.f32 %v2379_v16, %v2379_v16 }
 0x948   : > { %v2380_v8 = vsub.f32 %v2368_v55, %v2378_v6  ;;  %v2383_v12 = vsel %vm800_vm3, %v2381_v15, 0.0 }
 0x949   : > { %2384 = vadd.xlane.f32.xlu1 %v2383_v12 }
 0x94a   : > { %v2382_v58 = vmul.f32 %v2380_v8, %v2380_v8 }
 0x94c   : > { %v2386_v59 = vsel %vm800_vm3, %v2382_v58, 0.0 }
 0x94d   : > { %2387 = vadd.xlane.f32.xlu0 %v2386_v59 }
 0x9d2   : > { %v2385_v61 = vpop.xlane.xlu1 %2384 }
 0x9d3   : > { %v2389_v62 = vmul.f32 0.03125, %v2385_v61 }
 0x9d5   : > { %v2391_v63 = vadd.f32 1e-05, %v2389_v62 }
 0x9d6   : > { %v2388_v46 = vpop.xlane.xlu0 %2387 }
 0x9d7   : > { %3231 = vrsqrt.f32 %v2391_v63  ;;  %v2390_v47 = vmul.f32 0.03125, %v2388_v46 }
 0x9d9   : > { %v2392_v0 = vadd.f32 1e-05, %v2390_v47 }
 0x9db   : > { %3233 = vrsqrt.f32 %v2392_v0 }
 0x9e4   : > { %v3232_v1 = vpop.eup %3231 }
 0x9e5   : > { %v2395_v3 = vmul.f32 %v3232_v1, %v2379_v16 }
 0x9e7   : > { %v2403_v4 = vmul.f32 %v2832_v2, %v2395_v3 }
 0x9e8   : > { %v3234_v10 = vpop.eup %3233 }
 0x9e9   : > { %v2396_v14 = vmul.f32 %v3234_v10, %v2380_v8  ;;  %v2411_v18 = vadd.f32 %v2833_v11, %v2403_v4 }
 0x9eb   : > { %v2404_v17 = vmul.f32 %v2832_v2, %v2396_v14  ;;  %v2418_v23 = vrot.slane %v2411_v18, 7  ;;  %v2424_v29 = vrot.slane %v2411_v18, 1 }
 0x9ed   : > { %v2412_v19 = vadd.f32 %v2833_v11, %v2404_v17 }
 0x9ef   : > { %v2436_v21 = vpack.c.bf16 %v2412_v19, %v2411_v18  ;;  %v2414_v22 = vrot.slane %v2412_v19, 7  ;;  %v2425_v24 = vrot.slane %v2412_v19, 1 }
 0x9f1   : > { %3108 = vmatmul.mubr.msk.bf16.vlgmr.msra.gmra.mxu0 %vm800_vm3, %v2436_v21  ;;  %v2419_v25 = vsel %vm2417_vm7, %v2418_v23, %v2414_v22  ;;  %v2422_v26 = vsel %vm2417_vm7, %v2414_v22, %v2418_v23  ;;  %v2426_v30 = vsel %vm2423_vm8, %v2424_v29, %v2425_v24  ;;  %v2430_v31 = vsel %vm2423_vm8, %v2425_v24, %v2424_v29 }
 0x9f2   : > { %3120 = vmatpush3.bf16.msra.mxu0 %v3189_v20  ;;  %v2431_v27 = vpack.c.bf16 %v2419_v25, %v2422_v26  ;;  %3123 = vmatprep.mubr.msk.bf16.mxu0 %vm3248_vm2, %v3247_v5  ;;  %v2554_v32 = vpack.c.bf16 %v2430_v31, %v2426_v30 }
 0x9f3   : > { %3121 = vmatprep.subr.bf16.mxu0 %v3247_v5  ;;  %v2851_v5 = vld [vmem:[%s3806_s21] ss:$0 sm:$0xff] }
 0x9f4   : > { %3116 = vmatmul.mubr.msk.bf16.vlgmr.msra.gmra.mxu1 %vm800_vm3, %v2431_v27 }
 0x9f6   : > { %3122 = vmatpush3.bf16.msra.mxu0 %v3190_v28 }
 0x9f9   : > { %3124 = vmatmul.mubr.msk.bf16.vlgmr.msra.gmra.mxu0 %vm800_vm3, %v2554_v32 }
 0xab1   : > { %v2491_v33 = vpop.f32.mrf.mxu0 }
 0xab3   : > { %v3109_v34 = vpop.f32.mrf.mxu0 }
 0xab4   : > { %v2547_v35 = vpop.f32.mrf.mxu1 }
 0xab5   : > { %v2494_v36 = vpop.f32.mrf.mxu0  ;;  %v2548_v39 = vadd.f32 %v2547_v35, %v2491_v33 }
 0xab6   : > { %v3117_v37 = vpop.f32.mrf.mxu1 }
 0xab7   : > { %v3110_v38 = vpop.f32.mrf.mxu0 }
 0xab8   : > { %v2550_v40 = vpop.f32.mrf.mxu1 }
 0xab9   : > { %v2609_v41 = vpop.f32.mrf.mxu0  ;;  %v2551_v45 = vadd.f32 %v2550_v40, %v2494_v36 }
 0xaba   : > { %v2616_v42 = vadd.f32 %v2609_v41, %v2548_v39  ;;  %v3118_v43 = vpop.f32.mrf.mxu1 }
 0xabb   : > { %v3125_v44 = vpop.f32.mrf.mxu0 }
 0xabc   : > { %v2625_v48 = vadd.f32 %v2851_v5, %v2616_v42 }
 0xabd   : > { %v2612_v49 = vpop.f32.mrf.mxu0 }
 0xabe   : > { %v2629_v52 = vmin.f32 %v2625_v48, 0.0  ;;  %v2617_v53 = vadd.f32 %v2612_v49, %v2551_v45  ;;  %vm2627_vm9 = vcmp.gt.f32.partialorder %v2625_v48, 0.0 }
 0xabf   : > { %v3126_v54 = vpop.f32.mrf.mxu0 }
 0xac0   : > { %v2631_v55 = vmul.f32 1.442695, %v2629_v52  ;;  %v2626_v50 = vadd.f32 %v2851_v5, %v2617_v53 }
 0xac2   : > { %3235 = vpow2.f32 %v2631_v55  ;;  %v2630_v56 = vmin.f32 %v2626_v50, 0.0  ;;  %vm2628_vm10 = vcmp.gt.f32.partialorder %v2626_v50, 0.0 }
 0xac4   : > { %v2633_v51 = vmul.f32 1.442695, %v2630_v56 }
 0xac6   : > { %3237 = vpow2.f32 %v2633_v51 }
 0xacf   : > { %v3236_v16 = vpop.eup %3235 }
 0xad0   : > { %v2852_v57 = vadd.f32 -1.0, %v3236_v16 }
 0xad2   : > { %v2637_v6 = vsel %vm2627_vm9, %v2625_v48, %v2852_v57 }
 0xad3   : > { %v3238_v15 = vpop.eup %3237  ;;  %v2641_v8 = vrot.slane %v2637_v6, 7  ;;  %v2647_v7 = vrot.slane %v2637_v6, 1 }
 0xad4   : > { %v2853_v12 = vadd.f32 -1.0, %v3238_v15 }
 0xad5   : > { %v2646_v58 = vsel %vm2417_vm7, -1e+30, %v2641_v8 }
 0xad6   : > { %v2638_v59 = vsel %vm2628_vm10, %v2626_v50, %v2853_v12  ;;  %v2653_v60 = vmax.f32 %v2646_v58, %v2637_v6 }
 0xad7   : > { %v2642_v9 = vrot.slane %v2638_v59, 7  ;;  %v2648_v13 = vrot.slane %v2638_v59, 1 }
 0xad9   : > { %v2643_v61 = vsel %vm2417_vm7, %v2641_v8, %v2642_v9  ;;  %v2649_v62 = vsel %vm2423_vm8, %v2647_v7, %v2648_v13  ;;  %v2652_v47 = vsel %vm2423_vm8, %v2648_v13, -1e+30 }
 0xada   : > { %v2654_v63 = vmax.f32 %v2643_v61, %v2638_v59  ;;  %v2655_v46 = vmax.f32 %v2653_v60, %v2649_v62 }
 0xadc   : > { %v2656_v0 = vmax.f32 %v2654_v63, %v2652_v47  ;;  %2657 = vst.msk [vmem:[#allocation2] sm:$0xff] %vm800_vm3, %v2655_v46 }
 0xade   : > { %2658 = vst.msk [vmem:[#allocation2 + $0x8] sm:$0xff] %vm800_vm3, %v2656_v0 }
 0xae5   : > { %v2659_v1 = vld [vmem:[#allocation2] ss:$2 sm:$0xff] }
 0xae6   : > { %2660 = vst.msk [vmem:[%s681_s29] sm:$0xff] %vm800_vm3, %v2659_v1 }
 0xae7 PF: > { %s32_s3 = sadd.s32 1, %s3245_s3  }
 0xae8   : > { %p29_p4 = scmp.ge.s32.totalorder %s32_s3, 4  }
 0xaea   :  { %31 = sbr.rel (!%p29_p4) target bundleno = 8 (0x8), region = 149 }

// kernel: informer_forward.7
= control target key start
LH: loop header
LB: loop body
LE: loop exit
PB: predicated region body
PF: predicated region fallthrough
CT: control target
= control target key end

     0   :  { %s4707_s6 = smov 1   ;;  %s4708_s10 = smov 2   ;;  %s5306_s0 = inlined_call_operand.smem [shape: u32[31], index: -1, kind: input, shape index: {}] }
   0x1   :  { %s4750_s5 = sld [smem:[%s5306_s0]]   ;;  %s4709_s14 = smov 3  }
   0x2   :  { %s4755_s9 = sld [smem:[%s5306_s0 + %s4707_s6]]   ;;  %s4710_s18 = smov 4  }
   0x3   :  { %s4760_s13 = sld [smem:[%s5306_s0 + %s4708_s10]]   ;;  %s4711_s22 = smov 5  }
   0x4   :  { %s4765_s17 = sld [smem:[%s5306_s0 + %s4709_s14]]   ;;  %s4712_s26 = smov 6  }
   0x5   :  { %s4770_s21 = sld [smem:[%s5306_s0 + %s4710_s18]]   ;;  %s4713_s30 = smov 7  }
   0x6   :  { %s4775_s25 = sld [smem:[%s5306_s0 + %s4711_s22]]   ;;  %s4714_s4 = smov 8  }
   0x7   :  { %s4780_s29 = sld [smem:[%s5306_s0 + %s4712_s26]]   ;;  %s4715_s10 = smov 9  }
   0x8   :  { %s4785_s3 = sld [smem:[%s5306_s0 + %s4713_s30]]   ;;  %s4716_s15 = smov 10  }
   0x9   :  { %s4790_s8 = sld [smem:[%s5306_s0 + %s4714_s4]]   ;;  %s4717_s20 = smov 11  }
   0xa   :  { %s4795_s14 = sld [smem:[%s5306_s0 + %s4715_s10]]   ;;  %s4718_s26 = smov 12  }
   0xb   :  { %s4800_s19 = sld [smem:[%s5306_s0 + %s4716_s15]]   ;;  %s4719_s1 = smov 13  }
   0xc   :  { %s4805_s24 = sld [smem:[%s5306_s0 + %s4717_s20]]   ;;  %s4720_s7 = smov 14  }
   0xd   :  { %s4810_s30 = sld [smem:[%s5306_s0 + %s4718_s26]]   ;;  %s4721_s15 = smov 15  }
   0xe   :  { %s4815_s6 = sld [smem:[%s5306_s0 + %s4719_s1]]   ;;  %s4722_s22 = smov 16  }
   0xf   :  { %s4820_s12 = sld [smem:[%s5306_s0 + %s4720_s7]]   ;;  %s4723_s28 = smov 17  }
  0x10   :  { %s4825_s20 = sld [smem:[%s5306_s0 + %s4721_s15]]   ;;  %s4724_s7 = smov 18  }
  0x11   :  { %s4830_s27 = sld [smem:[%s5306_s0 + %s4722_s22]]   ;;  %s4725_s15 = smov 19  }
  0x12   :  { %s4835_s4 = sld [smem:[%s5306_s0 + %s4723_s28]]   ;;  %s4726_s22 = smov 20  }
  0x13   :  { %s4727_s28 = smov 21  }
  0x15   :  { %5314 = sst [smem:[#allocation2_spill]] %s4820_s12 }
  0x16   :  { %5315 = sst [smem:[#allocation3_spill]] %s4825_s20 }
  0x17   :  { %5316 = sst [smem:[#allocation4_spill]] %s4830_s27 }
  0x18   :  { %5317 = sst [smem:[#allocation5_spill]] %s4835_s4 }
  0x19   :  { %s4840_s12 = sld [smem:[%s5306_s0 + %s4724_s7]]   ;;  %s4728_s7 = smov 22  }
  0x1a   :  { %s4845_s20 = sld [smem:[%s5306_s0 + %s4725_s15]]   ;;  %s4729_s15 = smov 23  }
  0x1b   :  { %s4850_s27 = sld [smem:[%s5306_s0 + %s4726_s22]]   ;;  %s4730_s22 = smov 24  }
  0x1c   :  { %s4855_s4 = sld [smem:[%s5306_s0 + %s4727_s28]]   ;;  %s4731_s28 = smov 25  }
  0x1f   :  { %5318 = sst [smem:[#allocation6_spill]] %s4840_s12 }
  0x20   :  { %5319 = sst [smem:[#allocation7_spill]] %s4845_s20 }
  0x21   :  { %5320 = sst [smem:[#allocation8_spill]] %s4850_s27 }
  0x22   :  { %5321 = sst [smem:[#allocation9_spill]] %s4855_s4 }
  0x23   :  { %s4860_s12 = sld [smem:[%s5306_s0 + %s4728_s7]]   ;;  %s4732_s7 = smov 26  }
  0x24   :  { %s4865_s20 = sld [smem:[%s5306_s0 + %s4729_s15]]   ;;  %s4733_s15 = smov 27  }
  0x25   :  { %s4870_s27 = sld [smem:[%s5306_s0 + %s4730_s22]]   ;;  %s4734_s22 = smov 28  }
  0x26   :  { %s4875_s4 = sld [smem:[%s5306_s0 + %s4731_s28]]   ;;  %s4735_s28 = smov 29  }
  0x29   :  { %5322 = sst [smem:[#allocation10_spill]] %s4860_s12 }
  0x2a   :  { %5323 = sst [smem:[#allocation11_spill]] %s4865_s20 }
  0x2b   :  { %5324 = sst [smem:[#allocation12_spill]] %s4870_s27 }
  0x2c   :  { %5325 = sst [smem:[#allocation13_spill]] %s4875_s4 }
  0x2d   :  { %s4880_s12 = sld [smem:[%s5306_s0 + %s4732_s7]]   ;;  %s4736_s7 = smov 30  }
  0x2e   :  { %s4885_s20 = sld [smem:[%s5306_s0 + %s4733_s15]]   ;;  %s4902_s15 = smov 0  }
  0x2f   :  { %s4890_s27 = sld [smem:[%s5306_s0 + %s4734_s22]]  }
  0x30   :  { %s4895_s4 = sld [smem:[%s5306_s0 + %s4735_s28]]  }
  0x33   :  { %5326 = sst [smem:[#allocation14_spill]] %s4880_s12 }
  0x34   :  { %s4900_s12 = sld [smem:[%s5306_s0 + %s4736_s7]]  }
  0x35 LB: > { %s3904_s16 = sadd.s32 4294967295, %s4705_s15   ;;  %p3908_p0 = scmp.ge.s32.totalorder %s4705_s15, 1  ;;  %s4705_s15 = sphi %s4902_s15, %s71_s15  }
  0x36   : > { %p851_p1 = scmp.lt.s32.totalorder %s4705_s15, 3 }
  0x38   : > { %p852_p2 = pnand %p3908_p0, %p851_p1 }
  0x39   : > { %p931_p3 = scmp.lt.s32.totalorder (!%p852_p2), %s3904_s16, 1  ;;  %s4739_s22 = smov (!%p852_p2), 8  }
  0x3a   : > { %855 = sbr.rel (%p852_p2) target bundleno = 4231 (0x1087), region = 140  ;;  %s4740_s23 = smov (!%p852_p2), 16  }
  0x3b   : > { %s4741_s26 = smov (!%p852_p2), 24   ;;  %s5327_s1 = sld [smem:[#allocation2_spill]] (!%p852_p2) }
  0x3c   : > { %s5328_s2 = sld [smem:[#allocation4_spill]] (!%p852_p2) }
  0x3d   : > { %s5329_s7 = sld [smem:[#allocation3_spill]] (!%p852_p2) }
  0x3e   : > { %s5330_s10 = sld [smem:[#allocation5_spill]] (!%p852_p2) }
  0x3f   : > { %v4601_v0 = vld [vmem:[%s4760_s13 + $0x8] sm:$0xff]   ;;  %v4737_v1 = vmov 0.0   ;;  %v4602_v2 = vld [vmem:[%s4760_s13 + $0x18] sm:$0xff]   ;;  %v4603_v3 = vld [vmem:[%s4760_s13] sm:$0xff]   ;;  %vm4738_vm0 = vmmov 0   ;;  %s5341_s16 = smov (!%p931_p3, %s3904_s16), 1 }
  0x40   : > { %4238 = vmatprep.subr.bf16.mxu0 %v4737_v1  ;;  %4246 = vmatprep.subr.bf16.mxu1 %v4737_v1  ;;  %v4604_v4 = vld [vmem:[%s4760_s13 + $0x10] sm:$0xff]   ;;  %s4922_s0 = sshll.u32 %s5341_s16, 3  ;;  %v4605_v5 = vld [vmem:[%s4760_s13 + $0x28] sm:$0xff]   ;;  %v4606_v6 = vld [vmem:[%s4760_s13 + $0x38] sm:$0xff]   ;;  %vm963_vm1 = vcmask 261120   ;;  %vm1736_vm2 = vcmask 64512  }
  0x41   : > { %4239 = vmatpush3.bf16.msra.mxu0 %v4601_v0  ;;  %4242 = vmatprep.mubr.msk.bf16.mxu0 %vm4738_vm0, %v4737_v1  ;;  %s934_s18 = scalar_lea.vmem %s4750_s5, %s4922_s0  ;;  %v4607_v9 = vld [vmem:[%s4760_s13 + $0x20] sm:$0xff]   ;;  %v4608_v10 = vld [vmem:[%s4760_s13 + $0x30] sm:$0xff]   ;;  %v4609_v11 = vld [vmem:[%s4765_s17 + $0x8] sm:$0xff]   ;;  %vm1980_vm3 = vcmask 1043456   ;;  %vm2175_vm4 = vcmask 130048   ;;  %vm2177_vm5 = vcmask 195584   ;;  %s938_s28 = scalar_lea.vmem %s4755_s9, %s4922_s0 }
  0x42   : > { %4247 = vmatpush3.bf16.msra.mxu1 %v4602_v2  ;;  %4240 = vmatprep.subr.bf16.mxu0 %v4737_v1  ;;  %v4929_v7 = vld [vmem:[%s934_s18] sm:$0xff]  ;;  %v4610_v12 = vld [vmem:[%s4765_s17 + $0x18] sm:$0xff]   ;;  %v4612_v14 = vld [vmem:[%s4765_s17 + $0x10] sm:$0xff]   ;;  %s5331_s11 = sld [smem:[#allocation6_spill]] }
  0x43   : > { %4248 = vmatprep.subr.bf16.mxu1 %v4737_v1  ;;  %4250 = vmatprep.mubr.msk.bf16.mxu1 %vm4738_vm0, %v4737_v1  ;;  %v4934_v8 = vpack.c.bf16 %v4929_v7, %v4929_v7  ;;  %v4611_v13 = vld [vmem:[%s4765_s17] sm:$0xff]   ;;  %v4613_v15 = vld [vmem:[%s4765_s17 + $0x28] sm:$0xff]   ;;  %v4614_v16 = vld [vmem:[%s4765_s17 + $0x38] sm:$0xff]   ;;  %s5332_s16 = sld [smem:[#allocation7_spill]] }
  0x44   : > { %v4615_v17 = vld [vmem:[%s4765_s17 + $0x20] sm:$0xff]   ;;  %v4616_v18 = vld [vmem:[%s4765_s17 + $0x30] sm:$0xff]   ;;  %v4617_v19 = vld [vmem:[%s4770_s21 + $0x8] sm:$0xff]   ;;  %s5333_s18 = sld [smem:[#allocation10_spill]] }
  0x45   : > { %4241 = vmatpush3.bf16.msra.mxu0 %v4603_v3  ;;  %v4618_v20 = vld [vmem:[%s4770_s21] sm:$0xff]   ;;  %v4619_v21 = vld [vmem:[%s4770_s21 + $0x18] sm:$0xff]   ;;  %v4620_v22 = vld [vmem:[%s4770_s21 + $0x10] sm:$0xff]  }
  0x46   : > { %4249 = vmatpush3.bf16.msra.mxu1 %v4604_v4  ;;  %4254 = vmatprep.subr.bf16.mxu0 %v4737_v1  ;;  %v4621_v23 = vld [vmem:[%s4770_s21 + $0x28] sm:$0xff]   ;;  %v4622_v24 = vld [vmem:[%s4770_s21 + $0x20] sm:$0xff]   ;;  %v4623_v25 = vld [vmem:[%s4770_s21 + $0x38] sm:$0xff]  }
  0x47   : > { %4262 = vmatprep.subr.bf16.mxu1 %v4737_v1  ;;  %v4624_v26 = vld [vmem:[%s4770_s21 + $0x30] sm:$0xff]   ;;  %v3964_v43 = vld [vmem:[%s4780_s29] ss:$0 sm:$0xff]  ;;  %v3965_v44 = vld [vmem:[%s4780_s29 + $0x1] ss:$0 sm:$0xff] }
  0x48   : > { %4243 = vmatmul.mubr.msk.bf16.vlgmr.msra.gmra.mxu0 %vm963_vm1, %v4934_v8  ;;  %v3936_v53 = vld [vmem:[%s4775_s25] ss:$0 sm:$0xff]  ;;  %v3937_v54 = vld [vmem:[%s4775_s25 + $0x1] ss:$0 sm:$0xff]  ;;  %v3966_v61 = vld [vmem:[%s4780_s29 + $0x2] ss:$0 sm:$0xff] }
  0x49   : > { %4251 = vmatmul.mubr.msk.bf16.vlgmr.msra.gmra.mxu1 %vm963_vm1, %v4934_v8  ;;  %4255 = vmatpush3.bf16.msra.mxu0 %v4605_v5  ;;  %v3967_v62 = vld [vmem:[%s4780_s29 + $0x3] ss:$0 sm:$0xff] }
  0x4a   : > { %4263 = vmatpush3.bf16.msra.mxu1 %v4606_v6  ;;  %4256 = vmatprep.subr.bf16.mxu0 %v4737_v1 }
  0x4b   : > { %4264 = vmatprep.subr.bf16.mxu1 %v4737_v1  ;;  %4258 = vmatprep.mubr.msk.bf16.mxu0 %vm4738_vm0, %v4737_v1 }
  0x4c   : > { %4266 = vmatprep.mubr.msk.bf16.mxu1 %vm4738_vm0, %v4737_v1 }
  0x4d   : > { %4257 = vmatpush3.bf16.msra.mxu0 %v4607_v9 }
  0x4e   : > { %4265 = vmatpush3.bf16.msra.mxu1 %v4608_v10  ;;  %4270 = vmatprep.subr.bf16.mxu0 %v4737_v1 }
  0x4f   : > { %4278 = vmatprep.subr.bf16.mxu1 %v4737_v1 }
  0x50   : > { %4259 = vmatmul.mubr.msk.bf16.vlgmr.msra.gmra.mxu0 %vm963_vm1, %v4934_v8 }
  0x51   : > { %4267 = vmatmul.mubr.msk.bf16.vlgmr.msra.gmra.mxu1 %vm963_vm1, %v4934_v8  ;;  %4271 = vmatpush3.bf16.msra.mxu0 %v4609_v11 }
  0x52   : > { %4279 = vmatpush3.bf16.msra.mxu1 %v4610_v12  ;;  %4272 = vmatprep.subr.bf16.mxu0 %v4737_v1 }
  0x53   : > { %4280 = vmatprep.subr.bf16.mxu1 %v4737_v1  ;;  %4274 = vmatprep.mubr.msk.bf16.mxu0 %vm4738_vm0, %v4737_v1 }
  0x54   : > { %4282 = vmatprep.mubr.msk.bf16.mxu1 %vm4738_vm0, %v4737_v1 }
  0x55   : > { %4273 = vmatpush3.bf16.msra.mxu0 %v4611_v13  ;;  %v3938_v13 = vld [vmem:[%s4775_s25 + $0x2] ss:$0 sm:$0xff] }
  0x56   : > { %4281 = vmatpush3.bf16.msra.mxu1 %v4612_v14  ;;  %4286 = vmatprep.subr.bf16.mxu0 %v4737_v1  ;;  %v3939_v14 = vld [vmem:[%s4775_s25 + $0x3] ss:$0 sm:$0xff] }
  0x57   : > { %4294 = vmatprep.subr.bf16.mxu1 %v4737_v1 }
  0x58   : > { %4275 = vmatmul.mubr.msk.bf16.vlgmr.msra.gmra.mxu0 %vm963_vm1, %v4934_v8 }
  0x59   : > { %4283 = vmatmul.mubr.msk.bf16.vlgmr.msra.gmra.mxu1 %vm963_vm1, %v4934_v8  ;;  %4287 = vmatpush3.bf16.msra.mxu0 %v4613_v15 }
  0x5a   : > { %4295 = vmatpush3.bf16.msra.mxu1 %v4614_v16  ;;  %4288 = vmatprep.subr.bf16.mxu0 %v4737_v1 }
  0x5b   : > { %4296 = vmatprep.subr.bf16.mxu1 %v4737_v1  ;;  %4290 = vmatprep.mubr.msk.bf16.mxu0 %vm4738_vm0, %v4737_v1 }
  0x5c   : > { %4298 = vmatprep.mubr.msk.bf16.mxu1 %vm4738_vm0, %v4737_v1 }
  0x5d   : > { %4289 = vmatpush3.bf16.msra.mxu0 %v4615_v17 }
  0x5e   : > { %4297 = vmatpush3.bf16.msra.mxu1 %v4616_v18  ;;  %4302 = vmatprep.subr.bf16.mxu0 %v4737_v1 }
  0x5f   : > { %4310 = vmatprep.subr.bf16.mxu1 %v4737_v1 }
  0x60   : > { %4291 = vmatmul.mubr.msk.bf16.vlgmr.msra.gmra.mxu0 %vm963_vm1, %v4934_v8 }
  0x61   : > { %4299 = vmatmul.mubr.msk.bf16.vlgmr.msra.gmra.mxu1 %vm963_vm1, %v4934_v8  ;;  %4306 = vmatprep.mubr.msk.bf16.mxu0 %vm4738_vm0, %v4737_v1 }
  0x62   : > { %4314 = vmatprep.mubr.msk.bf16.mxu1 %vm4738_vm0, %v4737_v1  ;;  %4303 = vmatpush3.bf16.msra.mxu0 %v4617_v19 }
  0x63   : > { %4304 = vmatprep.subr.bf16.mxu0 %v4737_v1  ;;  %4311 = vmatpush3.bf16.msra.mxu1 %v4619_v21 }
  0x64   : > { %4312 = vmatprep.subr.bf16.mxu1 %v4737_v1 }
  0x66   : > { %4305 = vmatpush3.bf16.msra.mxu0 %v4618_v20 }
  0x67   : > { %4318 = vmatprep.subr.bf16.mxu0 %v4737_v1  ;;  %4313 = vmatpush3.bf16.msra.mxu1 %v4620_v22 }
  0x68   : > { %4326 = vmatprep.subr.bf16.mxu1 %v4737_v1 }
  0x69   : > { %4307 = vmatmul.mubr.msk.bf16.vlgmr.msra.gmra.mxu0 %vm963_vm1, %v4934_v8 }
  0x6a   : > { %4319 = vmatpush3.bf16.msra.mxu0 %v4621_v23  ;;  %4322 = vmatprep.mubr.msk.bf16.mxu0 %vm4738_vm0, %v4737_v1 }
  0x6b   : > { %4320 = vmatprep.subr.bf16.mxu0 %v4737_v1  ;;  %4315 = vmatmul.mubr.msk.bf16.vlgmr.msra.gmra.mxu1 %vm963_vm1, %v4934_v8 }
  0x6c   : > { %4327 = vmatpush3.bf16.msra.mxu1 %v4623_v25  ;;  %4330 = vmatprep.mubr.msk.bf16.mxu1 %vm4738_vm0, %v4737_v1  ;;  %v3992_v25 = vld [vmem:[%s4785_s3] ss:$0 sm:$0xff] }
  0x6d   : > { %4328 = vmatprep.subr.bf16.mxu1 %v4737_v1 }
  0x6e   : > { %4321 = vmatpush3.bf16.msra.mxu0 %v4622_v24 }
  0x6f   : > { %4334 = vmatprep.subr.bf16.mxu0 %v4737_v1 }
  0x70   : > { %4329 = vmatpush3.bf16.msra.mxu1 %v4624_v26 }
  0x71   : > { %4323 = vmatmul.mubr.msk.bf16.vlgmr.msra.gmra.mxu0 %vm963_vm1, %v4934_v8  ;;  %4340 = vmatprep.subr.bf16.mxu1 %v4737_v1 }
  0x72   : > { %4336 = vmatprep.mubr.msk.bf16.mxu0 %vm4738_vm0, %v4737_v1 }
  0x73   : > { %4331 = vmatmul.mubr.msk.bf16.vlgmr.msra.gmra.mxu1 %vm963_vm1, %v4934_v8 }
  0x74   : > { %4342 = vmatprep.mubr.msk.bf16.mxu1 %vm4738_vm0, %v4737_v1 }
 0x108   : > { %v1001_v27 = vpop.f32.mrf.mxu0 }
 0x109   : > { %v1058_v28 = vpop.f32.mrf.mxu1  ;;  %v1206_v63 = vadd.f32 %v3936_v53, %v1001_v27 }
 0x10a   : > { %v4244_v29 = vpop.f32.mrf.mxu0  ;;  %v1207_v0 = vadd.f32 %v3937_v54, %v1058_v28 }
 0x10b   : > { %v4252_v30 = vpop.f32.mrf.mxu1  ;;  %v1728_v9 = vpack.c.bf16 %v1206_v63, %v1206_v63  ;;  %v3993_v29 = vld [vmem:[%s4785_s3 + $0x1] ss:$0 sm:$0xff] }
 0x10c   : > { %v1004_v31 = vpop.f32.mrf.mxu0  ;;  %v1729_v10 = vpack.c.bf16 %v1207_v0, %v1207_v0 }
 0x10d   : > { %v1061_v32 = vpop.f32.mrf.mxu1 }
 0x10e   : > { %v4245_v33 = vpop.f32.mrf.mxu0 }
 0x10f   : > { %v4253_v34 = vpop.f32.mrf.mxu1 }
 0x110   : > { %v1115_v35 = vpop.f32.mrf.mxu0 }
 0x111   : > { %v1172_v36 = vpop.f32.mrf.mxu1  ;;  %v1208_v21 = vadd.f32 %v3938_v13, %v1115_v35 }
 0x112   : > { %v4260_v37 = vpop.f32.mrf.mxu0  ;;  %v1209_v22 = vadd.f32 %v3939_v14, %v1172_v36 }
 0x113   : > { %v4268_v38 = vpop.f32.mrf.mxu1  ;;  %v1730_v23 = vpack.c.bf16 %v1208_v21, %v1208_v21 }
 0x114   : > { %v1118_v39 = vpop.f32.mrf.mxu0  ;;  %v1731_v24 = vpack.c.bf16 %v1209_v22, %v1209_v22 }
 0x115   : > { %v1175_v40 = vpop.f32.mrf.mxu1 }
 0x116   : > { %v4261_v41 = vpop.f32.mrf.mxu0 }
 0x117   : > { %v4269_v42 = vpop.f32.mrf.mxu1 }
 0x118   : > { %v1260_v45 = vpop.f32.mrf.mxu0 }
 0x119   : > { %v1317_v46 = vpop.f32.mrf.mxu1  ;;  %v1465_v47 = vadd.f32 %v3964_v43, %v1260_v45 }
 0x11a   : > { %v1466_v48 = vadd.f32 %v3965_v44, %v1317_v46  ;;  %v4276_v49 = vpop.f32.mrf.mxu0 }
 0x11b   : > { %v4284_v50 = vpop.f32.mrf.mxu1  ;;  %v1732_v51 = vpack.c.bf16 %v1465_v47, %v1465_v47 }
 0x11c   : > { %v1733_v52 = vpack.c.bf16 %v1466_v48, %v1466_v48  ;;  %v1263_v55 = vpop.f32.mrf.mxu0 }
 0x11d   : > { %v1320_v56 = vpop.f32.mrf.mxu1  ;;  %v1741_v57 = vsel %vm1736_vm2, %v1732_v51, 0 }
 0x11e   : > { %v1787_v58 = vsel %vm1736_vm2, %v1733_v52, 0  ;;  %v4277_v59 = vpop.f32.mrf.mxu0  ;;  %4335 = vmatpush3.bf16.xpose.msra.mxu0 %v1741_v57 }
 0x11f   : > { %v4285_v60 = vpop.f32.mrf.mxu1  ;;  %4341 = vmatpush3.bf16.xpose.msra.mxu1 %v1787_v58  ;;  %4346 = vmatprep.subr.bf16.mxu0 %v4737_v1 }
 0x120   : > { %4352 = vmatprep.subr.bf16.mxu1 %v4737_v1  ;;  %v1374_v2 = vpop.f32.mrf.mxu0 }
 0x121   : > { %v1431_v3 = vpop.f32.mrf.mxu1  ;;  %v1467_v4 = vadd.f32 %v3966_v61, %v1374_v2 }
 0x122   : > { %v1468_v5 = vadd.f32 %v3967_v62, %v1431_v3  ;;  %v4292_v6 = vpop.f32.mrf.mxu0 }
 0x123   : > { %v4300_v8 = vpop.f32.mrf.mxu1  ;;  %v1734_v11 = vpack.c.bf16 %v1467_v4, %v1467_v4 }
 0x124   : > { %v1735_v12 = vpack.c.bf16 %v1468_v5, %v1468_v5  ;;  %v1377_v15 = vpop.f32.mrf.mxu0 }
 0x125   : > { %v1434_v16 = vpop.f32.mrf.mxu1  ;;  %v1833_v17 = vsel %vm1736_vm2, %v1734_v11, 0  ;;  %4337 = vmatmul.mubr.msk.bf16.vlgmr.msra.gmra.mxu0 %vm1736_vm2, %v1728_v9 }
 0x126   : > { %v1879_v18 = vsel %vm1736_vm2, %v1735_v12, 0  ;;  %4343 = vmatmul.mubr.msk.bf16.vlgmr.msra.gmra.mxu1 %vm1736_vm2, %v1729_v10  ;;  %v4293_v19 = vpop.f32.mrf.mxu0  ;;  %4347 = vmatpush3.bf16.xpose.msra.mxu0 %v1833_v17 }
 0x127   : > { %v4301_v20 = vpop.f32.mrf.mxu1  ;;  %4353 = vmatpush3.bf16.xpose.msra.mxu1 %v1879_v18  ;;  %4348 = vmatprep.mubr.msk.bf16.mxu0 %vm4738_vm0, %v4737_v1 }
 0x128   : > { %4354 = vmatprep.mubr.msk.bf16.mxu1 %vm4738_vm0, %v4737_v1  ;;  %4358 = vmatprep.subr.bf16.mxu0 %v4737_v1 }
 0x129   : > { %4364 = vmatprep.subr.bf16.mxu1 %v4737_v1  ;;  %v1519_v26 = vpop.f32.mrf.mxu0 }
 0x12a   : > { %v1724_v27 = vadd.f32 %v3992_v25, %v1519_v26 }
 0x12b   : > { %v4308_v28 = vpop.f32.mrf.mxu0  ;;  %v1576_v32 = vpop.f32.mrf.mxu1 }
 0x12c   : > { %v1973_v30 = vpack.c.bf16 %v1724_v27, %v1724_v27  ;;  %v1725_v34 = vadd.f32 %v3993_v29, %v1576_v32 }
 0x12d   : > { %4349 = vmatmul.mubr.msk.bf16.vlgmr.msra.gmra.mxu0 %vm1736_vm2, %v1730_v23  ;;  %v1522_v31 = vpop.f32.mrf.mxu0  ;;  %v4316_v36 = vpop.f32.mrf.mxu1 }
 0x12e   : > { %4355 = vmatmul.mubr.msk.bf16.vlgmr.msra.gmra.mxu1 %vm1736_vm2, %v1731_v24  ;;  %4360 = vmatprep.mubr.msk.bf16.mxu0 %vm4738_vm0, %v4737_v1  ;;  %v1982_v33 = vsel %vm1980_vm3, %v1973_v30, 0  ;;  %v1974_v37 = vpack.c.bf16 %v1725_v34, %v1725_v34  ;;  %v3995_v36 = vld [vmem:[%s4785_s3 + $0x3] ss:$0 sm:$0xff] }
 0x12f   : > { %4366 = vmatprep.mubr.msk.bf16.mxu1 %vm4738_vm0, %v4737_v1  ;;  %v4309_v35 = vpop.f32.mrf.mxu0  ;;  %4359 = vmatpush3.bf16.msra.mxu0 %v1982_v33  ;;  %v1579_v38 = vpop.f32.mrf.mxu1  ;;  %v3994_v33 = vld [vmem:[%s4785_s3 + $0x2] ss:$0 sm:$0xff] }
 0x130   : > { %4370 = vmatprep.subr.bf16.mxu0 %v4737_v1  ;;  %v2028_v40 = vsel %vm1980_vm3, %v1974_v37, 0 }
 0x131   : > { %v5054_v39 = vpop.f32.mrf.mxu0  ;;  %v4317_v41 = vpop.f32.mrf.mxu1  ;;  %4365 = vmatpush3.bf16.msra.mxu1 %v2028_v40 }
 0x132   : > { %4376 = vmatprep.subr.bf16.mxu1 %v4737_v1  ;;  %v1726_v35 = vadd.f32 %v3994_v33, %v5054_v39  ;;  %v4630_v33 = vld [vmem:[%s4810_s30 + $0x10] sm:$0xff]  }
 0x133   : > { %v4324_v42 = vpop.f32.mrf.mxu0  ;;  %v5058_v44 = vpop.f32.mrf.mxu1 }
 0x134   : > { %v1975_v40 = vpack.c.bf16 %v1726_v35, %v1726_v35  ;;  %v1727_v41 = vadd.f32 %v3995_v36, %v5058_v44 }
 0x135   : > { %v1636_v43 = vpop.f32.mrf.mxu0  ;;  %v4332_v46 = vpop.f32.mrf.mxu1 }
 0x136   : > { %v2074_v46 = vsel %vm1980_vm3, %v1975_v40, 0 }
 0x137   : > { %v4325_v45 = vpop.f32.mrf.mxu0  ;;  %v1693_v47 = vpop.f32.mrf.mxu1 }
 0x138   : > { %v1976_v47 = vpack.c.bf16 %v1727_v41, %v1727_v41  ;;  %v4009_v41 = vld [vmem:[%s4805_s24] ss:$0 sm:$0xff] }
 0x139   : > { %v4333_v48 = vpop.f32.mrf.mxu1 }
 0x13a   : > { %v2120_v44 = vsel %vm1980_vm3, %v1976_v47, 0 }
 0x1e5   : > { %v1777_v49 = vpop.f32.mrf.mxu0 }
 0x1e6   : > { %v1823_v50 = vpop.f32.mrf.mxu1  ;;  %v1921_v51 = vmul.f32 0.35355338, %v1777_v49 }
 0x1e7   : > { %v4338_v52 = vpop.f32.mrf.mxu0  ;;  %v1922_v54 = vmul.f32 0.35355338, %v1823_v50 }
 0x1e8   : > { %v4344_v53 = vpop.f32.mrf.mxu1  ;;  %v1925_v55 = vsel %vm1736_vm2, %v1921_v51, -inf }
 0x1e9   : > { %1926 = vmax.xlane.f32.xlu0 %v1925_v55  ;;  %v1780_v57 = vpop.f32.mrf.mxu0  ;;  %v1928_v60 = vsel %vm1736_vm2, %v1922_v54, -inf  ;;  %v4625_v55 = vld [vmem:[%s4790_s8 + $0x8] sm:$0xff]  }
 0x1ea   : > { %v1826_v56 = vpop.f32.mrf.mxu1 }
 0x1eb   : > { %v4339_v58 = vpop.f32.mrf.mxu0  ;;  %v4626_v56 = vld [vmem:[%s4790_s8] sm:$0xff]  }
 0x1ec   : > { %v4345_v59 = vpop.f32.mrf.mxu1 }
 0x1ed   : > { %1929 = vmax.xlane.f32.xlu0 %v1928_v60  ;;  %v1869_v62 = vpop.f32.mrf.mxu0 }
 0x1ee   : > { %v1915_v61 = vpop.f32.mrf.mxu1  ;;  %v1923_v63 = vmul.f32 0.35355338, %v1869_v62 }
 0x1ef   : > { %v4350_v0 = vpop.f32.mrf.mxu0  ;;  %v1924_v3 = vmul.f32 0.35355338, %v1915_v61 }
 0x1f0   : > { %v4356_v2 = vpop.f32.mrf.mxu1  ;;  %v1931_v4 = vsel %vm1736_vm2, %v1923_v63, -inf }
 0x1f1   : > { %1932 = vmax.xlane.f32.xlu1 %v1931_v4  ;;  %v1872_v6 = vpop.f32.mrf.mxu0  ;;  %v1934_v10 = vsel %vm1736_vm2, %v1924_v3, -inf }
 0x1f2   : > { %v1918_v5 = vpop.f32.mrf.mxu1 }
 0x1f3   : > { %v4351_v8 = vpop.f32.mrf.mxu0 }
 0x1f4   : > { %v4357_v9 = vpop.f32.mrf.mxu1 }
 0x1f5   : > { %1935 = vmax.xlane.f32.xlu1 %v1934_v10 }
 0x272   : > { %v1927_v11 = vpop.xlane.xlu0 %1926 }
 0x273   : > { %v1937_v12 = vsub.f32 %v1921_v51, %v1927_v11 }
 0x275   : > { %v1941_v13 = vmul.f32 1.442695, %v1937_v12 }
 0x276   : > { %v1930_v14 = vpop.xlane.xlu0 %1929 }
 0x277   : > { %4657 = vpow2.f32 %v1941_v13  ;;  %v1938_v15 = vsub.f32 %v1922_v54, %v1930_v14 }
 0x279   : > { %v1943_v16 = vmul.f32 1.442695, %v1938_v15 }
 0x27a   : > { %v1933_v17 = vpop.xlane.xlu1 %1932 }
 0x27b   : > { %4659 = vpow2.f32 %v1943_v16  ;;  %v1939_v18 = vsub.f32 %v1923_v63, %v1933_v17 }
 0x27d   : > { %v1945_v19 = vmul.f32 1.442695, %v1939_v18  ;;  %v4004_v18 = vld [vmem:[%s4795_s14] ss:$0 sm:$0xff] }
 0x27e   : > { %v1936_v20 = vpop.xlane.xlu1 %1935 }
 0x27f   : > { %4661 = vpow2.f32 %v1945_v19  ;;  %v1940_v21 = vsub.f32 %v1924_v3, %v1936_v20 }
 0x281   : > { %v1947_v22 = vmul.f32 1.442695, %v1940_v21 }
 0x283   : > { %4663 = vpow2.f32 %v1947_v22 }
 0x284   : > { %v4658_v23 = vpop.eup %4657 }
 0x285   : > { %v1949_v24 = vsel %vm1736_vm2, %v4658_v23, 0.0 }
 0x286   : > { %1950 = vadd.xlane.f32.xlu0 %v1949_v24 }
 0x288   : > { %v4660_v25 = vpop.eup %4659 }
 0x289   : > { %v1952_v26 = vsel %vm1736_vm2, %v4660_v25, 0.0 }
 0x28a   : > { %1953 = vadd.xlane.f32.xlu1 %v1952_v26 }
 0x28c   : > { %v4662_v27 = vpop.eup %4661 }
 0x28d   : > { %v1955_v28 = vsel %vm1736_vm2, %v4662_v27, 0.0 }
 0x28e   : > { %1956 = vadd.xlane.f32.xlu0 %v1955_v28 }
 0x290   : > { %v4664_v29 = vpop.eup %4663 }
 0x291   : > { %v1958_v30 = vsel %vm1736_vm2, %v4664_v29, 0.0 }
 0x292   : > { %1959 = vadd.xlane.f32.xlu1 %v1958_v30 }
 0x30f   : > { %v1951_v31 = vpop.xlane.xlu0 %1950 }
 0x310   : > { %4665 = vrcp.f32 %v1951_v31  ;;  %v4627_v31 = vld [vmem:[%s4810_s30 + $0x8] sm:$0xff]  }
 0x313   : > { %v1954_v32 = vpop.xlane.xlu1 %1953 }
 0x314   : > { %4667 = vrcp.f32 %v1954_v32  ;;  %v4628_v32 = vld [vmem:[%s4810_s30 + $0x18] sm:$0xff]  }
 0x317   : > { %v1957_v34 = vpop.xlane.xlu0 %1956 }
 0x318   : > { %4669 = vrcp.f32 %v1957_v34 }
 0x31b   : > { %v1960_v37 = vpop.xlane.xlu1 %1959 }
 0x31c   : > { %4671 = vrcp.f32 %v1960_v37 }
 0x31d   : > { %v4666_v38 = vpop.eup %4665 }
 0x31e   : > { %v1962_v42 = vmul.f32 %v4666_v38, %v4658_v23  ;;  %v4008_v38 = vld [vmem:[%s4800_s19] ss:$0 sm:$0xff] }
 0x320   : > { %v1969_v43 = vpack.c.bf16 %v1962_v42, %v1962_v42 }
 0x321   : > { %v4668_v45 = vpop.eup %4667 }
 0x322   : > { %4361 = vmatmul.mubr.msk.bf16.vlgmr.msra.gmra.mxu0 %vm1736_vm2, %v1969_v43  ;;  %v1964_v48 = vmul.f32 %v4668_v45, %v4660_v25  ;;  %v4631_v45 = vld [vmem:[%s4810_s30 + $0x28] sm:$0xff]  }
 0x323   : > { %4371 = vmatpush3.bf16.msra.mxu0 %v2074_v46  ;;  %4372 = vmatprep.mubr.msk.bf16.mxu0 %vm4738_vm0, %v4737_v1  ;;  %v4632_v46 = vld [vmem:[%s4810_s30 + $0x38] sm:$0xff]  }
 0x324   : > { %v1970_v39 = vpack.c.bf16 %v1964_v48, %v1964_v48  ;;  %4382 = vmatprep.subr.bf16.mxu0 %v4737_v1  ;;  %v4633_v48 = vld [vmem:[%s4810_s30 + $0x20] sm:$0xff]  }
 0x325   : > { %v4670_v49 = vpop.eup %4669 }
 0x326   : > { %4367 = vmatmul.mubr.msk.bf16.vlgmr.msra.gmra.mxu1 %vm1736_vm2, %v1970_v39  ;;  %v1966_v50 = vmul.f32 %v4670_v49, %v4662_v27  ;;  %v4634_v39 = vld [vmem:[%s4810_s30 + $0x30] sm:$0xff]   ;;  %v4635_v49 = vld [vmem:[%s4815_s6 + $0x8] sm:$0xff]  }
 0x327   : > { %4377 = vmatpush3.bf16.msra.mxu1 %v2120_v44  ;;  %4378 = vmatprep.mubr.msk.bf16.mxu1 %vm4738_vm0, %v4737_v1  ;;  %v4636_v44 = vld [vmem:[%s4815_s6 + $0x18] sm:$0xff]  }
 0x328   : > { %v1971_v51 = vpack.c.bf16 %v1966_v50, %v1966_v50  ;;  %4390 = vmatprep.subr.bf16.mxu1 %v4737_v1  ;;  %v4637_v50 = vld [vmem:[%s4815_s6] sm:$0xff]  }
 0x329   : > { %v4672_v52 = vpop.eup %4671 }
 0x32a   : > { %4373 = vmatmul.mubr.msk.bf16.vlgmr.msra.gmra.mxu0 %vm1736_vm2, %v1971_v51  ;;  %v1968_v53 = vmul.f32 %v4672_v52, %v4664_v29  ;;  %v4638_v51 = vld [vmem:[%s4815_s6 + $0x10] sm:$0xff]   ;;  %v945_v52 = vld [vmem:[%s938_s28] sm:$0xff]  ;;  %s5337_s28 = sld [smem:[#allocation11_spill]] }
 0x32b   : > { %4386 = vmatprep.mubr.msk.bf16.mxu0 %vm4738_vm0, %v4737_v1  ;;  %4383 = vmatpush3.bf16.msra.mxu0 %v4625_v55  ;;  %v4640_v55 = vld [vmem:[%s4815_s6 + $0x38] sm:$0xff]  }
 0x32c   : > { %v1972_v54 = vpack.c.bf16 %v1968_v53, %v1968_v53  ;;  %4384 = vmatprep.subr.bf16.mxu0 %v4737_v1  ;;  %v2278_v53 = vpack.c.bf16 %v945_v52, %v945_v52  ;;  %v4036_v52 = vld [vmem:[%s5329_s7 + $0x2] ss:$0 sm:$0xff] }
 0x32e   : > { %4379 = vmatmul.mubr.msk.bf16.vlgmr.msra.gmra.mxu1 %vm1736_vm2, %v1972_v54  ;;  %v4639_v54 = vld [vmem:[%s4815_s6 + $0x28] sm:$0xff]  }
 0x32f   : > { %4394 = vmatprep.mubr.msk.bf16.mxu1 %vm4738_vm0, %v4737_v1  ;;  %4385 = vmatpush3.bf16.msra.mxu0 %v4626_v56  ;;  %v4641_v56 = vld [vmem:[%s4815_s6 + $0x20] sm:$0xff]  }
 0x330   : > { %4398 = vmatprep.subr.bf16.mxu0 %v4737_v1  ;;  %4391 = vmatpush3.bf16.msra.mxu1 %v4627_v31  ;;  %v4035_v31 = vld [vmem:[%s5329_s7 + $0x1] ss:$0 sm:$0xff] }
 0x331   : > { %4392 = vmatprep.subr.bf16.mxu1 %v4737_v1 }
 0x3e2   : > { %v2018_v57 = vpop.f32.mrf.mxu0 }
 0x3e4   : > { %v4362_v58 = vpop.f32.mrf.mxu0 }
 0x3e5   : > { %v4643_v58 = vld [vmem:[%s5327_s1 + $0x8] sm:$0xff]  }
 0x3e6   : > { %v2021_v59 = vpop.f32.mrf.mxu0  ;;  %v2064_v60 = vpop.f32.mrf.mxu1 }
 0x3e7   : > { %2163 = vrot.lane.b32.xlu0 %v2064_v60, %s4739_s22  ;;  %v4644_v59 = vld [vmem:[%s5327_s1] sm:$0xff]   ;;  %v4645_v60 = vld [vmem:[%s5327_s1 + $0x18] sm:$0xff]  }
 0x3e8   : > { %v4363_v61 = vpop.f32.mrf.mxu0  ;;  %v4368_v62 = vpop.f32.mrf.mxu1 }
 0x3e9   : > { %v4646_v61 = vld [vmem:[%s5327_s1 + $0x10] sm:$0xff]   ;;  %v4647_v62 = vld [vmem:[%s5327_s1 + $0x28] sm:$0xff]  }
 0x3ea   : > { %v2067_v63 = vpop.f32.mrf.mxu1  ;;  %v2110_v0 = vpop.f32.mrf.mxu0 }
 0x3eb   : > { %2167 = vrot.lane.b32.xlu1 %v2110_v0, %s4740_s23  ;;  %v4648_v63 = vld [vmem:[%s5327_s1 + $0x20] sm:$0xff]   ;;  %v4649_v0 = vld [vmem:[%s5327_s1 + $0x38] sm:$0xff]  }
 0x3ec   : > { %v4369_v2 = vpop.f32.mrf.mxu1  ;;  %v4374_v3 = vpop.f32.mrf.mxu0 }
 0x3ed   : > { %v4650_v2 = vld [vmem:[%s5327_s1 + $0x30] sm:$0xff]  }
 0x3ee   : > { %v2113_v4 = vpop.f32.mrf.mxu0  ;;  %v2156_v5 = vpop.f32.mrf.mxu1 }
 0x3ef   : > { %2171 = vrot.lane.b32.xlu1 %v2156_v5, %s4741_s26 }
 0x3f0   : > { %v4375_v6 = vpop.f32.mrf.mxu0  ;;  %v4380_v8 = vpop.f32.mrf.mxu1 }
 0x3f2   : > { %v2159_v9 = vpop.f32.mrf.mxu1 }
 0x3f4   : > { %v4381_v10 = vpop.f32.mrf.mxu1 }
 0x459   : > { %v2164_v11 = vpop.permute.xlu0 %2163 }
 0x45a   : > { %v2174_v13 = vsel %vm1736_vm2, %v2018_v57, %v2164_v11  ;;  %v4642_v57 = vld [vmem:[%s4815_s6 + $0x30] sm:$0xff]  }
 0x45d   : > { %v2168_v12 = vpop.permute.xlu1 %2167 }
 0x45e   : > { %v2176_v14 = vsel %vm2175_vm4, %v2174_v13, %v2168_v12 }
 0x461   : > { %v2172_v15 = vpop.permute.xlu1 %2171 }
 0x462   : > { %v2178_v16 = vsel %vm2177_vm5, %v2176_v14, %v2172_v15 }
 0x463   : > { %v2179_v17 = vpack.c.bf16 %v2178_v16, %v2178_v16 }
 0x465   : > { %4387 = vmatmul.mubr.msk.bf16.vlgmr.msra.gmra.mxu0 %vm963_vm1, %v2179_v17 }
 0x466   : > { %4402 = vmatprep.mubr.msk.bf16.mxu0 %vm4738_vm0, %v4737_v1  ;;  %4399 = vmatpush3.bf16.msra.mxu0 %v4628_v32 }
 0x467   : > { %4400 = vmatprep.subr.bf16.mxu0 %v4737_v1 }
 0x46a   : > { %4401 = vmatpush3.bf16.msra.mxu0 %v4630_v33 }
 0x46b   : > { %4414 = vmatprep.subr.bf16.mxu0 %v4737_v1 }
 0x525   : > { %v2240_v19 = vpop.f32.mrf.mxu0 }
 0x526   : > { %v2241_v20 = vadd.f32 %v4004_v18, %v2240_v19 }
 0x527   : > { %v4388_v21 = vpop.f32.mrf.mxu0 }
 0x528   : > { %v2246_v22 = vadd.f32 %v2241_v20, %v4929_v7  ;;  %v4629_v7 = vld [vmem:[%s4810_s30] sm:$0xff]  }
 0x529   : > { %v2243_v23 = vpop.f32.mrf.mxu0  ;;  %4393 = vmatpush3.bf16.msra.mxu1 %v4629_v7  ;;  %v4062_v20 = vld [vmem:[%s5328_s2] ss:$0 sm:$0xff]  ;;  %v4063_v21 = vld [vmem:[%s5328_s2 + $0x1] ss:$0 sm:$0xff] }
 0x52a   : > { %v2249_v24 = vsel %vm963_vm1, %v2246_v22, 0.0  ;;  %4406 = vmatprep.subr.bf16.mxu1 %v4737_v1 }
 0x52b   : > { %2250 = vadd.xlane.f32.xlu1 %v2249_v24  ;;  %v4389_v25 = vpop.f32.mrf.mxu0 }
 0x5b4   : > { %v2251_v26 = vpop.xlane.xlu1 %2250 }
 0x5b5   : > { %v2253_v27 = vmul.f32 0.03125, %v2251_v26 }
 0x5b7   : > { %v2254_v28 = vsub.f32 %v2246_v22, %v2253_v27 }
 0x5b9   : > { %v2255_v29 = vmul.f32 %v2254_v28, %v2254_v28 }
 0x5bb   : > { %v2256_v30 = vsel %vm963_vm1, %v2255_v29, 0.0 }
 0x5bc   : > { %2257 = vadd.xlane.f32.xlu0 %v2256_v30  ;;  %v4034_v30 = vld [vmem:[%s5329_s7] ss:$0 sm:$0xff] }
 0x645   : > { %v2258_v34 = vpop.xlane.xlu0 %2257 }
 0x646   : > { %v2259_v35 = vmul.f32 0.03125, %v2258_v34 }
 0x648   : > { %v2260_v36 = vadd.f32 1e-05, %v2259_v35 }
 0x64a   : > { %4673 = vrsqrt.f32 %v2260_v36 }
 0x657   : > { %v4674_v37 = vpop.eup %4673 }
 0x658   : > { %v2262_v40 = vmul.f32 %v4674_v37, %v2254_v28  ;;  %v4064_v37 = vld [vmem:[%s5328_s2 + $0x2] ss:$0 sm:$0xff] }
 0x65a   : > { %v2269_v42 = vmul.f32 %v4008_v38, %v2262_v40  ;;  %v4065_v38 = vld [vmem:[%s5328_s2 + $0x3] ss:$0 sm:$0xff] }
 0x65c   : > { %v5115_v43 = vadd.f32 %v4009_v41, %v2269_v42 }
 0x65e   : > { %v2277_v47 = vpack.c.bf16 %v5115_v43, %v5115_v43 }
 0x660   : > { %4395 = vmatmul.mubr.msk.bf16.vlgmr.msra.gmra.mxu1 %vm963_vm1, %v2277_v47  ;;  %4403 = vmatmul.mubr.msk.bf16.vlgmr.msra.gmra.mxu0 %vm963_vm1, %v2277_v47 }
 0x661   : > { %4407 = vmatpush3.bf16.msra.mxu1 %v4631_v45  ;;  %4415 = vmatpush3.bf16.msra.mxu0 %v4632_v46 }
 0x662   : > { %4408 = vmatprep.subr.bf16.mxu1 %v4737_v1  ;;  %4416 = vmatprep.subr.bf16.mxu0 %v4737_v1 }
 0x663   : > { %4410 = vmatprep.mubr.msk.bf16.mxu1 %vm4738_vm0, %v4737_v1  ;;  %4418 = vmatprep.mubr.msk.bf16.mxu0 %vm4738_vm0, %v4737_v1 }
 0x665   : > { %4409 = vmatpush3.bf16.msra.mxu1 %v4633_v48  ;;  %4417 = vmatpush3.bf16.msra.mxu0 %v4634_v39 }
 0x666   : > { %4422 = vmatprep.subr.bf16.mxu1 %v4737_v1  ;;  %4430 = vmatprep.subr.bf16.mxu0 %v4737_v1 }
 0x668   : > { %4411 = vmatmul.mubr.msk.bf16.vlgmr.msra.gmra.mxu1 %vm963_vm1, %v2277_v47  ;;  %4419 = vmatmul.mubr.msk.bf16.vlgmr.msra.gmra.mxu0 %vm963_vm1, %v2277_v47 }
 0x669   : > { %4423 = vmatpush3.bf16.msra.mxu1 %v4635_v49  ;;  %4431 = vmatpush3.bf16.msra.mxu0 %v4636_v44 }
 0x66a   : > { %4424 = vmatprep.subr.bf16.mxu1 %v4737_v1  ;;  %4432 = vmatprep.subr.bf16.mxu0 %v4737_v1 }
 0x66b   : > { %4426 = vmatprep.mubr.msk.bf16.mxu1 %vm4738_vm0, %v4737_v1  ;;  %4434 = vmatprep.mubr.msk.bf16.mxu0 %vm4738_vm0, %v4737_v1 }
 0x66d   : > { %4425 = vmatpush3.bf16.msra.mxu1 %v4637_v50  ;;  %4433 = vmatpush3.bf16.msra.mxu0 %v4638_v51 }
 0x66e   : > { %4438 = vmatprep.subr.bf16.mxu1 %v4737_v1  ;;  %4446 = vmatprep.subr.bf16.mxu0 %v4737_v1 }
 0x670   : > { %4427 = vmatmul.mubr.msk.bf16.vlgmr.msra.gmra.mxu1 %vm963_vm1, %v2278_v53  ;;  %4435 = vmatmul.mubr.msk.bf16.vlgmr.msra.gmra.mxu0 %vm963_vm1, %v2278_v53 }
 0x671   : > { %4439 = vmatpush3.bf16.msra.mxu1 %v4639_v54  ;;  %4447 = vmatpush3.bf16.msra.mxu0 %v4640_v55 }
 0x672   : > { %4440 = vmatprep.subr.bf16.mxu1 %v4737_v1  ;;  %4448 = vmatprep.subr.bf16.mxu0 %v4737_v1 }
 0x673   : > { %4442 = vmatprep.mubr.msk.bf16.mxu1 %vm4738_vm0, %v4737_v1  ;;  %4450 = vmatprep.mubr.msk.bf16.mxu0 %vm4738_vm0, %v4737_v1 }
 0x675   : > { %4441 = vmatpush3.bf16.msra.mxu1 %v4641_v56  ;;  %4449 = vmatpush3.bf16.msra.mxu0 %v4642_v57 }
 0x676   : > { %4454 = vmatprep.subr.bf16.mxu1 %v4737_v1  ;;  %4462 = vmatprep.subr.bf16.mxu0 %v4737_v1 }
 0x678   : > { %4443 = vmatmul.mubr.msk.bf16.vlgmr.msra.gmra.mxu1 %vm963_vm1, %v2278_v53  ;;  %4451 = vmatmul.mubr.msk.bf16.vlgmr.msra.gmra.mxu0 %vm963_vm1, %v2278_v53 }
 0x679   : > { %4458 = vmatprep.mubr.msk.bf16.mxu1 %vm4738_vm0, %v4737_v1  ;;  %4466 = vmatprep.mubr.msk.bf16.mxu0 %vm4738_vm0, %v4737_v1 }
 0x67a   : > { %4455 = vmatpush3.bf16.msra.mxu1 %v4643_v58  ;;  %4463 = vmatpush3.bf16.msra.mxu0 %v4645_v60 }
 0x67b   : > { %4456 = vmatprep.subr.bf16.mxu1 %v4737_v1  ;;  %4464 = vmatprep.subr.bf16.mxu0 %v4737_v1 }
 0x67e   : > { %4457 = vmatpush3.bf16.msra.mxu1 %v4644_v59  ;;  %4465 = vmatpush3.bf16.msra.mxu0 %v4646_v61 }
 0x67f   : > { %4470 = vmatprep.subr.bf16.mxu1 %v4737_v1  ;;  %4478 = vmatprep.subr.bf16.mxu0 %v4737_v1 }
 0x681   : > { %4459 = vmatmul.mubr.msk.bf16.vlgmr.msra.gmra.mxu1 %vm963_vm1, %v2278_v53  ;;  %4467 = vmatmul.mubr.msk.bf16.vlgmr.msra.gmra.mxu0 %vm963_vm1, %v2278_v53 }
 0x682   : > { %4471 = vmatpush3.bf16.msra.mxu1 %v4647_v62  ;;  %4474 = vmatprep.mubr.msk.bf16.mxu1 %vm4738_vm0, %v4737_v1 }
 0x683   : > { %4472 = vmatprep.subr.bf16.mxu1 %v4737_v1  ;;  %4479 = vmatpush3.bf16.msra.mxu0 %v4649_v0  ;;  %v4090_v0 = vld [vmem:[%s5330_s10] ss:$0 sm:$0xff] }
 0x684   : > { %4480 = vmatprep.subr.bf16.mxu0 %v4737_v1  ;;  %4482 = vmatprep.mubr.msk.bf16.mxu0 %vm4738_vm0, %v4737_v1 }
 0x686   : > { %4473 = vmatpush3.bf16.msra.mxu1 %v4648_v63 }
 0x687   : > { %4486 = vmatprep.subr.bf16.mxu1 %v4737_v1  ;;  %4481 = vmatpush3.bf16.msra.mxu0 %v4650_v2 }
 0x688   : > { %4492 = vmatprep.subr.bf16.mxu0 %v4737_v1 }
 0x689   : > { %4475 = vmatmul.mubr.msk.bf16.vlgmr.msra.gmra.mxu1 %vm963_vm1, %v2278_v53 }
 0x68a   : > { %4488 = vmatprep.mubr.msk.bf16.mxu1 %vm4738_vm0, %v4737_v1  ;;  %4483 = vmatmul.mubr.msk.bf16.vlgmr.msra.gmra.mxu0 %vm963_vm1, %v2278_v53  ;;  %v4037_v53 = vld [vmem:[%s5329_s7 + $0x3] ss:$0 sm:$0xff] }
 0x68b   : > { %4494 = vmatprep.mubr.msk.bf16.mxu0 %vm4738_vm0, %v4737_v1 }
 0x720   : > { %v2332_v3 = vpop.f32.mrf.mxu1  ;;  %v2389_v4 = vpop.f32.mrf.mxu0 }
 0x721   : > { %v2537_v40 = vadd.f32 %v4034_v30, %v2332_v3  ;;  %v2538_v41 = vadd.f32 %v4035_v31, %v2389_v4 }
 0x722   : > { %v4396_v5 = vpop.f32.mrf.mxu1  ;;  %v4404_v6 = vpop.f32.mrf.mxu0 }
 0x723   : > { %v3062_v49 = vpack.c.bf16 %v2537_v40, %v2537_v40  ;;  %v3063_v44 = vpack.c.bf16 %v2538_v41, %v2538_v41  ;;  %v4091_v5 = vld [vmem:[%s5330_s10 + $0x1] ss:$0 sm:$0xff] }
 0x724   : > { %v2335_v8 = vpop.f32.mrf.mxu1  ;;  %v2392_v9 = vpop.f32.mrf.mxu0 }
 0x726   : > { %v4397_v10 = vpop.f32.mrf.mxu1  ;;  %v4405_v11 = vpop.f32.mrf.mxu0 }
 0x728   : > { %v2446_v12 = vpop.f32.mrf.mxu1  ;;  %v2503_v13 = vpop.f32.mrf.mxu0 }
 0x729   : > { %v2539_v60 = vadd.f32 %v4036_v52, %v2446_v12  ;;  %v2540_v61 = vadd.f32 %v4037_v53, %v2503_v13 }
 0x72a   : > { %v4412_v14 = vpop.f32.mrf.mxu1  ;;  %v4420_v15 = vpop.f32.mrf.mxu0 }
 0x72b   : > { %v3064_v62 = vpack.c.bf16 %v2539_v60, %v2539_v60  ;;  %v3065_v63 = vpack.c.bf16 %v2540_v61, %v2540_v61 }
 0x72c   : > { %v2449_v16 = vpop.f32.mrf.mxu1  ;;  %v2506_v17 = vpop.f32.mrf.mxu0 }
 0x72e   : > { %v4413_v18 = vpop.f32.mrf.mxu1  ;;  %v4421_v19 = vpop.f32.mrf.mxu0 }
 0x730   : > { %v2594_v22 = vpop.f32.mrf.mxu1  ;;  %v2651_v23 = vpop.f32.mrf.mxu0 }
 0x731   : > { %v2799_v24 = vadd.f32 %v4062_v20, %v2594_v22  ;;  %v2800_v25 = vadd.f32 %v4063_v21, %v2651_v23 }
 0x732   : > { %v4428_v26 = vpop.f32.mrf.mxu1  ;;  %v4436_v27 = vpop.f32.mrf.mxu0 }
 0x733   : > { %v3066_v28 = vpack.c.bf16 %v2799_v24, %v2799_v24  ;;  %v3067_v29 = vpack.c.bf16 %v2800_v25, %v2800_v25 }
 0x734   : > { %v2597_v32 = vpop.f32.mrf.mxu1  ;;  %v2654_v7 = vpop.f32.mrf.mxu0 }
 0x735   : > { %v3074_v33 = vsel %vm1736_vm2, %v3066_v28, 0  ;;  %v3120_v34 = vsel %vm1736_vm2, %v3067_v29, 0 }
 0x736   : > { %v4429_v35 = vpop.f32.mrf.mxu1  ;;  %v4437_v36 = vpop.f32.mrf.mxu0  ;;  %4487 = vmatpush3.bf16.xpose.msra.mxu1 %v3074_v33  ;;  %4493 = vmatpush3.bf16.xpose.msra.mxu0 %v3120_v34 }
 0x737   : > { %4498 = vmatprep.subr.bf16.mxu1 %v4737_v1  ;;  %4504 = vmatprep.subr.bf16.mxu0 %v4737_v1 }
 0x738   : > { %v2708_v42 = vpop.f32.mrf.mxu1  ;;  %v2765_v45 = vpop.f32.mrf.mxu0 }
 0x739   : > { %v2801_v46 = vadd.f32 %v4064_v37, %v2708_v42  ;;  %v2802_v47 = vadd.f32 %v4065_v38, %v2765_v45 }
 0x73a   : > { %v4444_v48 = vpop.f32.mrf.mxu1  ;;  %v4452_v39 = vpop.f32.mrf.mxu0 }
 0x73b   : > { %v3068_v50 = vpack.c.bf16 %v2801_v46, %v2801_v46  ;;  %v3069_v51 = vpack.c.bf16 %v2802_v47, %v2802_v47 }
 0x73c   : > { %v2711_v54 = vpop.f32.mrf.mxu1  ;;  %v2768_v55 = vpop.f32.mrf.mxu0 }
 0x73d   : > { %v3166_v56 = vsel %vm1736_vm2, %v3068_v50, 0  ;;  %v3212_v57 = vsel %vm1736_vm2, %v3069_v51, 0  ;;  %4489 = vmatmul.mubr.msk.bf16.vlgmr.msra.gmra.mxu1 %vm1736_vm2, %v3062_v49  ;;  %4495 = vmatmul.mubr.msk.bf16.vlgmr.msra.gmra.mxu0 %vm1736_vm2, %v3063_v44 }
 0x73e   : > { %v4445_v58 = vpop.f32.mrf.mxu1  ;;  %v4453_v59 = vpop.f32.mrf.mxu0  ;;  %4499 = vmatpush3.bf16.xpose.msra.mxu1 %v3166_v56  ;;  %4505 = vmatpush3.bf16.xpose.msra.mxu0 %v3212_v57 }
 0x73f   : > { %4500 = vmatprep.mubr.msk.bf16.mxu1 %vm4738_vm0, %v4737_v1  ;;  %4506 = vmatprep.mubr.msk.bf16.mxu0 %vm4738_vm0, %v4737_v1 }
 0x740   : > { %4510 = vmatprep.subr.bf16.mxu1 %v4737_v1  ;;  %4516 = vmatprep.subr.bf16.mxu0 %v4737_v1 }
 0x741   : > { %v2853_v2 = vpop.f32.mrf.mxu1  ;;  %v2910_v9 = vpop.f32.mrf.mxu0 }
 0x742   : > { %v3058_v3 = vadd.f32 %v4090_v0, %v2853_v2  ;;  %v3059_v11 = vadd.f32 %v4091_v5, %v2910_v9 }
 0x743   : > { %v4460_v4 = vpop.f32.mrf.mxu1  ;;  %v4468_v13 = vpop.f32.mrf.mxu0 }
 0x744   : > { %v3306_v6 = vpack.c.bf16 %v3058_v3, %v3058_v3  ;;  %v3307_v14 = vpack.c.bf16 %v3059_v11, %v3059_v11 }
 0x745   : > { %4501 = vmatmul.mubr.msk.bf16.vlgmr.msra.gmra.mxu1 %vm1736_vm2, %v3064_v62  ;;  %4507 = vmatmul.mubr.msk.bf16.vlgmr.msra.gmra.mxu0 %vm1736_vm2, %v3065_v63  ;;  %v2856_v8 = vpop.f32.mrf.mxu1  ;;  %v2913_v15 = vpop.f32.mrf.mxu0 }
 0x746   : > { %4512 = vmatprep.mubr.msk.bf16.mxu1 %vm4738_vm0, %v4737_v1  ;;  %4518 = vmatprep.mubr.msk.bf16.mxu0 %vm4738_vm0, %v4737_v1  ;;  %v3314_v10 = vsel %vm1980_vm3, %v3306_v6, 0  ;;  %v3360_v17 = vsel %vm1980_vm3, %v3307_v14, 0  ;;  %v4093_v14 = vld [vmem:[%s5330_s10 + $0x3] ss:$0 sm:$0xff] }
 0x747   : > { %v4461_v12 = vpop.f32.mrf.mxu1  ;;  %4511 = vmatpush3.bf16.msra.mxu1 %v3314_v10  ;;  %v4469_v18 = vpop.f32.mrf.mxu0  ;;  %4517 = vmatpush3.bf16.msra.mxu0 %v3360_v17  ;;  %v4092_v10 = vld [vmem:[%s5330_s10 + $0x2] ss:$0 sm:$0xff] }
 0x748   : > { %4522 = vmatprep.subr.bf16.mxu1 %v4737_v1  ;;  %4528 = vmatprep.subr.bf16.mxu0 %v4737_v1 }
 0x749   : > { %v5229_v16 = vpop.f32.mrf.mxu1 }
 0x74a   : > { %v5233_v21 = vpop.f32.mrf.mxu0  ;;  %v3060_v13 = vadd.f32 %v4092_v10, %v5229_v16 }
 0x74b   : > { %v4476_v19 = vpop.f32.mrf.mxu1  ;;  %v3061_v18 = vadd.f32 %v4093_v14, %v5233_v21 }
 0x74c   : > { %v4484_v23 = vpop.f32.mrf.mxu0  ;;  %v3308_v17 = vpack.c.bf16 %v3060_v13, %v3060_v13 }
 0x74d   : > { %v2970_v20 = vpop.f32.mrf.mxu1 }
 0x74e   : > { %v3027_v24 = vpop.f32.mrf.mxu0  ;;  %v3406_v23 = vsel %vm1980_vm3, %v3308_v17, 0 }
 0x74f   : > { %v4477_v22 = vpop.f32.mrf.mxu1  ;;  %v3309_v24 = vpack.c.bf16 %v3061_v18, %v3061_v18 }
 0x750   : > { %v4485_v25 = vpop.f32.mrf.mxu0 }
 0x751   : > { %v3452_v21 = vsel %vm1980_vm3, %v3309_v24, 0 }
 0x7fd   : > { %v3110_v26 = vpop.f32.mrf.mxu1  ;;  %v3156_v27 = vpop.f32.mrf.mxu0 }
 0x7fe   : > { %v3254_v28 = vmul.f32 0.35355338, %v3110_v26  ;;  %v3255_v31 = vmul.f32 0.35355338, %v3156_v27 }
 0x7ff   : > { %v4490_v29 = vpop.f32.mrf.mxu1  ;;  %v4496_v30 = vpop.f32.mrf.mxu0 }
 0x800   : > { %v3258_v32 = vsel %vm1736_vm2, %v3254_v28, -inf  ;;  %v3261_v36 = vsel %vm1736_vm2, %v3255_v31, -inf }
 0x801   : > { %3259 = vmax.xlane.f32.xlu0 %v3258_v32  ;;  %v3113_v7 = vpop.f32.mrf.mxu1  ;;  %v3159_v33 = vpop.f32.mrf.mxu0  ;;  %v4651_v32 = vld [vmem:[%s5331_s11 + $0x8] sm:$0xff]  }
 0x802   : > { %v4652_v7 = vld [vmem:[%s5331_s11] sm:$0xff]  }
 0x803   : > { %v4491_v34 = vpop.f32.mrf.mxu1  ;;  %v4497_v35 = vpop.f32.mrf.mxu0 }
 0x805   : > { %v3202_v37 = vpop.f32.mrf.mxu1  ;;  %3262 = vmax.xlane.f32.xlu0 %v3261_v36  ;;  %v3248_v38 = vpop.f32.mrf.mxu0 }
 0x806   : > { %v3256_v40 = vmul.f32 0.35355338, %v3202_v37  ;;  %v3257_v41 = vmul.f32 0.35355338, %v3248_v38 }
 0x807   : > { %v4502_v42 = vpop.f32.mrf.mxu1  ;;  %v4508_v45 = vpop.f32.mrf.mxu0 }
 0x808   : > { %v3264_v46 = vsel %vm1736_vm2, %v3256_v40, -inf  ;;  %v3267_v47 = vsel %vm1736_vm2, %v3257_v41, -inf }
 0x809   : > { %3265 = vmax.xlane.f32.xlu1 %v3264_v46  ;;  %v3205_v48 = vpop.f32.mrf.mxu1  ;;  %3268 = vmax.xlane.f32.xlu0 %v3267_v47  ;;  %v3251_v39 = vpop.f32.mrf.mxu0 }
 0x80b   : > { %v4503_v49 = vpop.f32.mrf.mxu1  ;;  %v4509_v44 = vpop.f32.mrf.mxu0 }
 0x88a   : > { %v3260_v50 = vpop.xlane.xlu0 %3259 }
 0x88b   : > { %v3270_v51 = vsub.f32 %v3254_v28, %v3260_v50 }
 0x88d   : > { %v3274_v52 = vmul.f32 1.442695, %v3270_v51 }
 0x88e   : > { %v3263_v53 = vpop.xlane.xlu0 %3262 }
 0x88f   : > { %4675 = vpow2.f32 %v3274_v52  ;;  %v3271_v54 = vsub.f32 %v3255_v31, %v3263_v53 }
 0x891   : > { %v3276_v55 = vmul.f32 1.442695, %v3271_v54 }
 0x892   : > { %v3266_v56 = vpop.xlane.xlu1 %3265  ;;  %v3269_v57 = vpop.xlane.xlu0 %3268 }
 0x893   : > { %4677 = vpow2.f32 %v3276_v55  ;;  %v3272_v58 = vsub.f32 %v3256_v40, %v3266_v56  ;;  %v3273_v59 = vsub.f32 %v3257_v41, %v3269_v57  ;;  %v4102_v57 = vld [vmem:[%s5332_s16] ss:$0 sm:$0xff]  ;;  %s5338_s16 = sld [smem:[#allocation13_spill]] }
 0x895   : > { %v3278_v60 = vmul.f32 1.442695, %v3272_v58  ;;  %v3280_v61 = vmul.f32 1.442695, %v3273_v59 }
 0x897   : > { %4679 = vpow2.f32 %v3278_v60 }
 0x898   : > { %4681 = vpow2.f32 %v3280_v61 }
 0x89c   : > { %v4676_v62 = vpop.eup %4675 }
 0x89d   : > { %v3282_v63 = vsel %vm1736_vm2, %v4676_v62, 0.0 }
 0x89e   : > { %3283 = vadd.xlane.f32.xlu1 %v3282_v63 }
 0x8a0   : > { %v4678_v0 = vpop.eup %4677 }
 0x8a1   : > { %v3285_v2 = vsel %vm1736_vm2, %v4678_v0, 0.0 }
 0x8a2   : > { %3286 = vadd.xlane.f32.xlu0 %v3285_v2 }
 0x8a4   : > { %v4680_v3 = vpop.eup %4679 }
 0x8a5   : > { %v4682_v4 = vpop.eup %4681  ;;  %v3288_v5 = vsel %vm1736_vm2, %v4680_v3, 0.0 }
 0x8a6   : > { %3289 = vadd.xlane.f32.xlu1 %v3288_v5  ;;  %v3291_v6 = vsel %vm1736_vm2, %v4682_v4, 0.0 }
 0x8a7   : > { %3292 = vadd.xlane.f32.xlu0 %v3291_v6 }
 0x927   : > { %v3284_v8 = vpop.xlane.xlu1 %3283 }
 0x928   : > { %4683 = vrcp.f32 %v3284_v8  ;;  %v4653_v8 = vld [vmem:[%s5333_s18 + $0x8] sm:$0xff]  }
 0x92b   : > { %v3287_v9 = vpop.xlane.xlu0 %3286 }
 0x92c   : > { %4685 = vrcp.f32 %v3287_v9  ;;  %v4654_v9 = vld [vmem:[%s5333_s18] sm:$0xff]  }
 0x92f   : > { %v3290_v11 = vpop.xlane.xlu1 %3289 }
 0x930   : > { %4687 = vrcp.f32 %v3290_v11  ;;  %v3293_v12 = vpop.xlane.xlu0 %3292 }
 0x931   : > { %4689 = vrcp.f32 %v3293_v12 }
 0x935   : > { %v4684_v15 = vpop.eup %4683 }
 0x936   : > { %v3295_v19 = vmul.f32 %v4684_v15, %v4676_v62 }
 0x938   : > { %v3302_v20 = vpack.c.bf16 %v3295_v19, %v3295_v19 }
 0x939   : > { %v4686_v22 = vpop.eup %4685 }
 0x93a   : > { %4513 = vmatmul.mubr.msk.bf16.vlgmr.msra.gmra.mxu1 %vm1736_vm2, %v3302_v20  ;;  %v3297_v25 = vmul.f32 %v4686_v22, %v4678_v0 }
 0x93b   : > { %4523 = vmatpush3.bf16.msra.mxu1 %v3406_v23  ;;  %4524 = vmatprep.mubr.msk.bf16.mxu1 %vm4738_vm0, %v4737_v1  ;;  %v4108_v23 = vld [vmem:[%s5337_s28] ss:$0 sm:$0xff] }
 0x93c   : > { %v3303_v26 = vpack.c.bf16 %v3297_v25, %v3297_v25  ;;  %4534 = vmatprep.subr.bf16.mxu1 %v4737_v1 }
 0x93d   : > { %v4688_v16 = vpop.eup %4687 }
 0x93e   : > { %v4690_v27 = vpop.eup %4689  ;;  %4519 = vmatmul.mubr.msk.bf16.vlgmr.msra.gmra.mxu0 %vm1736_vm2, %v3303_v26  ;;  %v3299_v28 = vmul.f32 %v4688_v16, %v4680_v3 }
 0x93f   : > { %4529 = vmatpush3.bf16.msra.mxu0 %v3452_v21  ;;  %4530 = vmatprep.mubr.msk.bf16.mxu0 %vm4738_vm0, %v4737_v1  ;;  %v3301_v30 = vmul.f32 %v4690_v27, %v4682_v4 }
 0x940   : > { %v3304_v29 = vpack.c.bf16 %v3299_v28, %v3299_v28  ;;  %4542 = vmatprep.subr.bf16.mxu0 %v4737_v1 }
 0x941   : > { %v3305_v31 = vpack.c.bf16 %v3301_v30, %v3301_v30 }
 0x942   : > { %4525 = vmatmul.mubr.msk.bf16.vlgmr.msra.gmra.mxu1 %vm1736_vm2, %v3304_v29 }
 0x943   : > { %4538 = vmatprep.mubr.msk.bf16.mxu1 %vm4738_vm0, %v4737_v1  ;;  %4535 = vmatpush3.bf16.msra.mxu1 %v4651_v32 }
 0x944   : > { %4536 = vmatprep.subr.bf16.mxu1 %v4737_v1 }
 0x946   : > { %4531 = vmatmul.mubr.msk.bf16.vlgmr.msra.gmra.mxu0 %vm1736_vm2, %v3305_v31 }
 0x947   : > { %4546 = vmatprep.mubr.msk.bf16.mxu0 %vm4738_vm0, %v4737_v1  ;;  %4537 = vmatpush3.bf16.msra.mxu1 %v4652_v7 }
 0x948   : > { %4550 = vmatprep.subr.bf16.mxu1 %v4737_v1  ;;  %4543 = vmatpush3.bf16.msra.mxu0 %v4653_v8  ;;  %v4119_v8 = vld [vmem:[%s4895_s4] ss:$0 sm:$0xff] }
 0x949   : > { %4544 = vmatprep.subr.bf16.mxu0 %v4737_v1 }
 0x94c   : > { %4545 = vmatpush3.bf16.msra.mxu0 %v4654_v9 }
 0x9fa   : > { %v3350_v33 = vpop.f32.mrf.mxu1 }
 0x9fc   : > { %v4514_v34 = vpop.f32.mrf.mxu1 }
 0x9fe   : > { %v3353_v35 = vpop.f32.mrf.mxu1  ;;  %v3396_v36 = vpop.f32.mrf.mxu0 }
 0x9ff   : > { %3495 = vrot.lane.b32.xlu1 %v3396_v36, %s4739_s22  ;;  %s5334_s22 = sld [smem:[#allocation8_spill]] }
 0xa00   : > { %v4515_v37 = vpop.f32.mrf.mxu1  ;;  %v4520_v38 = vpop.f32.mrf.mxu0 }
 0xa02   : > { %v3399_v40 = vpop.f32.mrf.mxu0  ;;  %v3442_v41 = vpop.f32.mrf.mxu1 }
 0xa03   : > { %3499 = vrot.lane.b32.xlu0 %v3442_v41, %s4740_s23  ;;  %s5335_s23 = sld [smem:[#allocation9_spill]] }
 0xa04   : > { %v4521_v42 = vpop.f32.mrf.mxu0  ;;  %v4526_v45 = vpop.f32.mrf.mxu1 }
 0xa05   : > { %v4106_v13 = vld [vmem:[%s5334_s22] ss:$0 sm:$0xff]  ;;  %s5339_s22 = sld [smem:[#allocation14_spill]] }
 0xa06   : > { %v3445_v46 = vpop.f32.mrf.mxu1  ;;  %v3488_v47 = vpop.f32.mrf.mxu0 }
 0xa07   : > { %3503 = vrot.lane.b32.xlu1 %v3488_v47, %s4741_s26  ;;  %s5336_s26 = sld [smem:[#allocation12_spill]] }
 0xa08   : > { %v4527_v48 = vpop.f32.mrf.mxu1  ;;  %v4532_v39 = vpop.f32.mrf.mxu0 }
 0xa09   : > { %v4107_v15 = vld [vmem:[%s5335_s23] ss:$0 sm:$0xff]  ;;  %s942_s23 = scalar_lea.vmem %s4900_s12, %s4922_s0 }
 0xa0a   : > { %v3491_v49 = vpop.f32.mrf.mxu0 }
 0xa0c   : > { %v4533_v44 = vpop.f32.mrf.mxu0 }
 0xa0d   : > { %v4655_v20 = vld [vmem:[%s5336_s26 + $0x8] sm:$0xff]   ;;  %v4656_v22 = vld [vmem:[%s5336_s26] sm:$0xff]  }
 0xa71   : > { %v3496_v50 = vpop.permute.xlu1 %3495 }
 0xa72   : > { %v3506_v52 = vsel %vm1736_vm2, %v3350_v33, %v3496_v50 }
 0xa75   : > { %v3500_v51 = vpop.permute.xlu0 %3499 }
 0xa76   : > { %v3507_v53 = vsel %vm2175_vm4, %v3506_v52, %v3500_v51 }
 0xa79   : > { %v3504_v54 = vpop.permute.xlu1 %3503 }
 0xa7a   : > { %v3508_v55 = vsel %vm2177_vm5, %v3507_v53, %v3504_v54  ;;  %v4116_v53 = vld [vmem:[%s5339_s22] ss:$0 sm:$0xff] }
 0xa7b   : > { %v3509_v56 = vpack.c.bf16 %v3508_v55, %v3508_v55  ;;  %v4117_v55 = vld [vmem:[%s4885_s20] ss:$0 sm:$0xff] }
 0xa7d   : > { %4539 = vmatmul.mubr.msk.bf16.vlgmr.msra.gmra.mxu1 %vm963_vm1, %v3509_v56 }
 0xa7e   : > { %4554 = vmatprep.mubr.msk.bf16.mxu1 %vm4738_vm0, %v4737_v1  ;;  %4551 = vmatpush3.bf16.msra.mxu1 %v4655_v20 }
 0xa7f   : > { %4552 = vmatprep.subr.bf16.mxu1 %v4737_v1  ;;  %v4112_v1 = vld [vmem:[%s5338_s16] ss:$0 sm:$0xff] }
 0xa82   : > { %4553 = vmatpush3.bf16.msra.mxu1 %v4656_v22 }
 0xb3d   : > { %v3570_v58 = vpop.f32.mrf.mxu1 }
 0xb3e   : > { %v3571_v59 = vadd.f32 %v4102_v57, %v3570_v58 }
 0xb3f   : > { %v4540_v60 = vpop.f32.mrf.mxu1 }
 0xb40   : > { %v3576_v61 = vadd.f32 %v3571_v59, %v5115_v43 }
 0xb41   : > { %v3573_v62 = vpop.f32.mrf.mxu1 }
 0xb42   : > { %v3579_v63 = vsel %vm963_vm1, %v3576_v61, 0.0 }
 0xb43   : > { %3580 = vadd.xlane.f32.xlu1 %v3579_v63  ;;  %v4541_v0 = vpop.f32.mrf.mxu1 }
 0xbcc   : > { %v3581_v2 = vpop.xlane.xlu1 %3580 }
 0xbcd   : > { %v3582_v3 = vmul.f32 0.03125, %v3581_v2 }
 0xbcf   : > { %v3583_v4 = vsub.f32 %v3576_v61, %v3582_v3 }
 0xbd1   : > { %v3584_v5 = vmul.f32 %v3583_v4, %v3583_v4 }
 0xbd3   : > { %v3585_v6 = vsel %vm963_vm1, %v3584_v5, 0.0  ;;  %v4118_v5 = vld [vmem:[%s4890_s27] ss:$0 sm:$0xff] }
 0xbd4   : > { %3586 = vadd.xlane.f32.xlu0 %v3585_v6 }
 0xc5d   : > { %v3587_v43 = vpop.xlane.xlu0 %3586 }
 0xc5e   : > { %v3588_v10 = vmul.f32 0.03125, %v3587_v43 }
 0xc60   : > { %v3589_v11 = vadd.f32 1e-05, %v3588_v10 }
 0xc62   : > { %4691 = vrsqrt.f32 %v3589_v11 }
 0xc6f   : > { %v4692_v12 = vpop.eup %4691 }
 0xc70   : > { %v3591_v14 = vmul.f32 %v4692_v12, %v3583_v4 }
 0xc72   : > { %v3598_v17 = vmul.f32 %v4106_v13, %v3591_v14 }
 0xc74   : > { %v3605_v18 = vadd.f32 %v4107_v15, %v3598_v17 }
 0xc76   : > { %v3606_v19 = vpack.c.bf16 %v3605_v18, %v3605_v18 }
 0xc78   : > { %4547 = vmatmul.mubr.msk.bf16.vlgmr.msra.gmra.mxu0 %vm963_vm1, %v3606_v19 }
 0xd38   : > { %v3667_v24 = vpop.f32.mrf.mxu0 }
 0xd39   : > { %v3668_v25 = vadd.f32 %v4108_v23, %v3667_v24 }
 0xd3a   : > { %v4548_v26 = vpop.f32.mrf.mxu0 }
 0xd3b   : > { %v3674_v16 = vmul.f32 0.044715, %v3668_v25  ;;  %v3673_v7 = vmul.f32 0.5, %v3668_v25 }
 0xd3c   : > { %v3670_v27 = vpop.f32.mrf.mxu0 }
 0xd3d   : > { %v3675_v21 = vmul.f32 %v3674_v16, %v3668_v25 }
 0xd3e   : > { %v4549_v28 = vpop.f32.mrf.mxu0 }
 0xd3f   : > { %v3676_v29 = vmul.f32 %v3675_v21, %v3668_v25 }
 0xd41   : > { %v3677_v30 = vadd.f32 %v3676_v29, %v3668_v25 }
 0xd43   : > { %v3678_v31 = vmul.f32 0.7978846, %v3677_v30 }
 0xd45   : > { %4693 = vtanh.f32 %v3678_v31 }
 0xd52   : > { %v4694_v32 = vpop.eup %4693 }
 0xd53   : > { %v3680_v33 = vadd.f32 1.0, %v4694_v32 }
 0xd55   : > { %v3681_v34 = vmul.f32 %v3680_v33, %v3673_v7 }
 0xd57   : > { %v3682_v35 = vpack.c.bf16 %v3681_v34, %v3681_v34 }
 0xd59   : > { %4555 = vmatmul.mubr.msk.bf16.vlgmr.msra.gmra.mxu1 %vm963_vm1, %v3682_v35 }
 0xe19   : > { %v3743_v36 = vpop.f32.mrf.mxu1 }
 0xe1a   : > { %v3744_v37 = vadd.f32 %v4112_v1, %v3743_v36 }
 0xe1b   : > { %v4556_v38 = vpop.f32.mrf.mxu1 }
 0xe1c   : > { %v3749_v40 = vadd.f32 %v3744_v37, %v3605_v18 }
 0xe1d   : > { %v3746_v41 = vpop.f32.mrf.mxu1 }
 0xe1e   : > { %v3752_v42 = vsel %vm963_vm1, %v3749_v40, 0.0 }
 0xe1f   : > { %3753 = vadd.xlane.f32.xlu0 %v3752_v42  ;;  %v4557_v45 = vpop.f32.mrf.mxu1 }
 0xea8   : > { %v3754_v46 = vpop.xlane.xlu0 %3753 }
 0xea9   : > { %v3755_v47 = vmul.f32 0.03125, %v3754_v46 }
 0xeab   : > { %v3756_v48 = vsub.f32 %v3749_v40, %v3755_v47 }
 0xead   : > { %v3757_v39 = vmul.f32 %v3756_v48, %v3756_v48 }
 0xeaf   : > { %v3758_v49 = vsel %vm963_vm1, %v3757_v39, 0.0 }
 0xeb0   : > { %3759 = vadd.xlane.f32.xlu1 %v3758_v49 }
 0xf39   : > { %v3760_v44 = vpop.xlane.xlu1 %3759 }
 0xf3a   : > { %v3761_v50 = vmul.f32 0.03125, %v3760_v44 }
 0xf3c   : > { %v3762_v51 = vadd.f32 1e-05, %v3761_v50 }
 0xf3e   : > { %4695 = vrsqrt.f32 %v3762_v51 }
 0xf4b   : > { %v4696_v52 = vpop.eup %4695 }
 0xf4c   : > { %v3764_v54 = vmul.f32 %v4696_v52, %v3756_v48 }
 0xf4e   : > { %v3771_v56 = vmul.f32 %v4116_v53, %v3764_v54 }
 0xf50   : > { %v3778_v57 = vadd.f32 %v4117_v55, %v3771_v56 }
 0xf52   : > { %v3781_v58 = vsel %vm963_vm1, %v3778_v57, 0.0 }
 0xf53   : > { %3782 = vadd.xlane.f32.xlu0 %v3781_v58 }
 0xfdc   : > { %v3783_v59 = vpop.xlane.xlu0 %3782 }
 0xfdd   : > { %v3784_v60 = vmul.f32 0.03125, %v3783_v59 }
 0xfdf   : > { %v3785_v61 = vsub.f32 %v3778_v57, %v3784_v60 }
 0xfe1   : > { %v3786_v62 = vmul.f32 %v3785_v61, %v3785_v61 }
 0xfe3   : > { %v3787_v63 = vsel %vm963_vm1, %v3786_v62, 0.0 }
 0xfe4   : > { %3788 = vadd.xlane.f32.xlu1 %v3787_v63 }
0x106d   : > { %v3789_v0 = vpop.xlane.xlu1 %3788 }
0x106e   : > { %v3790_v2 = vmul.f32 0.03125, %v3789_v0 }
0x1070   : > { %v3791_v3 = vadd.f32 1e-05, %v3790_v2 }
0x1072   : > { %4697 = vrsqrt.f32 %v3791_v3 }
0x107f   : > { %v4698_v4 = vpop.eup %4697 }
0x1080   : > { %v3793_v6 = vmul.f32 %v4698_v4, %v3785_v61 }
0x1082   : > { %v3800_v9 = vmul.f32 %v4118_v5, %v3793_v6 }
0x1084   : > { %v3807_v43 = vadd.f32 %v4119_v8, %v3800_v9 }
0x1086   : > { %3808 = vst.msk [vmem:[%s942_s23] sm:$0xff] %vm963_vm1, %v3807_v43 }
0x1087 PF: > { %s71_s15 = sadd.s32 1, %s4705_s15  }
0x1088   : > { %p68_p4 = scmp.ge.s32.totalorder %s71_s15, 4  }
0x108a   :  { %70 = sbr.rel (!%p68_p4) target bundleno = 53 (0x35), region = 221 }

// kernel: informer_forward.6
= control target key start
LH: loop header
LB: loop body
LE: loop exit
PB: predicated region body
PF: predicated region fallthrough
CT: control target
= control target key end

     0   :  { %s4801_s6 = smov 1   ;;  %s4802_s10 = smov 2   ;;  %s5409_s0 = inlined_call_operand.smem [shape: u32[32], index: -1, kind: input, shape index: {}] }
   0x1   :  { %s4845_s5 = sld [smem:[%s5409_s0]]   ;;  %s4803_s14 = smov 3  }
   0x2   :  { %s4850_s9 = sld [smem:[%s5409_s0 + %s4801_s6]]   ;;  %s4804_s18 = smov 4  }
   0x3   :  { %s4855_s13 = sld [smem:[%s5409_s0 + %s4802_s10]]   ;;  %s4805_s22 = smov 5  }
   0x4   :  { %s4860_s17 = sld [smem:[%s5409_s0 + %s4803_s14]]   ;;  %s4806_s26 = smov 6  }
   0x5   :  { %s4865_s21 = sld [smem:[%s5409_s0 + %s4804_s18]]   ;;  %s4807_s30 = smov 7  }
   0x6   :  { %s4870_s25 = sld [smem:[%s5409_s0 + %s4805_s22]]   ;;  %s4808_s4 = smov 8  }
   0x7   :  { %s4875_s29 = sld [smem:[%s5409_s0 + %s4806_s26]]   ;;  %s4809_s10 = smov 9  }
   0x8   :  { %5418 = sst [smem:[#allocation2_spill]] %s4850_s9  ;;  %s4810_s15 = smov 10  }
   0x9   :  { %s4880_s3 = sld [smem:[%s5409_s0 + %s4807_s30]]   ;;  %s4811_s20 = smov 11  }
   0xa   :  { %s4885_s8 = sld [smem:[%s5409_s0 + %s4808_s4]]   ;;  %s4812_s26 = smov 12  }
   0xb   :  { %s4890_s14 = sld [smem:[%s5409_s0 + %s4809_s10]]   ;;  %s4813_s1 = smov 13  }
   0xc   :  { %s4895_s19 = sld [smem:[%s5409_s0 + %s4810_s15]]   ;;  %s4814_s7 = smov 14  }
   0xd   :  { %s4900_s24 = sld [smem:[%s5409_s0 + %s4811_s20]]   ;;  %s4815_s15 = smov 15  }
   0xe   :  { %s4905_s30 = sld [smem:[%s5409_s0 + %s4812_s26]]   ;;  %s4816_s22 = smov 16  }
   0xf   :  { %s4910_s6 = sld [smem:[%s5409_s0 + %s4813_s1]]   ;;  %s4817_s28 = smov 17  }
  0x10   :  { %s4915_s12 = sld [smem:[%s5409_s0 + %s4814_s7]]   ;;  %s4818_s7 = smov 18  }
  0x11   :  { %s4920_s20 = sld [smem:[%s5409_s0 + %s4815_s15]]   ;;  %s4819_s15 = smov 19  }
  0x12   :  { %s4925_s27 = sld [smem:[%s5409_s0 + %s4816_s22]]   ;;  %s4820_s22 = smov 20  }
  0x13   :  { %s4930_s4 = sld [smem:[%s5409_s0 + %s4817_s28]]   ;;  %s4821_s28 = smov 21  }
  0x14   :  { %s4935_s9 = sld [smem:[%s5409_s0 + %s4818_s7]]   ;;  %s4822_s7 = smov 22  }
  0x16   :  { %5419 = sst [smem:[#allocation3_spill]] %s4915_s12 }
  0x17   :  { %s4940_s12 = sld [smem:[%s5409_s0 + %s4819_s15]]   ;;  %s4823_s15 = smov 23  }
  0x18   :  { %5420 = sst [smem:[#allocation4_spill]] %s4925_s27 }
  0x19   :  { %5421 = sst [smem:[#allocation5_spill]] %s4930_s4 }
  0x1a   :  { %5422 = sst [smem:[#allocation6_spill]] %s4935_s9 }
  0x1b   :  { %s4945_s27 = sld [smem:[%s5409_s0 + %s4820_s22]]   ;;  %s4824_s22 = smov 24  }
  0x1c   :  { %s4950_s4 = sld [smem:[%s5409_s0 + %s4821_s28]]   ;;  %s4825_s28 = smov 25  }
  0x1d   :  { %5423 = sst [smem:[#allocation7_spill]] %s4940_s12 }
  0x1e   :  { %s4955_s9 = sld [smem:[%s5409_s0 + %s4822_s7]]   ;;  %s4826_s7 = smov 26  }
  0x1f   :  { %s4960_s12 = sld [smem:[%s5409_s0 + %s4823_s15]]   ;;  %s4827_s15 = smov 27  }
  0x21   :  { %5424 = sst [smem:[#allocation8_spill]] %s4945_s27 }
  0x22   :  { %5425 = sst [smem:[#allocation9_spill]] %s4950_s4 }
  0x23   :  { %s4965_s27 = sld [smem:[%s5409_s0 + %s4824_s22]]   ;;  %s4828_s22 = smov 28  }
  0x24   :  { %5426 = sst [smem:[#allocation10_spill]] %s4955_s9 }
  0x25   :  { %5427 = sst [smem:[#allocation11_spill]] %s4960_s12 }
  0x26   :  { %s4970_s4 = sld [smem:[%s5409_s0 + %s4825_s28]]   ;;  %s4829_s28 = smov 29  }
  0x27   :  { %s4975_s9 = sld [smem:[%s5409_s0 + %s4826_s7]]   ;;  %s4830_s7 = smov 30  }
  0x28   :  { %s4980_s12 = sld [smem:[%s5409_s0 + %s4827_s15]]   ;;  %s4831_s15 = smov 31  }
  0x29   :  { %5428 = sst [smem:[#allocation12_spill]] %s4965_s27 }
  0x2a   :  { %s4985_s27 = sld [smem:[%s5409_s0 + %s4828_s22]]   ;;  %s5002_s22 = smov 0  }
  0x2c   :  { %5429 = sst [smem:[#allocation13_spill]] %s4970_s4 }
  0x2d   :  { %5430 = sst [smem:[#allocation14_spill]] %s4975_s9 }
  0x2e   :  { %5431 = sst [smem:[#allocation15_spill]] %s4980_s12 }
  0x2f   :  { %s4990_s4 = sld [smem:[%s5409_s0 + %s4829_s28]]  }
  0x30   :  { %s4995_s9 = sld [smem:[%s5409_s0 + %s4830_s7]]  }
  0x31   :  { %s5000_s12 = sld [smem:[%s5409_s0 + %s4831_s15]]  }
  0x32 LB: > { %s3991_s23 = sadd.s32 4294967295, %s4799_s22   ;;  %p3995_p0 = scmp.ge.s32.totalorder %s4799_s22, 1  ;;  %s4799_s22 = sphi %s5002_s22, %s73_s22  }
  0x33   : > { %p877_p1 = scmp.lt.s32.totalorder %s4799_s22, 3 }
  0x35   : > { %p878_p2 = pnand %p3995_p0, %p877_p1 }
  0x36   : > { %p959_p3 = scmp.lt.s32.totalorder (!%p878_p2), %s3991_s23, 1  ;;  %s4834_s28 = smov (!%p878_p2), 8  }
  0x37   : > { %881 = sbr.rel (%p878_p2) target bundleno = 4114 (0x1012), region = 144  ;;  %s4835_s1 = smov (!%p878_p2), 16  }
  0x38   : > { %s4836_s2 = smov (!%p878_p2), 24   ;;  %s5432_s7 = sld [smem:[#allocation3_spill]] (!%p878_p2) }
  0x39   : > { %s5433_s10 = sld [smem:[#allocation4_spill]] (!%p878_p2) }
  0x3a   : > { %s5434_s11 = sld [smem:[#allocation2_spill]] (!%p878_p2) }
  0x3b   : > { %s5435_s16 = sld [smem:[#allocation5_spill]] (!%p878_p2) }
  0x3c   : > { %v973_v0 = vld [vmem:[%s4855_s13] sm:$0xf]  ;;  %vm985_vm0 = vcmask 1043456   ;;  %v4832_v1 = vmov 0.0   ;;  %vm4833_vm1 = vmmov 0   ;;  %s5447_s23 = smov (!%p959_p3, %s3991_s23), 1 }
  0x3d   : > { %4328 = vmatprep.subr.mxu0 %v4832_v1  ;;  %4330 = vmatprep.mubr.msk.f32.mxu0 %vm4833_vm1, %v4832_v1  ;;  %s5019_s0 = sshll.u32 %s5447_s23, 3  ;;  %vm981_vm2 = vcmask 31744   ;;  %v4697_v3 = vld [vmem:[%s4870_s25 + $0x8] sm:$0xff]   ;;  %v4698_v4 = vld [vmem:[%s4870_s25 + $0x18] sm:$0xff]   ;;  %v4699_v5 = vld [vmem:[%s4870_s25] sm:$0xff]   ;;  %vm1079_vm3 = vcmask 261120  }
  0x3e   : > { %4329 = vmatpush3.msk.msra.mxu0 %vm985_vm0, %v973_v0  ;;  %4333 = vmatprep.subr.bf16.mxu1 %v4832_v1  ;;  %s962_s26 = scalar_lea.vmem %s4845_s5, %s5019_s0  ;;  %v4700_v6 = vld [vmem:[%s4870_s25 + $0x10] sm:$0xff]   ;;  %v3999_v7 = vld [vmem:[%s4860_s17] ss:$0 sm:$0xff]  ;;  %v4701_v13 = vld [vmem:[%s4870_s25 + $0x28] sm:$0xff]   ;;  %vm1852_vm4 = vcmask 64512   ;;  %vm2290_vm5 = vcmask 130048  }
  0x3f   : > { %4341 = vmatprep.subr.bf16.mxu0 %v4832_v1  ;;  %4337 = vmatprep.mubr.msk.bf16.mxu1 %vm4833_vm1, %v4832_v1  ;;  %v972_v2 = vld [vmem:[%s962_s26] sm:$0xff]  ;;  %v4702_v14 = vld [vmem:[%s4870_s25 + $0x38] sm:$0xff]   ;;  %v4704_v17 = vld [vmem:[%s4870_s25 + $0x30] sm:$0xff]   ;;  %vm2292_vm6 = vcmask 195584   ;;  %s5436_s18 = sld [smem:[#allocation7_spill]] }
  0x40   : > { %4331 = vmatmul.mubr.msk.f32.vlgmr.msra.gmra.mxu0 %vm981_vm2, %v972_v2  ;;  %4334 = vmatpush3.bf16.msra.mxu1 %v4697_v3  ;;  %v1059_v9 = vld [vmem:[%s4865_s21] sm:$0xff]  ;;  %v4705_v18 = vld [vmem:[%s4875_s29 + $0x8] sm:$0xff]   ;;  %v4706_v19 = vld [vmem:[%s4875_s29 + $0x18] sm:$0xff]   ;;  %s966_s15 = scalar_lea.vmem %s5434_s11, %s5019_s0  ;;  %s5437_s23 = sld [smem:[#allocation6_spill]] }
  0x41   : > { %4345 = vmatprep.mubr.msk.bf16.mxu0 %vm4833_vm1, %v4832_v1  ;;  %4342 = vmatpush3.bf16.msra.mxu0 %v4698_v4  ;;  %v4703_v16 = vld [vmem:[%s4870_s25 + $0x20] sm:$0xff]   ;;  %v4708_v21 = vld [vmem:[%s4875_s29 + $0x10] sm:$0xff]   ;;  %v4709_v22 = vld [vmem:[%s4875_s29 + $0x28] sm:$0xff]   ;;  %s5438_s26 = sld [smem:[#allocation8_spill]] }
  0x42   : > { %4335 = vmatprep.subr.bf16.mxu1 %v4832_v1  ;;  %4343 = vmatprep.subr.bf16.mxu0 %v4832_v1  ;;  %v4707_v20 = vld [vmem:[%s4875_s29] sm:$0xff]   ;;  %v4710_v23 = vld [vmem:[%s4875_s29 + $0x38] sm:$0xff]   ;;  %v4712_v25 = vld [vmem:[%s4875_s29 + $0x30] sm:$0xff]   ;;  %s5440_s11 = sld [smem:[#allocation10_spill]] }
  0x43   : > { %v4711_v24 = vld [vmem:[%s4875_s29 + $0x20] sm:$0xff]   ;;  %v4713_v26 = vld [vmem:[%s4880_s3 + $0x8] sm:$0xff]   ;;  %v4714_v27 = vld [vmem:[%s4880_s3 + $0x18] sm:$0xff]  }
  0x44   : > { %4336 = vmatpush3.bf16.msra.mxu1 %v4699_v5  ;;  %v4715_v28 = vld [vmem:[%s4880_s3] sm:$0xff]   ;;  %v4716_v29 = vld [vmem:[%s4880_s3 + $0x10] sm:$0xff]   ;;  %v4717_v30 = vld [vmem:[%s4880_s3 + $0x28] sm:$0xff]  }
  0x45   : > { %4344 = vmatpush3.bf16.msra.mxu0 %v4700_v6  ;;  %4349 = vmatprep.subr.bf16.mxu1 %v4832_v1  ;;  %v4718_v31 = vld [vmem:[%s4880_s3 + $0x38] sm:$0xff]   ;;  %v4719_v32 = vld [vmem:[%s4880_s3 + $0x20] sm:$0xff]   ;;  %v4720_v33 = vld [vmem:[%s4880_s3 + $0x30] sm:$0xff]  }
  0x46   : > { %4357 = vmatprep.subr.bf16.mxu0 %v4832_v1  ;;  %v4054_v50 = vld [vmem:[%s4890_s14] ss:$0 sm:$0xff]  ;;  %v4055_v51 = vld [vmem:[%s4890_s14 + $0x1] ss:$0 sm:$0xff]  ;;  %v4056_v5 = vld [vmem:[%s4890_s14 + $0x2] ss:$0 sm:$0xff] }
  0x47   : > { %v4026_v60 = vld [vmem:[%s4885_s8] ss:$0 sm:$0xff]  ;;  %v4027_v61 = vld [vmem:[%s4885_s8 + $0x1] ss:$0 sm:$0xff]  ;;  %v4057_v6 = vld [vmem:[%s4890_s14 + $0x3] ss:$0 sm:$0xff] }
 0x100   : > { %v1055_v8 = vpop.f32.mrf.mxu0 }
 0x101   : > { %v1056_v10 = vadd.f32 %v3999_v7, %v1055_v8 }
 0x102   : > { %v4332_v11 = vpop.f32.mrf.mxu0 }
 0x103   : > { %v5035_v12 = vadd.f32 %v1059_v9, %v1056_v10 }
 0x105   : > { %v5041_v15 = vpack.c.bf16 %v5035_v12, %v5035_v12 }
 0x107   : > { %4338 = vmatmul.mubr.msk.bf16.vlgmr.msra.gmra.mxu1 %vm1079_vm3, %v5041_v15  ;;  %4346 = vmatmul.mubr.msk.bf16.vlgmr.msra.gmra.mxu0 %vm1079_vm3, %v5041_v15 }
 0x108   : > { %4350 = vmatpush3.bf16.msra.mxu1 %v4701_v13  ;;  %4358 = vmatpush3.bf16.msra.mxu0 %v4702_v14 }
 0x109   : > { %4351 = vmatprep.subr.bf16.mxu1 %v4832_v1  ;;  %4359 = vmatprep.subr.bf16.mxu0 %v4832_v1 }
 0x10a   : > { %4353 = vmatprep.mubr.msk.bf16.mxu1 %vm4833_vm1, %v4832_v1  ;;  %4361 = vmatprep.mubr.msk.bf16.mxu0 %vm4833_vm1, %v4832_v1 }
 0x10c   : > { %4352 = vmatpush3.bf16.msra.mxu1 %v4703_v16  ;;  %4360 = vmatpush3.bf16.msra.mxu0 %v4704_v17 }
 0x10d   : > { %4365 = vmatprep.subr.bf16.mxu1 %v4832_v1  ;;  %4373 = vmatprep.subr.bf16.mxu0 %v4832_v1 }
 0x10f   : > { %4354 = vmatmul.mubr.msk.bf16.vlgmr.msra.gmra.mxu1 %vm1079_vm3, %v5041_v15  ;;  %4362 = vmatmul.mubr.msk.bf16.vlgmr.msra.gmra.mxu0 %vm1079_vm3, %v5041_v15 }
 0x110   : > { %4366 = vmatpush3.bf16.msra.mxu1 %v4705_v18  ;;  %4374 = vmatpush3.bf16.msra.mxu0 %v4706_v19 }
 0x111   : > { %4367 = vmatprep.subr.bf16.mxu1 %v4832_v1  ;;  %4375 = vmatprep.subr.bf16.mxu0 %v4832_v1 }
 0x112   : > { %4369 = vmatprep.mubr.msk.bf16.mxu1 %vm4833_vm1, %v4832_v1  ;;  %4377 = vmatprep.mubr.msk.bf16.mxu0 %vm4833_vm1, %v4832_v1 }
 0x114   : > { %4368 = vmatpush3.bf16.msra.mxu1 %v4707_v20  ;;  %4376 = vmatpush3.bf16.msra.mxu0 %v4708_v21  ;;  %v4028_v20 = vld [vmem:[%s4885_s8 + $0x2] ss:$0 sm:$0xff]  ;;  %v4029_v21 = vld [vmem:[%s4885_s8 + $0x3] ss:$0 sm:$0xff] }
 0x115   : > { %4381 = vmatprep.subr.bf16.mxu1 %v4832_v1  ;;  %4389 = vmatprep.subr.bf16.mxu0 %v4832_v1 }
 0x117   : > { %4370 = vmatmul.mubr.msk.bf16.vlgmr.msra.gmra.mxu1 %vm1079_vm3, %v5041_v15  ;;  %4378 = vmatmul.mubr.msk.bf16.vlgmr.msra.gmra.mxu0 %vm1079_vm3, %v5041_v15 }
 0x118   : > { %4382 = vmatpush3.bf16.msra.mxu1 %v4709_v22  ;;  %4390 = vmatpush3.bf16.msra.mxu0 %v4710_v23 }
 0x119   : > { %4383 = vmatprep.subr.bf16.mxu1 %v4832_v1  ;;  %4391 = vmatprep.subr.bf16.mxu0 %v4832_v1 }
 0x11a   : > { %4385 = vmatprep.mubr.msk.bf16.mxu1 %vm4833_vm1, %v4832_v1  ;;  %4393 = vmatprep.mubr.msk.bf16.mxu0 %vm4833_vm1, %v4832_v1 }
 0x11c   : > { %4384 = vmatpush3.bf16.msra.mxu1 %v4711_v24  ;;  %4392 = vmatpush3.bf16.msra.mxu0 %v4712_v25 }
 0x11d   : > { %4397 = vmatprep.subr.bf16.mxu1 %v4832_v1  ;;  %4405 = vmatprep.subr.bf16.mxu0 %v4832_v1 }
 0x11f   : > { %4386 = vmatmul.mubr.msk.bf16.vlgmr.msra.gmra.mxu1 %vm1079_vm3, %v5041_v15  ;;  %4394 = vmatmul.mubr.msk.bf16.vlgmr.msra.gmra.mxu0 %vm1079_vm3, %v5041_v15 }
 0x120   : > { %4398 = vmatpush3.bf16.msra.mxu1 %v4713_v26  ;;  %4406 = vmatpush3.bf16.msra.mxu0 %v4714_v27 }
 0x121   : > { %4399 = vmatprep.subr.bf16.mxu1 %v4832_v1  ;;  %4407 = vmatprep.subr.bf16.mxu0 %v4832_v1 }
 0x122   : > { %4401 = vmatprep.mubr.msk.bf16.mxu1 %vm4833_vm1, %v4832_v1  ;;  %4409 = vmatprep.mubr.msk.bf16.mxu0 %vm4833_vm1, %v4832_v1 }
 0x124   : > { %4400 = vmatpush3.bf16.msra.mxu1 %v4715_v28  ;;  %4408 = vmatpush3.bf16.msra.mxu0 %v4716_v29  ;;  %v4082_v28 = vld [vmem:[%s4895_s19] ss:$0 sm:$0xff]  ;;  %v4083_v29 = vld [vmem:[%s4895_s19 + $0x1] ss:$0 sm:$0xff] }
 0x125   : > { %4413 = vmatprep.subr.bf16.mxu1 %v4832_v1  ;;  %4421 = vmatprep.subr.bf16.mxu0 %v4832_v1 }
 0x127   : > { %4402 = vmatmul.mubr.msk.bf16.vlgmr.msra.gmra.mxu1 %vm1079_vm3, %v5041_v15  ;;  %4410 = vmatmul.mubr.msk.bf16.vlgmr.msra.gmra.mxu0 %vm1079_vm3, %v5041_v15 }
 0x128   : > { %4414 = vmatpush3.bf16.msra.mxu1 %v4717_v30  ;;  %4422 = vmatpush3.bf16.msra.mxu0 %v4718_v31 }
 0x129   : > { %4415 = vmatprep.subr.bf16.mxu1 %v4832_v1  ;;  %4423 = vmatprep.subr.bf16.mxu0 %v4832_v1 }
 0x12a   : > { %4417 = vmatprep.mubr.msk.bf16.mxu1 %vm4833_vm1, %v4832_v1  ;;  %4425 = vmatprep.mubr.msk.bf16.mxu0 %vm4833_vm1, %v4832_v1 }
 0x12c   : > { %4416 = vmatpush3.bf16.msra.mxu1 %v4719_v32  ;;  %4424 = vmatpush3.bf16.msra.mxu0 %v4720_v33 }
 0x12d   : > { %4429 = vmatprep.subr.bf16.mxu1 %v4832_v1  ;;  %4435 = vmatprep.subr.bf16.mxu0 %v4832_v1 }
 0x12f   : > { %4418 = vmatmul.mubr.msk.bf16.vlgmr.msra.gmra.mxu1 %vm1079_vm3, %v5041_v15  ;;  %4426 = vmatmul.mubr.msk.bf16.vlgmr.msra.gmra.mxu0 %vm1079_vm3, %v5041_v15 }
 0x130   : > { %4431 = vmatprep.mubr.msk.bf16.mxu1 %vm4833_vm1, %v4832_v1  ;;  %4437 = vmatprep.mubr.msk.bf16.mxu0 %vm4833_vm1, %v4832_v1 }
 0x1c7   : > { %v1117_v34 = vpop.f32.mrf.mxu1  ;;  %v1174_v35 = vpop.f32.mrf.mxu0 }
 0x1c8   : > { %v1322_v7 = vadd.f32 %v4026_v60, %v1117_v34  ;;  %v1323_v8 = vadd.f32 %v4027_v61, %v1174_v35 }
 0x1c9   : > { %v4339_v36 = vpop.f32.mrf.mxu1  ;;  %v4347_v37 = vpop.f32.mrf.mxu0 }
 0x1ca   : > { %v1844_v16 = vpack.c.bf16 %v1322_v7, %v1322_v7  ;;  %v1845_v17 = vpack.c.bf16 %v1323_v8, %v1323_v8 }
 0x1cb   : > { %v1120_v38 = vpop.f32.mrf.mxu1  ;;  %v1177_v39 = vpop.f32.mrf.mxu0 }
 0x1cd   : > { %v4340_v40 = vpop.f32.mrf.mxu1  ;;  %v4348_v41 = vpop.f32.mrf.mxu0 }
 0x1cf   : > { %v1231_v42 = vpop.f32.mrf.mxu1  ;;  %v1288_v43 = vpop.f32.mrf.mxu0 }
 0x1d0   : > { %v1324_v30 = vadd.f32 %v4028_v20, %v1231_v42  ;;  %v1325_v31 = vadd.f32 %v4029_v21, %v1288_v43 }
 0x1d1   : > { %v4355_v44 = vpop.f32.mrf.mxu1  ;;  %v4363_v45 = vpop.f32.mrf.mxu0 }
 0x1d2   : > { %v1846_v38 = vpack.c.bf16 %v1324_v30, %v1324_v30  ;;  %v1847_v39 = vpack.c.bf16 %v1325_v31, %v1325_v31 }
 0x1d3   : > { %v1234_v46 = vpop.f32.mrf.mxu1  ;;  %v1291_v47 = vpop.f32.mrf.mxu0 }
 0x1d5   : > { %v4356_v48 = vpop.f32.mrf.mxu1  ;;  %v4364_v49 = vpop.f32.mrf.mxu0 }
 0x1d7   : > { %v1376_v52 = vpop.f32.mrf.mxu1  ;;  %v1433_v53 = vpop.f32.mrf.mxu0 }
 0x1d8   : > { %v1581_v54 = vadd.f32 %v4054_v50, %v1376_v52  ;;  %v1582_v55 = vadd.f32 %v4055_v51, %v1433_v53 }
 0x1d9   : > { %v4371_v56 = vpop.f32.mrf.mxu1  ;;  %v4379_v57 = vpop.f32.mrf.mxu0 }
 0x1da   : > { %v1848_v58 = vpack.c.bf16 %v1581_v54, %v1581_v54  ;;  %v1849_v59 = vpack.c.bf16 %v1582_v55, %v1582_v55 }
 0x1db   : > { %v1379_v62 = vpop.f32.mrf.mxu1  ;;  %v1436_v63 = vpop.f32.mrf.mxu0 }
 0x1dc   : > { %v1857_v0 = vsel %vm1852_vm4, %v1848_v58, 0  ;;  %v1903_v2 = vsel %vm1852_vm4, %v1849_v59, 0 }
 0x1dd   : > { %v4372_v3 = vpop.f32.mrf.mxu1  ;;  %v4380_v4 = vpop.f32.mrf.mxu0  ;;  %4430 = vmatpush3.bf16.xpose.msra.mxu1 %v1857_v0  ;;  %4436 = vmatpush3.bf16.xpose.msra.mxu0 %v1903_v2 }
 0x1de   : > { %4441 = vmatprep.subr.bf16.mxu1 %v4832_v1  ;;  %4447 = vmatprep.subr.bf16.mxu0 %v4832_v1 }
 0x1df   : > { %v1490_v9 = vpop.f32.mrf.mxu1  ;;  %v1547_v10 = vpop.f32.mrf.mxu0 }
 0x1e0   : > { %v1583_v11 = vadd.f32 %v4056_v5, %v1490_v9  ;;  %v1584_v13 = vadd.f32 %v4057_v6, %v1547_v10 }
 0x1e1   : > { %v4387_v14 = vpop.f32.mrf.mxu1  ;;  %v4395_v15 = vpop.f32.mrf.mxu0 }
 0x1e2   : > { %v1850_v18 = vpack.c.bf16 %v1583_v11, %v1583_v11  ;;  %v1851_v19 = vpack.c.bf16 %v1584_v13, %v1584_v13 }
 0x1e3   : > { %v1493_v22 = vpop.f32.mrf.mxu1  ;;  %v1550_v23 = vpop.f32.mrf.mxu0 }
 0x1e4   : > { %v1949_v24 = vsel %vm1852_vm4, %v1850_v18, 0  ;;  %v1995_v25 = vsel %vm1852_vm4, %v1851_v19, 0  ;;  %4432 = vmatmul.mubr.msk.bf16.vlgmr.msra.gmra.mxu1 %vm1852_vm4, %v1844_v16  ;;  %4438 = vmatmul.mubr.msk.bf16.vlgmr.msra.gmra.mxu0 %vm1852_vm4, %v1845_v17 }
 0x1e5   : > { %v4388_v26 = vpop.f32.mrf.mxu1  ;;  %v4396_v27 = vpop.f32.mrf.mxu0  ;;  %4442 = vmatpush3.bf16.xpose.msra.mxu1 %v1949_v24  ;;  %4448 = vmatpush3.bf16.xpose.msra.mxu0 %v1995_v25 }
 0x1e6   : > { %4443 = vmatprep.mubr.msk.bf16.mxu1 %vm4833_vm1, %v4832_v1  ;;  %4449 = vmatprep.mubr.msk.bf16.mxu0 %vm4833_vm1, %v4832_v1 }
 0x1e7   : > { %v1635_v32 = vpop.f32.mrf.mxu1  ;;  %v1692_v33 = vpop.f32.mrf.mxu0  ;;  %4453 = vmatprep.subr.bf16.mxu1 %v4832_v1  ;;  %4459 = vmatprep.subr.bf16.mxu0 %v4832_v1 }
 0x1e8   : > { %v1840_v34 = vadd.f32 %v4082_v28, %v1635_v32  ;;  %v1841_v35 = vadd.f32 %v4083_v29, %v1692_v33 }
 0x1e9   : > { %v4403_v36 = vpop.f32.mrf.mxu1  ;;  %v4411_v37 = vpop.f32.mrf.mxu0 }
 0x1ea   : > { %v2089_v40 = vpack.c.bf16 %v1840_v34, %v1840_v34  ;;  %v2090_v41 = vpack.c.bf16 %v1841_v35, %v1841_v35 }
 0x1eb   : > { %v1638_v42 = vpop.f32.mrf.mxu1  ;;  %v1695_v43 = vpop.f32.mrf.mxu0 }
 0x1ec   : > { %v2097_v44 = vsel %vm985_vm0, %v2089_v40, 0  ;;  %v2143_v45 = vsel %vm985_vm0, %v2090_v41, 0  ;;  %4444 = vmatmul.mubr.msk.bf16.vlgmr.msra.gmra.mxu1 %vm1852_vm4, %v1846_v38  ;;  %4450 = vmatmul.mubr.msk.bf16.vlgmr.msra.gmra.mxu0 %vm1852_vm4, %v1847_v39  ;;  %v4084_v40 = vld [vmem:[%s4895_s19 + $0x2] ss:$0 sm:$0xff]  ;;  %v4085_v43 = vld [vmem:[%s4895_s19 + $0x3] ss:$0 sm:$0xff] }
 0x1ed   : > { %v4404_v46 = vpop.f32.mrf.mxu1  ;;  %v4412_v47 = vpop.f32.mrf.mxu0  ;;  %4454 = vmatpush3.bf16.msra.mxu1 %v2097_v44  ;;  %4460 = vmatpush3.bf16.msra.mxu0 %v2143_v45 }
 0x1ee   : > { %4455 = vmatprep.mubr.msk.bf16.mxu1 %vm4833_vm1, %v4832_v1  ;;  %4465 = vmatprep.subr.bf16.mxu1 %v4832_v1 }
 0x1ef   : > { %v5160_v48 = vpop.f32.mrf.mxu1  ;;  %v5162_v49 = vpop.f32.mrf.mxu0  ;;  %4461 = vmatprep.mubr.msk.bf16.mxu0 %vm4833_vm1, %v4832_v1  ;;  %4471 = vmatprep.subr.bf16.mxu0 %v4832_v1 }
 0x1f0   : > { %v1842_v42 = vadd.f32 %v4084_v40, %v5160_v48  ;;  %v1843_v47 = vadd.f32 %v4085_v43, %v5162_v49  ;;  %v4726_v40 = vld [vmem:[%s4920_s20 + $0x10] sm:$0xff]  }
 0x1f1   : > { %v4419_v50 = vpop.f32.mrf.mxu1  ;;  %v4427_v51 = vpop.f32.mrf.mxu0 }
 0x1f2   : > { %v2091_v46 = vpack.c.bf16 %v1842_v42, %v1842_v42 }
 0x1f3   : > { %v1752_v52 = vpop.f32.mrf.mxu1  ;;  %v1809_v53 = vpop.f32.mrf.mxu0 }
 0x1f4   : > { %v2189_v53 = vsel %vm985_vm0, %v2091_v46, 0 }
 0x1f5   : > { %v4420_v54 = vpop.f32.mrf.mxu1  ;;  %v4428_v55 = vpop.f32.mrf.mxu0 }
 0x1f6   : > { %v2092_v54 = vpack.c.bf16 %v1843_v47, %v1843_v47  ;;  %v4099_v47 = vld [vmem:[%s5432_s7] ss:$0 sm:$0xff]  ;;  %s5439_s7 = sld [smem:[#allocation9_spill]] }
 0x1f8   : > { %v2235_v49 = vsel %vm985_vm0, %v2092_v54, 0 }
 0x2a4   : > { %v1893_v56 = vpop.f32.mrf.mxu1  ;;  %v1939_v57 = vpop.f32.mrf.mxu0 }
 0x2a5   : > { %v2037_v58 = vmul.f32 0.35355338, %v1893_v56  ;;  %v2038_v61 = vmul.f32 0.35355338, %v1939_v57 }
 0x2a6   : > { %v4433_v59 = vpop.f32.mrf.mxu1  ;;  %v4439_v60 = vpop.f32.mrf.mxu0 }
 0x2a7   : > { %v2041_v62 = vsel %vm1852_vm4, %v2037_v58, -inf  ;;  %v2044_v4 = vsel %vm1852_vm4, %v2038_v61, -inf }
 0x2a8   : > { %2042 = vmax.xlane.f32.xlu0 %v2041_v62  ;;  %v1896_v63 = vpop.f32.mrf.mxu1  ;;  %v1942_v0 = vpop.f32.mrf.mxu0  ;;  %v4721_v62 = vld [vmem:[%s4900_s24 + $0x8] sm:$0xff]  }
 0x2a9   : > { %v4722_v63 = vld [vmem:[%s4900_s24] sm:$0xff]  }
 0x2aa   : > { %v4434_v2 = vpop.f32.mrf.mxu1  ;;  %v4440_v3 = vpop.f32.mrf.mxu0 }
 0x2ac   : > { %v1985_v5 = vpop.f32.mrf.mxu1  ;;  %2045 = vmax.xlane.f32.xlu0 %v2044_v4  ;;  %v2031_v6 = vpop.f32.mrf.mxu0 }
 0x2ad   : > { %v2039_v7 = vmul.f32 0.35355338, %v1985_v5  ;;  %v2040_v10 = vmul.f32 0.35355338, %v2031_v6 }
 0x2ae   : > { %v4445_v8 = vpop.f32.mrf.mxu1  ;;  %v4451_v9 = vpop.f32.mrf.mxu0 }
 0x2af   : > { %v2047_v11 = vsel %vm1852_vm4, %v2039_v7, -inf  ;;  %v2050_v17 = vsel %vm1852_vm4, %v2040_v10, -inf }
 0x2b0   : > { %2048 = vmax.xlane.f32.xlu1 %v2047_v11  ;;  %v1988_v13 = vpop.f32.mrf.mxu1  ;;  %v2034_v14 = vpop.f32.mrf.mxu0 }
 0x2b2   : > { %v4446_v15 = vpop.f32.mrf.mxu1  ;;  %v4452_v16 = vpop.f32.mrf.mxu0 }
 0x2b4   : > { %2051 = vmax.xlane.f32.xlu1 %v2050_v17 }
 0x331   : > { %v2043_v18 = vpop.xlane.xlu0 %2042 }
 0x332   : > { %v2053_v19 = vsub.f32 %v2037_v58, %v2043_v18 }
 0x334   : > { %v2057_v20 = vmul.f32 1.442695, %v2053_v19 }
 0x335   : > { %v2046_v21 = vpop.xlane.xlu0 %2045 }
 0x336   : > { %4753 = vpow2.f32 %v2057_v20  ;;  %v2054_v22 = vsub.f32 %v2038_v61, %v2046_v21 }
 0x338   : > { %v2059_v23 = vmul.f32 1.442695, %v2054_v22 }
 0x339   : > { %v2049_v24 = vpop.xlane.xlu1 %2048 }
 0x33a   : > { %4755 = vpow2.f32 %v2059_v23  ;;  %v2055_v25 = vsub.f32 %v2039_v7, %v2049_v24 }
 0x33c   : > { %v2061_v26 = vmul.f32 1.442695, %v2055_v25  ;;  %v4094_v25 = vld [vmem:[%s4905_s30] ss:$0 sm:$0xff] }
 0x33d   : > { %v2052_v27 = vpop.xlane.xlu1 %2051 }
 0x33e   : > { %4757 = vpow2.f32 %v2061_v26  ;;  %v2056_v28 = vsub.f32 %v2040_v10, %v2052_v27 }
 0x340   : > { %v2063_v29 = vmul.f32 1.442695, %v2056_v28 }
 0x342   : > { %4759 = vpow2.f32 %v2063_v29 }
 0x343   : > { %v4754_v30 = vpop.eup %4753 }
 0x344   : > { %v2065_v31 = vsel %vm1852_vm4, %v4754_v30, 0.0 }
 0x345   : > { %2066 = vadd.xlane.f32.xlu0 %v2065_v31 }
 0x347   : > { %v4756_v32 = vpop.eup %4755 }
 0x348   : > { %v2068_v33 = vsel %vm1852_vm4, %v4756_v32, 0.0 }
 0x349   : > { %2069 = vadd.xlane.f32.xlu1 %v2068_v33 }
 0x34b   : > { %v4758_v34 = vpop.eup %4757 }
 0x34c   : > { %v2071_v35 = vsel %vm1852_vm4, %v4758_v34, 0.0 }
 0x34d   : > { %2072 = vadd.xlane.f32.xlu0 %v2071_v35 }
 0x34f   : > { %v4760_v36 = vpop.eup %4759 }
 0x350   : > { %v2074_v37 = vsel %vm1852_vm4, %v4760_v36, 0.0 }
 0x351   : > { %2075 = vadd.xlane.f32.xlu1 %v2074_v37 }
 0x3ce   : > { %v2067_v38 = vpop.xlane.xlu0 %2066 }
 0x3cf   : > { %4761 = vrcp.f32 %v2067_v38  ;;  %v4723_v38 = vld [vmem:[%s4920_s20 + $0x8] sm:$0xff]  }
 0x3d2   : > { %v2070_v39 = vpop.xlane.xlu1 %2069 }
 0x3d3   : > { %4763 = vrcp.f32 %v2070_v39  ;;  %v4724_v39 = vld [vmem:[%s4920_s20 + $0x18] sm:$0xff]  }
 0x3d6   : > { %v2073_v41 = vpop.xlane.xlu0 %2072 }
 0x3d7   : > { %4765 = vrcp.f32 %v2073_v41 }
 0x3da   : > { %v2076_v44 = vpop.xlane.xlu1 %2075 }
 0x3db   : > { %4767 = vrcp.f32 %v2076_v44 }
 0x3dc   : > { %v4762_v45 = vpop.eup %4761 }
 0x3dd   : > { %v2078_v50 = vmul.f32 %v4762_v45, %v4754_v30  ;;  %v4098_v45 = vld [vmem:[%s4910_s6] ss:$0 sm:$0xff] }
 0x3df   : > { %v2085_v51 = vpack.c.bf16 %v2078_v50, %v2078_v50 }
 0x3e0   : > { %v4764_v52 = vpop.eup %4763 }
 0x3e1   : > { %4456 = vmatmul.mubr.msk.bf16.vlgmr.msra.gmra.mxu1 %vm1852_vm4, %v2085_v51  ;;  %v2080_v55 = vmul.f32 %v4764_v52, %v4756_v32  ;;  %v4727_v52 = vld [vmem:[%s4920_s20 + $0x28] sm:$0xff]  }
 0x3e2   : > { %4466 = vmatpush3.bf16.msra.mxu1 %v2189_v53  ;;  %4467 = vmatprep.mubr.msk.bf16.mxu1 %vm4833_vm1, %v4832_v1  ;;  %v4728_v53 = vld [vmem:[%s4920_s20 + $0x38] sm:$0xff]  }
 0x3e3   : > { %v2086_v48 = vpack.c.bf16 %v2080_v55, %v2080_v55  ;;  %4477 = vmatprep.subr.bf16.mxu1 %v4832_v1  ;;  %v4729_v55 = vld [vmem:[%s4920_s20 + $0x20] sm:$0xff]  }
 0x3e4   : > { %v4766_v56 = vpop.eup %4765 }
 0x3e5   : > { %4462 = vmatmul.mubr.msk.bf16.vlgmr.msra.gmra.mxu0 %vm1852_vm4, %v2086_v48  ;;  %v2082_v57 = vmul.f32 %v4766_v56, %v4758_v34  ;;  %v4730_v48 = vld [vmem:[%s4920_s20 + $0x30] sm:$0xff]   ;;  %v4731_v56 = vld [vmem:[%s5433_s10 + $0x8] sm:$0xff]  }
 0x3e6   : > { %4472 = vmatpush3.bf16.msra.mxu0 %v2235_v49  ;;  %4473 = vmatprep.mubr.msk.bf16.mxu0 %vm4833_vm1, %v4832_v1  ;;  %v4732_v49 = vld [vmem:[%s5433_s10 + $0x18] sm:$0xff]  }
 0x3e7   : > { %v2087_v58 = vpack.c.bf16 %v2082_v57, %v2082_v57  ;;  %4485 = vmatprep.subr.bf16.mxu0 %v4832_v1  ;;  %v1061_v57 = vld [vmem:[%s966_s15] sm:$0xff]  ;;  %s5444_s15 = sld [smem:[#allocation15_spill]] }
 0x3e8   : > { %v4768_v59 = vpop.eup %4767 }
 0x3e9   : > { %4468 = vmatmul.mubr.msk.bf16.vlgmr.msra.gmra.mxu1 %vm1852_vm4, %v2087_v58  ;;  %v2084_v60 = vmul.f32 %v4768_v59, %v4760_v36  ;;  %v4733_v58 = vld [vmem:[%s5433_s10] sm:$0xff]   ;;  %v4734_v59 = vld [vmem:[%s5433_s10 + $0x10] sm:$0xff]  }
 0x3ea   : > { %4481 = vmatprep.mubr.msk.bf16.mxu1 %vm4833_vm1, %v4832_v1  ;;  %4478 = vmatpush3.bf16.msra.mxu1 %v4721_v62  ;;  %v4736_v62 = vld [vmem:[%s5433_s10 + $0x38] sm:$0xff]  }
 0x3eb   : > { %v2088_v61 = vpack.c.bf16 %v2084_v60, %v2084_v60  ;;  %4479 = vmatprep.subr.bf16.mxu1 %v4832_v1  ;;  %v2393_v60 = vpack.c.bf16 %v1061_v57, %v1061_v57 }
 0x3ed   : > { %4474 = vmatmul.mubr.msk.bf16.vlgmr.msra.gmra.mxu0 %vm1852_vm4, %v2088_v61  ;;  %v4735_v61 = vld [vmem:[%s5433_s10 + $0x28] sm:$0xff]  }
 0x3ee   : > { %4489 = vmatprep.mubr.msk.bf16.mxu0 %vm4833_vm1, %v4832_v1  ;;  %4480 = vmatpush3.bf16.msra.mxu1 %v4722_v63  ;;  %v4737_v63 = vld [vmem:[%s5433_s10 + $0x20] sm:$0xff]  }
 0x3ef   : > { %4493 = vmatprep.subr.bf16.mxu1 %v4832_v1  ;;  %4486 = vmatpush3.bf16.msra.mxu0 %v4723_v38  ;;  %v4125_v38 = vld [vmem:[%s5437_s23 + $0x1] ss:$0 sm:$0xff] }
 0x3f0   : > { %4487 = vmatprep.subr.bf16.mxu0 %v4832_v1 }
 0x4a1   : > { %v2133_v0 = vpop.f32.mrf.mxu1 }
 0x4a3   : > { %v4457_v2 = vpop.f32.mrf.mxu1 }
 0x4a4   : > { %v4739_v2 = vld [vmem:[%s5435_s16 + $0x8] sm:$0xff]  }
 0x4a5   : > { %v2136_v3 = vpop.f32.mrf.mxu1  ;;  %v2179_v4 = vpop.f32.mrf.mxu0 }
 0x4a6   : > { %2278 = vrot.lane.b32.xlu0 %v2179_v4, %s4834_s28  ;;  %v4740_v3 = vld [vmem:[%s5435_s16] sm:$0xff]   ;;  %v4741_v4 = vld [vmem:[%s5435_s16 + $0x18] sm:$0xff]  }
 0x4a7   : > { %v4458_v5 = vpop.f32.mrf.mxu1  ;;  %v4463_v6 = vpop.f32.mrf.mxu0 }
 0x4a8   : > { %v4742_v5 = vld [vmem:[%s5435_s16 + $0x10] sm:$0xff]   ;;  %v4743_v6 = vld [vmem:[%s5435_s16 + $0x28] sm:$0xff]  }
 0x4a9   : > { %v2182_v7 = vpop.f32.mrf.mxu0  ;;  %v2225_v8 = vpop.f32.mrf.mxu1 }
 0x4aa   : > { %2282 = vrot.lane.b32.xlu1 %v2225_v8, %s4835_s1  ;;  %v4744_v7 = vld [vmem:[%s5435_s16 + $0x20] sm:$0xff]   ;;  %v4745_v8 = vld [vmem:[%s5435_s16 + $0x38] sm:$0xff]  }
 0x4ab   : > { %v4464_v9 = vpop.f32.mrf.mxu0  ;;  %v4469_v10 = vpop.f32.mrf.mxu1 }
 0x4ac   : > { %v4746_v9 = vld [vmem:[%s5435_s16 + $0x30] sm:$0xff]  }
 0x4ad   : > { %v2228_v11 = vpop.f32.mrf.mxu1  ;;  %v2271_v13 = vpop.f32.mrf.mxu0 }
 0x4ae   : > { %2286 = vrot.lane.b32.xlu1 %v2271_v13, %s4836_s2 }
 0x4af   : > { %v4470_v14 = vpop.f32.mrf.mxu1  ;;  %v4475_v15 = vpop.f32.mrf.mxu0 }
 0x4b1   : > { %v2274_v16 = vpop.f32.mrf.mxu0 }
 0x4b3   : > { %v4476_v17 = vpop.f32.mrf.mxu0 }
 0x518   : > { %v2279_v18 = vpop.permute.xlu0 %2278 }
 0x519   : > { %v2289_v20 = vsel %vm1852_vm4, %v2133_v0, %v2279_v18  ;;  %v4738_v0 = vld [vmem:[%s5433_s10 + $0x30] sm:$0xff]  }
 0x51c   : > { %v2283_v19 = vpop.permute.xlu1 %2282 }
 0x51d   : > { %v2291_v21 = vsel %vm2290_vm5, %v2289_v20, %v2283_v19 }
 0x520   : > { %v2287_v22 = vpop.permute.xlu1 %2286 }
 0x521   : > { %v2293_v23 = vsel %vm2292_vm6, %v2291_v21, %v2287_v22 }
 0x522   : > { %v2294_v24 = vpack.c.bf16 %v2293_v23, %v2293_v23 }
 0x524   : > { %4482 = vmatmul.mubr.msk.bf16.vlgmr.msra.gmra.mxu1 %vm1079_vm3, %v2294_v24 }
 0x525   : > { %4497 = vmatprep.mubr.msk.bf16.mxu1 %vm4833_vm1, %v4832_v1  ;;  %4494 = vmatpush3.bf16.msra.mxu1 %v4724_v39 }
 0x526   : > { %4495 = vmatprep.subr.bf16.mxu1 %v4832_v1 }
 0x529   : > { %4496 = vmatpush3.bf16.msra.mxu1 %v4726_v40 }
 0x52a   : > { %4509 = vmatprep.subr.bf16.mxu1 %v4832_v1 }
 0x5e4   : > { %v2355_v26 = vpop.f32.mrf.mxu1 }
 0x5e5   : > { %v2356_v27 = vadd.f32 %v4094_v25, %v2355_v26 }
 0x5e6   : > { %v4483_v28 = vpop.f32.mrf.mxu1 }
 0x5e7   : > { %v2361_v29 = vadd.f32 %v2356_v27, %v5035_v12  ;;  %v4725_v12 = vld [vmem:[%s4920_s20] sm:$0xff]  }
 0x5e8   : > { %v2358_v30 = vpop.f32.mrf.mxu1  ;;  %4488 = vmatpush3.bf16.msra.mxu0 %v4725_v12  ;;  %v4152_v27 = vld [vmem:[%s5436_s18] ss:$0 sm:$0xff]  ;;  %v4153_v28 = vld [vmem:[%s5436_s18 + $0x1] ss:$0 sm:$0xff] }
 0x5e9   : > { %v2364_v31 = vsel %vm1079_vm3, %v2361_v29, 0.0  ;;  %4501 = vmatprep.subr.bf16.mxu0 %v4832_v1 }
 0x5ea   : > { %2365 = vadd.xlane.f32.xlu1 %v2364_v31  ;;  %v4484_v32 = vpop.f32.mrf.mxu1 }
 0x673   : > { %v2366_v33 = vpop.xlane.xlu1 %2365 }
 0x674   : > { %v2368_v34 = vmul.f32 0.03125, %v2366_v33 }
 0x676   : > { %v2369_v35 = vsub.f32 %v2361_v29, %v2368_v34 }
 0x678   : > { %v2370_v36 = vmul.f32 %v2369_v35, %v2369_v35 }
 0x67a   : > { %v2371_v37 = vsel %vm1079_vm3, %v2370_v36, 0.0 }
 0x67b   : > { %2372 = vadd.xlane.f32.xlu0 %v2371_v37  ;;  %v4124_v37 = vld [vmem:[%s5437_s23] ss:$0 sm:$0xff] }
 0x704   : > { %v2373_v41 = vpop.xlane.xlu0 %2372 }
 0x705   : > { %v2374_v42 = vmul.f32 0.03125, %v2373_v41 }
 0x707   : > { %v2375_v43 = vadd.f32 1e-05, %v2374_v42 }
 0x709   : > { %4769 = vrsqrt.f32 %v2375_v43 }
 0x716   : > { %v4770_v44 = vpop.eup %4769 }
 0x717   : > { %v2377_v46 = vmul.f32 %v4770_v44, %v2369_v35  ;;  %v4154_v44 = vld [vmem:[%s5436_s18 + $0x2] ss:$0 sm:$0xff] }
 0x719   : > { %v2384_v50 = vmul.f32 %v4098_v45, %v2377_v46  ;;  %v4155_v45 = vld [vmem:[%s5436_s18 + $0x3] ss:$0 sm:$0xff] }
 0x71b   : > { %v5222_v51 = vadd.f32 %v4099_v47, %v2384_v50 }
 0x71d   : > { %v2392_v54 = vpack.c.bf16 %v5222_v51, %v5222_v51 }
 0x71f   : > { %4490 = vmatmul.mubr.msk.bf16.vlgmr.msra.gmra.mxu0 %vm1079_vm3, %v2392_v54  ;;  %4498 = vmatmul.mubr.msk.bf16.vlgmr.msra.gmra.mxu1 %vm1079_vm3, %v2392_v54 }
 0x720   : > { %4502 = vmatpush3.bf16.msra.mxu0 %v4727_v52  ;;  %4510 = vmatpush3.bf16.msra.mxu1 %v4728_v53 }
 0x721   : > { %4503 = vmatprep.subr.bf16.mxu0 %v4832_v1  ;;  %4511 = vmatprep.subr.bf16.mxu1 %v4832_v1 }
 0x722   : > { %4505 = vmatprep.mubr.msk.bf16.mxu0 %vm4833_vm1, %v4832_v1  ;;  %4513 = vmatprep.mubr.msk.bf16.mxu1 %vm4833_vm1, %v4832_v1 }
 0x724   : > { %4504 = vmatpush3.bf16.msra.mxu0 %v4729_v55  ;;  %4512 = vmatpush3.bf16.msra.mxu1 %v4730_v48 }
 0x725   : > { %4517 = vmatprep.subr.bf16.mxu0 %v4832_v1  ;;  %4525 = vmatprep.subr.bf16.mxu1 %v4832_v1 }
 0x727   : > { %4506 = vmatmul.mubr.msk.bf16.vlgmr.msra.gmra.mxu0 %vm1079_vm3, %v2392_v54  ;;  %4514 = vmatmul.mubr.msk.bf16.vlgmr.msra.gmra.mxu1 %vm1079_vm3, %v2392_v54 }
 0x728   : > { %4518 = vmatpush3.bf16.msra.mxu0 %v4731_v56  ;;  %4526 = vmatpush3.bf16.msra.mxu1 %v4732_v49 }
 0x729   : > { %4519 = vmatprep.subr.bf16.mxu0 %v4832_v1  ;;  %4527 = vmatprep.subr.bf16.mxu1 %v4832_v1 }
 0x72a   : > { %4521 = vmatprep.mubr.msk.bf16.mxu0 %vm4833_vm1, %v4832_v1  ;;  %4529 = vmatprep.mubr.msk.bf16.mxu1 %vm4833_vm1, %v4832_v1 }
 0x72c   : > { %4520 = vmatpush3.bf16.msra.mxu0 %v4733_v58  ;;  %4528 = vmatpush3.bf16.msra.mxu1 %v4734_v59  ;;  %v4126_v59 = vld [vmem:[%s5437_s23 + $0x2] ss:$0 sm:$0xff] }
 0x72d   : > { %4533 = vmatprep.subr.bf16.mxu0 %v4832_v1  ;;  %4541 = vmatprep.subr.bf16.mxu1 %v4832_v1 }
 0x72f   : > { %4522 = vmatmul.mubr.msk.bf16.vlgmr.msra.gmra.mxu0 %vm1079_vm3, %v2393_v60  ;;  %4530 = vmatmul.mubr.msk.bf16.vlgmr.msra.gmra.mxu1 %vm1079_vm3, %v2393_v60 }
 0x730   : > { %4534 = vmatpush3.bf16.msra.mxu0 %v4735_v61  ;;  %4542 = vmatpush3.bf16.msra.mxu1 %v4736_v62 }
 0x731   : > { %4535 = vmatprep.subr.bf16.mxu0 %v4832_v1  ;;  %4543 = vmatprep.subr.bf16.mxu1 %v4832_v1 }
 0x732   : > { %4537 = vmatprep.mubr.msk.bf16.mxu0 %vm4833_vm1, %v4832_v1  ;;  %4545 = vmatprep.mubr.msk.bf16.mxu1 %vm4833_vm1, %v4832_v1 }
 0x734   : > { %4536 = vmatpush3.bf16.msra.mxu0 %v4737_v63  ;;  %4544 = vmatpush3.bf16.msra.mxu1 %v4738_v0 }
 0x735   : > { %4549 = vmatprep.subr.bf16.mxu0 %v4832_v1  ;;  %4557 = vmatprep.subr.bf16.mxu1 %v4832_v1 }
 0x737   : > { %4538 = vmatmul.mubr.msk.bf16.vlgmr.msra.gmra.mxu0 %vm1079_vm3, %v2393_v60  ;;  %4546 = vmatmul.mubr.msk.bf16.vlgmr.msra.gmra.mxu1 %vm1079_vm3, %v2393_v60 }
 0x738   : > { %4553 = vmatprep.mubr.msk.bf16.mxu0 %vm4833_vm1, %v4832_v1  ;;  %4561 = vmatprep.mubr.msk.bf16.mxu1 %vm4833_vm1, %v4832_v1 }
 0x739   : > { %4550 = vmatpush3.bf16.msra.mxu0 %v4739_v2  ;;  %4558 = vmatpush3.bf16.msra.mxu1 %v4741_v4 }
 0x73a   : > { %4551 = vmatprep.subr.bf16.mxu0 %v4832_v1  ;;  %4559 = vmatprep.subr.bf16.mxu1 %v4832_v1 }
 0x73d   : > { %4552 = vmatpush3.bf16.msra.mxu0 %v4740_v3  ;;  %4560 = vmatpush3.bf16.msra.mxu1 %v4742_v5 }
 0x73e   : > { %4565 = vmatprep.subr.bf16.mxu0 %v4832_v1  ;;  %4573 = vmatprep.subr.bf16.mxu1 %v4832_v1 }
 0x740   : > { %4554 = vmatmul.mubr.msk.bf16.vlgmr.msra.gmra.mxu0 %vm1079_vm3, %v2393_v60  ;;  %4562 = vmatmul.mubr.msk.bf16.vlgmr.msra.gmra.mxu1 %vm1079_vm3, %v2393_v60 }
 0x741   : > { %4566 = vmatpush3.bf16.msra.mxu0 %v4743_v6  ;;  %4569 = vmatprep.mubr.msk.bf16.mxu0 %vm4833_vm1, %v4832_v1 }
 0x742   : > { %4567 = vmatprep.subr.bf16.mxu0 %v4832_v1  ;;  %4574 = vmatpush3.bf16.msra.mxu1 %v4745_v8  ;;  %v4180_v8 = vld [vmem:[%s5438_s26] ss:$0 sm:$0xff] }
 0x743   : > { %4575 = vmatprep.subr.bf16.mxu1 %v4832_v1  ;;  %4577 = vmatprep.mubr.msk.bf16.mxu1 %vm4833_vm1, %v4832_v1 }
 0x745   : > { %4568 = vmatpush3.bf16.msra.mxu0 %v4744_v7 }
 0x746   : > { %4581 = vmatprep.subr.bf16.mxu0 %v4832_v1  ;;  %4576 = vmatpush3.bf16.msra.mxu1 %v4746_v9 }
 0x747   : > { %4587 = vmatprep.subr.bf16.mxu1 %v4832_v1 }
 0x748   : > { %4570 = vmatmul.mubr.msk.bf16.vlgmr.msra.gmra.mxu0 %vm1079_vm3, %v2393_v60 }
 0x749   : > { %4583 = vmatprep.mubr.msk.bf16.mxu0 %vm4833_vm1, %v4832_v1  ;;  %4578 = vmatmul.mubr.msk.bf16.vlgmr.msra.gmra.mxu1 %vm1079_vm3, %v2393_v60  ;;  %v4127_v60 = vld [vmem:[%s5437_s23 + $0x3] ss:$0 sm:$0xff] }
 0x74a   : > { %4589 = vmatprep.mubr.msk.bf16.mxu1 %vm4833_vm1, %v4832_v1 }
 0x7df   : > { %v2447_v10 = vpop.f32.mrf.mxu0  ;;  %v2504_v11 = vpop.f32.mrf.mxu1 }
 0x7e0   : > { %v2652_v46 = vadd.f32 %v4124_v37, %v2447_v10  ;;  %v2653_v47 = vadd.f32 %v4125_v38, %v2504_v11 }
 0x7e1   : > { %v4491_v13 = vpop.f32.mrf.mxu0  ;;  %v4499_v14 = vpop.f32.mrf.mxu1 }
 0x7e2   : > { %v3177_v56 = vpack.c.bf16 %v2652_v46, %v2652_v46  ;;  %v3178_v49 = vpack.c.bf16 %v2653_v47, %v2653_v47  ;;  %v4181_v13 = vld [vmem:[%s5438_s26 + $0x1] ss:$0 sm:$0xff] }
 0x7e3   : > { %v2450_v15 = vpop.f32.mrf.mxu0  ;;  %v2507_v16 = vpop.f32.mrf.mxu1 }
 0x7e5   : > { %v4492_v17 = vpop.f32.mrf.mxu0  ;;  %v4500_v18 = vpop.f32.mrf.mxu1 }
 0x7e7   : > { %v2561_v19 = vpop.f32.mrf.mxu0  ;;  %v2618_v20 = vpop.f32.mrf.mxu1 }
 0x7e8   : > { %v2654_v4 = vadd.f32 %v4126_v59, %v2561_v19  ;;  %v2655_v5 = vadd.f32 %v4127_v60, %v2618_v20 }
 0x7e9   : > { %v4507_v21 = vpop.f32.mrf.mxu0  ;;  %v4515_v22 = vpop.f32.mrf.mxu1 }
 0x7ea   : > { %v3179_v6 = vpack.c.bf16 %v2654_v4, %v2654_v4  ;;  %v3180_v7 = vpack.c.bf16 %v2655_v5, %v2655_v5 }
 0x7eb   : > { %v2564_v23 = vpop.f32.mrf.mxu0  ;;  %v2621_v24 = vpop.f32.mrf.mxu1 }
 0x7ed   : > { %v4508_v25 = vpop.f32.mrf.mxu0  ;;  %v4516_v26 = vpop.f32.mrf.mxu1 }
 0x7ef   : > { %v2709_v29 = vpop.f32.mrf.mxu0  ;;  %v2766_v30 = vpop.f32.mrf.mxu1 }
 0x7f0   : > { %v2914_v31 = vadd.f32 %v4152_v27, %v2709_v29  ;;  %v2915_v32 = vadd.f32 %v4153_v28, %v2766_v30 }
 0x7f1   : > { %v4523_v33 = vpop.f32.mrf.mxu0  ;;  %v4531_v34 = vpop.f32.mrf.mxu1 }
 0x7f2   : > { %v3181_v35 = vpack.c.bf16 %v2914_v31, %v2914_v31  ;;  %v3182_v36 = vpack.c.bf16 %v2915_v32, %v2915_v32 }
 0x7f3   : > { %v2712_v39 = vpop.f32.mrf.mxu0  ;;  %v2769_v12 = vpop.f32.mrf.mxu1 }
 0x7f4   : > { %v3189_v40 = vsel %vm1852_vm4, %v3181_v35, 0  ;;  %v3235_v41 = vsel %vm1852_vm4, %v3182_v36, 0 }
 0x7f5   : > { %v4524_v42 = vpop.f32.mrf.mxu0  ;;  %v4532_v43 = vpop.f32.mrf.mxu1  ;;  %4582 = vmatpush3.bf16.xpose.msra.mxu0 %v3189_v40  ;;  %4588 = vmatpush3.bf16.xpose.msra.mxu1 %v3235_v41 }
 0x7f6   : > { %4593 = vmatprep.subr.bf16.mxu0 %v4832_v1  ;;  %4599 = vmatprep.subr.bf16.mxu1 %v4832_v1 }
 0x7f7   : > { %v2823_v50 = vpop.f32.mrf.mxu0  ;;  %v2880_v52 = vpop.f32.mrf.mxu1 }
 0x7f8   : > { %v2916_v53 = vadd.f32 %v4154_v44, %v2823_v50  ;;  %v2917_v54 = vadd.f32 %v4155_v45, %v2880_v52 }
 0x7f9   : > { %v4539_v55 = vpop.f32.mrf.mxu0  ;;  %v4547_v48 = vpop.f32.mrf.mxu1 }
 0x7fa   : > { %v3183_v57 = vpack.c.bf16 %v2916_v53, %v2916_v53  ;;  %v3184_v58 = vpack.c.bf16 %v2917_v54, %v2917_v54 }
 0x7fb   : > { %v2826_v61 = vpop.f32.mrf.mxu0  ;;  %v2883_v62 = vpop.f32.mrf.mxu1 }
 0x7fc   : > { %v3281_v63 = vsel %vm1852_vm4, %v3183_v57, 0  ;;  %v3327_v0 = vsel %vm1852_vm4, %v3184_v58, 0  ;;  %4584 = vmatmul.mubr.msk.bf16.vlgmr.msra.gmra.mxu0 %vm1852_vm4, %v3177_v56  ;;  %4590 = vmatmul.mubr.msk.bf16.vlgmr.msra.gmra.mxu1 %vm1852_vm4, %v3178_v49 }
 0x7fd   : > { %v4540_v2 = vpop.f32.mrf.mxu0  ;;  %v4548_v3 = vpop.f32.mrf.mxu1  ;;  %4594 = vmatpush3.bf16.xpose.msra.mxu0 %v3281_v63  ;;  %4600 = vmatpush3.bf16.xpose.msra.mxu1 %v3327_v0 }
 0x7fe   : > { %4595 = vmatprep.mubr.msk.bf16.mxu0 %vm4833_vm1, %v4832_v1  ;;  %4601 = vmatprep.mubr.msk.bf16.mxu1 %vm4833_vm1, %v4832_v1 }
 0x7ff   : > { %4605 = vmatprep.subr.bf16.mxu0 %v4832_v1  ;;  %4611 = vmatprep.subr.bf16.mxu1 %v4832_v1 }
 0x800   : > { %v2968_v9 = vpop.f32.mrf.mxu0  ;;  %v3025_v16 = vpop.f32.mrf.mxu1 }
 0x801   : > { %v3173_v10 = vadd.f32 %v4180_v8, %v2968_v9  ;;  %v3174_v18 = vadd.f32 %v4181_v13, %v3025_v16 }
 0x802   : > { %v4555_v11 = vpop.f32.mrf.mxu0  ;;  %v4563_v20 = vpop.f32.mrf.mxu1 }
 0x803   : > { %v3421_v14 = vpack.c.bf16 %v3173_v10, %v3173_v10  ;;  %v3422_v21 = vpack.c.bf16 %v3174_v18, %v3174_v18 }
 0x804   : > { %4596 = vmatmul.mubr.msk.bf16.vlgmr.msra.gmra.mxu0 %vm1852_vm4, %v3179_v6  ;;  %4602 = vmatmul.mubr.msk.bf16.vlgmr.msra.gmra.mxu1 %vm1852_vm4, %v3180_v7  ;;  %v2971_v15 = vpop.f32.mrf.mxu0  ;;  %v3028_v22 = vpop.f32.mrf.mxu1 }
 0x805   : > { %4607 = vmatprep.mubr.msk.bf16.mxu0 %vm4833_vm1, %v4832_v1  ;;  %4613 = vmatprep.mubr.msk.bf16.mxu1 %vm4833_vm1, %v4832_v1  ;;  %v3429_v17 = vsel %vm985_vm0, %v3421_v14, 0  ;;  %v3475_v24 = vsel %vm985_vm0, %v3422_v21, 0  ;;  %v4183_v21 = vld [vmem:[%s5438_s26 + $0x3] ss:$0 sm:$0xff] }
 0x806   : > { %v4556_v19 = vpop.f32.mrf.mxu0  ;;  %4606 = vmatpush3.bf16.msra.mxu0 %v3429_v17  ;;  %v4564_v25 = vpop.f32.mrf.mxu1  ;;  %4612 = vmatpush3.bf16.msra.mxu1 %v3475_v24  ;;  %v4182_v17 = vld [vmem:[%s5438_s26 + $0x2] ss:$0 sm:$0xff] }
 0x807   : > { %4617 = vmatprep.subr.bf16.mxu0 %v4832_v1  ;;  %4623 = vmatprep.subr.bf16.mxu1 %v4832_v1 }
 0x808   : > { %v5336_v23 = vpop.f32.mrf.mxu0 }
 0x809   : > { %v5340_v28 = vpop.f32.mrf.mxu1  ;;  %v3175_v20 = vadd.f32 %v4182_v17, %v5336_v23 }
 0x80a   : > { %v4571_v26 = vpop.f32.mrf.mxu0  ;;  %v3176_v25 = vadd.f32 %v4183_v21, %v5340_v28 }
 0x80b   : > { %v4579_v30 = vpop.f32.mrf.mxu1  ;;  %v3423_v24 = vpack.c.bf16 %v3175_v20, %v3175_v20 }
 0x80c   : > { %v3085_v27 = vpop.f32.mrf.mxu0 }
 0x80d   : > { %v3142_v31 = vpop.f32.mrf.mxu1  ;;  %v3521_v30 = vsel %vm985_vm0, %v3423_v24, 0 }
 0x80e   : > { %v4572_v29 = vpop.f32.mrf.mxu0  ;;  %v3424_v31 = vpack.c.bf16 %v3176_v25, %v3176_v25 }
 0x80f   : > { %v4580_v32 = vpop.f32.mrf.mxu1 }
 0x810   : > { %v3567_v28 = vsel %vm985_vm0, %v3424_v31, 0 }
 0x8bc   : > { %v3225_v33 = vpop.f32.mrf.mxu0  ;;  %v3271_v34 = vpop.f32.mrf.mxu1 }
 0x8bd   : > { %v3369_v35 = vmul.f32 0.35355338, %v3225_v33  ;;  %v3370_v38 = vmul.f32 0.35355338, %v3271_v34 }
 0x8be   : > { %v4585_v36 = vpop.f32.mrf.mxu0  ;;  %v4591_v37 = vpop.f32.mrf.mxu1 }
 0x8bf   : > { %v3373_v39 = vsel %vm1852_vm4, %v3369_v35, -inf  ;;  %v3376_v43 = vsel %vm1852_vm4, %v3370_v38, -inf }
 0x8c0   : > { %v3274_v12 = vpop.f32.mrf.mxu1  ;;  %3374 = vmax.xlane.f32.xlu0 %v3373_v39  ;;  %v3228_v40 = vpop.f32.mrf.mxu0  ;;  %v4747_v39 = vld [vmem:[%s5439_s7 + $0x8] sm:$0xff]  }
 0x8c1   : > { %v4748_v12 = vld [vmem:[%s5439_s7] sm:$0xff]  }
 0x8c2   : > { %v4586_v41 = vpop.f32.mrf.mxu0  ;;  %v4592_v42 = vpop.f32.mrf.mxu1 }
 0x8c4   : > { %v3363_v44 = vpop.f32.mrf.mxu1  ;;  %3377 = vmax.xlane.f32.xlu0 %v3376_v43  ;;  %v3317_v45 = vpop.f32.mrf.mxu0 }
 0x8c5   : > { %v3372_v46 = vmul.f32 0.35355338, %v3363_v44  ;;  %v3371_v47 = vmul.f32 0.35355338, %v3317_v45 }
 0x8c6   : > { %v4597_v50 = vpop.f32.mrf.mxu0  ;;  %v4603_v52 = vpop.f32.mrf.mxu1 }
 0x8c7   : > { %v3382_v53 = vsel %vm1852_vm4, %v3372_v46, -inf  ;;  %v3379_v54 = vsel %vm1852_vm4, %v3371_v47, -inf }
 0x8c8   : > { %v3366_v55 = vpop.f32.mrf.mxu1  ;;  %3383 = vmax.xlane.f32.xlu0 %v3382_v53  ;;  %3380 = vmax.xlane.f32.xlu1 %v3379_v54  ;;  %v3320_v48 = vpop.f32.mrf.mxu0 }
 0x8ca   : > { %v4598_v56 = vpop.f32.mrf.mxu0  ;;  %v4604_v49 = vpop.f32.mrf.mxu1 }
 0x949   : > { %v3375_v57 = vpop.xlane.xlu0 %3374 }
 0x94a   : > { %v3385_v58 = vsub.f32 %v3369_v35, %v3375_v57 }
 0x94c   : > { %v3389_v59 = vmul.f32 1.442695, %v3385_v58 }
 0x94d   : > { %v3378_v60 = vpop.xlane.xlu0 %3377 }
 0x94e   : > { %4771 = vpow2.f32 %v3389_v59  ;;  %v3386_v61 = vsub.f32 %v3370_v38, %v3378_v60 }
 0x950   : > { %v3391_v62 = vmul.f32 1.442695, %v3386_v61 }
 0x951   : > { %v3384_v63 = vpop.xlane.xlu0 %3383  ;;  %v3381_v0 = vpop.xlane.xlu1 %3380 }
 0x952   : > { %4773 = vpow2.f32 %v3391_v62  ;;  %v3388_v2 = vsub.f32 %v3372_v46, %v3384_v63  ;;  %v3387_v3 = vsub.f32 %v3371_v47, %v3381_v0  ;;  %v4192_v0 = vld [vmem:[%s5440_s11] ss:$0 sm:$0xff]  ;;  %s5445_s11 = sld [smem:[#allocation14_spill]] }
 0x954   : > { %v3395_v4 = vmul.f32 1.442695, %v3388_v2  ;;  %v3393_v5 = vmul.f32 1.442695, %v3387_v3 }
 0x956   : > { %4775 = vpow2.f32 %v3395_v4 }
 0x957   : > { %4777 = vpow2.f32 %v3393_v5 }
 0x95b   : > { %v4772_v6 = vpop.eup %4771 }
 0x95c   : > { %v3397_v7 = vsel %vm1852_vm4, %v4772_v6, 0.0 }
 0x95d   : > { %3398 = vadd.xlane.f32.xlu1 %v3397_v7 }
 0x95f   : > { %v4774_v8 = vpop.eup %4773 }
 0x960   : > { %v3400_v9 = vsel %vm1852_vm4, %v4774_v8, 0.0 }
 0x961   : > { %3401 = vadd.xlane.f32.xlu0 %v3400_v9 }
 0x963   : > { %v4776_v10 = vpop.eup %4775 }
 0x964   : > { %v4778_v11 = vpop.eup %4777  ;;  %v3406_v13 = vsel %vm1852_vm4, %v4776_v10, 0.0 }
 0x965   : > { %3407 = vadd.xlane.f32.xlu0 %v3406_v13  ;;  %v3403_v14 = vsel %vm1852_vm4, %v4778_v11, 0.0 }
 0x966   : > { %3404 = vadd.xlane.f32.xlu1 %v3403_v14 }
 0x9e6   : > { %v3399_v15 = vpop.xlane.xlu1 %3398 }
 0x9e7   : > { %4779 = vrcp.f32 %v3399_v15 }
 0x9ea   : > { %v3402_v16 = vpop.xlane.xlu0 %3401 }
 0x9eb   : > { %4781 = vrcp.f32 %v3402_v16 }
 0x9ee   : > { %v3408_v18 = vpop.xlane.xlu0 %3407 }
 0x9ef   : > { %4783 = vrcp.f32 %v3408_v18  ;;  %v3405_v19 = vpop.xlane.xlu1 %3404 }
 0x9f0   : > { %4785 = vrcp.f32 %v3405_v19 }
 0x9f4   : > { %v4780_v22 = vpop.eup %4779 }
 0x9f5   : > { %v3410_v26 = vmul.f32 %v4780_v22, %v4772_v6 }
 0x9f7   : > { %v3417_v27 = vpack.c.bf16 %v3410_v26, %v3410_v26 }
 0x9f8   : > { %v4782_v29 = vpop.eup %4781 }
 0x9f9   : > { %4608 = vmatmul.mubr.msk.bf16.vlgmr.msra.gmra.mxu0 %vm1852_vm4, %v3417_v27  ;;  %v3412_v32 = vmul.f32 %v4782_v29, %v4774_v8  ;;  %v4751_v27 = vld [vmem:[%s5444_s15 + $0x8] sm:$0xff]   ;;  %v4752_v29 = vld [vmem:[%s5444_s15] sm:$0xff]  }
 0x9fa   : > { %4618 = vmatpush3.bf16.msra.mxu0 %v3521_v30  ;;  %4619 = vmatprep.mubr.msk.bf16.mxu0 %vm4833_vm1, %v4832_v1  ;;  %v4198_v30 = vld [vmem:[%s5445_s11] ss:$0 sm:$0xff] }
 0x9fb   : > { %v3418_v33 = vpack.c.bf16 %v3412_v32, %v3412_v32  ;;  %4629 = vmatprep.subr.bf16.mxu0 %v4832_v1 }
 0x9fc   : > { %v4784_v23 = vpop.eup %4783 }
 0x9fd   : > { %v4786_v34 = vpop.eup %4785  ;;  %4614 = vmatmul.mubr.msk.bf16.vlgmr.msra.gmra.mxu1 %vm1852_vm4, %v3418_v33  ;;  %v3416_v36 = vmul.f32 %v4784_v23, %v4776_v10 }
 0x9fe   : > { %4624 = vmatpush3.bf16.msra.mxu1 %v3567_v28  ;;  %v3414_v35 = vmul.f32 %v4786_v34, %v4778_v11  ;;  %4625 = vmatprep.mubr.msk.bf16.mxu1 %vm4833_vm1, %v4832_v1 }
 0x9ff   : > { %4637 = vmatprep.subr.bf16.mxu1 %v4832_v1  ;;  %v3420_v38 = vpack.c.bf16 %v3416_v36, %v3416_v36 }
 0xa00   : > { %v3419_v37 = vpack.c.bf16 %v3414_v35, %v3414_v35 }
 0xa02   : > { %4620 = vmatmul.mubr.msk.bf16.vlgmr.msra.gmra.mxu0 %vm1852_vm4, %v3419_v37 }
 0xa03   : > { %4633 = vmatprep.mubr.msk.bf16.mxu0 %vm4833_vm1, %v4832_v1  ;;  %4630 = vmatpush3.bf16.msra.mxu0 %v4747_v39 }
 0xa04   : > { %4631 = vmatprep.subr.bf16.mxu0 %v4832_v1 }
 0xa05   : > { %4626 = vmatmul.mubr.msk.bf16.vlgmr.msra.gmra.mxu1 %vm1852_vm4, %v3420_v38 }
 0xa06   : > { %4641 = vmatprep.mubr.msk.bf16.mxu1 %vm4833_vm1, %v4832_v1 }
 0xa07   : > { %4632 = vmatpush3.bf16.msra.mxu0 %v4748_v12 }
 0xa08   : > { %4645 = vmatprep.subr.bf16.mxu0 %v4832_v1 }
 0xab9   : > { %v3465_v40 = vpop.f32.mrf.mxu0 }
 0xabb   : > { %v4609_v41 = vpop.f32.mrf.mxu0 }
 0xabd   : > { %v3468_v42 = vpop.f32.mrf.mxu0  ;;  %v3511_v43 = vpop.f32.mrf.mxu1 }
 0xabe   : > { %3610 = vrot.lane.b32.xlu1 %v3511_v43, %s4834_s28  ;;  %s5441_s28 = sld [smem:[#allocation13_spill]] }
 0xabf   : > { %v4610_v44 = vpop.f32.mrf.mxu0  ;;  %v4615_v45 = vpop.f32.mrf.mxu1 }
 0xac1   : > { %v3514_v46 = vpop.f32.mrf.mxu1 }
 0xac2   : > { %v3557_v47 = vpop.f32.mrf.mxu0 }
 0xac3   : > { %3614 = vrot.lane.b32.xlu0 %v3557_v47, %s4835_s1  ;;  %v4616_v50 = vpop.f32.mrf.mxu1  ;;  %s5442_s1 = sld [smem:[#allocation11_spill]] }
 0xac4   : > { %v4621_v52 = vpop.f32.mrf.mxu0  ;;  %v4749_v15 = vld [vmem:[%s5441_s28 + $0x8] sm:$0xff]   ;;  %v4750_v16 = vld [vmem:[%s5441_s28] sm:$0xff]  }
 0xac5   : > { %v3603_v53 = vpop.f32.mrf.mxu1  ;;  %4638 = vmatpush3.bf16.msra.mxu1 %v4749_v15 }
 0xac6   : > { %v3560_v54 = vpop.f32.mrf.mxu0  ;;  %3618 = vrot.lane.b32.xlu1 %v3603_v53, %s4836_s2  ;;  %s5443_s2 = sld [smem:[#allocation12_spill]]  ;;  %4639 = vmatprep.subr.bf16.mxu1 %v4832_v1 }
 0xac7   : > { %v4627_v55 = vpop.f32.mrf.mxu1 }
 0xac8   : > { %v4622_v48 = vpop.f32.mrf.mxu0 }
 0xac9   : > { %v3606_v56 = vpop.f32.mrf.mxu1  ;;  %4640 = vmatpush3.bf16.msra.mxu1 %v4750_v16  ;;  %v4196_v20 = vld [vmem:[%s5442_s1] ss:$0 sm:$0xff]  ;;  %s970_s1 = scalar_lea.vmem %s5000_s12, %s5019_s0 }
 0xacb   : > { %v4628_v49 = vpop.f32.mrf.mxu1 }
 0xacc   : > { %v4197_v22 = vld [vmem:[%s5443_s2] ss:$0 sm:$0xff] }
 0xb30   : > { %v3611_v57 = vpop.permute.xlu1 %3610 }
 0xb31   : > { %v3621_v59 = vsel %vm1852_vm4, %v3465_v40, %v3611_v57 }
 0xb35   : > { %v3615_v58 = vpop.permute.xlu0 %3614 }
 0xb36   : > { %v3622_v60 = vsel %vm2290_vm5, %v3621_v59, %v3615_v58 }
 0xb38   : > { %v3619_v61 = vpop.permute.xlu1 %3618 }
 0xb39   : > { %v3623_v62 = vsel %vm2292_vm6, %v3622_v60, %v3619_v61  ;;  %v4206_v60 = vld [vmem:[%s4990_s4] ss:$0 sm:$0xff] }
 0xb3a   : > { %v3624_v63 = vpack.c.bf16 %v3623_v62, %v3623_v62  ;;  %v4207_v62 = vld [vmem:[%s4995_s9] ss:$0 sm:$0xff] }
 0xb3c   : > { %4634 = vmatmul.mubr.msk.bf16.vlgmr.msra.gmra.mxu0 %vm1079_vm3, %v3624_v63 }
 0xb3d   : > { %4649 = vmatprep.mubr.msk.bf16.mxu0 %vm4833_vm1, %v4832_v1  ;;  %4646 = vmatpush3.bf16.msra.mxu0 %v4751_v27 }
 0xb3e   : > { %4647 = vmatprep.subr.bf16.mxu0 %v4832_v1  ;;  %v4202_v1 = vld [vmem:[%s4985_s27] ss:$0 sm:$0xff] }
 0xb41   : > { %4648 = vmatpush3.bf16.msra.mxu0 %v4752_v29 }
 0xbfc   : > { %v3685_v2 = vpop.f32.mrf.mxu0 }
 0xbfd   : > { %v3686_v3 = vadd.f32 %v4192_v0, %v3685_v2 }
 0xbfe   : > { %v4635_v4 = vpop.f32.mrf.mxu0 }
 0xbff   : > { %v3691_v5 = vadd.f32 %v3686_v3, %v5222_v51 }
 0xc00   : > { %v3688_v6 = vpop.f32.mrf.mxu0 }
 0xc01   : > { %v3694_v7 = vsel %vm1079_vm3, %v3691_v5, 0.0 }
 0xc02   : > { %3695 = vadd.xlane.f32.xlu1 %v3694_v7  ;;  %v4636_v8 = vpop.f32.mrf.mxu0 }
 0xc8b   : > { %v3696_v9 = vpop.xlane.xlu1 %3695 }
 0xc8c   : > { %v3697_v10 = vmul.f32 0.03125, %v3696_v9 }
 0xc8e   : > { %v3698_v11 = vsub.f32 %v3691_v5, %v3697_v10 }
 0xc90   : > { %v3699_v13 = vmul.f32 %v3698_v11, %v3698_v11 }
 0xc92   : > { %v3700_v14 = vsel %vm1079_vm3, %v3699_v13, 0.0 }
 0xc93   : > { %3701 = vadd.xlane.f32.xlu0 %v3700_v14 }
 0xd1c   : > { %v3702_v51 = vpop.xlane.xlu0 %3701 }
 0xd1d   : > { %v3703_v17 = vmul.f32 0.03125, %v3702_v51 }
 0xd1f   : > { %v3704_v18 = vadd.f32 1e-05, %v3703_v17 }
 0xd21   : > { %4787 = vrsqrt.f32 %v3704_v18 }
 0xd2e   : > { %v4788_v19 = vpop.eup %4787 }
 0xd2f   : > { %v3706_v21 = vmul.f32 %v4788_v19, %v3698_v11 }
 0xd31   : > { %v3713_v24 = vmul.f32 %v4196_v20, %v3706_v21 }
 0xd33   : > { %v3720_v25 = vadd.f32 %v4197_v22, %v3713_v24 }
 0xd35   : > { %v3721_v26 = vpack.c.bf16 %v3720_v25, %v3720_v25 }
 0xd37   : > { %4642 = vmatmul.mubr.msk.bf16.vlgmr.msra.gmra.mxu1 %vm1079_vm3, %v3721_v26 }
 0xdf7   : > { %v3782_v31 = vpop.f32.mrf.mxu1 }
 0xdf8   : > { %v3783_v32 = vadd.f32 %v4198_v30, %v3782_v31 }
 0xdf9   : > { %v4643_v33 = vpop.f32.mrf.mxu1 }
 0xdfa   : > { %v3789_v23 = vmul.f32 0.044715, %v3783_v32  ;;  %v3788_v12 = vmul.f32 0.5, %v3783_v32 }
 0xdfb   : > { %v3785_v34 = vpop.f32.mrf.mxu1 }
 0xdfc   : > { %v3790_v28 = vmul.f32 %v3789_v23, %v3783_v32 }
 0xdfd   : > { %v4644_v35 = vpop.f32.mrf.mxu1 }
 0xdfe   : > { %v3791_v36 = vmul.f32 %v3790_v28, %v3783_v32 }
 0xe00   : > { %v3792_v37 = vadd.f32 %v3791_v36, %v3783_v32 }
 0xe02   : > { %v3793_v38 = vmul.f32 0.7978846, %v3792_v37 }
 0xe04   : > { %4789 = vtanh.f32 %v3793_v38 }
 0xe11   : > { %v4790_v39 = vpop.eup %4789 }
 0xe12   : > { %v3795_v40 = vadd.f32 1.0, %v4790_v39 }
 0xe14   : > { %v3796_v41 = vmul.f32 %v3795_v40, %v3788_v12 }
 0xe16   : > { %v3797_v42 = vpack.c.bf16 %v3796_v41, %v3796_v41 }
 0xe18   : > { %4650 = vmatmul.mubr.msk.bf16.vlgmr.msra.gmra.mxu0 %vm1079_vm3, %v3797_v42 }
 0xed8   : > { %v3858_v43 = vpop.f32.mrf.mxu0 }
 0xed9   : > { %v3859_v44 = vadd.f32 %v4202_v1, %v3858_v43 }
 0xeda   : > { %v4651_v45 = vpop.f32.mrf.mxu0 }
 0xedb   : > { %v3864_v46 = vadd.f32 %v3859_v44, %v3720_v25 }
 0xedc   : > { %v3861_v47 = vpop.f32.mrf.mxu0 }
 0xedd   : > { %v3867_v50 = vsel %vm1079_vm3, %v3864_v46, 0.0 }
 0xede   : > { %3868 = vadd.xlane.f32.xlu0 %v3867_v50  ;;  %v4652_v52 = vpop.f32.mrf.mxu0 }
 0xf67   : > { %v3869_v53 = vpop.xlane.xlu0 %3868 }
 0xf68   : > { %v3870_v54 = vmul.f32 0.03125, %v3869_v53 }
 0xf6a   : > { %v3871_v55 = vsub.f32 %v3864_v46, %v3870_v54 }
 0xf6c   : > { %v3872_v48 = vmul.f32 %v3871_v55, %v3871_v55 }
 0xf6e   : > { %v3873_v56 = vsel %vm1079_vm3, %v3872_v48, 0.0 }
 0xf6f   : > { %3874 = vadd.xlane.f32.xlu1 %v3873_v56 }
 0xff8   : > { %v3875_v49 = vpop.xlane.xlu1 %3874 }
 0xff9   : > { %v3876_v57 = vmul.f32 0.03125, %v3875_v49 }
 0xffb   : > { %v3877_v58 = vadd.f32 1e-05, %v3876_v57 }
 0xffd   : > { %4791 = vrsqrt.f32 %v3877_v58 }
0x100a   : > { %v4792_v59 = vpop.eup %4791 }
0x100b   : > { %v3879_v61 = vmul.f32 %v4792_v59, %v3871_v55 }
0x100d   : > { %v3886_v63 = vmul.f32 %v4206_v60, %v3879_v61 }
0x100f   : > { %v3893_v0 = vadd.f32 %v4207_v62, %v3886_v63 }
0x1011   : > { %3894 = vst.msk [vmem:[%s970_s1] sm:$0xff] %vm1079_vm3, %v3893_v0 }
0x1012 PF: > { %s73_s22 = sadd.s32 1, %s4799_s22  }
0x1013   : > { %p70_p4 = scmp.ge.s32.totalorder %s73_s22, 4  }
0x1015   :  { %72 = sbr.rel (!%p70_p4) target bundleno = 50 (0x32), region = 226 }

</bundles_post_ra>
